<compile_context>
chip_gen: v7x
topology: tpu7x:2x2x1
jax: 0.10.0
libtpu: 0.0.40
codegen_flags: <defaults>
</compile_context>

<pallas_src>
import math

import jax
import jax.numpy as jnp
from jax.experimental import pallas as pl
from jax.experimental.pallas import tpu as pltpu


def _round_up(x, m):
    return (x + m - 1) // m * m


def _full_spec(arr):
    ndim = arr.ndim
    return pl.BlockSpec(arr.shape, lambda i, _nd=ndim: (0,) * _nd)


def _make_siren_kernel(num_layers, image_height, image_width, block_n, chunk):
    """Kernel body for one output block of pixels (lanes = pixels).

    Ref order:
      w0_ref   : (dim_hidden, 2)               layer-0 weight  (omega_0 folded)
      wh_ref   : (L-1, dim_hidden, dim_hidden) hidden weights  (omega_i, z_{i-1} folded)
      b_ref    : (dim_hidden, L)               per-layer biases (omega_i folded)
      wl_ref   : (dim_out, dim_hidden)         last linear weight (z_{L-1} folded)
      bl_ref   : (dim_out, 1)                  last linear bias
      out_ref  : (dim_out, block_n)
    """
    n_chunks_inner = block_n // chunk
    inv_h = 2.0 / float(max(image_height - 1, 1))
    inv_w = 2.0 / float(max(image_width - 1, 1))
    w_f = float(image_width)

    def kernel(w0_ref, wh_ref, b_ref, wl_ref, bl_ref, out_ref):
        base = pl.program_id(0) * block_n

        # Statically-unrolled chunk loop: keeps the live activation footprint at
        # (dim_hidden, chunk) vregs while the output block stays large and the
        # store stays lane-dense.
        for c in range(n_chunks_inner):
            start = c * chunk  # static -> plain static slice on out_ref

            # --- in-kernel coordinate generation (no HBM coordinate read) ---
            lane = jax.lax.broadcasted_iota(jnp.int32, (1, chunk), 1).astype(jnp.float32)
            p = lane + (base + start).astype(jnp.float32)  # global pixel index
            # row = p // W, col = p % W via f32 divide + floor; the fixup below
            # absorbs any 1-ulp rounding of the division.
            # TODO(synk): for images beyond ~16M pixels switch p to exact int math.
            row = jnp.floor(p / w_f)
            col = p - row * w_f
            hi = (col >= w_f).astype(jnp.float32)
            row = row + hi
            col = col - w_f * hi
            lo = (col < 0.0).astype(jnp.float32)
            row = row - lo
            col = col + w_f * lo
            ycoord = row * inv_h - 1.0      # linspace(-1, 1, H)[row]
            xcoord = col * inv_w - 1.0      # linspace(-1, 1, W)[col]
            coords = jnp.concatenate([ycoord, xcoord], axis=0)   # (2, chunk)

            # --- SIREN stack: layer 0 ---
            x = jnp.sin(
                jnp.dot(w0_ref[...], coords, preferred_element_type=jnp.float32)
                + b_ref[:, 0:1]
            )
            # hidden layers (omega_i, z_{i-1} folded into W_i')
            for i in range(1, num_layers):
                x = jnp.sin(
                    jnp.dot(wh_ref[i - 1], x, preferred_element_type=jnp.float32)
                    + b_ref[:, i:i + 1]
                )
            # outermost linear (z_{L-1} folded into its columns) + tanh
            y = jnp.dot(wl_ref[...], x, preferred_element_type=jnp.float32) + bl_ref[...]
            out_ref[:, start:start + chunk] = jnp.tanh(y)

    return kernel


def modulate_siren_forward(
    latent,        # (dim_latent,)
    syn_ws,        # list of torch-layout (dim_hidden, d_in_i) sine-layer weights
    syn_bs,        # list of (dim_hidden,) sine-layer biases
    w_last,        # (dim_out, dim_hidden)
    b_last,        # (dim_out,)
    mod_ws,        # list of torch-layout (dim_hidden, d_in_i) modulator weights
    mod_bs,        # list of (dim_hidden,) modulator biases
    image_height,
    image_width,
    omegas,
    tile_n=2048,   # output block (lanes); compute iterates 512-lane chunks inside
):
    num_layers = len(syn_ws)
    dim_hidden = syn_ws[0].shape[0]
    dim_out = w_last.shape[0]
    dim_in = syn_ws[0].shape[1]
    assert dim_in == 2, "ModulateSiren uses a 2-D (y, x) coordinate grid"
    N = image_height * image_width

    # ---- modulator (tiny, plain JAX glue): per-layer z_i of size dim_hidden ----
    zs = []
    z = None
    for i in range(num_layers):
        inp = latent if i == 0 else jnp.concatenate([latent, z], axis=-1)
        z = jax.nn.relu(inp @ mod_ws[i].T + mod_bs[i])
        zs.append(z)

    # ---- fold omega_i and z_i into weights/biases (one-time, tiny matrices) ----
    #   sin(w_i*(W_i x + b_i)) * z_i  ==  D(z_i) sin((w_i W_i) x + w_i b_i)
    # and the D(z_i) scaling is pushed into the columns of the NEXT layer's weight
    # (w_last for the final layer).
    ws_eff, bs_eff = [], []
    for i in range(num_layers):
        w = syn_ws[i]
        if i > 0:
            w = w * zs[i - 1][None, :]
        ws_eff.append(omegas[i] * w)
        bs_eff.append(omegas[i] * syn_bs[i])

    w0_eff = ws_eff[0].astype(jnp.float32)                            # (dh, 2)
    if num_layers > 1:
        wh_eff = jnp.stack(ws_eff[1:], axis=0).astype(jnp.float32)    # (L-1, dh, dh)
    else:
        wh_eff = jnp.zeros((1, dim_hidden, dim_hidden), jnp.float32)  # unused dummy
    b_stack = jnp.stack(bs_eff, axis=1).astype(jnp.float32)           # (dh, L)
    wl_eff = (w_last * zs[-1][None, :]).astype(jnp.float32)           # (dim_out, dh)
    bl_eff = b_last.reshape(dim_out, 1).astype(jnp.float32)           # (dim_out, 1)

    # ---- tiling: big lane-dense output block, fixed 512-lane compute chunk ----
    chunk = 512
    block_n = _round_up(max(chunk, min(int(tile_n), 4096)), chunk)
    n_chunks_total = -(-N // chunk)
    if n_chunks_total >= 2:
        # keep >= 2 grid steps so v7x's second TensorCore gets work
        block_n = min(block_n, max(chunk, (n_chunks_total // 2) * chunk))
    n_pad = _round_up(N, block_n)

    kernel = _make_siren_kernel(num_layers, image_height, image_width, block_n, chunk)

    flops = n_pad * (
        2 * dim_hidden * dim_in
        + 2 * dim_hidden * dim_hidden * (num_layers - 1)
        + 2 * dim_out * dim_hidden
    )
    transcendentals = n_pad * (num_layers * dim_hidden + dim_out)
    bytes_accessed = 4 * int(
        dim_out * n_pad
        + w0_eff.size + wh_eff.size + b_stack.size + wl_eff.size + bl_eff.size
    )

    out = pl.pallas_call(
        kernel,
        out_shape=jax.ShapeDtypeStruct((dim_out, n_pad), jnp.float32),
        grid=(n_pad // block_n,),
        in_specs=[
            _full_spec(w0_eff),
            _full_spec(wh_eff),
            _full_spec(b_stack),
            _full_spec(wl_eff),
            _full_spec(bl_eff),
        ],
        out_specs=pl.BlockSpec((dim_out, block_n), lambda i: (0, i)),
        compiler_params=pltpu.CompilerParams(
            dimension_semantics=("parallel",)   # independent tiles -> v7x megacore
        ),
        cost_estimate=pl.CostEstimate(
            flops=int(flops),
            transcendentals=int(transcendentals),
            bytes_accessed=bytes_accessed,
        ),
    )(w0_eff, wh_eff, b_stack, wl_eff, bl_eff)

    # (dim_out, N) with pixels row-major -> NCHW (1, dim_out, H, W); identical to
    # the PyTorch view(-1,H,W,1).permute(0,3,1,2) for dim_out == 1.
    out = out[:, :N].reshape(1, dim_out, image_height, image_width)
    return out


def _reference_forward(latent, grid, syn_ws, syn_bs, w_last, b_last,
                       mod_ws, mod_bs, H, W, omegas):
    """Pure-JAX reference matching the PyTorch semantics (unfused)."""
    num_layers = len(syn_ws)
    x = grid
    z = None
    for i in range(num_layers):
        inp = latent if i == 0 else jnp.concatenate([latent, z], axis=-1)
        z = jax.nn.relu(inp @ mod_ws[i].T + mod_bs[i])
        x = jnp.sin(omegas[i] * (x @ syn_ws[i].T + syn_bs[i]))
        x = x * z
    x = x @ w_last.T + b_last
    x = jnp.tanh(x)
    x = x.reshape(1, H, W, w_last.shape[0]).transpose(0, 3, 1, 2)
    return x


if __name__ == "__main__":
    # --- config (small, consistent with the module) ---
    dim_in = 2
    dim_hidden = 32
    dim_out = 1
    dim_latent = 8
    num_layers = 3
    image_height = 32
    image_width = 32
    w0 = 1.0
    w0_initial = 30.0
    omegas = tuple(w0_initial if i == 0 else w0 for i in range(num_layers))

    key = jax.random.PRNGKey(0)

    # --- deterministic parameter init (matching PyTorch init distributions) ---
    syn_ws, syn_bs = [], []
    for i in range(num_layers):
        d_in = dim_in if i == 0 else dim_hidden
        key, kw, kb = jax.random.split(key, 3)
        if i == 0:
            w_std = 1.0 / d_in
        else:
            w_std = math.sqrt(6.0 / d_in) / w0
        w = jax.random.uniform(kw, (dim_hidden, d_in), jnp.float32, -w_std, w_std)
        b_bound = 1.0 / math.sqrt(d_in)  # default nn.Linear bias init
        b = jax.random.uniform(kb, (dim_hidden,), jnp.float32, -b_bound, b_bound)
        syn_ws.append(w)     # torch layout (out_features, in_features)
        syn_bs.append(b)

    # outermost linear, kaiming normal fan_in (relu gain sqrt(2))
    key, kw, kb = jax.random.split(key, 3)
    w_last = jax.random.normal(kw, (dim_out, dim_hidden), jnp.float32) * math.sqrt(
        2.0 / dim_hidden
    )
    b_bound = 1.0 / math.sqrt(dim_hidden)
    b_last = jax.random.uniform(kb, (dim_out,), jnp.float32, -b_bound, b_bound)

    # modulator: Linear(dim_latent or dim_hidden+dim_latent -> dim_hidden) + ReLU
    mod_ws, mod_bs = [], []
    for i in range(num_layers):
        d_in = dim_latent if i == 0 else dim_hidden + dim_latent
        key, kw, kb = jax.random.split(key, 3)
        w = jax.random.normal(kw, (dim_hidden, d_in), jnp.float32) * math.sqrt(
            2.0 / d_in
        )
        b_bound = 1.0 / math.sqrt(d_in)
        b = jax.random.uniform(kb, (dim_hidden,), jnp.float32, -b_bound, b_bound)
        mod_ws.append(w)
        mod_bs.append(b)

    # --- coordinate grid buffer (reference only; kernel generates coords) ---
    ys = jnp.linspace(-1.0, 1.0, image_height)
    xs = jnp.linspace(-1.0, 1.0, image_width)
    gy, gx = jnp.meshgrid(ys, xs, indexing="ij")
    grid = jnp.stack([gy, gx], axis=-1).reshape(-1, dim_in).astype(jnp.float32)

    # --- input latent vector ---
    key, kl = jax.random.split(key)
    latent = jax.random.normal(kl, (dim_latent,), jnp.float32)

    # --- run Pallas kernel ---
    out = modulate_siren_forward(
        latent, syn_ws, syn_bs, w_last, b_last, mod_ws, mod_bs,
        image_height, image_width, omegas, tile_n=2048,
    )
    out = jax.block_until_ready(out)

    # --- verify against pure-JAX reference ---
    ref = _reference_forward(
        latent, grid, syn_ws, syn_bs, w_last, b_last, mod_ws, mod_bs,
        image_height, image_width, omegas,
    )
    assert out.shape == (1, dim_out, image_height, image_width), out.shape
    # Folding omega / z into the weights re-associates f32 arithmetic (layer-0
    # sine arguments reach |omega0 * x @ W| ~ 50), so allow a modest tolerance
    # vs the unfused reference.
    assert jnp.allclose(out, ref, atol=1e-3, rtol=1e-3), (
        float(jnp.max(jnp.abs(out - ref)))
    )

    print("KERNEL_OK")
</pallas_src>

<mosaic_0001>
module attributes {stable_mosaic.version = 11 : i64} {
  func.func @kernel(%arg0: i32, %arg1: memref<32x2xf32, #tpu.memory_space<vmem>>, %arg2: memref<2x32x32xf32, #tpu.memory_space<vmem>>, %arg3: memref<32x3xf32, #tpu.memory_space<vmem>>, %arg4: memref<1x32xf32, #tpu.memory_space<vmem>>, %arg5: memref<1x1xf32, #tpu.memory_space<vmem>>, %arg6: memref<1x512xf32, #tpu.memory_space<vmem>>) attributes {dimension_semantics = [#tpu.dimension_semantics<parallel>], iteration_bounds = array<i64: 2>, scalar_prefetch = 0 : i64, scratch_operands = 0 : i64, tpu.core_type = #tpu.core_type<tc>, window_params = [{pipeline_mode = #tpu.pipeline_mode<synchronous>, transform_indices = @transform_0, window_bounds = array<i64: 32, 2>}, {pipeline_mode = #tpu.pipeline_mode<synchronous>, transform_indices = @transform_1, window_bounds = array<i64: 2, 32, 32>}, {pipeline_mode = #tpu.pipeline_mode<synchronous>, transform_indices = @transform_2, window_bounds = array<i64: 32, 3>}, {pipeline_mode = #tpu.pipeline_mode<synchronous>, transform_indices = @transform_3, window_bounds = array<i64: 1, 32>}, {pipeline_mode = #tpu.pipeline_mode<synchronous>, transform_indices = @transform_4, window_bounds = array<i64: 1, 1>}, {transform_indices = @transform_5, window_bounds = array<i64: 1, 512>}]} {
    %c512_i32 = arith.constant 512 : i32
    %0 = arith.muli %arg0, %c512_i32 : i32
    %1 = tpu.iota {dimensions = array<i32: 1>} : vector<1x512xi32>
    %2 = arith.sitofp %1 : vector<1x512xi32> to vector<1x512xf32>
    %c0_i32 = arith.constant 0 : i32
    %3 = arith.addi %0, %c0_i32 : i32
    %4 = arith.sitofp %3 : i32 to f32
    %5 = vector.broadcast %4 : f32 to vector<1x512xf32>
    %6 = arith.addf %2, %5 : vector<1x512xf32>
    %cst = arith.constant 3.200000e+01 : f32
    %7 = vector.broadcast %cst : f32 to vector<1x512xf32>
    %8 = arith.divf %6, %7 : vector<1x512xf32>
    %9 = math.floor %8 : vector<1x512xf32>
    %cst_0 = arith.constant 3.200000e+01 : f32
    %10 = vector.broadcast %cst_0 : f32 to vector<1x512xf32>
    %11 = arith.mulf %9, %10 : vector<1x512xf32>
    %12 = arith.subf %6, %11 : vector<1x512xf32>
    %cst_1 = arith.constant 3.200000e+01 : f32
    %13 = vector.broadcast %cst_1 : f32 to vector<1x512xf32>
    %14 = arith.cmpf oge, %12, %13 : vector<1x512xf32>
    %15 = arith.extui %14 : vector<1x512xi1> to vector<1x512xi32>
    %16 = arith.sitofp %15 : vector<1x512xi32> to vector<1x512xf32>
    %17 = arith.addf %9, %16 : vector<1x512xf32>
    %cst_2 = arith.constant 3.200000e+01 : f32
    %18 = vector.broadcast %cst_2 : f32 to vector<1x512xf32>
    %19 = arith.mulf %18, %16 : vector<1x512xf32>
    %20 = arith.subf %12, %19 : vector<1x512xf32>
    %cst_3 = arith.constant 0.000000e+00 : f32
    %21 = vector.broadcast %cst_3 : f32 to vector<1x512xf32>
    %22 = arith.cmpf olt, %20, %21 : vector<1x512xf32>
    %23 = arith.extui %22 : vector<1x512xi1> to vector<1x512xi32>
    %24 = arith.sitofp %23 : vector<1x512xi32> to vector<1x512xf32>
    %25 = arith.subf %17, %24 : vector<1x512xf32>
    %cst_4 = arith.constant 3.200000e+01 : f32
    %26 = vector.broadcast %cst_4 : f32 to vector<1x512xf32>
    %27 = arith.mulf %26, %24 : vector<1x512xf32>
    %28 = arith.addf %20, %27 : vector<1x512xf32>
    %cst_5 = arith.constant 0.0645161271 : f32
    %29 = vector.broadcast %cst_5 : f32 to vector<1x512xf32>
    %30 = arith.mulf %25, %29 : vector<1x512xf32>
    %cst_6 = arith.constant 1.000000e+00 : f32
    %31 = vector.broadcast %cst_6 : f32 to vector<1x512xf32>
    %32 = arith.subf %30, %31 : vector<1x512xf32>
    %cst_7 = arith.constant 0.0645161271 : f32
    %33 = vector.broadcast %cst_7 : f32 to vector<1x512xf32>
    %34 = arith.mulf %28, %33 : vector<1x512xf32>
    %cst_8 = arith.constant 1.000000e+00 : f32
    %35 = vector.broadcast %cst_8 : f32 to vector<1x512xf32>
    %36 = arith.subf %34, %35 : vector<1x512xf32>
    %37 = tpu.concatenate %32, %36 in 0 : vector<1x512xf32>, vector<1x512xf32> -> vector<2x512xf32>
    %c0 = arith.constant 0 : index
    %c0_9 = arith.constant 0 : index
    %38 = vector.load %arg1[%c0, %c0_9] : memref<32x2xf32, #tpu.memory_space<vmem>>, vector<32x2xf32>
    %cst_10 = arith.constant dense<0.000000e+00> : vector<32x512xf32>
    %39 = tpu.matmul %38, %37, %cst_10 {dimension_numbers = #tpu.dot_dimension_numbers<[1], [0], [0], [1], [0, 0, 1, 1], [], []>} : vector<32x2xf32>, vector<2x512xf32>, vector<32x512xf32> -> vector<32x512xf32>
    %c0_11 = arith.constant 0 : index
    %c0_12 = arith.constant 0 : index
    %40 = vector.load %arg3[%c0_11, %c0_12] : memref<32x3xf32, #tpu.memory_space<vmem>>, vector<32x1xf32>
    %41 = vector.broadcast %40 : vector<32x1xf32> to vector<32x512xf32>
    %42 = arith.addf %39, %41 : vector<32x512xf32>
    %43 = math.sin %42 : vector<32x512xf32>
    %c0_13 = arith.constant 0 : index
    %c0_14 = arith.constant 0 : index
    %c0_15 = arith.constant 0 : index
    %44 = vector.load %arg2[%c0_13, %c0_14, %c0_15] : memref<2x32x32xf32, #tpu.memory_space<vmem>>, vector<1x32x32xf32>
    %45 = vector.shape_cast %44 : vector<1x32x32xf32> to vector<32x32xf32>
    %cst_16 = arith.constant dense<0.000000e+00> : vector<32x512xf32>
    %46 = tpu.matmul %45, %43, %cst_16 {dimension_numbers = #tpu.dot_dimension_numbers<[1], [0], [0], [1], [0, 0, 1, 1], [], []>} : vector<32x32xf32>, vector<32x512xf32>, vector<32x512xf32> -> vector<32x512xf32>
    %c0_17 = arith.constant 0 : index
    %c1 = arith.constant 1 : index
    %47 = vector.load %arg3[%c0_17, %c1] : memref<32x3xf32, #tpu.memory_space<vmem>>, vector<32x1xf32>
    %48 = vector.broadcast %47 : vector<32x1xf32> to vector<32x512xf32>
    %49 = arith.addf %46, %48 : vector<32x512xf32>
    %50 = math.sin %49 : vector<32x512xf32>
    %c1_18 = arith.constant 1 : index
    %c0_19 = arith.constant 0 : index
    %c0_20 = arith.constant 0 : index
    %51 = vector.load %arg2[%c1_18, %c0_19, %c0_20] : memref<2x32x32xf32, #tpu.memory_space<vmem>>, vector<1x32x32xf32>
    %52 = vector.shape_cast %51 : vector<1x32x32xf32> to vector<32x32xf32>
    %cst_21 = arith.constant dense<0.000000e+00> : vector<32x512xf32>
    %53 = tpu.matmul %52, %50, %cst_21 {dimension_numbers = #tpu.dot_dimension_numbers<[1], [0], [0], [1], [0, 0, 1, 1], [], []>} : vector<32x32xf32>, vector<32x512xf32>, vector<32x512xf32> -> vector<32x512xf32>
    %c0_22 = arith.constant 0 : index
    %c2 = arith.constant 2 : index
    %54 = vector.load %arg3[%c0_22, %c2] : memref<32x3xf32, #tpu.memory_space<vmem>>, vector<32x1xf32>
    %55 = vector.broadcast %54 : vector<32x1xf32> to vector<32x512xf32>
    %56 = arith.addf %53, %55 : vector<32x512xf32>
    %57 = math.sin %56 : vector<32x512xf32>
    %c0_23 = arith.constant 0 : index
    %c0_24 = arith.constant 0 : index
    %58 = vector.load %arg4[%c0_23, %c0_24] : memref<1x32xf32, #tpu.memory_space<vmem>>, vector<1x32xf32>
    %cst_25 = arith.constant dense<0.000000e+00> : vector<1x512xf32>
    %59 = tpu.matmul %58, %57, %cst_25 {dimension_numbers = #tpu.dot_dimension_numbers<[1], [0], [0], [1], [0, 0, 1, 1], [], []>} : vector<1x32xf32>, vector<32x512xf32>, vector<1x512xf32> -> vector<1x512xf32>
    %c0_26 = arith.constant 0 : index
    %c0_27 = arith.constant 0 : index
    %60 = vector.load %arg5[%c0_26, %c0_27] : memref<1x1xf32, #tpu.memory_space<vmem>>, vector<1x1xf32>
    %61 = vector.broadcast %60 : vector<1x1xf32> to vector<1x512xf32>
    %62 = arith.addf %59, %61 : vector<1x512xf32>
    %63 = math.tanh %62 : vector<1x512xf32>
    %c0_28 = arith.constant 0 : index
    %c0_29 = arith.constant 0 : index
    %64 = vector.load %arg6[%c0_28, %c0_29] : memref<1x512xf32, #tpu.memory_space<vmem>>, vector<1x512xf32>
    tpu.vector_store %arg6[%c0_28, %c0_29], %63 {strides = array<i32>} : memref<1x512xf32, #tpu.memory_space<vmem>>, vector<1x512xf32>,
    return
  }
  func.func @transform_0(%arg0: i32) -> (i32, i32) {
    %c0_i32 = arith.constant 0 : i32
    %c0_i32_0 = arith.constant 0 : i32
    %c0_i32_1 = arith.constant 0 : i32
    return %c0_i32, %c0_i32_0 : i32, i32
  }
  func.func @transform_1(%arg0: i32) -> (i32, i32, i32) {
    %c0_i32 = arith.constant 0 : i32
    %c0_i32_0 = arith.constant 0 : i32
    %c0_i32_1 = arith.constant 0 : i32
    %c0_i32_2 = arith.constant 0 : i32
    return %c0_i32, %c0_i32_0, %c0_i32_1 : i32, i32, i32
  }
  func.func @transform_2(%arg0: i32) -> (i32, i32) {
    %c0_i32 = arith.constant 0 : i32
    %c0_i32_0 = arith.constant 0 : i32
    %c0_i32_1 = arith.constant 0 : i32
    return %c0_i32, %c0_i32_0 : i32, i32
  }
  func.func @transform_3(%arg0: i32) -> (i32, i32) {
    %c0_i32 = arith.constant 0 : i32
    %c0_i32_0 = arith.constant 0 : i32
    %c0_i32_1 = arith.constant 0 : i32
    return %c0_i32, %c0_i32_0 : i32, i32
  }
  func.func @transform_4(%arg0: i32) -> (i32, i32) {
    %c0_i32 = arith.constant 0 : i32
    %c0_i32_0 = arith.constant 0 : i32
    %c0_i32_1 = arith.constant 0 : i32
    return %c0_i32, %c0_i32_0 : i32, i32
  }
  func.func @transform_5(%arg0: i32) -> (i32, i32) {
    %c0_i32 = arith.constant 0 : i32
    %c0_i32_0 = arith.constant 0 : i32
    return %c0_i32, %arg0 : i32, i32
  }
}

</mosaic_0001>

<bundles_post_ra>
// kernel: tpu_custom_call.1
= control target key start
LH: loop header
LB: loop body
LE: loop exit
PB: predicated region body
PF: predicated region fallthrough
CT: control target
= control target key end

     0   :  { %s11820_s0 = inlined_call_operand.vmem [shape: f32[32,2], index: 0, kind: input, shape index: {}]   ;;  %s11821_s1 = inlined_call_operand.vmem [shape: f32[2,32,32], index: 1, kind: input, shape index: {}]   ;;  %s11822_s2 = inlined_call_operand.vmem [shape: f32[32,3], index: 2, kind: input, shape index: {}]   ;;  %s11823_s3 = inlined_call_operand.vmem [shape: f32[1,32], index: 3, kind: input, shape index: {}]   ;;  %s11824_s4 = inlined_call_operand.<no memory space> [shape: f32[1,1], index: 4, kind: input, shape index: {}]   ;;  %s11825_s5 = inlined_call_operand.hbm [shape: f32[1,1024], index: 5, kind: output, shape index: {}]  }
   0x1   :  { %v10_v0 = vstv %s11824_s4 }
   0x2   :  { %11 = vst [vmem:[#allocation2] sm:$0x1] %v10_v0 }
   0x3   :  { %12 = vsyncpa [#allocation4], 0 }
   0x4   :  { %14 = vsyncpa [#allocation4 + $0x1], 0  ;;  %s7077_s20 = smov 0   ;;  %s7079_s21 = smov 0  }
   0x5   :  { %s7081_s22 = smov 0   ;;  %s7083_s23 = smov 0  }
   0x6 LB: > { %s7098_s4 = sadd.s32 4294967295, %s7030_s23   ;;  %s6210_s24 = sadd.s32 4294967294, %s7030_s23   ;;  %s7030_s23 = sphi %s7083_s23, %s12431_s23   ;;  %s7026_s22 = sphi %s7081_s22, %s12430_s22   ;;  %s7022_s21 = sphi %s7079_s21, %s12429_s21   ;;  %s7018_s20 = sphi %s7077_s20, %s12428_s20  }
   0x7   : > { %s7102_s25 = sadd.s32 1, %s7030_s23   ;;  %s132_s26 = sadd.s32 1, %s7026_s22 }
   0x8   : > { %s129_s27 = ssub.s32 %s7030_s23, %s7102_s25  ;;  %p142_p0 = scmp.ne.s32.totalorder %s7026_s22, %s7022_s21 }
   0x9   : > { %p130_p1 = scmp.eq.s32.totalorder %s129_s27, 0  ;;  %p143_p2 = scmp.eq.s32.totalorder %s7098_s4, 1 }
   0xa   : > { %p148_p3 = scmp.ne.s32.totalorder %s7022_s21, %s7018_s20  ;;  %p149_p4 = scmp.eq.s32.totalorder %s6210_s24, 1 }
   0xb   : > { %s7113_s28 = scalar_select %p130_p1, %s7026_s22, %s132_s26  }
   0xc   : > { %p7115_p5 = por %p143_p2, %p142_p0  ;;  %p7119_p6 = por %p149_p4, %p148_p3 }
   0xd   : > { %p6212_p7 = scmp.ge.s32.totalorder %s7030_s23, 1  ;;  %p182_p8 = scmp.lt.s32.totalorder %s7030_s23, 3 }
   0xf   : > { %p183_p9 = pnand %p6212_p7, %p182_p8 }
  0x11   : > { %186 = sbr.rel (%p183_p9) target bundleno = 2182 (0x886), region = 40 }
  0x18   : > { %s6214_s6 = sshll.u32 %s7098_s4, 9  ;;  %v11826_v1 = vlaneseq  ;;  %v11829_v2 = vmov 0.0   ;;  %v312_v3 = vld [vmem:[%s11822_s2] sm:$0xff]  ;;  %v11828_v5 = vmov 0   ;;  %v314_v6 = vld [vmem:[%s11822_s2 + $0x10] sm:$0xff]  ;;  %v313_v12 = vld [vmem:[%s11822_s2 + $0x8] sm:$0xff] }
  0x19   : > { %s216_s7 = scvt.s32.f32 %s6214_s6  ;;  %426 = vmatprep.mubr.f32.mxu0 %v11829_v2  ;;  %515 = vmatprep.mubr.f32.mxu1 %v11829_v2  ;;  %v315_v13 = vld [vmem:[%s11822_s2 + $0x18] sm:$0xff]  ;;  %vm303_vm8 = vcmask 1040384   ;;  %vm349_vm9 = vcmask 1041408   ;;  %vm336_vm10 = vcmask 15360   ;;  %s6462_s9 = sshll.u32 %s7098_s4, 6 }
  0x1a   : > { %v208_v4 = vand.u32 127, %v11826_v1  ;;  %6753 = vset.pattern.permute.xlu0 %v11828_v5  ;;  %6754 = vset.pattern.permute.xlu1 %v11828_v5  ;;  %s11778_s14 = scalar_lea.hbm %s11825_s5, %s6462_s9  ;;  %s7043_s4 = smov [#allocation3]  }
  0x1b   : > { %v217_v7 = vstv %s216_s7  ;;  %318 = vperm.xlu0 %6753, %v312_v3   ;;  %328 = vperm.xlu1 %6754, %v314_v6   ;;  %s202_s7 = sand.u32 1, %s7022_s21   ;;  %s6972_s17 = sshll.u32 %s7043_s4, 4  ;;  %s6973_s17 = int_to_ptr.vmem [resolvable:$false] %s6972_s17 }
  0x1c   : > { %v209_v8 = vadd.s32 128, %v208_v4  ;;  %v211_v9 = vadd.s32 384, %v208_v4  ;;  %v212_v10 = vcvt.s32.f32 %v208_v4  ;;  %v210_v11 = vadd.s32 256, %v208_v4  ;;  %s6213_s8 = sshll.u32 %s202_s7, 2  ;;  %s6149_s15 = scalar_lea.sflag [#allocation4], %s202_s7 }
  0x1d   : > { %s204_s10 = scalar_lea.vmem [#allocation3], %s6213_s8  ;;  %s6974_s18 = scalar_lea.vmem %s6973_s17, 128 }
  0x1e   : > { %v213_v14 = vcvt.s32.f32 %v209_v8  ;;  %v215_v15 = vcvt.s32.f32 %v211_v9  ;;  %v218_v16 = vadd.f32 %v217_v7, %v212_v10  ;;  %v214_v17 = vcvt.s32.f32 %v210_v11  ;;  %s6163_s11 = sshll.u32 %s204_s10, 4  ;;  %s11780_s11 = int_to_ptr.vmem [resolvable:$true] %s6163_s11 }
  0x1f   : > { %323 = vperm.xlu0 %6753, %v313_v12   ;;  %333 = vperm.xlu1 %6754, %v315_v13   ;;  %s6968_s16 = scalar_lea.vmem %s11780_s11, 64  ;;  %p6975_p13 = scmp.lt.s32.totalorder %s11780_s11, %s6973_s17 }
  0x20   : > { %v219_v18 = vadd.f32 %v217_v7, %v213_v14  ;;  %v221_v19 = vadd.f32 %v217_v7, %v215_v15  ;;  %v223_v20 = vmul.f32 0.03125, %v218_v16  ;;  %v220_v21 = vadd.f32 %v217_v7, %v214_v17  ;;  %p6969_p10 = scmp.ne.s32.totalorder %s11780_s11, %s6968_s16  ;;  %p6976_p0 = scmp.lt.s32.totalorder %s6974_s18, %s6968_s16 }
  0x22   : > { %v224_v22 = vmul.f32 0.03125, %v219_v18  ;;  %v226_v23 = vmul.f32 0.03125, %v221_v19  ;;  %v227_v24 = vfloor.f32 %v223_v20  ;;  %v225_v25 = vmul.f32 0.03125, %v220_v21  ;;  %p6970_p11 = pnand %p6969_p10, %p7115_p5  ;;  %p6977_p1 = por %p6976_p0, %p6975_p13 }
  0x24   : > { %v228_v26 = vfloor.f32 %v224_v22  ;;  %v230_v27 = vfloor.f32 %v226_v23  ;;  %v231_v28 = vmul.f32 32.0, %v227_v24  ;;  %v229_v29 = vfloor.f32 %v225_v25  ;;  %p6971_p12 = pneg %p6970_p11 }
  0x26   : > { %v232_v30 = vmul.f32 32.0, %v228_v26  ;;  %v234_v31 = vmul.f32 32.0, %v230_v27  ;;  %v235_v32 = vsub.f32 %v218_v16, %v231_v28  ;;  %v233_v33 = vmul.f32 32.0, %v229_v29  ;;  %v309_v28 = vld [vmem:[%s11820_s0 + $0x8] sm:$0xff]  ;;  %p6978_p2 = pnand %p6977_p1, %p6971_p12 }
  0x28   : > { %v236_v34 = vsub.f32 %v219_v18, %v232_v30  ;;  %v238_v35 = vsub.f32 %v221_v19, %v234_v31  ;;  %vm239_vm0 = vcmp.ge.f32.partialorder %v235_v32, 32.0  ;;  %v237_v36 = vsub.f32 %v220_v21, %v233_v33  ;;  %v310_v30 = vld [vmem:[%s11820_s0 + $0x10] sm:$0xff]  ;;  %v311_v31 = vld [vmem:[%s11820_s0 + $0x18] sm:$0xff] }
  0x29   : > { %v6215_v37 = vsel %vm239_vm0, 1.0, %v11829_v2 }
  0x2a   : > { %vm240_vm1 = vcmp.ge.f32.partialorder %v236_v34, 32.0  ;;  %vm242_vm2 = vcmp.ge.f32.partialorder %v238_v35, 32.0  ;;  %v255_v38 = vmul.f32 32.0, %v6215_v37  ;;  %vm241_vm3 = vcmp.ge.f32.partialorder %v237_v36, 32.0 }
  0x2b   : > { %v6216_v39 = vsel %vm240_vm1, 1.0, %v11829_v2  ;;  %v6218_v40 = vsel %vm242_vm2, 1.0, %v11829_v2  ;;  %v251_v44 = vadd.f32 %v6215_v37, %v227_v24  ;;  %v6217_v46 = vsel %vm241_vm3, 1.0, %v11829_v2  ;;  %v308_v24 = vld [vmem:[%s11820_s0] sm:$0xff] }
  0x2c   : > { %v256_v41 = vmul.f32 32.0, %v6216_v39  ;;  %v258_v42 = vmul.f32 32.0, %v6218_v40  ;;  %v252_v43 = vadd.f32 %v6216_v39, %v228_v26  ;;  %v259_v45 = vsub.f32 %v235_v32, %v255_v38 }
  0x2d   : > { %v254_v48 = vadd.f32 %v6218_v40, %v230_v27  ;;  %v257_v50 = vmul.f32 32.0, %v6217_v46  ;;  %v253_v63 = vadd.f32 %v6217_v46, %v229_v29 }
  0x2e   : > { %v260_v47 = vsub.f32 %v236_v34, %v256_v41  ;;  %v262_v49 = vsub.f32 %v238_v35, %v258_v42  ;;  %vm263_vm4 = vcmp.lt.f32.partialorder %v259_v45, 0.0 }
  0x2f   : > { %v6219_v51 = vsel %vm263_vm4, 1.0, %v11829_v2  ;;  %v261_v52 = vsub.f32 %v237_v36, %v257_v50 }
  0x30   : > { %vm264_vm5 = vcmp.lt.f32.partialorder %v260_v47, 0.0  ;;  %vm266_vm6 = vcmp.lt.f32.partialorder %v262_v49, 0.0  ;;  %v275_v55 = vsub.f32 %v251_v44, %v6219_v51  ;;  %v279_v56 = vmul.f32 32.0, %v6219_v51 }
  0x31   : > { %v6220_v53 = vsel %vm264_vm5, 1.0, %v11829_v2  ;;  %v6222_v54 = vsel %vm266_vm6, 1.0, %v11829_v2  ;;  %vm265_vm7 = vcmp.lt.f32.partialorder %v261_v52, 0.0 }
  0x32   : > { %v276_v57 = vsub.f32 %v252_v43, %v6220_v53  ;;  %v280_v58 = vmul.f32 32.0, %v6220_v53  ;;  %v278_v59 = vsub.f32 %v254_v48, %v6222_v54  ;;  %v282_v60 = vmul.f32 32.0, %v6222_v54 }
  0x33   : > { %v283_v61 = vadd.f32 %v279_v56, %v259_v45  ;;  %v287_v62 = vmul.f32 0.06451613, %v275_v55  ;;  %v6221_v9 = vsel %vm265_vm7, 1.0, %v11829_v2 }
  0x34   : > { %v284_v0 = vadd.f32 %v280_v58, %v260_v47  ;;  %v288_v3 = vmul.f32 0.06451613, %v276_v57  ;;  %v286_v4 = vadd.f32 %v282_v60, %v262_v49  ;;  %v290_v6 = vmul.f32 0.06451613, %v278_v59 }
  0x35   : > { %v6223_v7 = vadd.f32 -1.0, %v287_v62  ;;  %v295_v8 = vmul.f32 0.06451613, %v283_v61  ;;  %v277_v15 = vsub.f32 %v253_v63, %v6221_v9  ;;  %v281_v16 = vmul.f32 32.0, %v6221_v9 }
  0x36   : > { %v6224_v10 = vadd.f32 -1.0, %v288_v3  ;;  %v296_v11 = vmul.f32 0.06451613, %v284_v0  ;;  %v6226_v12 = vadd.f32 -1.0, %v290_v6  ;;  %v298_v13 = vmul.f32 0.06451613, %v286_v4 }
  0x37   : > { %v6227_v14 = vadd.f32 -1.0, %v295_v8  ;;  %v285_v20 = vadd.f32 %v281_v16, %v261_v52  ;;  %v289_v21 = vmul.f32 0.06451613, %v277_v15  ;;  %v11840_v16 = vmov 2102212464  }
  0x38   : > { %v6228_v17 = vadd.f32 -1.0, %v296_v11  ;;  %v6230_v18 = vadd.f32 -1.0, %v298_v13 }
  0x39   : > { %v304_v19 = vsel %vm303_vm8, %v6223_v7, %v6227_v14  ;;  %v6225_v25 = vadd.f32 -1.0, %v289_v21  ;;  %v297_v26 = vmul.f32 0.06451613, %v285_v20  ;;  %v11846_v7 = vmov 683565275  }
  0x3a   : > { %v305_v22 = vsel %vm303_vm8, %v6224_v10, %v6228_v17  ;;  %v307_v23 = vsel %vm303_vm8, %v6226_v12, %v6230_v18  ;;  %v11844_v12 = vmov 2475754826   ;;  %v11842_v14 = vmov 2131351028  }
  0x3b   : > { %6231 = vmatprep.subr.msk.mxu0 %vm349_vm9, %v305_v22  ;;  %6237 = vmatprep.subr.msk.mxu1 %vm349_vm9, %v307_v23  ;;  %v6229_v27 = vadd.f32 -1.0, %v297_v26  ;;  %v11838_v18 = vmov 920167782  }
  0x3c   : > { %6232 = vmatpush1.msk.msra.mxu0 %vm349_vm9, %v304_v19 }
  0x3d   : > { %6233 = vmatmul.mubr.msk.f32.vlgmr.msra.gmra.mrb[0].mxu0 %vm336_vm10, %v308_v24  ;;  %v306_v29 = vsel %vm303_vm8, %v6225_v25, %v6229_v27  ;;  %v11833_v25 = vmov 1326507024  }
  0x3e   : > { %432 = vmatprep.mubr.f32.mxu0 %v11829_v2  ;;  %6238 = vmatpush1.msk.msra.mxu1 %vm349_vm9, %v306_v29 }
  0x3f   : > { %6239 = vmatmul.mubr.msk.f32.vlgmr.msra.gmra.mrb[0].mxu1 %vm336_vm10, %v308_v24 }
  0x40   : > { %521 = vmatprep.mubr.f32.mxu1 %v11829_v2 }
  0x41   : > { %6234 = vmatmul.mubr.msk.f32.gmra.mrb[2].mxu0 %vm336_vm10, %v309_v28 }
  0x42   : > { %438 = vmatprep.mubr.f32.mxu0 %v11829_v2 }
  0x43   : > { %6240 = vmatmul.mubr.msk.f32.gmra.mrb[2].mxu1 %vm336_vm10, %v309_v28 }
  0x44   : > { %527 = vmatprep.mubr.f32.mxu1 %v11829_v2 }
  0x45   : > { %6235 = vmatmul.mubr.msk.f32.gmra.mrb[4].mxu0 %vm336_vm10, %v310_v30 }
  0x46   : > { %444 = vmatprep.mubr.f32.mxu0 %v11829_v2 }
  0x47   : > { %6241 = vmatmul.mubr.msk.f32.gmra.mrb[4].mxu1 %vm336_vm10, %v310_v30 }
  0x48   : > { %533 = vmatprep.mubr.f32.mxu1 %v11829_v2 }
  0x49   : > { %6236 = vmatmul.mubr.msk.f32.gmra.mrb[6].mxu0 %vm336_vm10, %v311_v31 }
  0x4a   : > { %2301 = vmatprep.mubr.f32.mxu0 %v11829_v2 }
  0x4b   : > { %6242 = vmatmul.mubr.msk.f32.gmra.mrb[6].mxu1 %vm336_vm10, %v311_v31 }
  0x4c   : > { %2390 = vmatprep.mubr.f32.mxu1 %v11829_v2 }
  0x9a   : > { %v7187_v32 = vpop.permute.xlu0 %318 }
 0x110   : > { %v428_v33 = vpop.f32.mrb[0].mxu0 }
 0x111   : > { %v7190_v34 = vadd.f32 %v428_v33, %v7187_v32  ;;  %v430_v35 = vpop.f32.mrb[1].mxu0 }
 0x112   : > { %v7193_v36 = vadd.f32 %v430_v35, %v7187_v32  ;;  %v517_v39 = vpop.f32.mrb[0].mxu1 }
 0x113   : > { %12001 = vst [vmem:[#allocation6_spill] sm:$0xff] %v7190_v34  ;;  %v540_v37 = vand.u32 2147483647, %v7190_v34  ;;  %v543_v38 = vand.u32 2139095040, %v7190_v34  ;;  %v7201_v43 = vadd.f32 %v517_v39, %v7187_v32  ;;  %v7203_v44 = vpop.f32.mrb[1].mxu1 }
 0x114   : > { %v647_v40 = vand.u32 2139095040, %v7193_v36  ;;  %v7198_v41 = vpop.f32.mrb[2].mxu0  ;;  %v644_v54 = vand.u32 2147483647, %v7193_v36 }
 0x115   : > { %v544_v42 = vshrl.u32 %v543_v38, 23  ;;  %12002 = vst [vmem:[#allocation7_spill] sm:$0xff] %v7201_v43  ;;  %v547_v45 = vand.u32 8388607, %v540_v37  ;;  %v7207_v47 = vpop.f32.mrb[3].mxu0  ;;  %v751_v50 = vand.u32 2139095040, %v7201_v43 }
 0x116   : > { %v648_v46 = vshrl.u32 %v647_v40, 23  ;;  %v748_v49 = vand.u32 2147483647, %v7201_v43  ;;  %v7211_v52 = vpop.f32.mrb[2].mxu1  ;;  %v7225_v4 = vand.u32 8388607, %v644_v54 }
 0x117   : > { %v6243_v48 = vadd.s32 4294967169, %v544_v42  ;;  %v548_v55 = vor.u32 8388608, %v547_v45  ;;  %v752_v56 = vshrl.u32 %v751_v50, 23  ;;  %v7218_v59 = vpop.f32.mrb[3].mxu1 }
 0x118   : > { %v6247_v51 = vadd.s32 4294967169, %v648_v46  ;;  %v7216_v57 = vand.u32 8388607, %v748_v49  ;;  %v7230_v11 = vpop.f32.mrb[4].mxu0 }
 0x119   : > { %v550_v53 = vadd.s32 1, %v6243_v48  ;;  %v6251_v61 = vadd.s32 4294967169, %v752_v56  ;;  %v7220_v0 = vshll.u32 %v548_v55, 8 }
 0x11a   : > { %v654_v58 = vadd.s32 1, %v6247_v51  ;;  %v756_v3 = vor.u32 8388608, %v7216_v57 }
 0x11b   : > { %vm551_vm11 = vcmp.gt.s32.totalorder %v550_v53, 0  ;;  %v758_v9 = vadd.s32 1, %v6251_v61 }
 0x11c   : > { %v552_v60 = vsel %vm551_vm11, %v550_v53, 0  ;;  %vm655_vm12 = vcmp.gt.s32.totalorder %v654_v58, 0 }
 0x11d   : > { %v553_v62 = vshrl.u32 %v552_v60, 5  ;;  %v554_v63 = vand.u32 31, %v552_v60  ;;  %v7228_v10 = vsel %vm655_vm12, %v654_v58, 0  ;;  %vm759_vm15 = vcmp.gt.s32.totalorder %v758_v9, 0 }
 0x11e   : > { %v760_v33 = vsel %vm759_vm15, %v758_v9, 0  ;;  %v7247_v48 = vand.u32 31, %v7228_v10  ;;  %v7253_v58 = vadd.f32 %v7203_v44, %v7187_v32  ;;  %v7264_v9 = vshll.u32 %v756_v3, 8 }
 0x11f   : > { %v555_v6 = vsub.s32 32, %v554_v63  ;;  %v557_v8 = vshll.u32 %v11846_v7, %v554_v63  ;;  %v560_v13 = vshll.u32 %v11844_v12, %v554_v63  ;;  %v563_v15 = vshll.u32 %v11842_v14, %v554_v63 }
 0x120   : > { %v566_v17 = vshll.u32 %v11840_v16, %v554_v63  ;;  %v569_v19 = vshll.u32 %v11838_v18, %v554_v63  ;;  %vm572_vm13 = vcmp.lt.s32.totalorder %v553_v62, 1  ;;  %vm574_vm14 = vcmp.lt.s32.totalorder %v553_v62, 3 }
 0x121   : > { %v558_v20 = vshrl.u32 %v11844_v12, %v555_v6  ;;  %v561_v21 = vshrl.u32 %v11842_v14, %v555_v6  ;;  %v564_v22 = vshrl.u32 %v11840_v16, %v555_v6  ;;  %v556_v23 = vshrl.u32 %v11846_v7, %v555_v6 }
 0x122   : > { %v567_v24 = vshrl.u32 %v11838_v18, %v555_v6  ;;  %v570_v26 = vshrl.u32 %v11833_v25, %v555_v6  ;;  %vm575_vm0 = vcmp.lt.s32.totalorder %v553_v62, 4  ;;  %vm573_vm1 = vcmp.lt.s32.totalorder %v553_v62, 2 }
 0x123   : > { %v559_v27 = vor.u32 %v558_v20, %v557_v8  ;;  %v562_v28 = vor.u32 %v561_v21, %v560_v13  ;;  %v565_v29 = vor.u32 %v564_v22, %v563_v15  ;;  %v762_v53 = vand.u32 31, %v760_v33 }
 0x124   : > { %v568_v30 = vor.u32 %v567_v24, %v566_v17  ;;  %v571_v31 = vor.u32 %v570_v26, %v569_v19  ;;  %v761_v8 = vshrl.u32 %v760_v33, 5  ;;  %v7267_v13 = vsub.s32 32, %v7247_v48 }
 0x125   : > { %v576_v35 = vsel %vm572_vm13, %v556_v23, %v559_v27  ;;  %v577_v38 = vsel %vm575_vm0, %v565_v29, 2102212464  ;;  %v580_v39 = vsel %vm572_vm13, %v559_v27, %v562_v28  ;;  %v584_v40 = vsel %vm572_vm13, %v562_v28, %v565_v29 }
 0x126   : > { %v578_v42 = vsel %vm574_vm14, %v562_v28, %v577_v38  ;;  %v581_v45 = vsel %vm575_vm0, %v568_v30, 920167782  ;;  %v585_v46 = vsel %vm575_vm0, %v571_v31, 1326507024  ;;  %v763_v62 = vsub.s32 32, %v762_v53 }
 0x127   : > { %v582_v50 = vsel %vm574_vm14, %v565_v29, %v581_v45  ;;  %v586_v51 = vsel %vm574_vm14, %v568_v30, %v585_v46  ;;  %v579_v55 = vsel %vm573_vm1, %v576_v35, %v578_v42  ;;  %v765_v32 = vshll.u32 %v11846_v7, %v762_v53 }
 0x128   : > { %v583_v56 = vsel %vm573_vm1, %v580_v39, %v582_v50  ;;  %v587_v57 = vsel %vm573_vm1, %v584_v40, %v586_v51  ;;  %v595_v15 = vmul.u32 %v7220_v0, %v579_v55  ;;  %v768_v44 = vshll.u32 %v11844_v12, %v762_v53 }
 0x129   : > { %v7256_v60 = vmul.u32.u64.low %v7220_v0, %v587_v57  ;;  %v7257_v61 = vmul.u32.u64.high %v7220_v0, %v587_v57, %v7256_v60  ;;  %v7260_v63 = vmul.u32.u64.low %v7220_v0, %v583_v56  ;;  %v7261_v6 = vmul.u32.u64.high %v7220_v0, %v583_v56, %v7260_v63 }
 0x12a   : > { %v771_v17 = vshll.u32 %v11842_v14, %v762_v53  ;;  %v766_v19 = vshrl.u32 %v11844_v12, %v763_v62  ;;  %v769_v20 = vshrl.u32 %v11842_v14, %v763_v62  ;;  %v772_v21 = vshrl.u32 %v11840_v16, %v763_v62 }
 0x12b   : > { %v774_v3 = vshll.u32 %v11840_v16, %v762_v53  ;;  %vm597_vm2 = vc.u32 %v7257_v61, %v7260_v63  ;;  %v598_v22 = vadd.s32 1, %v7261_v6  ;;  %v775_v0 = vshrl.u32 %v11838_v18, %v763_v62 }
 0x12c   : > { %v777_v23 = vshll.u32 %v11838_v18, %v762_v53  ;;  %v767_v24 = vor.u32 %v766_v19, %v765_v32  ;;  %v770_v26 = vor.u32 %v769_v20, %v768_v44  ;;  %v773_v27 = vor.u32 %v772_v21, %v771_v17 }
 0x12d   : > { %v778_v28 = vshrl.u32 %v11833_v25, %v763_v62  ;;  %v599_v29 = vsel %vm597_vm2, %v598_v22, %v7261_v6  ;;  %v776_v30 = vor.u32 %v775_v0, %v774_v3  ;;  %vm780_vm3 = vcmp.lt.s32.totalorder %v761_v8, 1 }
 0x12e   : > { %vm783_vm4 = vcmp.lt.s32.totalorder %v761_v8, 4  ;;  %v600_v31 = vadd.s32 %v599_v29, %v595_v15  ;;  %vm782_vm5 = vcmp.lt.s32.totalorder %v761_v8, 3  ;;  %v764_v38 = vshrl.u32 %v11846_v7, %v763_v62  ;;  %v7292_v62 = vpop.f32.mrb[4].mxu1 }
 0x12f   : > { %v779_v33 = vor.u32 %v778_v28, %v777_v23  ;;  %v785_v35 = vsel %vm783_vm4, %v773_v27, 2102212464  ;;  %v788_v39 = vsel %vm780_vm3, %v767_v24, %v770_v26  ;;  %v789_v40 = vsel %vm783_vm4, %v776_v30, 920167782 }
 0x130   : > { %v792_v42 = vsel %vm780_vm3, %v770_v26, %v773_v27  ;;  %v601_v45 = vadd.s32 536870912, %v600_v31  ;;  %vm781_vm6 = vcmp.lt.s32.totalorder %v761_v8, 2  ;;  %v790_v46 = vsel %vm782_vm5, %v773_v27, %v789_v40 }
 0x131   : > { %v793_v50 = vsel %vm783_vm4, %v779_v33, 1326507024  ;;  %v784_v51 = vsel %vm780_vm3, %v764_v38, %v767_v24  ;;  %v786_v53 = vsel %vm782_vm5, %v770_v26, %v785_v35  ;;  %v791_v55 = vsel %vm781_vm6, %v788_v39, %v790_v46 }
 0x132   : > { %v794_v56 = vsel %vm782_vm5, %v776_v30, %v793_v50  ;;  %v7285_v57 = vshrl.u32 %v601_v45, 30  ;;  %v7288_v6 = vmul.u32.u64.low %v7264_v9, %v791_v55  ;;  %v7289_v15 = vmul.u32.u64.high %v7264_v9, %v791_v55, %v7288_v6 }
 0x133   : > { %v795_v60 = vsel %vm781_vm6, %v792_v42, %v794_v56  ;;  %v652_v8 = vor.u32 8388608, %v7225_v4  ;;  %v662_v17 = vshrl.u32 %v11844_v12, %v7267_v13  ;;  %v787_v20 = vsel %vm781_vm6, %v784_v51, %v786_v53 }
 0x134   : > { %v7295_v32 = vmul.u32.u64.low %v7264_v9, %v795_v60  ;;  %v7296_v44 = vmul.u32.u64.high %v7264_v9, %v795_v60, %v7295_v32  ;;  %v603_v19 = vshll.u32 %v7285_v57, 30  ;;  %v665_v21 = vshrl.u32 %v11842_v14, %v7267_v13 }
 0x135   : > { %v855_v3 = vand.u32 2139095040, %v7253_v58  ;;  %v657_v22 = vshrl.u32 %v7228_v10, 5  ;;  %v661_v0 = vshll.u32 %v11846_v7, %v7247_v48  ;;  %v668_v23 = vshrl.u32 %v11840_v16, %v7267_v13 }
 0x136   : > { %v671_v4 = vshrl.u32 %v11838_v18, %v7267_v13  ;;  %v7312_v24 = vsub.s32 %v600_v31, %v603_v19  ;;  %v806_v26 = vadd.s32 1, %v7289_v15  ;;  %v664_v27 = vshll.u32 %v11844_v12, %v7247_v48 }
 0x137   : > { %v670_v28 = vshll.u32 %v11840_v16, %v7247_v48  ;;  %v803_v10 = vmul.u32 %v7264_v9, %v787_v20  ;;  %vm805_vm7 = vc.u32 %v7296_v44, %v7288_v6  ;;  %v663_v29 = vor.u32 %v662_v17, %v661_v0 }
 0x138   : > { %v667_v30 = vshll.u32 %v11842_v14, %v7247_v48  ;;  %v606_v31 = vsub.s32 0, %v7312_v24  ;;  %v807_v33 = vsel %vm805_vm7, %v806_v26, %v7289_v15  ;;  %v666_v35 = vor.u32 %v665_v21, %v664_v27 }
 0x139   : > { %v672_v38 = vor.u32 %v671_v4, %v670_v28  ;;  %v808_v39 = vadd.s32 %v807_v33, %v803_v10  ;;  %v673_v42 = vshll.u32 %v11838_v18, %v7247_v48  ;;  %v674_v9 = vshrl.u32 %v11833_v25, %v7267_v13 }
 0x13a   : > { %v669_v40 = vor.u32 %v668_v23, %v667_v30  ;;  %v6244_v45 = vmin.u32 %v606_v31, %v7312_v24  ;;  %v692_v46 = vshll.u32 %v652_v8, 8  ;;  %v856_v50 = vshrl.u32 %v855_v3, 23 }
 0x13b   : > { %v809_v51 = vadd.s32 536870912, %v808_v39  ;;  %v675_v53 = vor.u32 %v674_v9, %v673_v42  ;;  %vm676_vm8 = vcmp.lt.s32.totalorder %v657_v22, 1  ;;  %vm679_vm9 = vcmp.lt.s32.totalorder %v657_v22, 4 }
 0x13c   : > { %v608_v55 = vclz %v6244_v45  ;;  %vm678_vm10 = vcmp.lt.s32.totalorder %v657_v22, 3  ;;  %v684_v56 = vsel %vm676_vm8, %v663_v29, %v666_v35  ;;  %v685_v60 = vsel %vm679_vm9, %v672_v38, 920167782 }
 0x13d   : > { %v7332_v15 = vshrl.u32 %v809_v51, 30  ;;  %vm677_vm11 = vcmp.lt.s32.totalorder %v657_v22, 2  ;;  %v686_v48 = vsel %vm678_vm10, %v669_v40, %v685_v60  ;;  %v688_v32 = vsel %vm676_vm8, %v666_v35, %v669_v40 }
 0x13e   : > { %v6245_v17 = vadd.s32 4294967294, %v608_v55  ;;  %v681_v19 = vsel %vm679_vm9, %v669_v40, 2102212464  ;;  %v687_v8 = vsel %vm677_vm11, %v684_v56, %v686_v48  ;;  %v689_v20 = vsel %vm679_vm9, %v675_v53, 1326507024 }
 0x13f   : > { %v811_v21 = vshll.u32 %v7332_v15, 30  ;;  %v660_v3 = vshrl.u32 %v11846_v7, %v7267_v13  ;;  %v690_v0 = vsel %vm678_vm10, %v672_v38, %v689_v20  ;;  %v6255_v23 = vadd.s32 4294967169, %v856_v50  ;;  %v7367_v20 = vpop.permute.xlu0 %323 }
 0x140   : > { %vm6246_vm12 = vcmp.lt.s32.totalorder %v6245_v17, 0  ;;  %v691_v4 = vsel %vm677_vm11, %v688_v32, %v690_v0  ;;  %v7342_v26 = vmul.u32.u64.low %v692_v46, %v687_v8  ;;  %v7343_v27 = vmul.u32.u64.high %v692_v46, %v687_v8, %v7342_v26 }
 0x141   : > { %v7346_v28 = vsub.s32 %v808_v39, %v811_v21  ;;  %v680_v10 = vsel %vm676_vm8, %v660_v3, %v663_v29  ;;  %v682_v30 = vsel %vm678_vm10, %v666_v35, %v681_v19  ;;  %v611_v31 = vsel %vm6246_vm12, 0, %v6245_v17  ;;  %v7358_v29 = vpop.f32.mrb[5].mxu0 }
 0x142   : > { %v7351_v13 = vmul.u32.u64.low %v692_v46, %v691_v4  ;;  %v7352_v40 = vmul.u32.u64.high %v692_v46, %v691_v4, %v7351_v13  ;;  %v683_v38 = vsel %vm677_vm11, %v680_v10, %v682_v30  ;;  %v702_v42 = vadd.s32 1, %v7343_v27 }
 0x143   : > { %v814_v33 = vsub.s32 0, %v7346_v28  ;;  %v11835_v9 = vand.u32 2147483647, %v7253_v58  ;;  %v862_v45 = vadd.s32 1, %v6255_v23  ;;  %v616_v50 = vsub.s32 4294967266, %v611_v31 }
 0x144   : > { %v612_v51 = vsub.s32 32, %v611_v31  ;;  %v699_v53 = vmul.u32 %v692_v46, %v683_v38  ;;  %vm701_vm14 = vc.u32 %v7352_v40, %v7342_v26  ;;  %v596_v22 = vadd.s32 %v7260_v63, %v7257_v61 }
 0x145   : > { %v6252_v39 = vmin.u32 %v814_v33, %v7346_v28  ;;  %vm863_vm13 = vcmp.gt.s32.totalorder %v862_v45, 0  ;;  %v703_v56 = vsel %vm701_vm14, %v702_v42, %v7343_v27  ;;  %v859_v60 = vand.u32 8388607, %v11835_v9 }
 0x146   : > { %v864_v55 = vsel %vm863_vm13, %v862_v45, 0  ;;  %v617_v48 = vadd.s32 127, %v616_v50  ;;  %v704_v17 = vadd.s32 %v703_v56, %v699_v53  ;;  %v614_v8 = vshrl.u32 %v596_v22, %v612_v51 }
 0x147   : > { %v816_v35 = vclz %v6252_v39  ;;  %v866_v19 = vand.u32 31, %v864_v55  ;;  %v613_v3 = vshll.u32 %v7312_v24, %v611_v31  ;;  %v626_v0 = vsub.s32 4, %v7285_v57 }
 0x148   : > { %v705_v46 = vadd.s32 536870912, %v704_v17  ;;  %v860_v61 = vor.u32 8388608, %v859_v60  ;;  %v618_v63 = vshll.u32 %v617_v48, 23  ;;  %v7377_v27 = vadd.f32 %v7198_v41, %v7367_v20 }
 0x149   : > { %v6253_v32 = vadd.s32 4294967294, %v816_v35  ;;  %v867_v21 = vsub.s32 32, %v866_v19  ;;  %v615_v10 = vor.u32 %v614_v8, %v613_v3  ;;  %v865_v30 = vshrl.u32 %v864_v55, 5 }
 0x14a   : > { %v7373_v4 = vshrl.u32 %v705_v46, 30  ;;  %12003 = vst [vmem:[#allocation8_spill] sm:$0xff] %v7377_v27  ;;  %v869_v31 = vshll.u32 %v11846_v7, %v866_v19  ;;  %v872_v38 = vshll.u32 %v11844_v12, %v866_v19  ;;  %v804_v45 = vadd.s32 %v7288_v6, %v7296_v44 }
 0x14b   : > { %vm6254_vm15 = vcmp.lt.s32.totalorder %v6253_v32, 0  ;;  %v870_v33 = vshrl.u32 %v11844_v12, %v867_v21  ;;  %v873_v13 = vshrl.u32 %v11842_v14, %v867_v21  ;;  %v876_v42 = vshrl.u32 %v11840_v16, %v867_v21 }
 0x14c   : > { %v7371_v23 = vsel %vm6254_vm15, 0, %v6253_v32  ;;  %v707_v24 = vshll.u32 %v7373_v4, 30  ;;  %v875_v50 = vshll.u32 %v11842_v14, %v866_v19  ;;  %v7389_v39 = vshll.u32 %v860_v61, 8 }
 0x14d   : > { %v824_v41 = vsub.s32 4294967266, %v7371_v23  ;;  %v619_v51 = vor.u32 4788187, %v618_v63  ;;  %v871_v53 = vor.u32 %v870_v33, %v869_v31  ;;  %v874_v55 = vor.u32 %v873_v13, %v872_v38 }
 0x14e   : > { %v7391_v35 = vsub.s32 %v704_v17, %v707_v24  ;;  %v622_v22 = vcvt.s32.f32 %v615_v10  ;;  %v877_v56 = vor.u32 %v876_v42, %v875_v50  ;;  %v878_v60 = vshll.u32 %v11840_v16, %v866_v19  ;;  %v7528_v24 = vpop.f32.mrb[6].mxu0 }
 0x14f   : > { %v879_v48 = vshrl.u32 %v11838_v18, %v867_v21  ;;  %vm884_vm0 = vcmp.lt.s32.totalorder %v865_v30, 1  ;;  %vm885_vm1 = vcmp.lt.s32.totalorder %v865_v30, 2  ;;  %v11836_v6 = vand.u32 2147483647, %v7377_v27 }
 0x150   : > { %v710_v32 = vsub.s32 0, %v7391_v35  ;;  %vm542_vm2 = vcmp.lt.s32.totalorder %v7190_v34, 0  ;;  %v825_v44 = vadd.s32 127, %v824_v41  ;;  %v881_v17 = vshll.u32 %v11838_v18, %v866_v19 }
 0x151   : > { %v880_v8 = vor.u32 %v879_v48, %v878_v60  ;;  %v882_v46 = vshrl.u32 %v11833_v25, %v867_v21  ;;  %vm886_vm3 = vcmp.lt.s32.totalorder %v865_v30, 3  ;;  %vm887_vm4 = vcmp.lt.s32.totalorder %v865_v30, 4 }
 0x152   : > { %v6248_v3 = vmin.u32 %v710_v32, %v7391_v35  ;;  %v892_v61 = vsel %vm884_vm0, %v871_v53, %v874_v55  ;;  %v820_v63 = vsub.s32 32, %v7371_v23  ;;  %v889_v33 = vsel %vm887_vm4, %v877_v56, 2102212464 }
 0x153   : > { %v883_v10 = vor.u32 %v882_v46, %v881_v17  ;;  %v893_v13 = vsel %vm887_vm4, %v880_v8, 920167782  ;;  %vm7405_vm5 = vcmp.le.f32.partialorder %v540_v37, 0.7853982  ;;  %v868_v31 = vshrl.u32 %v11846_v7, %v867_v21 }
 0x154   : > { %v712_v19 = vclz %v6248_v3  ;;  %v894_v38 = vsel %vm886_vm3, %v877_v56, %v893_v13  ;;  %v896_v42 = vsel %vm884_vm0, %v874_v55, %v877_v56  ;;  %v620_v41 = vand.u32 2147483647, %v619_v51 }
 0x155   : > { %vm750_vm6 = vcmp.lt.s32.totalorder %v7201_v43, 0  ;;  %v826_v50 = vshll.u32 %v825_v44, 23  ;;  %v895_v60 = vsel %vm885_vm1, %v892_v61, %v894_v38  ;;  %v897_v48 = vsel %vm887_vm4, %v883_v10, 1326507024 }
 0x156   : > { %v6249_v32 = vadd.s32 4294967294, %v712_v19  ;;  %v888_v37 = vsel %vm884_vm0, %v868_v31, %v871_v53  ;;  %v890_v17 = vsel %vm886_vm3, %v874_v55, %v889_v33  ;;  %v898_v46 = vsel %vm886_vm3, %v880_v8, %v897_v48 }
 0x157   : > { %v899_v21 = vsel %vm885_vm1, %v896_v42, %v898_v46  ;;  %v7419_v3 = vmul.u32.u64.low %v7389_v39, %v895_v60  ;;  %v7420_v13 = vmul.u32.u64.high %v7389_v39, %v895_v60, %v7419_v3  ;;  %v959_v51 = vand.u32 2139095040, %v7377_v27  ;;  %v7455_v60 = vpop.f32.mrb[5].mxu1 }
 0x158   : > { %v822_v56 = vshrl.u32 %v804_v45, %v820_v63  ;;  %vm6250_vm7 = vcmp.lt.s32.totalorder %v6249_v32, 0  ;;  %v7425_v44 = vmul.u32.u64.low %v7389_v39, %v899_v21  ;;  %v7426_v61 = vmul.u32.u64.high %v7389_v39, %v899_v21, %v7425_v44 }
 0x159   : > { %v623_v53 = vmul.f32 %v622_v22, %v620_v41  ;;  %v7428_v10 = vsel %vm6250_vm7, 0, %v6249_v32  ;;  %v891_v55 = vsel %vm885_vm1, %v888_v37, %v890_v17  ;;  %v960_v8 = vshrl.u32 %v959_v51, 23 }
 0x15a   : > { %v627_v33 = vsel %vm542_vm2, %v626_v0, %v7285_v57  ;;  %v821_v45 = vshll.u32 %v7346_v28, %v7371_v23  ;;  %v827_v63 = vor.u32 4788187, %v826_v50  ;;  %v834_v19 = vsub.s32 4, %v7332_v15 }
 0x15b   : > { %v720_v31 = vsub.s32 4294967266, %v7428_v10  ;;  %v910_v22 = vadd.s32 1, %v7420_v13  ;;  %v6259_v38 = vadd.s32 4294967169, %v960_v8  ;;  %v963_v30 = vand.u32 8388607, %v11836_v6 }
 0x15c   : > { %vm7445_vm8 = vcmp.le.f32.partialorder %v748_v49, 0.7853982  ;;  %v823_v57 = vor.u32 %v822_v56, %v821_v45  ;;  %v907_v28 = vmul.u32 %v7389_v39, %v891_v55  ;;  %vm909_vm9 = vc.u32 %v7426_v61, %v7419_v3 }
 0x15d   : > { %v624_v0 = vxor.u32 2147483648, %v623_v53  ;;  %v629_v23 = vsel %vm7405_vm5, 0, %v627_v33  ;;  %v911_v41 = vsel %vm909_vm9, %v910_v22, %v7420_v13  ;;  %v966_v50 = vadd.s32 1, %v6259_v38 }
 0x15e   : > { %v828_v48 = vand.u32 2147483647, %v827_v63  ;;  %v7460_v49 = vsel %vm750_vm6, %v834_v19, %v7332_v15  ;;  %v716_v39 = vsub.s32 32, %v7428_v10  ;;  %v912_v32 = vadd.s32 %v911_v41, %v907_v28 }
 0x15f   : > { %v721_v37 = vadd.s32 127, %v720_v31  ;;  %v964_v17 = vor.u32 8388608, %v963_v30  ;;  %vm967_vm10 = vcmp.gt.s32.totalorder %v966_v50, 0  ;;  %v7465_v46 = vadd.f32 %v7211_v52, %v7367_v20 }
 0x160   : > { %v830_v21 = vcvt.s32.f32 %v823_v57  ;;  %v700_v13 = vadd.s32 %v7342_v26, %v7352_v40  ;;  %v913_v51 = vadd.s32 536870912, %v912_v32  ;;  %v968_v56 = vsel %vm967_vm10, %v966_v50, 0 }
 0x161   : > { %12008 = vst [vmem:[#allocation9_spill] sm:$0xff] %v7465_v46  ;;  %v625_v15 = vsel %vm542_vm2, %v624_v0, %v623_v53  ;;  %v7471_v44 = vadd.s32 3, %v629_v23  ;;  %v837_v55 = vsel %vm7445_vm8, 0, %v7460_v49  ;;  %v970_v8 = vand.u32 31, %v968_v56 }
 0x162   : > { %v7476_v33 = vmul.f32 %v830_v21, %v828_v48  ;;  %v717_v52 = vshll.u32 %v7391_v35, %v7428_v10  ;;  %v718_v45 = vshrl.u32 %v700_v13, %v716_v39  ;;  %v7480_v63 = vshrl.u32 %v913_v51, 30 }
 0x163   : > { %12009 = vst [vmem:[#allocation10_spill] sm:$0xff] %v7471_v44  ;;  %v722_v26 = vshll.u32 %v721_v37, 23  ;;  %v971_v40 = vsub.s32 32, %v970_v8  ;;  %v7482_v19 = vshll.u32 %v964_v17, 8  ;;  %v1167_v53 = vand.u32 2139095040, %v7465_v46 }
 0x164   : > { %v915_v31 = vshll.u32 %v7480_v63, 30  ;;  %v969_v22 = vshrl.u32 %v968_v56, 5  ;;  %v973_v38 = vshll.u32 %v11846_v7, %v970_v8  ;;  %v976_v30 = vshll.u32 %v11844_v12, %v970_v8 }
 0x165   : > { %v974_v57 = vshrl.u32 %v11844_v12, %v971_v40  ;;  %v977_v35 = vshrl.u32 %v11842_v14, %v971_v40  ;;  %v979_v10 = vshll.u32 %v11842_v14, %v970_v8  ;;  %v980_v28 = vshrl.u32 %v11840_v16, %v971_v40 }
 0x166   : > { %v7492_v0 = vsub.s32 %v912_v32, %v915_v31  ;;  %v982_v23 = vshll.u32 %v11840_v16, %v970_v8  ;;  %v983_v41 = vshrl.u32 %v11838_v18, %v971_v40  ;;  %v986_v50 = vshrl.u32 %v11833_v25, %v971_v40 }
 0x167   : > { %v975_v48 = vor.u32 %v974_v57, %v973_v38  ;;  %v978_v39 = vor.u32 %v977_v35, %v976_v30  ;;  %v981_v37 = vor.u32 %v980_v28, %v979_v10  ;;  %v985_v17 = vshll.u32 %v11838_v18, %v970_v8 }
 0x168   : > { %v719_v21 = vor.u32 %v718_v45, %v717_v52  ;;  %v918_v13 = vsub.s32 0, %v7492_v0  ;;  %v984_v51 = vor.u32 %v983_v41, %v982_v23  ;;  %v11832_v56 = vand.u32 2147483647, %v7465_v46 }
 0x169   : > { %v723_v1 = vor.u32 4788187, %v722_v26  ;;  %v987_v32 = vor.u32 %v986_v50, %v985_v17  ;;  %vm991_vm11 = vcmp.lt.s32.totalorder %v969_v22, 4  ;;  %v1168_v31 = vshrl.u32 %v1167_v53, 23 }
 0x16a   : > { %v6256_v5 = vmin.u32 %v918_v13, %v7492_v0  ;;  %v972_v2 = vshrl.u32 %v11846_v7, %v971_v40  ;;  %vm988_vm12 = vcmp.lt.s32.totalorder %v969_v22, 1  ;;  %v993_v38 = vsel %vm991_vm11, %v981_v37, 2102212464 }
 0x16b   : > { %vm989_vm13 = vcmp.lt.s32.totalorder %v969_v22, 2  ;;  %vm990_vm14 = vcmp.lt.s32.totalorder %v969_v22, 3  ;;  %v996_v8 = vsel %vm988_vm12, %v975_v48, %v978_v39  ;;  %v997_v52 = vsel %vm991_vm11, %v984_v51, 920167782 }
 0x16c   : > { %v920_v45 = vclz %v6256_v5  ;;  %v992_v30 = vsel %vm988_vm12, %v972_v2, %v975_v48  ;;  %v998_v57 = vsel %vm990_vm14, %v981_v37, %v997_v52  ;;  %v1000_v35 = vsel %vm988_vm12, %v978_v39, %v981_v37 }
 0x16d   : > { %v994_v26 = vsel %vm990_vm14, %v978_v39, %v993_v38  ;;  %v999_v10 = vsel %vm989_vm13, %v996_v8, %v998_v57  ;;  %v1001_v53 = vsel %vm991_vm11, %v987_v32, 1326507024  ;;  %v6267_v28 = vadd.s32 4294967169, %v1168_v31 }
 0x16e   : > { %v6257_v23 = vadd.s32 4294967294, %v920_v45  ;;  %v1002_v40 = vsel %vm990_vm14, %v984_v51, %v1001_v53  ;;  %v7507_v41 = vmul.u32.u64.low %v7482_v19, %v999_v10  ;;  %v7508_v50 = vmul.u32.u64.high %v7482_v19, %v999_v10, %v7507_v41 }
 0x16f   : > { %v724_v17 = vand.u32 2147483647, %v723_v1  ;;  %v1003_v13 = vsel %vm989_vm13, %v1000_v35, %v1002_v40  ;;  %v1174_v5 = vadd.s32 1, %v6267_v28  ;;  %v7514_v2 = vadd.f32 %v7207_v47, %v7367_v20 }
 0x170   : > { %v628_v48 = vsel %vm7405_vm5, %v7190_v34, %v625_v15  ;;  %vm6258_vm15 = vcmp.lt.s32.totalorder %v6257_v23, 0  ;;  %v7520_v39 = vmul.u32.u64.low %v7482_v19, %v1003_v13  ;;  %v7521_v37 = vmul.u32.u64.high %v7482_v19, %v1003_v13, %v7520_v39 }
 0x171   : > { %v726_v51 = vcvt.s32.f32 %v719_v21  ;;  %v923_v32 = vsel %vm6258_vm15, 0, %v6257_v23  ;;  %v995_v1 = vsel %vm989_vm13, %v992_v30, %v994_v26  ;;  %vm1175_vm0 = vcmp.gt.s32.totalorder %v1174_v5, 0 }
 0x172   : > { %v832_v31 = vxor.u32 2147483648, %v7476_v33  ;;  %v928_v38 = vsub.s32 4294967266, %v923_v32  ;;  %v1014_v47 = vadd.s32 1, %v7508_v50  ;;  %v1171_v8 = vand.u32 8388607, %v11832_v56 }
 0x173   : > { %6760 = vcosq.f32 %v628_v48  ;;  %v727_v15 = vmul.f32 %v726_v51, %v724_v17  ;;  %v924_v52 = vsub.s32 32, %v923_v32  ;;  %v1176_v45 = vsel %vm1175_vm0, %v1174_v5, 0 }
 0x174   : > { %vm646_vm1 = vcmp.lt.s32.totalorder %v7193_v36, 0  ;;  %v929_v21 = vadd.s32 127, %v928_v38  ;;  %v1011_v22 = vmul.u32 %v7482_v19, %v995_v1  ;;  %vm1013_vm2 = vc.u32 %v7521_v37, %v7507_v41 }
 0x175   : > { %v1063_v30 = vand.u32 2139095040, %v7514_v2  ;;  %6762 = vsinq.f32 %v628_v48  ;;  %v908_v57 = vadd.s32 %v7419_v3, %v7426_v61  ;;  %v1015_v35 = vsel %vm1013_vm2, %v1014_v47, %v7508_v50 }
 0x176   : > { %v1178_v26 = vand.u32 31, %v1176_v45  ;;  %v833_v10 = vsel %vm750_vm6, %v832_v31, %v7476_v33  ;;  %v1016_v53 = vadd.s32 %v1015_v35, %v1011_v22  ;;  %v1172_v28 = vor.u32 8388608, %v1171_v8 }
 0x177   : > { %v11831_v19 = vand.u32 2147483647, %v7514_v2  ;;  %v728_v23 = vxor.u32 2147483648, %v727_v15  ;;  %v925_v40 = vshll.u32 %v7492_v0, %v923_v32  ;;  %v926_v17 = vshrl.u32 %v908_v57, %v924_v52 }
 0x178   : > { %v1179_v13 = vsub.s32 32, %v1178_v26  ;;  %v930_v5 = vshll.u32 %v929_v21, 23  ;;  %v1017_v48 = vadd.s32 536870912, %v1016_v53  ;;  %v1177_v39 = vshrl.u32 %v1176_v45, 5 }
 0x179   : > { %v1064_v3 = vshrl.u32 %v1063_v30, 23  ;;  %v1181_v61 = vshll.u32 %v11846_v7, %v1178_v26  ;;  %v1184_v31 = vshll.u32 %v11844_v12, %v1178_v26  ;;  %v1187_v0 = vshll.u32 %v11842_v14, %v1178_v26 }
 0x17a   : > { %v1182_v50 = vshrl.u32 %v11844_v12, %v1179_v13  ;;  %v1185_v51 = vshrl.u32 %v11842_v14, %v1179_v13  ;;  %v1188_v33 = vshrl.u32 %v11840_v16, %v1179_v13  ;;  %v7547_v1 = vshrl.u32 %v1017_v48, 30 }
 0x17b   : > { %v1191_v32 = vshrl.u32 %v11838_v18, %v1179_v13  ;;  %v927_v38 = vor.u32 %v926_v17, %v925_v40  ;;  %v1190_v47 = vshll.u32 %v11840_v16, %v1178_v26  ;;  %v1193_v8 = vshll.u32 %v11838_v18, %v1178_v26 }
 0x17c   : > { %v1194_v52 = vshrl.u32 %v11833_v25, %v1179_v13  ;;  %v1019_v45 = vshll.u32 %v7547_v1, 30  ;;  %v1183_v21 = vor.u32 %v1182_v50, %v1181_v61  ;;  %v1186_v22 = vor.u32 %v1185_v51, %v1184_v31 }
 0x17d   : > { %v1189_v30 = vor.u32 %v1188_v33, %v1187_v0  ;;  %v7556_v57 = vpop.eup %6760  ;;  %v836_v35 = vsel %vm7445_vm8, %v7201_v43, %v833_v10  ;;  %v729_v40 = vsel %vm646_vm1, %v728_v23, %v727_v15  ;;  %v931_v17 = vor.u32 4788187, %v930_v5 }
 0x17e   : > { %12010 = vst [vmem:[#allocation11_spill] sm:$0xff] %v7556_v57  ;;  %v1192_v48 = vor.u32 %v1191_v32, %v1190_v47  ;;  %vm7565_vm3 = vcmp.le.f32.partialorder %v644_v54, 0.7853982  ;;  %v7569_v61 = vsub.s32 %v1016_v53, %v1019_v45  ;;  %v1195_v50 = vor.u32 %v1194_v52, %v1193_v8 }
 0x17f   : > { %v1212_v51 = vshll.u32 %v1172_v28, 8  ;;  %v1067_v33 = vand.u32 8388607, %v11831_v19  ;;  %v7573_v31 = vpop.eup %6762  ;;  %v934_v10 = vcvt.s32.f32 %v927_v38  ;;  %vm1196_vm4 = vcmp.lt.s32.totalorder %v1177_v39, 1 }
 0x180   : > { %12013 = vst [vmem:[#allocation12_spill] sm:$0xff] %v7573_v31  ;;  %vm1199_vm5 = vcmp.lt.s32.totalorder %v1177_v39, 4  ;;  %v6263_v15 = vadd.s32 4294967169, %v1064_v3  ;;  %v1022_v23 = vsub.s32 0, %v7569_v61  ;;  %v1180_v54 = vshrl.u32 %v11846_v7, %v1179_v13 }
 0x181   : > { %v1201_v5 = vsel %vm1199_vm5, %v1189_v30, 2102212464  ;;  %v1204_v0 = vsel %vm1196_vm4, %v1183_v21, %v1186_v22  ;;  %v932_v32 = vand.u32 2147483647, %v931_v17  ;;  %vm1198_vm6 = vcmp.lt.s32.totalorder %v1177_v39, 3 }
 0x182   : > { %v1205_v53 = vsel %vm1199_vm5, %v1192_v48, 920167782  ;;  %v1208_v47 = vsel %vm1196_vm4, %v1186_v22, %v1189_v30  ;;  %v6260_v28 = vmin.u32 %v1022_v23, %v7569_v61  ;;  %vm1197_vm7 = vcmp.lt.s32.totalorder %v1177_v39, 2 }
 0x183   : > { %v1206_v8 = vsel %vm1198_vm6, %v1189_v30, %v1205_v53  ;;  %v1209_v52 = vsel %vm1199_vm5, %v1195_v50, 1326507024  ;;  %v1200_v45 = vsel %vm1196_vm4, %v1180_v54, %v1183_v21  ;;  %v1202_v38 = vsel %vm1198_vm6, %v1186_v22, %v1201_v5 }
 0x184   : > { %v1207_v19 = vsel %vm1197_vm7, %v1204_v0, %v1206_v8  ;;  %v1210_v3 = vsel %vm1198_vm6, %v1192_v48, %v1209_v52  ;;  %vm11892_vm9 = vcmp.lt.s32.totalorder %v7253_v58, 0  ;;  %v1024_v56 = vclz %v6260_v28 }
 0x185   : > { %v1211_v13 = vsel %vm1197_vm7, %v1208_v47, %v1210_v3  ;;  %v7581_v25 = vmul.u32.u64.low %v1212_v51, %v1207_v19  ;;  %v7582_v17 = vmul.u32.u64.high %v1212_v51, %v1207_v19, %v7581_v25  ;;  %v935_v9 = vmul.f32 %v934_v10, %v932_v32  ;;  %v7604_v10 = vpop.f32.mrb[6].mxu1 }
 0x186   : > { %v7585_v6 = vmul.u32.u64.low %v1212_v51, %v1211_v13  ;;  %v7586_v23 = vmul.u32.u64.high %v1212_v51, %v1211_v13, %v7585_v6  ;;  %v1070_v30 = vadd.s32 1, %v6263_v15  ;;  %6764 = vcosq.f32 %v836_v35 }
 0x187   : > { %v7592_v21 = vadd.s32 3, %v837_v55  ;;  %v6261_v22 = vadd.s32 4294967294, %v1024_v56  ;;  %v1203_v48 = vsel %vm1197_vm7, %v1200_v45, %v1202_v38  ;;  %v7598_v19 = vsel %vm7565_vm3, %v7193_v36, %v729_v40 }
 0x188   : > { %v1068_v50 = vor.u32 8388608, %v1067_v33  ;;  %vm1071_vm10 = vcmp.gt.s32.totalorder %v1070_v30, 0  ;;  %v7602_v6 = vadd.f32 %v7218_v59, %v7367_v20  ;;  %v1042_v42 = vsub.s32 4, %v7547_v1 }
 0x189   : > { %12014 = vst [vmem:[#allocation13_spill] sm:$0xff] %v7592_v21  ;;  %vm6262_vm11 = vcmp.lt.s32.totalorder %v6261_v22, 0  ;;  %v1222_v49 = vadd.s32 1, %v7582_v17  ;;  %v1072_v55 = vsel %vm1071_vm10, %v1070_v30, 0  ;;  %v936_v56 = vxor.u32 2147483648, %v935_v9 }
 0x18a   : > { %v1027_v39 = vsel %vm6262_vm11, 0, %v6261_v22  ;;  %v1219_v15 = vmul.u32 %v1212_v51, %v1203_v48  ;;  %vm1221_vm8 = vc.u32 %v7586_v23, %v7581_v25  ;;  %6766 = vsinq.f32 %v836_v35 }
 0x18b   : > { %vm958_vm12 = vcmp.lt.s32.totalorder %v7377_v27, 0  ;;  %v1032_v40 = vsub.s32 4294967266, %v1027_v39  ;;  %v1223_v59 = vsel %vm1221_vm8, %v1222_v49, %v7582_v17  ;;  %6768 = vcosq.f32 %v7598_v19 }
 0x18c   : > { %v1224_v20 = vadd.s32 %v1223_v59, %v1219_v15  ;;  %v1074_v33 = vand.u32 31, %v1072_v55  ;;  %v11837_v54 = vand.u32 2147483647, %v7602_v6  ;;  %v1012_v5 = vadd.s32 %v7507_v41, %v7521_v37 }
 0x18d   : > { %v1033_v0 = vadd.s32 127, %v1032_v40  ;;  %v7619_v51 = vsel %vm958_vm12, %v1042_v42, %v7547_v1  ;;  %v7621_v35 = vshll.u32 %v1068_v50, 8  ;;  %v7625_v32 = vsel %vm11892_vm9, %v936_v56, %v935_v9 }
 0x18e   : > { %v1028_v53 = vsub.s32 32, %v1027_v39  ;;  %v1225_v47 = vadd.s32 536870912, %v1224_v20  ;;  %v1075_v28 = vsub.s32 32, %v1074_v33  ;;  %v7627_v8 = vshrl.u32 %v1072_v55, 5 }
 0x18f   : > { %v1077_v52 = vshll.u32 %v11846_v7, %v1074_v33  ;;  %v1080_v41 = vshll.u32 %v11844_v12, %v1074_v33  ;;  %v1271_v37 = vand.u32 2139095040, %v7602_v6  ;;  %v1034_v45 = vshll.u32 %v1033_v0, 23 }
 0x190   : > { %v7632_v1 = vshrl.u32 %v1225_v47, 30  ;;  %v1078_v38 = vshrl.u32 %v11844_v12, %v1075_v28  ;;  %v1081_v3 = vshrl.u32 %v11842_v14, %v1075_v28  ;;  %v7636_v9 = vpop.eup %6764  ;;  %v1083_v13 = vshll.u32 %v11842_v14, %v1074_v33 }
 0x191   : > { %12015 = vst [vmem:[#allocation14_spill] sm:$0xff] %v7636_v9  ;;  %v1084_v17 = vshrl.u32 %v11840_v16, %v1075_v28  ;;  %v1086_v30 = vshll.u32 %v11840_v16, %v1074_v33  ;;  %v1087_v22 = vshrl.u32 %v11838_v18, %v1075_v28  ;;  %v1030_v48 = vshrl.u32 %v1012_v5, %v1028_v53 }
 0x192   : > { %v1227_v50 = vshll.u32 %v7632_v1, 30  ;;  %v1079_v42 = vor.u32 %v1078_v38, %v1077_v52  ;;  %v1082_v49 = vor.u32 %v1081_v3, %v1080_v41  ;;  %v12016_v55 = vand.u32 2147483647, %v7377_v27 }
 0x193   : > { %v1085_v15 = vor.u32 %v1084_v17, %v1083_v13  ;;  %v1088_v40 = vor.u32 %v1087_v22, %v1086_v30  ;;  %v1272_v59 = vshrl.u32 %v1271_v37, 23  ;;  %v7651_v0 = vand.u32 8388607, %v11837_v54 }
 0x194   : > { %vm7645_vm13 = vcmp.le.f32.partialorder %v12016_v55, 0.7853982  ;;  %v12019_v47 = vand.u32 2147483647, %v7253_v58  ;;  %v1029_v53 = vshll.u32 %v7569_v61, %v1027_v39  ;;  %v7660_v52 = vsub.s32 %v1224_v20, %v1227_v50  ;;  %v7664_v13 = vpop.eup %6766 }
 0x195   : > { %v1089_v41 = vshll.u32 %v11838_v18, %v1074_v33  ;;  %v12022_v38 = vmov 1326507024   ;;  %12023 = vst [vmem:[#allocation15_spill] sm:$0xff] %v7664_v13  ;;  %v1035_v37 = vor.u32 4788187, %v1034_v45  ;;  %vm1092_vm15 = vcmp.lt.s32.totalorder %v7627_v8, 1  ;;  %v7669_v17 = vpop.eup %6768 }
 0x196   : > { %vm7655_vm14 = vcmp.le.f32.partialorder %v12019_v47, 0.7853982  ;;  %v1090_v3 = vshrl.u32 %v12022_v38, %v1075_v28  ;;  %vm1093_vm0 = vcmp.lt.s32.totalorder %v7627_v8, 2  ;;  %vm1095_vm2 = vcmp.lt.s32.totalorder %v7627_v8, 4 }
 0x197   : > { %v1031_v30 = vor.u32 %v1030_v48, %v1029_v53  ;;  %v1230_v61 = vsub.s32 0, %v7660_v52  ;;  %v1100_v20 = vsel %vm1092_vm15, %v1079_v42, %v1082_v49  ;;  %v1076_v33 = vshrl.u32 %v11846_v7, %v1075_v28 }
 0x198   : > { %v1091_v39 = vor.u32 %v1090_v3, %v1089_v41  ;;  %vm1094_vm4 = vcmp.lt.s32.totalorder %v7627_v8, 3  ;;  %v1101_v45 = vsel %vm1095_vm2, %v1088_v40, 920167782  ;;  %v1104_v22 = vsel %vm1092_vm15, %v1082_v49, %v1085_v15 }
 0x199   : > { %v6268_v50 = vmin.u32 %v1230_v61, %v7660_v52  ;;  %v1097_v55 = vsel %vm1095_vm2, %v1085_v15, 2102212464  ;;  %v1102_v47 = vsel %vm1094_vm4, %v1085_v15, %v1101_v45  ;;  %v1036_v48 = vand.u32 2147483647, %v1035_v37  ;;  %v7689_v37 = vpop.f32.mrb[7].mxu0 }
 0x19a   : > { %v1105_v54 = vsel %vm1095_vm2, %v1091_v39, 1326507024  ;;  %v1103_v53 = vsel %vm1093_vm0, %v1100_v20, %v1102_v47  ;;  %v6271_v3 = vadd.s32 4294967169, %v1272_v59  ;;  %v1038_v18 = vcvt.s32.f32 %v1031_v30  ;;  %v7694_v59 = vpop.permute.xlu1 %328 }
 0x19b   : > { %v1106_v41 = vsel %vm1094_vm4, %v1088_v40, %v1105_v54  ;;  %v1232_v16 = vclz %v6268_v50  ;;  %v1096_v28 = vsel %vm1092_vm15, %v1076_v33, %v1079_v42  ;;  %v1098_v12 = vsel %vm1094_vm4, %v1082_v49, %v1097_v55 }
 0x19c   : > { %v1107_v14 = vsel %vm1093_vm0, %v1104_v22, %v1106_v41  ;;  %v1278_v15 = vadd.s32 1, %v6271_v3  ;;  %v1045_v54 = vsel %vm7645_vm13, 0, %v7619_v51  ;;  %v7705_v49 = vmul.f32 %v1038_v18, %v1036_v48 }
 0x19d   : > { %v7686_v61 = vmul.u32.u64.low %v7621_v35, %v1107_v14  ;;  %v7687_v7 = vmul.u32.u64.high %v7621_v35, %v1107_v14, %v7686_v61  ;;  %v6269_v40 = vadd.s32 4294967294, %v1232_v16  ;;  %v940_v14 = vsel %vm7655_vm14, %v7253_v58, %v7625_v32 }
 0x19e   : > { %v7697_v42 = vmul.u32.u64.low %v7621_v35, %v1103_v53  ;;  %v7698_v30 = vmul.u32.u64.high %v7621_v35, %v1103_v53, %v7697_v42  ;;  %vm1279_vm5 = vcmp.gt.s32.totalorder %v1278_v15, 0  ;;  %v7709_v39 = vadd.f32 %v7230_v11, %v7694_v59 }
 0x19f   : > { %vm6270_vm6 = vcmp.lt.s32.totalorder %v6269_v40, 0  ;;  %v1099_v16 = vsel %vm1093_vm0, %v1096_v28, %v1098_v12  ;;  %v1276_v51 = vor.u32 8388608, %v7651_v0  ;;  %v1280_v20 = vsel %vm1279_vm5, %v1278_v15, 0 }
 0x1a0   : > { %12024 = vst [vmem:[#allocation16_spill] sm:$0xff] %v7709_v39  ;;  %6770 = vsinq.f32 %v7598_v19  ;;  %v7715_v33 = vadd.s32 3, %v1045_v54  ;;  %v7717_v45 = vsel %vm6270_vm6, 0, %v6269_v40  ;;  %vm1117_vm7 = vc.u32 %v7687_v7, %v7697_v42 }
 0x1a1   : > { %6772 = vcosq.f32 %v940_v14  ;;  %v1240_v11 = vsub.s32 4294967266, %v7717_v45  ;;  %v1118_v18 = vadd.s32 1, %v7698_v30  ;;  %v7723_v32 = vshrl.u32 %v1280_v20, 5 }
 0x1a2   : > { %12025 = vst [vmem:[#allocation17_spill] sm:$0xff] %v7715_v33  ;;  %6774 = vsinq.f32 %v940_v14  ;;  %v1220_v12 = vadd.s32 %v7581_v25, %v7586_v23  ;;  %v1115_v19 = vmul.u32 %v7621_v35, %v1099_v16  ;;  %v1282_v8 = vand.u32 31, %v1280_v20 }
 0x1a3   : > { %v1119_v22 = vsel %vm1117_vm7, %v1118_v18, %v7698_v30  ;;  %v7730_v50 = vshll.u32 %v1276_v51, 8  ;;  %v1236_v47 = vsub.s32 32, %v7717_v45  ;;  %v1375_v41 = vand.u32 2139095040, %v7709_v39 }
 0x1a4   : > { %v1120_v48 = vadd.s32 %v1119_v22, %v1115_v19  ;;  %v1283_v53 = vsub.s32 32, %v1282_v8  ;;  %v1241_v3 = vadd.s32 127, %v1240_v11  ;;  %v12026_v28 = vmov 683565275  }
 0x1a5   : > { %v1285_v25 = vshll.u32 %v12026_v28, %v1282_v8  ;;  %vm1300_vm10 = vcmp.lt.s32.totalorder %v7723_v32, 1  ;;  %vm1301_vm11 = vcmp.lt.s32.totalorder %v7723_v32, 2  ;;  %v12027_v35 = vmov 2475754826  }
 0x1a6   : > { %v1121_v23 = vadd.s32 536870912, %v1120_v48  ;;  %v1286_v61 = vshrl.u32 %v12027_v35, %v1283_v53  ;;  %v1288_v15 = vshll.u32 %v12027_v35, %v1282_v8  ;;  %v12028_v54 = vmov 2131351028  }
 0x1a7   : > { %v1289_v40 = vshrl.u32 %v12028_v54, %v1283_v53  ;;  %v1291_v30 = vshll.u32 %v12028_v54, %v1282_v8  ;;  %v12029_v14 = vmov 2102212464   ;;  %v12030_v20 = vmov 920167782  }
 0x1a8   : > { %v1292_v16 = vshrl.u32 %v12029_v14, %v1283_v53  ;;  %v1294_v51 = vshll.u32 %v12029_v14, %v1282_v8  ;;  %v1295_v11 = vshrl.u32 %v12030_v20, %v1283_v53  ;;  %v7745_v18 = vshrl.u32 %v1121_v23, 30 }
 0x1a9   : > { %v1287_v19 = vor.u32 %v1286_v61, %v1285_v25  ;;  %v1290_v22 = vor.u32 %v1289_v40, %v1288_v15  ;;  %vm1302_vm8 = vcmp.lt.s32.totalorder %v7723_v32, 3  ;;  %v1297_v43 = vshll.u32 %v12030_v20, %v1282_v8 }
 0x1aa   : > { %v1293_v0 = vor.u32 %v1292_v16, %v1291_v30  ;;  %v1296_v55 = vor.u32 %v1295_v11, %v1294_v51  ;;  %v1298_v9 = vshrl.u32 %v12022_v38, %v1283_v53  ;;  %v7750_v13 = vpop.eup %6770  ;;  %vm1166_vm15 = vcmp.lt.s32.totalorder %v7465_v46, 0 }
 0x1ab   : > { %v1242_v21 = vshll.u32 %v1241_v3, 23  ;;  %v1123_v34 = vshll.u32 %v7745_v18, 30  ;;  %vm1303_vm0 = vcmp.lt.s32.totalorder %v7723_v32, 4  ;;  %v1308_v25 = vsel %vm1300_vm10, %v1287_v19, %v1290_v22  ;;  %v7757_v23 = vpop.eup %6772 }
 0x1ac   : > { %12031 = vst [vmem:[#allocation18_spill] sm:$0xff] %v7757_v23  ;;  %v1284_v61 = vshrl.u32 %v12026_v28, %v1283_v53  ;;  %v1299_v15 = vor.u32 %v1298_v9, %v1297_v43  ;;  %v1305_v8 = vsel %vm1303_vm0, %v1293_v0, 2102212464  ;;  %v1309_v40 = vsel %vm1303_vm0, %v1296_v55, 920167782  ;;  %v7760_v30 = vpop.eup %6774 }
 0x1ad   : > { %12032 = vst [vmem:[#allocation19_spill] sm:$0xff] %v7760_v30  ;;  %v1238_v16 = vshrl.u32 %v1220_v12, %v1236_v47  ;;  %v7762_v51 = vsub.s32 %v1120_v48, %v1123_v34  ;;  %v1310_v3 = vsel %vm1302_vm8, %v1293_v0, %v1309_v40  ;;  %v1312_v11 = vsel %vm1300_vm10, %v1290_v22, %v1293_v0 }
 0x1ae   : > { %v1304_v33 = vsel %vm1300_vm10, %v1284_v61, %v1287_v19  ;;  %v1306_v53 = vsel %vm1302_vm8, %v1290_v22, %v1305_v8  ;;  %v1311_v43 = vsel %vm1301_vm11, %v1308_v25, %v1310_v3  ;;  %v1313_v9 = vsel %vm1303_vm0, %v1299_v15, 1326507024 }
 0x1af   : > { %v1126_v12 = vsub.s32 0, %v7762_v51  ;;  %v1314_v34 = vsel %vm1302_vm8, %v1296_v55, %v1313_v9  ;;  %v7778_v47 = vmul.u32.u64.low %v7730_v50, %v1311_v43  ;;  %v7779_v48 = vmul.u32.u64.high %v7730_v50, %v1311_v43, %v7778_v47 }
 0x1b0   : > { %v1243_v0 = vor.u32 4788187, %v1242_v21  ;;  %v1250_v19 = vsub.s32 4, %v7632_v1  ;;  %v1315_v22 = vsel %vm1301_vm11, %v1312_v11, %v1314_v34  ;;  %v1376_v61 = vshrl.u32 %v1375_v41, 23  ;;  %v7815_v34 = vpop.f32.mrb[7].mxu1 }
 0x1b1   : > { %v1237_v25 = vshll.u32 %v7660_v52, %v7717_v45  ;;  %v6264_v15 = vmin.u32 %v1126_v12, %v7762_v51  ;;  %v7789_v8 = vmul.u32.u64.low %v7730_v50, %v1315_v22  ;;  %v7790_v55 = vmul.u32.u64.high %v7730_v50, %v1315_v22, %v7789_v8 }
 0x1b2   : > { %v1307_v40 = vsel %vm1301_vm11, %v1304_v33, %v1306_v53  ;;  %v6275_v3 = vadd.s32 4294967169, %v1376_v61  ;;  %v12033_v21 = vand.u32 2147483647, %v7709_v39  ;;  %v7798_v11 = vadd.f32 %v7292_v62, %v7694_v59 }
 0x1b3   : > { %v12035_v52 = vxor.u32 2147483648, %v7705_v49  ;;  %v1239_v41 = vor.u32 %v1238_v16, %v1237_v25  ;;  %v1128_v9 = vclz %v6264_v15  ;;  %v1326_v12 = vadd.s32 1, %v7779_v48  ;;  %v12097_v5 = vld [vmem:[#allocation18_spill] sm:$0xff] }
 0x1b4   : > { %v1379_v43 = vand.u32 8388607, %v12033_v21  ;;  %12034 = vst [vmem:[#allocation20_spill] sm:$0xff] %v7798_v11  ;;  %v1244_v32 = vand.u32 2147483647, %v1243_v0  ;;  %v7809_v33 = vsel %vm1166_vm15, %v1250_v19, %v7632_v1  ;;  %v1382_v53 = vadd.s32 1, %v6275_v3 }
 0x1b5   : > { %v1041_v45 = vsel %vm958_vm12, %v12035_v52, %v7705_v49  ;;  %v7813_v62 = vadd.f32 %v7358_v29, %v7694_v59  ;;  %v6265_v22 = vadd.s32 4294967294, %v1128_v9  ;;  %v1323_v49 = vmul.u32 %v7730_v50, %v1307_v40 }
 0x1b6   : > { %vm1325_vm12 = vc.u32 %v7790_v55, %v7778_v47  ;;  %v1380_v16 = vor.u32 8388608, %v1379_v43  ;;  %v7823_v0 = vsel %vm7645_vm13, %v7377_v27, %v1041_v45  ;;  %vm1383_vm2 = vcmp.gt.s32.totalorder %v1382_v53, 0 }
 0x1b7   : > { %12036 = vst [vmem:[#allocation21_spill] sm:$0xff] %v7813_v62  ;;  %v1327_v1 = vsel %vm1325_vm12, %v1326_v12, %v7779_v48  ;;  %v1583_v29 = vand.u32 2139095040, %v7798_v11  ;;  %v1246_v19 = vcvt.s32.f32 %v1239_v41  ;;  %vm6266_vm4 = vcmp.lt.s32.totalorder %v6265_v22, 0 }
 0x1b8   : > { %v1328_v61 = vadd.s32 %v1327_v1, %v1323_v49  ;;  %v1384_v25 = vsel %vm1383_vm2, %v1382_v53, 0  ;;  %v1116_v50 = vadd.s32 %v7697_v42, %v7687_v7  ;;  %v1131_v15 = vsel %vm6266_vm4, 0, %v6265_v22 }
 0x1b9   : > { %v1386_v8 = vand.u32 31, %v1384_v25  ;;  %v7830_v3 = vmul.f32 %v1246_v19, %v1244_v32  ;;  %v1136_v56 = vsub.s32 4294967266, %v1131_v15  ;;  %v7832_v43 = vshll.u32 %v1380_v16, 8 }
 0x1ba   : > { %v1329_v21 = vadd.s32 536870912, %v1328_v61  ;;  %v1132_v48 = vsub.s32 32, %v1131_v15  ;;  %v7834_v52 = vshrl.u32 %v1384_v25, 5  ;;  %v1584_v41 = vshrl.u32 %v1583_v29, 23 }
 0x1bb   : > { %v1387_v45 = vsub.s32 32, %v1386_v8  ;;  %v1137_v9 = vadd.s32 127, %v1136_v56  ;;  %v1389_v7 = vshll.u32 %v12026_v28, %v1386_v8  ;;  %v1392_v42 = vshll.u32 %v12027_v35, %v1386_v8 }
 0x1bc   : > { %v7836_v12 = vshrl.u32 %v1329_v21, 30  ;;  %v1395_v22 = vshll.u32 %v12028_v54, %v1386_v8  ;;  %v1398_v29 = vshll.u32 %v12029_v14, %v1386_v8  ;;  %v6283_v40 = vadd.s32 4294967169, %v1584_v41 }
 0x1bd   : > { %v1390_v53 = vshrl.u32 %v12027_v35, %v1387_v45  ;;  %v1393_v32 = vshrl.u32 %v12028_v54, %v1387_v45  ;;  %v1396_v49 = vshrl.u32 %v12029_v14, %v1387_v45  ;;  %v1138_v16 = vshll.u32 %v1137_v9, 23 }
 0x1be   : > { %12037 = vst [vmem:[#allocation22_spill] sm:$0xff] %v7836_v12  ;;  %v1331_v1 = vshll.u32 %v7836_v12, 30  ;;  %v1399_v19 = vshrl.u32 %v12030_v20, %v1387_v45  ;;  %v12038_v27 = vand.u32 2147483647, %v7465_v46  ;;  %v1133_v31 = vshll.u32 %v7762_v51, %v1131_v15 }
 0x1bf   : > { %v1391_v25 = vor.u32 %v1390_v53, %v1389_v7  ;;  %v1394_v56 = vor.u32 %v1393_v32, %v1392_v42  ;;  %v1397_v21 = vor.u32 %v1396_v49, %v1395_v22  ;;  %v1134_v44 = vshrl.u32 %v1116_v50, %v1132_v48 }
 0x1c0   : > { %vm7849_vm13 = vcmp.le.f32.partialorder %v12038_v27, 0.7853982  ;;  %v7854_v9 = vsub.s32 %v1328_v61, %v1331_v1  ;;  %v1400_v23 = vor.u32 %v1399_v19, %v1398_v29  ;;  %v1139_v12 = vor.u32 4788187, %v1138_v16 }
 0x1c1   : > { %v1388_v30 = vshrl.u32 %v12026_v28, %v1387_v45  ;;  %v1401_v7 = vshll.u32 %v12030_v20, %v1386_v8  ;;  %v1402_v42 = vshrl.u32 %v12022_v38, %v1387_v45  ;;  %vm1404_vm5 = vcmp.lt.s32.totalorder %v7834_v52, 1 }
 0x1c2   : > { %v1334_v41 = vsub.s32 0, %v7854_v9  ;;  %vm1406_vm6 = vcmp.lt.s32.totalorder %v7834_v52, 3  ;;  %vm1407_vm7 = vcmp.lt.s32.totalorder %v7834_v52, 4  ;;  %v1412_v61 = vsel %vm1404_vm5, %v1391_v25, %v1394_v56 }
 0x1c3   : > { %v1403_v27 = vor.u32 %v1402_v42, %v1401_v7  ;;  %v1409_v51 = vsel %vm1407_vm7, %v1397_v21, 2102212464  ;;  %v1413_v50 = vsel %vm1407_vm7, %v1400_v23, 920167782  ;;  %v1135_v15 = vor.u32 %v1134_v44, %v1133_v31 }
 0x1c4   : > { %v6272_v48 = vmin.u32 %v1334_v41, %v7854_v9  ;;  %vm1405_vm10 = vcmp.lt.s32.totalorder %v7834_v52, 2  ;;  %v1414_v8 = vsel %vm1406_vm6, %v1397_v21, %v1413_v50  ;;  %v1140_v45 = vand.u32 2147483647, %v1139_v12 }
 0x1c5   : > { %v1415_v53 = vsel %vm1405_vm10, %v1412_v61, %v1414_v8  ;;  %v1416_v32 = vsel %vm1404_vm5, %v1394_v56, %v1397_v21  ;;  %v1417_v22 = vsel %vm1407_vm7, %v1403_v27, 1326507024  ;;  %v1408_v16 = vsel %vm1404_vm5, %v1388_v30, %v1391_v25 }
 0x1c6   : > { %v1336_v49 = vclz %v6272_v48  ;;  %v1410_v44 = vsel %vm1406_vm6, %v1394_v56, %v1409_v51  ;;  %v1418_v31 = vsel %vm1406_vm6, %v1400_v23, %v1417_v22  ;;  %v1590_v19 = vadd.s32 1, %v6283_v40 }
 0x1c7   : > { %v1419_v12 = vsel %vm1405_vm10, %v1416_v32, %v1418_v31  ;;  %v7882_v1 = vmul.u32.u64.low %v7832_v43, %v1415_v53  ;;  %v7883_v29 = vmul.u32.u64.high %v7832_v43, %v1415_v53, %v7882_v1  ;;  %v1248_v21 = vxor.u32 2147483648, %v7830_v3 }
 0x1c8   : > { %v6273_v7 = vadd.s32 4294967294, %v1336_v49  ;;  %v7888_v30 = vmul.u32.u64.low %v7832_v43, %v1419_v12  ;;  %v7889_v25 = vmul.u32.u64.high %v7832_v43, %v1419_v12, %v7888_v30  ;;  %v1253_v23 = vsel %vm7849_vm13, 0, %v7809_v33 }
 0x1c9   : > { %v1142_v56 = vcvt.s32.f32 %v1135_v15  ;;  %v12041_v42 = vand.u32 2147483647, %v7798_v11  ;;  %vm1591_vm11 = vcmp.gt.s32.totalorder %v1590_v19, 0  ;;  %6776 = vcosq.f32 %v7823_v0 }
 0x1ca   : > { %vm6274_vm8 = vcmp.lt.s32.totalorder %v6273_v7, 0  ;;  %v1411_v40 = vsel %vm1405_vm10, %v1408_v16, %v1410_v44  ;;  %v1592_v27 = vsel %vm1591_vm11, %v1590_v19, 0  ;;  %6778 = vsinq.f32 %v7823_v0 }
 0x1cb   : > { %v7896_v41 = vand.u32 8388607, %v12041_v42  ;;  %v1143_v51 = vmul.f32 %v1142_v56, %v1140_v45  ;;  %v1339_v61 = vsel %vm6274_vm8, 0, %v6273_v7  ;;  %v1430_v50 = vadd.s32 1, %v7883_v29 }
 0x1cc   : > { %v1249_v15 = vsel %vm1166_vm15, %v1248_v21, %v7830_v3  ;;  %vm1062_vm0 = vcmp.lt.s32.totalorder %v7514_v2, 0  ;;  %v1324_v48 = vadd.s32 %v7778_v47, %v7790_v55  ;;  %v1340_v8 = vsub.s32 32, %v1339_v61 }
 0x1cd   : > { %v1344_v53 = vsub.s32 4294967266, %v1339_v61  ;;  %v1427_v52 = vmul.u32 %v7832_v43, %v1411_v40  ;;  %vm1429_vm12 = vc.u32 %v7889_v25, %v7882_v1  ;;  %v1588_v0 = vor.u32 8388608, %v7896_v41 }
 0x1ce   : > { %v1594_v45 = vand.u32 31, %v1592_v27  ;;  %v1341_v32 = vshll.u32 %v7854_v9, %v1339_v61  ;;  %v1342_v22 = vshrl.u32 %v1324_v48, %v1340_v8  ;;  %v1431_v3 = vsel %vm1429_vm12, %v1430_v50, %v7883_v29 }
 0x1cf   : > { %v1345_v49 = vadd.s32 127, %v1344_v53  ;;  %v1144_v16 = vxor.u32 2147483648, %v1143_v51  ;;  %v1432_v44 = vadd.s32 %v1431_v3, %v1427_v52  ;;  %v7915_v31 = vshrl.u32 %v1592_v27, 5 }
 0x1d0   : > { %v1595_v47 = vsub.s32 32, %v1594_v45  ;;  %v1343_v55 = vor.u32 %v1342_v22, %v1341_v32  ;;  %v1597_v43 = vshll.u32 %v12026_v28, %v1594_v45  ;;  %v1600_v19 = vshll.u32 %v12027_v35, %v1594_v45 }
 0x1d1   : > { %v1346_v12 = vshll.u32 %v1345_v49, 23  ;;  %v1433_v21 = vadd.s32 536870912, %v1432_v44  ;;  %v1603_v30 = vshll.u32 %v12028_v54, %v1594_v45  ;;  %v1606_v42 = vshll.u32 %v12029_v14, %v1594_v45 }
 0x1d2   : > { %v1598_v7 = vshrl.u32 %v12027_v35, %v1595_v47  ;;  %v1601_v9 = vshrl.u32 %v12028_v54, %v1595_v47  ;;  %v1604_v29 = vshrl.u32 %v12029_v14, %v1595_v47  ;;  %v1607_v41 = vshrl.u32 %v12030_v20, %v1595_v47 }
 0x1d3   : > { %v1347_v56 = vor.u32 4788187, %v1346_v12  ;;  %v1434_v40 = vshrl.u32 %v1433_v21, 30  ;;  %v1609_v50 = vshll.u32 %v12030_v20, %v1594_v45  ;;  %v7926_v48 = vpop.eup %6776  ;;  %v12043_v8 = vand.u32 2147483647, %v7514_v2 }
 0x1d4   : > { %v1599_v27 = vor.u32 %v1598_v7, %v1597_v43  ;;  %v1602_v61 = vor.u32 %v1601_v9, %v1600_v19  ;;  %12042 = vst [vmem:[#allocation23_spill] sm:$0xff] %v7926_v48  ;;  %v1605_v32 = vor.u32 %v1604_v29, %v1603_v30  ;;  %v1608_v22 = vor.u32 %v1607_v41, %v1606_v42  ;;  %v7935_v3 = vpop.eup %6778 }
 0x1d5   : > { %vm7930_vm15 = vcmp.le.f32.partialorder %v12043_v8, 0.7853982  ;;  %v1348_v52 = vand.u32 2147483647, %v1347_v56  ;;  %v1610_v49 = vshrl.u32 %v12022_v38, %v1595_v47  ;;  %12046 = vst [vmem:[#allocation24_spill] sm:$0xff] %v7935_v3  ;;  %v1252_v12 = vsel %vm7849_vm13, %v7465_v46, %v1249_v15 }
 0x1d6   : > { %v1145_v45 = vsel %vm1062_vm0, %v1144_v16, %v1143_v51  ;;  %v1435_v43 = vshll.u32 %v1434_v40, 30  ;;  %vm1612_vm2 = vcmp.lt.s32.totalorder %v7915_v31, 1  ;;  %v1350_v19 = vcvt.s32.f32 %v1343_v55 }
 0x1d7   : > { %vm1374_vm4 = vcmp.lt.s32.totalorder %v7709_v39, 0  ;;  %v1611_v21 = vor.u32 %v1610_v49, %v1609_v50  ;;  %vm1615_vm5 = vcmp.lt.s32.totalorder %v7915_v31, 4  ;;  %v1620_v7 = vsel %vm1612_vm2, %v1599_v27, %v1602_v61 }
 0x1d8   : > { %vm11865_vm6 = vcmp.lt.s32.totalorder %v7602_v6, 0  ;;  %v7948_v9 = vsub.s32 %v1432_v44, %v1435_v43  ;;  %vm1614_vm7 = vcmp.lt.s32.totalorder %v7915_v31, 3  ;;  %v1621_v51 = vsel %vm1615_vm5, %v1608_v22, 920167782 }
 0x1d9   : > { %v1628_v15 = vshll.u32 %v1588_v0, 8  ;;  %v1351_v16 = vmul.f32 %v1350_v19, %v1348_v52  ;;  %vm1613_vm10 = vcmp.lt.s32.totalorder %v7915_v31, 2  ;;  %v1617_v55 = vsel %vm1615_vm5, %v1605_v32, 2102212464 }
 0x1da   : > { %v1622_v30 = vsel %vm1614_vm7, %v1605_v32, %v1621_v51  ;;  %v1438_v56 = vsub.s32 0, %v7948_v9  ;;  %v1596_v44 = vshrl.u32 %v12026_v28, %v1595_v47  ;;  %v1624_v42 = vsel %vm1612_vm2, %v1602_v61, %v1605_v32 }
 0x1db   : > { %v1623_v29 = vsel %vm1613_vm10, %v1620_v7, %v1622_v30  ;;  %v12047_v0 = vand.u32 2147483647, %v7602_v6  ;;  %v1458_v50 = vsub.s32 4, %v1434_v40  ;;  %v1625_v8 = vsel %vm1615_vm5, %v1611_v21, 1326507024 }
 0x1dc   : > { %v7972_v52 = vmul.u32.u64.low %v1628_v15, %v1623_v29  ;;  %v7973_v49 = vmul.u32.u64.high %v1628_v15, %v1623_v29, %v7972_v52  ;;  %v6276_v47 = vmin.u32 %v1438_v56, %v7948_v9  ;;  %v1616_v43 = vsel %vm1612_vm2, %v1596_v44, %v1599_v27 }
 0x1dd   : > { %vm7966_vm11 = vcmp.le.f32.partialorder %v12047_v0, 0.7853982  ;;  %v1618_v32 = vsel %vm1614_vm7, %v1602_v61, %v1617_v55  ;;  %v1626_v19 = vsel %vm1614_vm7, %v1608_v22, %v1625_v8  ;;  %v1352_v7 = vxor.u32 2147483648, %v1351_v16 }
 0x1de   : > { %v1627_v51 = vsel %vm1613_vm10, %v1624_v42, %v1626_v19  ;;  %v11860_v21 = vand.u32 2147483647, %v7813_v62  ;;  %v1479_v30 = vand.u32 2139095040, %v7813_v62  ;;  %v1148_v56 = vsel %vm7930_vm15, %v7514_v2, %v1145_v45 }
 0x1df   : > { %v1440_v29 = vclz %v6276_v47  ;;  %v7990_v27 = vmul.u32.u64.low %v1628_v15, %v1627_v51  ;;  %v7991_v44 = vmul.u32.u64.high %v1628_v15, %v1627_v51, %v7990_v27  ;;  %6780 = vcosq.f32 %v1252_v12 }
 0x1e0   : > { %v1619_v61 = vsel %vm1613_vm10, %v1616_v43, %v1618_v32  ;;  %v1638_v22 = vadd.s32 1, %v7973_v49  ;;  %v1480_v55 = vshrl.u32 %v1479_v30, 23  ;;  %6782 = vsinq.f32 %v1252_v12 }
 0x1e1   : > { %v12050_v42 = vand.u32 2147483647, %v7709_v39  ;;  %v6277_v8 = vadd.s32 4294967294, %v1440_v29  ;;  %v1459_v45 = vsel %vm1374_vm4, %v1458_v50, %v1434_v40  ;;  %6784 = vcosq.f32 %v1148_v56 }
 0x1e2   : > { %v1353_v47 = vsel %vm11865_vm6, %v1352_v7, %v1351_v16  ;;  %v6279_v31 = vadd.s32 4294967169, %v1480_v55  ;;  %v1483_v43 = vand.u32 8388607, %v11860_v21  ;;  %v1635_v12 = vmul.u32 %v1628_v15, %v1619_v61 }
 0x1e3   : > { %vm7998_vm8 = vcmp.le.f32.partialorder %v12050_v42, 0.7853982  ;;  %vm6278_vm12 = vcmp.lt.s32.totalorder %v6277_v8, 0  ;;  %vm1637_vm2 = vc.u32 %v7991_v44, %v7972_v52  ;;  %v8012_v32 = vadd.f32 %v7455_v60, %v7694_v59 }
 0x1e4   : > { %v1443_v19 = vsel %vm6278_vm12, 0, %v6277_v8  ;;  %v1461_v40 = vsel %vm7998_vm8, 0, %v1459_v45  ;;  %v1639_v50 = vsel %vm1637_vm2, %v1638_v22, %v7973_v49  ;;  %v1486_v16 = vadd.s32 1, %v6279_v31  ;;  %v8033_v8 = vpop.permute.xlu1 %333 }
 0x1e5   : > { %12053 = vst [vmem:[#allocation25_spill] sm:$0xff] %v8012_v32  ;;  %v1356_v7 = vsel %vm7966_vm11, %v7602_v6, %v1353_v47  ;;  %v1444_v51 = vsub.s32 32, %v1443_v19  ;;  %v1448_v15 = vsub.s32 4294967266, %v1443_v19  ;;  %v1640_v30 = vadd.s32 %v1639_v50, %v1635_v12 }
 0x1e6   : > { %6786 = vsinq.f32 %v1148_v56  ;;  %v1428_v29 = vadd.s32 %v7882_v1, %v7889_v25  ;;  %v1484_v60 = vor.u32 8388608, %v1483_v43  ;;  %vm1487_vm5 = vcmp.gt.s32.totalorder %v1486_v16, 0 }
 0x1e7   : > { %v1449_v59 = vadd.s32 127, %v1448_v15  ;;  %v1641_v27 = vadd.s32 536870912, %v1640_v30  ;;  %v1488_v61 = vsel %vm1487_vm5, %v1486_v16, 0  ;;  %v1687_v55 = vand.u32 2139095040, %v8012_v32 }
 0x1e8   : > { %v8027_v49 = vadd.s32 3, %v1253_v23  ;;  %6788 = vcosq.f32 %v1356_v7  ;;  %v8029_v22 = vadd.s32 3, %v1461_v40  ;;  %v1490_v56 = vand.u32 31, %v1488_v61 }
 0x1e9   : > { %6790 = vsinq.f32 %v1356_v7  ;;  %v1446_v42 = vshrl.u32 %v1428_v29, %v1444_v51  ;;  %v1450_v1 = vshll.u32 %v1449_v59, 23  ;;  %v8031_v25 = vshrl.u32 %v1641_v27, 30  ;;  %v8035_v45 = vpop.eup %6780 }
 0x1ea   : > { %12054 = vst [vmem:[#allocation26_spill] sm:$0xff] %v8027_v49  ;;  %12055 = vst [vmem:[#allocation27_spill] sm:$0xff] %v8029_v22  ;;  %v1445_v47 = vshll.u32 %v7948_v9, %v1443_v19  ;;  %v1491_v57 = vsub.s32 32, %v1490_v56  ;;  %v8038_v31 = vshll.u32 %v1484_v60, 8  ;;  %v8042_v33 = vadd.f32 %v7528_v24, %v8033_v8  ;;  %v8044_v23 = vpop.eup %6782 }
 0x1eb   : > { %12056 = vst [vmem:[#allocation28_spill] sm:$0xff] %v8035_v45  ;;  %12057 = vst [vmem:[#allocation29_spill] sm:$0xff] %v8044_v23  ;;  %v1643_v43 = vshll.u32 %v8031_v25, 30  ;;  %v1493_v12 = vshll.u32 %v12026_v28, %v1490_v56  ;;  %v1496_v40 = vshll.u32 %v12027_v35, %v1490_v56  ;;  %v1688_v50 = vshrl.u32 %v1687_v55, 23  ;;  %v8049_v16 = vpop.eup %6784 }
 0x1ec   : > { %v1451_v7 = vor.u32 4788187, %v1450_v1  ;;  %v1494_v9 = vshrl.u32 %v12027_v35, %v1491_v57  ;;  %v1497_v19 = vshrl.u32 %v12028_v54, %v1491_v57  ;;  %v1500_v51 = vshrl.u32 %v12029_v14, %v1491_v57 }
 0x1ed   : > { %v1447_v24 = vor.u32 %v1446_v42, %v1445_v47  ;;  %v8054_v15 = vsub.s32 %v1640_v30, %v1643_v43  ;;  %v1489_v29 = vshrl.u32 %v1488_v61, 5  ;;  %v1499_v60 = vshll.u32 %v12028_v54, %v1490_v56 }
 0x1ee   : > { %v1636_v59 = vadd.s32 %v7972_v52, %v7991_v44  ;;  %v1495_v27 = vor.u32 %v1494_v9, %v1493_v12  ;;  %v1498_v55 = vor.u32 %v1497_v19, %v1496_v40  ;;  %vm1582_vm13 = vcmp.lt.s32.totalorder %v7798_v11, 0 }
 0x1ef   : > { %v1646_v1 = vsub.s32 0, %v8054_v15  ;;  %v1501_v22 = vor.u32 %v1500_v51, %v1499_v60  ;;  %v1502_v46 = vshll.u32 %v12029_v14, %v1490_v56  ;;  %v1503_v30 = vshrl.u32 %v12030_v20, %v1491_v57 }
 0x1f0   : > { %v8064_v42 = vpop.eup %6786  ;;  %v1452_v61 = vand.u32 2147483647, %v1451_v7  ;;  %v1505_v47 = vshll.u32 %v12030_v20, %v1490_v56  ;;  %v1506_v52 = vshrl.u32 %v12022_v38, %v1491_v57  ;;  %v6287_v44 = vadd.s32 4294967169, %v1688_v50 }
 0x1f1   : > { %v1454_v43 = vcvt.s32.f32 %v1447_v24  ;;  %v6284_v12 = vmin.u32 %v1646_v1, %v8054_v15  ;;  %v1504_v40 = vor.u32 %v1503_v30, %v1502_v46  ;;  %vm1508_vm7 = vcmp.lt.s32.totalorder %v1489_v29, 1 }
 0x1f2   : > { %v8069_v9 = vpop.eup %6788  ;;  %v1492_v19 = vshrl.u32 %v12026_v28, %v1491_v57  ;;  %v1507_v51 = vor.u32 %v1506_v52, %v1505_v47  ;;  %vm1511_vm10 = vcmp.lt.s32.totalorder %v1489_v29, 4  ;;  %v1516_v60 = vsel %vm1508_vm7, %v1495_v27, %v1498_v55 }
 0x1f3   : > { %12058 = vst [vmem:[#allocation30_spill] sm:$0xff] %v8069_v9  ;;  %v8073_v21 = vpop.eup %6790  ;;  %v12060_v56 = vand.u32 2147483647, %v7798_v11  ;;  %v1648_v50 = vclz %v6284_v12  ;;  %vm1510_vm2 = vcmp.lt.s32.totalorder %v1489_v29, 3  ;;  %v1513_v46 = vsel %vm1511_vm10, %v1501_v22, 2102212464 }
 0x1f4   : > { %12059 = vst [vmem:[#allocation31_spill] sm:$0xff] %v8073_v21  ;;  %v1517_v24 = vsel %vm1511_vm10, %v1504_v40, 920167782  ;;  %v1455_v1 = vmul.f32 %v1454_v43, %v1452_v61  ;;  %v1666_v57 = vsub.s32 4, %v8031_v25  ;;  %vm1509_vm5 = vcmp.lt.s32.totalorder %v1489_v29, 2 }
 0x1f5   : > { %vm8077_vm12 = vcmp.le.f32.partialorder %v12060_v56, 0.7853982  ;;  %v1518_v30 = vsel %vm1510_vm2, %v1501_v22, %v1517_v24  ;;  %v6285_v47 = vadd.s32 4294967294, %v1648_v50  ;;  %v1512_v52 = vsel %vm1508_vm7, %v1492_v19, %v1495_v27 }
 0x1f6   : > { %v1519_v45 = vsel %vm1509_vm5, %v1516_v60, %v1518_v30  ;;  %v1520_v56 = vsel %vm1508_vm7, %v1498_v55, %v1501_v22  ;;  %v1514_v23 = vsel %vm1510_vm2, %v1498_v55, %v1513_v46  ;;  %v1521_v12 = vsel %vm1511_vm10, %v1507_v51, 1326507024 }
 0x1f7   : > { %v8089_v49 = vmul.u32.u64.low %v8038_v31, %v1519_v45  ;;  %v8090_v48 = vmul.u32.u64.high %v8038_v31, %v1519_v45, %v8089_v49  ;;  %vm6286_vm6 = vcmp.lt.s32.totalorder %v6285_v47, 0  ;;  %v1522_v61 = vsel %vm1510_vm2, %v1504_v40, %v1521_v12 }
 0x1f8   : > { %v12063_v43 = vand.u32 2147483647, %v8012_v32  ;;  %v1694_v50 = vadd.s32 1, %v6287_v44  ;;  %v1456_v3 = vxor.u32 2147483648, %v1455_v1  ;;  %v1651_v27 = vsel %vm6286_vm6, 0, %v6285_v47 }
 0x1f9   : > { %v8098_v22 = vsel %vm1582_vm13, %v1666_v57, %v8031_v25  ;;  %v1523_v55 = vsel %vm1509_vm5, %v1520_v56, %v1522_v61  ;;  %v1652_v19 = vsub.s32 32, %v1651_v27  ;;  %v1656_v51 = vsub.s32 4294967266, %v1651_v27 }
 0x1fa   : > { %v1691_v24 = vand.u32 8388607, %v12063_v43  ;;  %v1515_v45 = vsel %vm1509_vm5, %v1512_v52, %v1514_v23  ;;  %vm1695_vm7 = vcmp.gt.s32.totalorder %v1694_v50, 0  ;;  %v1653_v40 = vshll.u32 %v8054_v15, %v1651_v27 }
 0x1fb   : > { %v8104_v60 = vmul.u32.u64.low %v8038_v31, %v1523_v55  ;;  %v8105_v46 = vmul.u32.u64.high %v8038_v31, %v1523_v55, %v8104_v60  ;;  %v1696_v44 = vsel %vm1695_vm7, %v1694_v50, 0  ;;  %v1654_v30 = vshrl.u32 %v1636_v59, %v1652_v19 }
 0x1fc   : > { %v1657_v47 = vadd.s32 127, %v1656_v51  ;;  %v1534_v12 = vadd.s32 1, %v8090_v48  ;;  %v1698_v25 = vand.u32 31, %v1696_v44  ;;  %v1692_v56 = vor.u32 8388608, %v1691_v24 }
 0x1fd   : > { %v8114_v15 = vadd.f32 %v7604_v10, %v8033_v8  ;;  %v1457_v29 = vsel %vm1374_vm4, %v1456_v3, %v1455_v1  ;;  %v1655_v52 = vor.u32 %v1654_v30, %v1653_v40  ;;  %v1531_v43 = vmul.u32 %v8038_v31, %v1515_v45 }
 0x1fe   : > { %v1658_v59 = vshll.u32 %v1657_v47, 23  ;;  %v1699_v61 = vsub.s32 32, %v1698_v25  ;;  %vm1533_vm6 = vc.u32 %v8105_v46, %v8089_v49  ;;  %v1697_v50 = vshrl.u32 %v1696_v44, 5 }
 0x1ff   : > { %v1701_v24 = vshll.u32 %v12026_v28, %v1698_v25  ;;  %v1535_v55 = vsel %vm1533_vm6, %v1534_v12, %v8090_v48  ;;  %v1704_v10 = vshll.u32 %v12027_v35, %v1698_v25  ;;  %v1707_v19 = vshll.u32 %v12028_v54, %v1698_v25 }
 0x200   : > { %v1659_v27 = vor.u32 4788187, %v1658_v59  ;;  %v1536_v51 = vadd.s32 %v1535_v55, %v1531_v43  ;;  %v1702_v3 = vshrl.u32 %v12027_v35, %v1699_v61  ;;  %v1705_v1 = vshrl.u32 %v12028_v54, %v1699_v61 }
 0x201   : > { %v1708_v31 = vshrl.u32 %v12029_v14, %v1699_v61  ;;  %v1662_v40 = vcvt.s32.f32 %v1655_v52  ;;  %v1710_v60 = vshll.u32 %v12029_v14, %v1698_v25  ;;  %v1711_v44 = vshrl.u32 %v12030_v20, %v1699_v61 }
 0x202   : > { %v1660_v45 = vand.u32 2147483647, %v1659_v27  ;;  %v1537_v30 = vadd.s32 536870912, %v1536_v51  ;;  %v1703_v47 = vor.u32 %v1702_v3, %v1701_v24  ;;  %v1706_v48 = vor.u32 %v1705_v1, %v1704_v10 }
 0x203   : > { %v1709_v12 = vor.u32 %v1708_v31, %v1707_v19  ;;  %v1460_v59 = vsel %vm7998_vm8, %v7709_v39, %v1457_v29  ;;  %v1712_v43 = vor.u32 %v1711_v44, %v1710_v60  ;;  %v1713_v55 = vshll.u32 %v12030_v20, %v1698_v25 }
 0x204   : > { %v1714_v57 = vshrl.u32 %v12022_v38, %v1699_v61  ;;  %v1663_v23 = vmul.f32 %v1662_v40, %v1660_v45  ;;  %v8135_v27 = vshrl.u32 %v1537_v30, 30  ;;  %v1700_v52 = vshrl.u32 %v12026_v28, %v1699_v61 }
 0x205   : > { %v1732_v9 = vshll.u32 %v1692_v56, 8  ;;  %vm1716_vm4 = vcmp.lt.s32.totalorder %v1697_v50, 1  ;;  %vm1718_vm10 = vcmp.lt.s32.totalorder %v1697_v50, 3  ;;  %vm1719_vm2 = vcmp.lt.s32.totalorder %v1697_v50, 4 }
 0x206   : > { %12064 = vst [vmem:[#allocation32_spill] sm:$0xff] %v8135_v27  ;;  %v1715_v21 = vor.u32 %v1714_v57, %v1713_v55  ;;  %v1539_v24 = vshll.u32 %v8135_v27, 30  ;;  %v1721_v10 = vsel %vm1719_vm2, %v1709_v12, 2102212464  ;;  %v1724_v0 = vsel %vm1716_vm4, %v1703_v47, %v1706_v48 }
 0x207   : > { %v1725_v29 = vsel %vm1719_vm2, %v1712_v43, 920167782  ;;  %vm1717_vm8 = vcmp.lt.s32.totalorder %v1697_v50, 2  ;;  %v1728_v25 = vsel %vm1716_vm4, %v1706_v48, %v1709_v12  ;;  %v1791_v3 = vand.u32 2139095040, %v8042_v33 }
 0x208   : > { %v1726_v19 = vsel %vm1718_vm10, %v1709_v12, %v1725_v29  ;;  %v8140_v1 = vsub.s32 %v1536_v51, %v1539_v24  ;;  %v1720_v31 = vsel %vm1716_vm4, %v1700_v52, %v1703_v47  ;;  %v1729_v56 = vsel %vm1719_vm2, %v1715_v21, 1326507024 }
 0x209   : > { %v1727_v61 = vsel %vm1717_vm8, %v1724_v0, %v1726_v19  ;;  %v1722_v57 = vsel %vm1718_vm10, %v1706_v48, %v1721_v10  ;;  %v1730_v45 = vsel %vm1718_vm10, %v1712_v43, %v1729_v56  ;;  %v1664_v44 = vxor.u32 2147483648, %v1663_v23 }
 0x20a   : > { %v8143_v40 = vmul.u32.u64.low %v1732_v9, %v1727_v61  ;;  %v8144_v60 = vmul.u32.u64.high %v1732_v9, %v1727_v61, %v8143_v40  ;;  %v1542_v30 = vsub.s32 0, %v8140_v1  ;;  %v1731_v55 = vsel %vm1717_vm8, %v1728_v25, %v1730_v45 }
 0x20b   : > { %v12065_v12 = vand.u32 2147483647, %v8042_v33  ;;  %v8151_v51 = vmul.u32.u64.low %v1732_v9, %v1731_v55  ;;  %v8152_v24 = vmul.u32.u64.high %v1732_v9, %v1731_v55, %v8151_v51  ;;  %v1792_v47 = vshrl.u32 %v1791_v3, 23 }
 0x20c   : > { %v11869_v21 = vand.u32 2147483647, %v8114_v15  ;;  %v6280_v48 = vmin.u32 %v1542_v30, %v8140_v1  ;;  %v1723_v43 = vsel %vm1717_vm8, %v1720_v31, %v1722_v57  ;;  %v1999_v52 = vand.u32 2139095040, %v8114_v15 }
 0x20d   : > { %v1795_v29 = vand.u32 8388607, %v12065_v12  ;;  %v8160_v10 = vadd.f32 %v7689_v37, %v8033_v8  ;;  %6792 = vcosq.f32 %v1460_v59  ;;  %v12066_v0 = vsel %vm8077_vm12, 0, %v8098_v22 }
 0x20e   : > { %v8166_v19 = vadd.s32 3, %v12066_v0  ;;  %v1742_v25 = vadd.s32 1, %v8144_v60  ;;  %v6291_v3 = vadd.s32 4294967169, %v1792_v47  ;;  %v1665_v50 = vsel %vm1582_vm13, %v1664_v44, %v1663_v23 }
 0x20f   : > { %v1544_v31 = vclz %v6280_v48  ;;  %v1796_v61 = vor.u32 8388608, %v1795_v29  ;;  %v2000_v56 = vshrl.u32 %v1999_v52, 23  ;;  %v1739_v57 = vmul.u32 %v1732_v9, %v1723_v43 }
 0x210   : > { %12067 = vst [vmem:[#allocation33_spill] sm:$0xff] %v8166_v19  ;;  %vm1741_vm5 = vc.u32 %v8152_v24, %v8143_v40  ;;  %v1798_v37 = vadd.s32 1, %v6291_v3  ;;  %v8175_v45 = vand.u32 8388607, %v11869_v21  ;;  %6794 = vsinq.f32 %v1460_v59 }
 0x211   : > { %v6281_v22 = vadd.s32 4294967294, %v1544_v31  ;;  %v1743_v30 = vsel %vm1741_vm5, %v1742_v25, %v8144_v60  ;;  %v6299_v55 = vadd.s32 4294967169, %v2000_v56  ;;  %v8181_v23 = vsel %vm8077_vm12, %v7798_v11, %v1665_v50 }
 0x212   : > { %v1532_v9 = vadd.s32 %v8089_v49, %v8105_v46  ;;  %v1744_v44 = vadd.s32 %v1743_v30, %v1739_v57  ;;  %vm1799_vm13 = vcmp.gt.s32.totalorder %v1798_v37, 0  ;;  %v8185_v29 = vshll.u32 %v1796_v61, 8 }
 0x213   : > { %vm6282_vm7 = vcmp.lt.s32.totalorder %v6281_v22, 0  ;;  %v1800_v12 = vsel %vm1799_vm13, %v1798_v37, 0  ;;  %v2006_v0 = vadd.s32 1, %v6299_v55  ;;  %vm11874_vm6 = vcmp.lt.s32.totalorder %v7813_v62, 0 }
 0x214   : > { %v1547_v51 = vsel %vm6282_vm7, 0, %v6281_v22  ;;  %v1745_v47 = vadd.s32 536870912, %v1744_v44  ;;  %v1802_v60 = vand.u32 31, %v1800_v12  ;;  %v8189_v52 = vshrl.u32 %v1800_v12, 5 }
 0x215   : > { %v1548_v43 = vsub.s32 32, %v1547_v51  ;;  %v1552_v7 = vsub.s32 4294967266, %v1547_v51  ;;  %v1549_v49 = vshll.u32 %v8140_v1, %v1547_v51  ;;  %vm2007_vm12 = vcmp.gt.s32.totalorder %v2006_v0, 0 }
 0x216   : > { %v8192_v46 = vshrl.u32 %v1745_v47, 30  ;;  %v1803_v25 = vsub.s32 32, %v1802_v60  ;;  %v1805_v3 = vshll.u32 %v12026_v28, %v1802_v60  ;;  %v1808_v61 = vshll.u32 %v12027_v35, %v1802_v60 }
 0x217   : > { %v1550_v50 = vshrl.u32 %v1532_v9, %v1548_v43  ;;  %v1553_v31 = vadd.s32 127, %v1552_v7  ;;  %v1811_v56 = vshll.u32 %v12028_v54, %v1802_v60  ;;  %v8197_v57 = vpop.eup %6792  ;;  %v1814_v1 = vshll.u32 %v12029_v14, %v1802_v60 }
 0x218   : > { %12068 = vst [vmem:[#allocation34_spill] sm:$0xff] %v8192_v46  ;;  %12069 = vst [vmem:[#allocation35_spill] sm:$0xff] %v8197_v57  ;;  %v1747_v37 = vshll.u32 %v8192_v46, 30  ;;  %v1806_v22 = vshrl.u32 %v12027_v35, %v1803_v25  ;;  %v1809_v30 = vshrl.u32 %v12028_v54, %v1803_v25  ;;  %v1812_v51 = vshrl.u32 %v12029_v14, %v1803_v25 }
 0x219   : > { %v1551_v55 = vor.u32 %v1550_v50, %v1549_v49  ;;  %v1554_v12 = vshll.u32 %v1553_v31, 23  ;;  %v1815_v9 = vshrl.u32 %v12030_v20, %v1803_v25  ;;  %v1804_v48 = vshrl.u32 %v12026_v28, %v1803_v25 }
 0x21a   : > { %v8205_v47 = vsub.s32 %v1744_v44, %v1747_v37  ;;  %v1807_v43 = vor.u32 %v1806_v22, %v1805_v3  ;;  %v1810_v7 = vor.u32 %v1809_v30, %v1808_v61  ;;  %v8207_v21 = vpop.eup %6794  ;;  %v1813_v11 = vor.u32 %v1812_v51, %v1811_v56 }
 0x21b   : > { %12070 = vst [vmem:[#allocation36_spill] sm:$0xff] %v8207_v21  ;;  %v1555_v59 = vor.u32 4788187, %v1554_v12  ;;  %v1816_v19 = vor.u32 %v1815_v9, %v1814_v1  ;;  %v1558_v49 = vcvt.s32.f32 %v1551_v55  ;;  %v1817_v31 = vshll.u32 %v12030_v20, %v1802_v60 }
 0x21c   : > { %v1750_v50 = vsub.s32 0, %v8205_v47  ;;  %v1818_v44 = vshrl.u32 %v12022_v38, %v1803_v25  ;;  %vm1820_vm4 = vcmp.lt.s32.totalorder %v8189_v52, 1  ;;  %vm1821_vm10 = vcmp.lt.s32.totalorder %v8189_v52, 2 }
 0x21d   : > { %v1556_v37 = vand.u32 2147483647, %v1555_v59  ;;  %vm1823_vm2 = vcmp.lt.s32.totalorder %v8189_v52, 4  ;;  %v1828_v22 = vsel %vm1820_vm4, %v1807_v43, %v1810_v7  ;;  %v12071_v30 = vand.u32 2147483647, %v7813_v62 }
 0x21e   : > { %v6288_v3 = vmin.u32 %v1750_v50, %v8205_v47  ;;  %v1819_v61 = vor.u32 %v1818_v44, %v1817_v31  ;;  %v1825_v56 = vsel %vm1823_vm2, %v1813_v11, 2102212464  ;;  %v12072_v1 = vmov 0 }
 0x21f   : > { %vm8220_vm8 = vcmp.le.f32.partialorder %v12071_v30, 0.7853982  ;;  %v1559_v60 = vmul.f32 %v1558_v49, %v1556_v37  ;;  %vm1822_vm5 = vcmp.lt.s32.totalorder %v8189_v52, 3  ;;  %v1829_v59 = vsel %vm1823_vm2, %v1816_v19, 920167782 }
 0x220   : > { %v12073_v1 = vsel %vm8220_vm8, 4294967295, %v12072_v1  ;;  %v1832_v25 = vsel %vm1820_vm4, %v1810_v7, %v1813_v11  ;;  %v1752_v55 = vclz %v6288_v3  ;;  %v1824_v12 = vsel %vm1820_vm4, %v1804_v48, %v1807_v43 }
 0x221   : > { %12074 = vst [vmem:[#allocation37_spill] sm:$0xff] %v12073_v1  ;;  %v1830_v51 = vsel %vm1822_vm5, %v1813_v11, %v1829_v59  ;;  %v1833_v9 = vsel %vm1823_vm2, %v1819_v61, 1326507024  ;;  %v1560_v57 = vxor.u32 2147483648, %v1559_v60  ;;  %v1826_v50 = vsel %vm1822_vm5, %v1810_v7, %v1825_v56 }
 0x222   : > { %v1831_v31 = vsel %vm1821_vm10, %v1828_v22, %v1830_v51  ;;  %v1834_v44 = vsel %vm1822_vm5, %v1816_v19, %v1833_v9  ;;  %v6289_v39 = vadd.s32 4294967294, %v1752_v55  ;;  %6796 = vcosq.f32 %v8181_v23 }
 0x223   : > { %v1835_v30 = vsel %vm1821_vm10, %v1832_v25, %v1834_v44  ;;  %v8230_v49 = vmul.u32.u64.low %v8185_v29, %v1831_v31  ;;  %v8231_v37 = vmul.u32.u64.high %v8185_v29, %v1831_v31, %v8230_v49  ;;  %v2008_v43 = vsel %vm2007_vm12, %v2006_v0, 0 }
 0x224   : > { %v8236_v11 = vmul.u32.u64.low %v8185_v29, %v1835_v30  ;;  %v8237_v48 = vmul.u32.u64.high %v8185_v29, %v1835_v30, %v8236_v11  ;;  %6798 = vsinq.f32 %v8181_v23  ;;  %vm6290_vm13 = vcmp.lt.s32.totalorder %v6289_v39, 0 }
 0x225   : > { %v1827_v19 = vsel %vm1821_vm10, %v1824_v12, %v1826_v50  ;;  %v2010_v7 = vand.u32 31, %v2008_v43  ;;  %v1561_v3 = vsel %vm11874_vm6, %v1560_v57, %v1559_v60  ;;  %v1740_v61 = vadd.s32 %v8143_v40, %v8152_v24 }
 0x226   : > { %v1755_v56 = vsel %vm6290_vm13, 0, %v6289_v39  ;;  %v12075_v22 = vor.u32 8388608, %v8175_v45  ;;  %v1895_v23 = vand.u32 2139095040, %v8160_v10  ;;  %v12076_v55 = vand.u32 2147483647, %v8160_v10 }
 0x227   : > { %v1756_v25 = vsub.s32 32, %v1755_v56  ;;  %v1760_v0 = vsub.s32 4294967266, %v1755_v56  ;;  %v1843_v12 = vmul.u32 %v8185_v29, %v1827_v19  ;;  %vm1845_vm7 = vc.u32 %v8237_v48, %v8230_v49 }
 0x228   : > { %v8249_v59 = vshll.u32 %v12075_v22, 8  ;;  %v8254_v52 = vand.u32 8388607, %v12076_v55  ;;  %v1846_v40 = vadd.s32 1, %v8231_v37  ;;  %v2011_v39 = vsub.s32 32, %v2010_v7 }
 0x229   : > { %v8263_v24 = vsel %vm8220_vm8, %v7813_v62, %v1561_v3  ;;  %v1757_v45 = vshll.u32 %v8205_v47, %v1755_v56  ;;  %v1758_v57 = vshrl.u32 %v1740_v61, %v1756_v25  ;;  %v1761_v60 = vadd.s32 127, %v1760_v0 }
 0x22a   : > { %v1847_v51 = vsel %vm1845_vm7, %v1846_v40, %v8231_v37  ;;  %v2013_v9 = vshll.u32 %v12026_v28, %v2010_v7  ;;  %v2014_v29 = vshrl.u32 %v12027_v35, %v2011_v39  ;;  %v2017_v50 = vshrl.u32 %v12028_v54, %v2011_v39 }
 0x22b   : > { %v1759_v31 = vor.u32 %v1758_v57, %v1757_v45  ;;  %v1762_v44 = vshll.u32 %v1761_v60, 23  ;;  %v1848_v30 = vadd.s32 %v1847_v51, %v1843_v12  ;;  %v2009_v11 = vshrl.u32 %v2008_v43, 5 }
 0x22c   : > { %v2015_v19 = vor.u32 %v2014_v29, %v2013_v9  ;;  %v2016_v3 = vshll.u32 %v12027_v35, %v2010_v7  ;;  %v2019_v22 = vshll.u32 %v12028_v54, %v2010_v7  ;;  %v2020_v47 = vshrl.u32 %v12029_v14, %v2011_v39  ;;  %v8275_v0 = vpop.eup %6796 }
 0x22d   : > { %v1763_v61 = vor.u32 4788187, %v1762_v44  ;;  %v1849_v56 = vadd.s32 536870912, %v1848_v30  ;;  %v2022_v37 = vshll.u32 %v12029_v14, %v2010_v7  ;;  %v2023_v25 = vshrl.u32 %v12030_v20, %v2011_v39  ;;  %12077 = vst [vmem:[#allocation38_spill] sm:$0xff] %v8275_v0 }
 0x22e   : > { %vm11891_vm12 = vcmp.lt.s32.totalorder %v8012_v32, 0  ;;  %v2018_v55 = vor.u32 %v2017_v50, %v2016_v3  ;;  %v2021_v12 = vor.u32 %v2020_v47, %v2019_v22  ;;  %v2025_v43 = vshll.u32 %v12030_v20, %v2010_v7  ;;  %v8280_v45 = vpop.eup %6798 }
 0x22f   : > { %v2026_v40 = vshrl.u32 %v12022_v38, %v2011_v39  ;;  %12078 = vst [vmem:[#allocation39_spill] sm:$0xff] %v8280_v45  ;;  %v1764_v57 = vand.u32 2147483647, %v1763_v61  ;;  %v1766_v60 = vcvt.s32.f32 %v1759_v31  ;;  %vm1790_vm4 = vcmp.lt.s32.totalorder %v8042_v33, 0 }
 0x230   : > { %v1850_v51 = vshrl.u32 %v1849_v56, 30  ;;  %v2024_v9 = vor.u32 %v2023_v25, %v2022_v37  ;;  %6800 = vcosq.f32 %v8263_v24  ;;  %v1896_v44 = vshrl.u32 %v1895_v23, 23 }
 0x231   : > { %v2027_v29 = vor.u32 %v2026_v40, %v2025_v43  ;;  %v8286_v50 = vadd.f32 %v7815_v34, %v8033_v8  ;;  %v12079_v7 = vand.u32 2147483647, %v8012_v32  ;;  %v12080_v3 = vmov 0 }
 0x232   : > { %v1767_v22 = vmul.f32 %v1766_v60, %v1764_v57  ;;  %v1851_v31 = vshll.u32 %v1850_v51, 30  ;;  %vm2028_vm2 = vcmp.lt.s32.totalorder %v2009_v11, 1  ;;  %vm2031_vm5 = vcmp.lt.s32.totalorder %v2009_v11, 4 }
 0x233   : > { %vm8290_vm10 = vcmp.le.f32.partialorder %v12079_v7, 0.7853982  ;;  %v12083_v47 = vand.u32 2147483647, %v8042_v33  ;;  %v2012_v23 = vshrl.u32 %v12026_v28, %v2011_v39  ;;  %v2033_v34 = vsel %vm2031_vm5, %v2021_v12, 2102212464 }
 0x234   : > { %v12081_v3 = vsel %vm8290_vm10, 4294967295, %v12080_v3  ;;  %v2036_v8 = vsel %vm2028_vm2, %v2015_v19, %v2018_v55  ;;  %v2037_v56 = vsel %vm2031_vm5, %v2024_v9, 920167782  ;;  %v1768_v37 = vxor.u32 2147483648, %v1767_v22 }
 0x235   : > { %12082 = vst [vmem:[#allocation40_spill] sm:$0xff] %v12081_v3  ;;  %vm8296_vm13 = vcmp.le.f32.partialorder %v12083_v47, 0.7853982  ;;  %v8302_v25 = vsub.s32 %v1848_v30, %v1851_v31  ;;  %vm2029_vm7 = vcmp.lt.s32.totalorder %v2009_v11, 2  ;;  %vm2030_vm6 = vcmp.lt.s32.totalorder %v2009_v11, 3 }
 0x236   : > { %v1874_v43 = vsub.s32 4, %v1850_v51  ;;  %v2038_v40 = vsel %vm2030_vm6, %v2021_v12, %v2037_v56  ;;  %v2040_v57 = vsel %vm2028_vm2, %v2018_v55, %v2021_v12  ;;  %v2041_v60 = vsel %vm2031_vm5, %v2027_v29, 1326507024 }
 0x237   : > { %v1854_v7 = vsub.s32 0, %v8302_v25  ;;  %v2032_v47 = vsel %vm2028_vm2, %v2012_v23, %v2015_v19  ;;  %v2034_v0 = vsel %vm2030_vm6, %v2018_v55, %v2033_v34  ;;  %v2039_v39 = vsel %vm2029_vm7, %v2036_v8, %v2038_v40 }
 0x238   : > { %v2042_v45 = vsel %vm2030_vm6, %v2024_v9, %v2041_v60  ;;  %v8309_v21 = vmul.u32.u64.low %v8249_v59, %v2039_v39  ;;  %v8310_v46 = vmul.u32.u64.high %v8249_v59, %v2039_v39, %v8309_v21  ;;  %v1900_v30 = vor.u32 8388608, %v8254_v52 }
 0x239   : > { %v1769_v31 = vsel %vm11891_vm12, %v1768_v37, %v1767_v22  ;;  %v6292_v12 = vmin.u32 %v1854_v7, %v8302_v25  ;;  %v2043_v29 = vsel %vm2029_vm7, %v2040_v57, %v2042_v45  ;;  %v6295_v56 = vadd.s32 4294967169, %v1896_v44 }
 0x23a   : > { %v8320_v19 = vsel %vm1790_vm4, %v1874_v43, %v1850_v51  ;;  %v2035_v55 = vsel %vm2029_vm7, %v2032_v47, %v2034_v0  ;;  %v8324_v9 = vmul.u32.u64.low %v8249_v59, %v2043_v29  ;;  %v8325_v23 = vmul.u32.u64.high %v8249_v59, %v2043_v29, %v8324_v9  ;;  %v8329_v8 = vpop.eup %6800 }
 0x23b   : > { %6802 = vsinq.f32 %v8263_v24  ;;  %v1856_v52 = vclz %v6292_v12  ;;  %v1902_v34 = vadd.s32 1, %v6295_v56  ;;  %v11880_v22 = vand.u32 2147483647, %v8286_v50  ;;  %12086 = vst [vmem:[#allocation41_spill] sm:$0xff] %v8329_v8 }
 0x23c   : > { %v8334_v45 = vsel %vm8290_vm10, %v8012_v32, %v1769_v31  ;;  %v1844_v11 = vadd.s32 %v8230_v49, %v8237_v48  ;;  %v2054_v0 = vadd.s32 1, %v8310_v46  ;;  %v2103_v51 = vand.u32 2139095040, %v8286_v50 }
 0x23d   : > { %v6293_v44 = vadd.s32 4294967294, %v1856_v52  ;;  %v2051_v37 = vmul.u32 %v8249_v59, %v2035_v55  ;;  %vm1903_vm6 = vcmp.gt.s32.totalorder %v1902_v34, 0  ;;  %vm2053_vm2 = vc.u32 %v8325_v23, %v8309_v21 }
 0x23e   : > { %v1904_v43 = vsel %vm1903_vm6, %v1902_v34, 0  ;;  %v2104_v40 = vshrl.u32 %v2103_v51, 23  ;;  %v8348_v49 = vand.u32 8388607, %v11880_v22  ;;  %6804 = vcosq.f32 %v8334_v45 }
 0x23f   : > { %vm6294_vm5 = vcmp.lt.s32.totalorder %v6293_v44, 0  ;;  %v2055_v48 = vsel %vm2053_vm2, %v2054_v0, %v8310_v46  ;;  %v1906_v57 = vand.u32 31, %v1904_v43  ;;  %vm1998_vm7 = vcmp.lt.s32.totalorder %v8114_v15, 0 }
 0x240   : > { %v1859_v60 = vsel %vm6294_vm5, 0, %v6293_v44  ;;  %v2056_v59 = vadd.s32 %v2055_v48, %v2051_v37  ;;  %v8353_v7 = vshll.u32 %v1900_v30, 8  ;;  %v8356_v12 = vshrl.u32 %v1904_v43, 5 }
 0x241   : > { %v1860_v39 = vsub.s32 32, %v1859_v60  ;;  %v1864_v31 = vsub.s32 4294967266, %v1859_v60  ;;  %v1907_v29 = vsub.s32 32, %v1906_v57  ;;  %v1861_v56 = vshll.u32 %v8302_v25, %v1859_v60 }
 0x242   : > { %v2057_v55 = vadd.s32 536870912, %v2056_v59  ;;  %v8359_v9 = vadd.s32 4294967169, %v2104_v40  ;;  %v1909_v0 = vshll.u32 %v12026_v28, %v1906_v57  ;;  %v1912_v44 = vshll.u32 %v12027_v35, %v1906_v57 }
 0x243   : > { %v1862_v52 = vshrl.u32 %v1844_v11, %v1860_v39  ;;  %v1865_v34 = vadd.s32 127, %v1864_v31  ;;  %v1910_v30 = vshrl.u32 %v12027_v35, %v1907_v29  ;;  %v1913_v37 = vshrl.u32 %v12028_v54, %v1907_v29 }
 0x244   : > { %v2058_v51 = vshrl.u32 %v2057_v55, 30  ;;  %v1916_v43 = vshrl.u32 %v12029_v14, %v1907_v29  ;;  %v12088_v60 = vand.u32 2147483647, %v8114_v15  ;;  %v1915_v39 = vshll.u32 %v12028_v54, %v1906_v57 }
 0x245   : > { %v8367_v48 = vpop.eup %6802  ;;  %v1863_v25 = vor.u32 %v1862_v52, %v1861_v56  ;;  %v1866_v40 = vshll.u32 %v1865_v34, 23  ;;  %v1919_v31 = vshrl.u32 %v12030_v20, %v1907_v29  ;;  %v1908_v46 = vshrl.u32 %v12026_v28, %v1907_v29 }
 0x246   : > { %12087 = vst [vmem:[#allocation42_spill] sm:$0xff] %v8367_v48  ;;  %vm8371_vm6 = vcmp.le.f32.partialorder %v12088_v60, 0.7853982  ;;  %v2059_v55 = vshll.u32 %v2058_v51, 30  ;;  %v2082_v22 = vsub.s32 4, %v2058_v51  ;;  %v1918_v47 = vshll.u32 %v12029_v14, %v1906_v57 }
 0x247   : > { %v1867_v24 = vor.u32 4788187, %v1866_v40  ;;  %v1911_v3 = vor.u32 %v1910_v30, %v1909_v0  ;;  %v1914_v56 = vor.u32 %v1913_v37, %v1912_v44  ;;  %v1917_v52 = vor.u32 %v1916_v43, %v1915_v39 }
 0x248   : > { %v8379_v34 = vsub.s32 %v2056_v59, %v2059_v55  ;;  %v1920_v60 = vor.u32 %v1919_v31, %v1918_v47  ;;  %v1921_v32 = vshll.u32 %v12030_v20, %v1906_v57  ;;  %v1922_v8 = vshrl.u32 %v12022_v38, %v1907_v29  ;;  %v8383_v48 = vpop.eup %6804 }
 0x249   : > { %v1868_v1 = vand.u32 2147483647, %v1867_v24  ;;  %v1870_v62 = vcvt.s32.f32 %v1863_v25  ;;  %v2083_v27 = vsel %vm1998_vm7, %v2082_v22, %v2058_v51  ;;  %vm1924_vm2 = vcmp.lt.s32.totalorder %v8356_v12, 1 }
 0x24a   : > { %v2062_v0 = vsub.s32 0, %v8379_v34  ;;  %v1923_v30 = vor.u32 %v1922_v8, %v1921_v32  ;;  %vm1925_vm5 = vcmp.lt.s32.totalorder %v8356_v12, 2  ;;  %vm1927_vm12 = vcmp.lt.s32.totalorder %v8356_v12, 4 }
 0x24b   : > { %v1871_v59 = vmul.f32 %v1870_v62, %v1868_v1  ;;  %vm1926_vm9 = vcmp.lt.s32.totalorder %v8356_v12, 3  ;;  %v1929_v57 = vsel %vm1927_vm12, %v1917_v52, 2102212464  ;;  %v1932_v47 = vsel %vm1924_vm2, %v1911_v3, %v1914_v56 }
 0x24c   : > { %v6300_v24 = vmin.u32 %v2062_v0, %v8379_v34  ;;  %v1928_v29 = vsel %vm1924_vm2, %v1908_v46, %v1911_v3  ;;  %v1933_v44 = vsel %vm1927_vm12, %v1920_v60, 920167782  ;;  %v1936_v37 = vsel %vm1924_vm2, %v1914_v56, %v1917_v52 }
 0x24d   : > { %v1872_v22 = vxor.u32 2147483648, %v1871_v59  ;;  %v1930_v51 = vsel %vm1926_vm9, %v1914_v56, %v1929_v57  ;;  %v1934_v43 = vsel %vm1926_vm9, %v1917_v52, %v1933_v44  ;;  %v1937_v25 = vsel %vm1927_vm12, %v1923_v30, 1326507024 }
 0x24e   : > { %v2064_v40 = vclz %v6300_v24  ;;  %v2085_v32 = vsel %vm8371_vm6, 0, %v2083_v27  ;;  %v1935_v62 = vsel %vm1925_vm5, %v1932_v47, %v1934_v43  ;;  %v1938_v1 = vsel %vm1926_vm9, %v1920_v60, %v1937_v25 }
 0x24f   : > { %v1873_v8 = vsel %vm1790_vm4, %v1872_v22, %v1871_v59  ;;  %v1939_v3 = vsel %vm1925_vm5, %v1936_v37, %v1938_v1  ;;  %v8402_v46 = vmul.u32.u64.low %v8353_v7, %v1935_v62  ;;  %v8403_v39 = vmul.u32.u64.high %v8353_v7, %v1935_v62, %v8402_v46 }
 0x250   : > { %v6301_v31 = vadd.s32 4294967294, %v2064_v40  ;;  %v1931_v55 = vsel %vm1925_vm5, %v1928_v29, %v1930_v51  ;;  %v8409_v27 = vmul.u32.u64.low %v8353_v7, %v1939_v3  ;;  %v8410_v56 = vmul.u32.u64.high %v8353_v7, %v1939_v3, %v8409_v27 }
 0x251   : > { %6806 = vsinq.f32 %v8334_v45  ;;  %v1876_v52 = vsel %vm8296_vm13, %v8042_v33, %v1873_v8  ;;  %v12091_v60 = vsel %vm8296_vm13, 0, %v8320_v19  ;;  %v2110_v30 = vadd.s32 1, %v8359_v9 }
 0x252   : > { %v8420_v0 = vadd.s32 3, %v12091_v60  ;;  %v2052_v12 = vadd.s32 %v8309_v21, %v8325_v23  ;;  %vm6302_vm9 = vcmp.lt.s32.totalorder %v6301_v31, 0  ;;  %v8425_v59 = vadd.s32 3, %v2085_v32 }
 0x253   : > { %v12092_v45 = vsub.s32 4, %v7373_v4  ;;  %v2067_v47 = vsel %vm6302_vm9, 0, %v6301_v31  ;;  %v1947_v61 = vmul.u32 %v8353_v7, %v1931_v55  ;;  %v1950_v19 = vadd.s32 1, %v8403_v39 }
 0x254   : > { %vm2111_vm12 = vcmp.gt.s32.totalorder %v2110_v30, 0  ;;  %6808 = vcosq.f32 %v1876_v52  ;;  %v2068_v9 = vsub.s32 32, %v2067_v47  ;;  %v2072_v24 = vsub.s32 4294967266, %v2067_v47 }
 0x255   : > { %v731_v57 = vsel %vm646_vm1, %v12092_v45, %v7373_v4  ;;  %v12093_v21 = vor.u32 8388608, %v8348_v49  ;;  %v2069_v29 = vshll.u32 %v8379_v34, %v2067_v47  ;;  %vm1949_vm4 = vc.u32 %v8410_v56, %v8402_v46 }
 0x256   : > { %v2112_v44 = vsel %vm2111_vm12, %v2110_v30, 0  ;;  %v733_v4 = vsel %vm7565_vm3, 0, %v731_v57  ;;  %v2070_v7 = vshrl.u32 %v2052_v12, %v2068_v9  ;;  %v2073_v37 = vadd.s32 127, %v2072_v24 }
 0x257   : > { %v8436_v23 = vshll.u32 %v12093_v21, 8  ;;  %v1951_v22 = vsel %vm1949_vm4, %v1950_v19, %v8403_v39  ;;  %v2113_v51 = vshrl.u32 %v2112_v44, 5  ;;  %6810 = vsinq.f32 %v1876_v52 }
 0x258   : > { %v1952_v43 = vadd.s32 %v1951_v22, %v1947_v61  ;;  %v2114_v25 = vand.u32 31, %v2112_v44  ;;  %v741_v49 = vxor.u32 2147483648, %v7750_v13  ;;  %v2071_v40 = vor.u32 %v2070_v7, %v2069_v29 }
 0x259   : > { %v2074_v32 = vshll.u32 %v2073_v37, 23  ;;  %vm2132_vm1 = vcmp.lt.s32.totalorder %v2113_v51, 1  ;;  %v737_v34 = vadd.s32 3, %v733_v4  ;;  %vm2133_vm3 = vcmp.lt.s32.totalorder %v2113_v51, 2 }
 0x25a   : > { %v1953_v62 = vadd.s32 536870912, %v1952_v43  ;;  %v2115_v1 = vsub.s32 32, %v2114_v25  ;;  %v2117_v8 = vshll.u32 %v12026_v28, %v2114_v25  ;;  %v2120_v26 = vshll.u32 %v12027_v35, %v2114_v25 }
 0x25b   : > { %v2075_v3 = vor.u32 4788187, %v2074_v32  ;;  %v2078_v31 = vcvt.s32.f32 %v2071_v40  ;;  %v2123_v39 = vshll.u32 %v12028_v54, %v2114_v25  ;;  %v2126_v55 = vshll.u32 %v12029_v14, %v2114_v25  ;;  %v8449_v27 = vpop.eup %6806 }
 0x25c   : > { %v8451_v52 = vshrl.u32 %v1953_v62, 30  ;;  %v2116_v60 = vshrl.u32 %v12026_v28, %v2115_v1  ;;  %v2118_v30 = vshrl.u32 %v12027_v35, %v2115_v1  ;;  %v2121_v12 = vshrl.u32 %v12028_v54, %v2115_v1 }
 0x25d   : > { %v2076_v45 = vand.u32 2147483647, %v2075_v3  ;;  %v2124_v57 = vshrl.u32 %v12029_v14, %v2115_v1  ;;  %v2127_v47 = vshrl.u32 %v12030_v20, %v2115_v1  ;;  %v2129_v61 = vshll.u32 %v12030_v20, %v2114_v25 }
 0x25e   : > { %v1955_v19 = vshll.u32 %v8451_v52, 30  ;;  %v2119_v9 = vor.u32 %v2118_v30, %v2117_v8  ;;  %v2122_v24 = vor.u32 %v2121_v12, %v2120_v26  ;;  %v2130_v21 = vshrl.u32 %v12022_v38, %v2115_v1  ;;  %v8461_v29 = vpop.eup %6808 }
 0x25f   : > { %v2079_v44 = vmul.f32 %v2078_v31, %v2076_v45  ;;  %v2125_v4 = vor.u32 %v2124_v57, %v2123_v39  ;;  %v2128_v7 = vor.u32 %v2127_v47, %v2126_v55  ;;  %vm2134_vm13 = vcmp.lt.s32.totalorder %v2113_v51, 3 }
 0x260   : > { %v8463_v37 = vsub.s32 %v1952_v43, %v1955_v19  ;;  %v2131_v22 = vor.u32 %v2130_v21, %v2129_v61  ;;  %vm2135_vm2 = vcmp.lt.s32.totalorder %v2113_v51, 4  ;;  %v2136_v40 = vsel %vm2132_vm1, %v2116_v60, %v2119_v9 }
 0x261   : > { %v2080_v32 = vxor.u32 2147483648, %v2079_v44  ;;  %v2137_v25 = vsel %vm2135_vm2, %v2125_v4, 2102212464  ;;  %v2140_v62 = vsel %vm2132_vm1, %v2119_v9, %v2122_v24  ;;  %v2141_v8 = vsel %vm2135_vm2, %v2128_v7, 920167782  ;;  %v8467_v26 = vpop.eup %6810 }
 0x262   : > { %v1958_v1 = vsub.s32 0, %v8463_v37  ;;  %v2138_v3 = vsel %vm2134_vm13, %v2122_v24, %v2137_v25  ;;  %v2142_v31 = vsel %vm2134_vm13, %v2125_v4, %v2141_v8  ;;  %v2144_v43 = vsel %vm2132_vm1, %v2122_v24, %v2125_v4 }
 0x263   : > { %v2081_v39 = vsel %vm1998_vm7, %v2080_v32, %v2079_v44  ;;  %v2143_v55 = vsel %vm2133_vm3, %v2140_v62, %v2142_v31  ;;  %v2145_v60 = vsel %vm2135_vm2, %v2131_v22, 1326507024  ;;  %v738_v30 = vand.u32 3, %v737_v34 }
 0x264   : > { %v6296_v12 = vmin.u32 %v1958_v1, %v8463_v37  ;;  %v2139_v45 = vsel %vm2133_vm3, %v2136_v40, %v2138_v3  ;;  %v2146_v57 = vsel %vm2134_vm13, %v2128_v7, %v2145_v60  ;;  %v744_v47 = vxor.u32 2147483648, %v7669_v17 }
 0x265   : > { %v2084_v61 = vsel %vm8371_vm6, %v8114_v15, %v2081_v39  ;;  %v2147_v19 = vsel %vm2133_vm3, %v2144_v43, %v2146_v57  ;;  %v8485_v9 = vmul.u32.u64.low %v8436_v23, %v2143_v55  ;;  %v8486_v24 = vmul.u32.u64.high %v8436_v23, %v2143_v55, %v8485_v9 }
 0x266   : > { %v1948_v34 = vadd.s32 %v8402_v46, %v8410_v56  ;;  %v1960_v21 = vclz %v6296_v12  ;;  %v8492_v44 = vmul.u32.u64.low %v8436_v23, %v2147_v19  ;;  %v8493_v4 = vmul.u32.u64.high %v8436_v23, %v2147_v19, %v8492_v44 }
 0x267   : > { %vm736_vm7 = vweird.f32 %v7193_v36  ;;  %v2155_v11 = vmul.u32 %v8436_v23, %v2139_v45  ;;  %vm739_vm6 = vcmp.lt.s32.totalorder %v738_v30, 2  ;;  %vm740_vm5 = vcmp.eq.s32.totalorder %v738_v30, 0 }
 0x268   : > { %v1146_v51 = vsub.s32 4, %v7745_v18  ;;  %6812 = vcosq.f32 %v2084_v61  ;;  %v6297_v7 = vadd.s32 4294967294, %v1960_v21  ;;  %v742_v22 = vsel %vm740_vm5, %v7669_v17, %v741_v49 }
 0x269   : > { %vm743_vm9 = vcmp.eq.s32.totalorder %v738_v30, 2  ;;  %v2158_v46 = vadd.s32 1, %v8486_v24  ;;  %v938_v23 = vsub.s32 4, %v7480_v63  ;;  %6814 = vsinq.f32 %v2084_v61  ;;  %v12095_v30 = vld [vmem:[#allocation19_spill] sm:$0xff] }
 0x26a   : > { %v745_v56 = vsel %vm743_vm9, %v744_v47, %v7750_v13  ;;  %v1147_v40 = vsel %vm1062_vm0, %v1146_v51, %v7745_v18  ;;  %vm6298_vm12 = vcmp.lt.s32.totalorder %v6297_v7, 0  ;;  %vm2157_vm4 = vc.u32 %v8493_v4, %v8485_v9  ;;  %v12096_v47 = vld [vmem:[#allocation22_spill] sm:$0xff] }
 0x26b   : > { %v1157_v32 = vxor.u32 2147483648, %v8064_v42  ;;  %v1963_v25 = vsel %vm6298_vm12, 0, %v6297_v7  ;;  %v2159_v17 = vsel %vm2157_vm4, %v2158_v46, %v8486_v24  ;;  %v1149_v49 = vsel %vm7930_vm15, 0, %v1147_v40 }
 0x26c   : > { %vm12094_vm1 = vcmp.lt.s32.totalorder %v7253_v58, 0  ;;  %v1964_v18 = vsub.s32 32, %v1963_v25  ;;  %v1968_v62 = vsub.s32 4294967266, %v1963_v25  ;;  %v2160_v8 = vadd.s32 %v2159_v17, %v2155_v11 }
 0x26d   : > { %v939_v13 = vsel %vm12094_vm1, %v938_v23, %v7480_v63  ;;  %v746_v1 = vsel %vm739_vm6, %v742_v22, %v745_v56  ;;  %vm1152_vm0 = vweird.f32 %v7514_v2  ;;  %v1965_v3 = vshll.u32 %v8463_v37, %v1963_v25 }
 0x26e   : > { %v1153_v31 = vadd.s32 3, %v1149_v49  ;;  %v1160_v43 = vxor.u32 2147483648, %v8049_v16  ;;  %v941_v53 = vsel %vm7655_vm14, 0, %v939_v13  ;;  %v1966_v39 = vshrl.u32 %v1948_v34, %v1964_v18 }
 0x26f   : > { %v1969_v55 = vadd.s32 127, %v1968_v62  ;;  %v2161_v60 = vadd.s32 536870912, %v2160_v8  ;;  %v945_v12 = vadd.s32 3, %v941_v53  ;;  %v747_v63 = vsel %vm736_vm7, nan, %v746_v1 }
 0x270   : > { %v1154_v45 = vand.u32 3, %v1153_v31  ;;  %v949_v57 = vxor.u32 2147483648, %v12095_v30  ;;  %v1354_v61 = vsub.s32 4, %v12096_v47  ;;  %v1967_v19 = vor.u32 %v1966_v39, %v1965_v3 }
 0x271   : > { %v1970_v37 = vshll.u32 %v1969_v55, 23  ;;  %v8526_v24 = vshrl.u32 %v2161_v60, 30  ;;  %v946_v21 = vand.u32 3, %v945_v12  ;;  %vm1894_vm15 = vcmp.lt.s32.totalorder %v8160_v10, 0  ;;  %v12103_v55 = vld [vmem:[#allocation30_spill] sm:$0xff] }
 0x272   : > { %vm1155_vm14 = vcmp.lt.s32.totalorder %v1154_v45, 2  ;;  %vm1156_vm3 = vcmp.eq.s32.totalorder %v1154_v45, 0  ;;  %vm1159_vm13 = vcmp.eq.s32.totalorder %v1154_v45, 2  ;;  %v952_v34 = vxor.u32 2147483648, %v12097_v5  ;;  %v8530_v44 = vpop.eup %6812  ;;  %v12104_v60 = vld [vmem:[#allocation10_spill] sm:$0xff] }
 0x273   : > { %v12098_v36 = vand.u32 2147483647, %v8160_v10  ;;  %v1971_v51 = vor.u32 4788187, %v1970_v37  ;;  %v2163_v7 = vshll.u32 %v8526_v24, 30  ;;  %v1158_v22 = vsel %vm1156_vm3, %v8049_v16, %v1157_v32  ;;  %v8544_v23 = vpop.eup %6814 }
 0x274   : > { %vm12101_vm7 = vcmp.lt.s32.totalorder %v7602_v6, 0  ;;  %v1974_v56 = vcvt.s32.f32 %v1967_v19  ;;  %v1161_v40 = vsel %vm1159_vm13, %v1160_v43, %v8064_v42  ;;  %vm948_vm6 = vcmp.eq.s32.totalorder %v946_v21, 0  ;;  %v12102_v43 = vld [vmem:[#allocation31_spill] sm:$0xff] }
 0x275   : > { %vm8534_vm2 = vcmp.le.f32.partialorder %v12098_v36, 0.7853982  ;;  %v1355_v46 = vsel %vm12101_vm7, %v1354_v61, %v12096_v47  ;;  %vm951_vm5 = vcmp.eq.s32.totalorder %v946_v21, 2  ;;  %v1972_v25 = vand.u32 2147483647, %v1971_v51  ;;  %v12107_v61 = vld [vmem:[#allocation17_spill] sm:$0xff] }
 0x276   : > { %v8546_v17 = vsub.s32 %v2160_v8, %v2163_v7  ;;  %v1162_v49 = vsel %vm1155_vm14, %v1158_v22, %v1161_v40  ;;  %v950_v13 = vsel %vm948_vm6, %v12097_v5, %v949_v57  ;;  %vm947_vm9 = vcmp.lt.s32.totalorder %v946_v21, 2  ;;  %v12108_v51 = vld [vmem:[#allocation6_spill] sm:$0xff] }
 0x277   : > { %v1163_v16 = vsel %vm1152_vm0, nan, %v1162_v49  ;;  %v953_v32 = vsel %vm951_vm5, %v952_v34, %v12095_v30  ;;  %v1357_v42 = vsel %vm7966_vm11, 0, %v1355_v46  ;;  %v1975_v18 = vmul.f32 %v1974_v56, %v1972_v25  ;;  %v12105_v30 = vld [vmem:[#allocation12_spill] sm:$0xff] }
 0x278   : > { %v2166_v62 = vsub.s32 0, %v8546_v17  ;;  %v6463_v1 = vpack.c.bf16 %v1163_v16, %v747_v63  ;;  %v954_v3 = vsel %vm947_vm9, %v950_v13, %v953_v32  ;;  %v2156_v8 = vadd.s32 %v8485_v9, %v8493_v4  ;;  %v12106_v4 = vld [vmem:[#allocation11_spill] sm:$0xff]  ;;  %v12109_v32 = vld [vmem:[#allocation24_spill] sm:$0xff] }
 0x279   : > { %vm944_vm12 = vweird.f32 %v7253_v58  ;;  %v1361_v31 = vadd.s32 3, %v1357_v42  ;;  %v1365_v2 = vxor.u32 2147483648, %v12102_v43  ;;  %v1976_v53 = vxor.u32 2147483648, %v1975_v18 }
 0x27a   : > { %v6304_v39 = vmin.u32 %v2166_v62, %v8546_v17  ;;  %6464 = vmatprep.subr.bf16.mxu0 %v6463_v1  ;;  %v1368_v41 = vxor.u32 2147483648, %v12103_v55  ;;  %v634_v12 = vand.u32 3, %v12104_v60  ;;  %v955_v45 = vsel %vm944_vm12, nan, %v954_v3  ;;  %v12111_v3 = vld [vmem:[#allocation13_spill] sm:$0xff] }
 0x27b   : > { %vm1360_vm11 = vweird.f32 %v7602_v6  ;;  %v1362_v63 = vand.u32 3, %v1361_v31  ;;  %v637_v57 = vxor.u32 2147483648, %v12105_v30  ;;  %v1977_v58 = vsel %vm1894_vm15, %v1976_v53, %v1975_v18  ;;  %v12110_v18 = vld [vmem:[#allocation23_spill] sm:$0xff] }
 0x27c   : > { %v2168_v9 = vclz %v6304_v39  ;;  %v640_v47 = vxor.u32 2147483648, %v12106_v4  ;;  %v1050_v19 = vand.u32 3, %v12107_v61  ;;  %v1980_v37 = vsel %vm8534_vm2, %v8160_v10, %v1977_v58 }
 0x27d   : > { %vm1364_vm4 = vcmp.eq.s32.totalorder %v1362_v63, 0  ;;  %vm1367_vm1 = vcmp.eq.s32.totalorder %v1362_v63, 2  ;;  %vm636_vm0 = vcmp.eq.s32.totalorder %v634_v12, 0  ;;  %vm1363_vm14 = vcmp.lt.s32.totalorder %v1362_v63, 2 }
 0x27e   : > { %v6305_v21 = vadd.s32 4294967294, %v2168_v9  ;;  %v1366_v5 = vsel %vm1364_vm4, %v12103_v55, %v1365_v2  ;;  %v1369_v34 = vsel %vm1367_vm1, %v1368_v41, %v12102_v43  ;;  %vm632_vm3 = vweird.f32 %v12108_v51  ;;  %v12112_v43 = vld [vmem:[#allocation15_spill] sm:$0xff]  ;;  %v12113_v55 = vld [vmem:[#allocation14_spill] sm:$0xff] }
 0x27f   : > { %v1370_v36 = vsel %vm1363_vm14, %v1366_v5, %v1369_v34  ;;  %v638_v7 = vsel %vm636_vm0, %v12106_v4, %v637_v57  ;;  %vm639_vm13 = vcmp.eq.s32.totalorder %v634_v12, 2  ;;  %6816 = vcosq.f32 %v1980_v37 }
 0x280   : > { %vm6306_vm7 = vcmp.lt.s32.totalorder %v6305_v21, 0  ;;  %v1371_v22 = vsel %vm1360_vm11, nan, %v1370_v36  ;;  %v641_v46 = vsel %vm639_vm13, %v640_v47, %v12105_v30  ;;  %6818 = vsinq.f32 %v1980_v37  ;;  %v12115_v30 = vld [vmem:[#allocation26_spill] sm:$0xff] }
 0x281   : > { %v2171_v56 = vsel %vm6306_vm7, 0, %v6305_v21  ;;  %v6471_v40 = vpack.c.bf16 %v1371_v22, %v955_v45  ;;  %vm635_vm6 = vcmp.lt.s32.totalorder %v634_v12, 2  ;;  %vm1052_vm5 = vcmp.eq.s32.totalorder %v1050_v19, 0  ;;  %v12114_v12 = vld [vmem:[#allocation8_spill] sm:$0xff]  ;;  %v12119_v21 = vld [vmem:[#allocation29_spill] sm:$0xff] }
 0x282   : > { %v2172_v25 = vsub.s32 32, %v2171_v56  ;;  %v2176_v49 = vsub.s32 4294967266, %v2171_v56  ;;  %v642_v13 = vsel %vm635_vm6, %v638_v7, %v641_v46  ;;  %v2173_v16 = vshll.u32 %v8546_v17, %v2171_v56  ;;  %v12120_v7 = vld [vmem:[#allocation28_spill] sm:$0xff]  ;;  %v12121_v56 = vld [vmem:[#allocation7_spill] sm:$0xff] }
 0x283   : > { %6472 = vmatprep.subr.bf16.mxu1 %v6471_v40  ;;  %v1053_v42 = vxor.u32 2147483648, %v12109_v32  ;;  %vm1055_vm9 = vcmp.eq.s32.totalorder %v1050_v19, 2  ;;  %v1056_v62 = vxor.u32 2147483648, %v12110_v18  ;;  %v842_v31 = vand.u32 3, %v12111_v3 }
 0x284   : > { %v2174_v6 = vshrl.u32 %v2156_v8, %v2172_v25  ;;  %v2177_v1 = vadd.s32 127, %v2176_v49  ;;  %v845_v2 = vxor.u32 2147483648, %v12112_v43  ;;  %vm1051_vm12 = vcmp.lt.s32.totalorder %v1050_v19, 2  ;;  %v12122_v25 = vld [vmem:[#allocation32_spill] sm:$0xff] }
 0x285   : > { %v1054_v53 = vsel %vm1052_vm5, %v12110_v18, %v1053_v42  ;;  %v1057_v39 = vsel %vm1055_vm9, %v1056_v62, %v12109_v32  ;;  %v848_v41 = vxor.u32 2147483648, %v12113_v55  ;;  %vm1048_vm11 = vweird.f32 %v12114_v12  ;;  %v12124_v62 = vld [vmem:[#allocation21_spill] sm:$0xff] }
 0x286   : > { %v2175_v17 = vor.u32 %v2174_v6, %v2173_v16  ;;  %v2178_v60 = vshll.u32 %v2177_v1, 23  ;;  %v1058_v45 = vsel %vm1051_vm12, %v1054_v53, %v1057_v39  ;;  %vm2102_vm4 = vcmp.lt.s32.totalorder %v8286_v50, 0  ;;  %v12123_v16 = vld [vmem:[#allocation9_spill] sm:$0xff]  ;;  %v12127_v53 = vld [vmem:[#allocation42_spill] sm:$0xff] }
 0x287   : > { %v643_v8 = vsel %vm632_vm3, nan, %v642_v13  ;;  %v1059_v63 = vsel %vm1048_vm11, nan, %v1058_v45  ;;  %vm844_vm1 = vcmp.eq.s32.totalorder %v842_v31, 0  ;;  %v1258_v57 = vand.u32 3, %v12115_v30 }
 0x288   : > { %v12116_v58 = vand.u32 2147483647, %v8286_v50  ;;  %v2179_v4 = vor.u32 4788187, %v2178_v60  ;;  %v6465_v47 = vpack.c.bf16 %v1059_v63, %v643_v8  ;;  %v846_v61 = vsel %vm844_vm1, %v12113_v55, %v845_v2  ;;  %v12129_v63 = vld [vmem:[#allocation34_spill] sm:$0xff] }
 0x289   : > { %vm847_vm14 = vcmp.eq.s32.totalorder %v842_v31, 2  ;;  %v2182_v19 = vcvt.s32.f32 %v2175_v17  ;;  %vm843_vm13 = vcmp.lt.s32.totalorder %v842_v31, 2  ;;  %v1261_v5 = vxor.u32 2147483648, %v12119_v21  ;;  %v6817_v34 = vpop.eup %6816  ;;  %v12128_v17 = vld [vmem:[#allocation41_spill] sm:$0xff] }
 0x28a   : > { %vm8594_vm0 = vcmp.le.f32.partialorder %v12116_v58, 0.7853982  ;;  %v849_v37 = vsel %vm847_vm14, %v848_v41, %v12112_v43  ;;  %v2180_v36 = vand.u32 2147483647, %v2179_v4  ;;  %6466 = vmatpush1.bf16.msra.mxu0 %v6465_v47  ;;  %vm1260_vm3 = vcmp.eq.s32.totalorder %v1258_v57, 0  ;;  %v6819_v46 = vpop.eup %6818  ;;  %v12134_v43 = vld [vmem:[#allocation36_spill] sm:$0xff] }
 0x28b   : > { %v850_v51 = vsel %vm843_vm13, %v846_v61, %v849_v37  ;;  %v1264_v22 = vxor.u32 2147483648, %v12120_v7  ;;  %vm840_vm7 = vweird.f32 %v12121_v56  ;;  %v1262_v40 = vsel %vm1260_vm3, %v12120_v7, %v1261_v5  ;;  %v12130_v61 = vld [vmem:[#allocation25_spill] sm:$0xff] }
 0x28c   : > { %vm1263_vm6 = vcmp.eq.s32.totalorder %v1258_v57, 2  ;;  %v1562_v49 = vsub.s32 4, %v12122_v25  ;;  %v2183_v13 = vmul.f32 %v2182_v19, %v2180_v36  ;;  %vm1256_vm5 = vweird.f32 %v12123_v16  ;;  %v12139_v36 = vld [vmem:[#allocation38_spill] sm:$0xff] }
 0x28d   : > { %vm1259_vm9 = vcmp.lt.s32.totalorder %v1258_v57, 2  ;;  %v1265_v32 = vsel %vm1263_vm6, %v1264_v22, %v12119_v21  ;;  %v851_v42 = vsel %vm840_vm7, nan, %v850_v51  ;;  %vm12125_vm12 = vcmp.lt.s32.totalorder %v12124_v62, 0 }
 0x28e   : > { %v1266_v18 = vsel %vm1259_vm9, %v1262_v40, %v1265_v32  ;;  %v1563_v6 = vsel %vm12125_vm12, %v1562_v49, %v12122_v25  ;;  %v1978_v1 = vsub.s32 4, %v8451_v52  ;;  %v2184_v3 = vxor.u32 2147483648, %v2183_v13 }
 0x28f   : > { %v1267_v31 = vsel %vm1256_vm5, nan, %v1266_v18  ;;  %v1565_v2 = vsel %vm8220_vm8, 0, %v1563_v6  ;;  %v1573_v39 = vxor.u32 2147483648, %v12127_v53  ;;  %vm1568_vm11 = vweird.f32 %v12124_v62 }
 0x290   : > { %v6473_v55 = vpack.c.bf16 %v1267_v31, %v851_v42  ;;  %v1569_v41 = vadd.s32 3, %v1565_v2  ;;  %v1576_v60 = vxor.u32 2147483648, %v12128_v17  ;;  %v1979_v12 = vsel %vm1894_vm15, %v1978_v1, %v8451_v52  ;;  %v12133_v1 = vld [vmem:[#allocation27_spill] sm:$0xff] }
 0x291   : > { %v2185_v45 = vsel %vm2102_vm4, %v2184_v3, %v2183_v13  ;;  %v1981_v8 = vsel %vm8534_vm2, 0, %v1979_v12  ;;  %vm1984_vm8 = vweird.f32 %v8160_v10  ;;  %v1770_v30 = vsub.s32 4, %v12129_v63 }
 0x292   : > { %v2188_v57 = vsel %vm8594_vm0, %v8286_v50, %v2185_v45  ;;  %6474 = vmatpush1.bf16.msra.mxu1 %v6473_v55  ;;  %v1570_v58 = vand.u32 3, %v1569_v41  ;;  %v1985_v4 = vadd.s32 3, %v1981_v8  ;;  %v1989_v47 = vxor.u32 2147483648, %v6819_v46  ;;  %v12136_v41 = vld [vmem:[#allocation35_spill] sm:$0xff] }
 0x293   : > { %6820 = vcosq.f32 %v2188_v57  ;;  %v1992_v52 = vxor.u32 2147483648, %v6817_v34  ;;  %vm12131_vm15 = vcmp.lt.s32.totalorder %v12130_v61, 0  ;;  %v2186_v11 = vsub.s32 4, %v8526_v24 }
 0x294   : > { %v1771_v19 = vsel %vm12131_vm15, %v1770_v30, %v12129_v63  ;;  %6822 = vsinq.f32 %v2188_v57  ;;  %vm1571_vm2 = vcmp.lt.s32.totalorder %v1570_v58, 2  ;;  %vm1572_vm1 = vcmp.eq.s32.totalorder %v1570_v58, 0 }
 0x295   : > { %vm1575_vm14 = vcmp.eq.s32.totalorder %v1570_v58, 2  ;;  %v1574_v37 = vsel %vm1572_vm1, %v12128_v17, %v1573_v39  ;;  %v1986_v5 = vand.u32 3, %v1985_v4  ;;  %v1773_v51 = vsel %vm8290_vm10, 0, %v1771_v19  ;;  %v12135_v39 = vld [vmem:[#allocation16_spill] sm:$0xff] }
 0x296   : > { %v1577_v21 = vsel %vm1575_vm14, %v1576_v60, %v12127_v53  ;;  %v1777_v22 = vadd.s32 3, %v1773_v51  ;;  %v1781_v56 = vxor.u32 2147483648, %v8449_v27  ;;  %v2187_v40 = vsel %vm2102_vm4, %v2186_v11, %v8526_v24  ;;  %v12138_v11 = vld [vmem:[#allocation39_spill] sm:$0xff] }
 0x297   : > { %v1578_v7 = vsel %vm1571_vm2, %v1574_v37, %v1577_v21  ;;  %vm1987_vm13 = vcmp.lt.s32.totalorder %v1986_v5, 2  ;;  %vm1988_vm3 = vcmp.eq.s32.totalorder %v1986_v5, 0  ;;  %vm1991_vm7 = vcmp.eq.s32.totalorder %v1986_v5, 2 }
 0x298   : > { %v1784_v25 = vxor.u32 2147483648, %v8383_v48  ;;  %v1990_v49 = vsel %vm1988_vm3, %v6817_v34, %v1989_v47  ;;  %v1993_v13 = vsel %vm1991_vm7, %v1992_v52, %v6819_v46  ;;  %v1778_v16 = vand.u32 3, %v1777_v22 }
 0x299   : > { %v2189_v32 = vsel %vm8594_vm0, 0, %v2187_v40  ;;  %v1579_v42 = vsel %vm1568_vm11, nan, %v1578_v7  ;;  %v1994_v18 = vsel %vm1987_vm13, %v1990_v49, %v1993_v13  ;;  %v1466_v3 = vand.u32 3, %v12133_v1  ;;  %v2204_v49 = vld [vmem:[%s11821_s1] sm:$0xff] }
 0x29a   : > { %v2193_v6 = vadd.s32 3, %v2189_v32  ;;  %v1995_v24 = vsel %vm1984_vm8, nan, %v1994_v18  ;;  %vm1779_vm10 = vcmp.lt.s32.totalorder %v1778_v16, 2  ;;  %vm1780_vm4 = vcmp.eq.s32.totalorder %v1778_v16, 0  ;;  %v6960_v1 = vld [vmem:[%s11822_s2] sm:$0xff] }
 0x29b   : > { %vm1783_vm6 = vcmp.eq.s32.totalorder %v1778_v16, 2  ;;  %v6467_v31 = vpack.c.bf16 %v1995_v24, %v1579_v42  ;;  %v1782_v34 = vsel %vm1780_vm4, %v8383_v48, %v1781_v56  ;;  %vm1776_vm0 = vweird.f32 %v12130_v61  ;;  %v12137_v61 = vld [vmem:[#allocation33_spill] sm:$0xff]  ;;  %v6962_v24 = vld [vmem:[%s11822_s2 + $0x18] sm:$0xff] }
 0x29c   : > { %v1785_v46 = vsel %vm1783_vm6, %v1784_v25, %v8449_v27  ;;  %v2194_v9 = vand.u32 3, %v2193_v6  ;;  %vm2192_vm5 = vweird.f32 %v8286_v50  ;;  %v1469_v2 = vxor.u32 2147483648, %v12134_v43 }
 0x29d   : > { %v1786_v62 = vsel %vm1779_vm10, %v1782_v34, %v1785_v46  ;;  %v6821_v53 = vpop.eup %6820  ;;  %6468 = vmatprep.subr.bf16.mxu0 %v6467_v31  ;;  %vm1464_vm9 = vweird.f32 %v12135_v39  ;;  %vm1467_vm12 = vcmp.lt.s32.totalorder %v1466_v3, 2  ;;  %vm1468_vm11 = vcmp.eq.s32.totalorder %v1466_v3, 0  ;;  %v2206_v31 = vld [vmem:[%s11821_s1 + $0x10] sm:$0xff]  ;;  %v2207_v46 = vld [vmem:[%s11821_s1 + $0x18] sm:$0xff] }
 0x29e   : > { %v1787_v10 = vsel %vm1776_vm0, nan, %v1786_v62  ;;  %v6823_v55 = vpop.eup %6822  ;;  %vm2199_vm8 = vcmp.eq.s32.totalorder %v2194_v9, 2  ;;  %v2200_v48 = vxor.u32 2147483648, %v6821_v53  ;;  %v1470_v27 = vsel %vm1468_vm11, %v12136_v41, %v1469_v2  ;;  %v6963_v34 = vld [vmem:[%s11822_s2 + $0x10] sm:$0xff] }
 0x29f   : > { %v1472_v17 = vxor.u32 2147483648, %v12136_v41  ;;  %v2197_v60 = vxor.u32 2147483648, %v6823_v55  ;;  %vm1471_vm15 = vcmp.eq.s32.totalorder %v1466_v3, 2  ;;  %v1882_v12 = vand.u32 3, %v8420_v0 }
 0x2a0   : > { %v1885_v45 = vxor.u32 2147483648, %v8467_v26  ;;  %vm2196_vm2 = vcmp.eq.s32.totalorder %v2194_v9, 0  ;;  %v2201_v8 = vsel %vm2199_vm8, %v2200_v48, %v6823_v55  ;;  %v1888_v30 = vxor.u32 2147483648, %v8461_v29 }
 0x2a1   : > { %v1473_v63 = vsel %vm1471_vm15, %v1472_v17, %v12134_v43  ;;  %vm2195_vm1 = vcmp.lt.s32.totalorder %v2194_v9, 2  ;;  %v2198_v57 = vsel %vm2196_vm2, %v6821_v53, %v2197_v60  ;;  %vm1884_vm14 = vcmp.eq.s32.totalorder %v1882_v12, 0 }
 0x2a2   : > { %v1474_v58 = vsel %vm1467_vm12, %v1470_v27, %v1473_v63  ;;  %v2202_v4 = vsel %vm2195_vm1, %v2198_v57, %v2201_v8  ;;  %vm1883_vm13 = vcmp.lt.s32.totalorder %v1882_v12, 2  ;;  %v1886_v47 = vsel %vm1884_vm14, %v8461_v29, %v1885_v45 }
 0x2a3   : > { %vm1887_vm3 = vcmp.eq.s32.totalorder %v1882_v12, 2  ;;  %v2203_v0 = vsel %vm2192_vm5, nan, %v2202_v4  ;;  %v1674_v19 = vand.u32 3, %v12137_v61  ;;  %v1677_v37 = vxor.u32 2147483648, %v12138_v11 }
 0x2a4   : > { %v1889_v52 = vsel %vm1887_vm3, %v1888_v30, %v8467_v26  ;;  %v6475_v21 = vpack.c.bf16 %v2203_v0, %v1787_v10  ;;  %vm1880_vm7 = vweird.f32 %v8042_v33  ;;  %v1680_v51 = vxor.u32 2147483648, %v12139_v36 }
 0x2a5   : > { %v1890_v5 = vsel %vm1883_vm13, %v1886_v47, %v1889_v52  ;;  %v1475_v7 = vsel %vm1464_vm9, nan, %v1474_v58  ;;  %vm1676_vm10 = vcmp.eq.s32.totalorder %v1674_v19, 0  ;;  %vm1679_vm4 = vcmp.eq.s32.totalorder %v1674_v19, 2 }
 0x2a6   : > { %v1891_v29 = vsel %vm1880_vm7, nan, %v1890_v5  ;;  %6476 = vmatprep.subr.bf16.mxu1 %v6475_v21  ;;  %v1678_v26 = vsel %vm1676_vm10, %v12139_v36, %v1677_v37  ;;  %v1681_v22 = vsel %vm1679_vm4, %v1680_v51, %v12138_v11  ;;  %v2090_v56 = vand.u32 3, %v8425_v59  ;;  %v12140_v59 = vld [vmem:[#allocation20_spill] sm:$0xff] }
 0x2a7   : > { %v6469_v50 = vpack.c.bf16 %v1891_v29, %v1475_v7  ;;  %vm1675_vm6 = vcmp.lt.s32.totalorder %v1674_v19, 2  ;;  %v2093_v33 = vxor.u32 2147483648, %v8544_v23  ;;  %v2096_v40 = vxor.u32 2147483648, %v8530_v44 }
 0x2a8   : > { %v1682_v25 = vsel %vm1675_vm6, %v1678_v26, %v1681_v22  ;;  %vm2092_vm0 = vcmp.eq.s32.totalorder %v2090_v56, 0  ;;  %vm2095_vm5 = vcmp.eq.s32.totalorder %v2090_v56, 2  ;;  %vm11922_vm9 = vcmask 261120  }
 0x2a9   : > { %6470 = vmatpush1.bf16.msra.mxu0 %v6469_v50  ;;  %vm2091_vm12 = vcmp.lt.s32.totalorder %v2090_v56, 2  ;;  %v2094_v13 = vsel %vm2092_vm0, %v8530_v44, %v2093_v33  ;;  %v2097_v16 = vsel %vm2095_vm5, %v2096_v40, %v8544_v23  ;;  %vm1672_vm11 = vweird.f32 %v12140_v59  ;;  %v6961_v23 = vld [vmem:[%s11822_s2 + $0x8] sm:$0xff] }
 0x2aa   : > { %vm2088_vm8 = vweird.f32 %v8114_v15  ;;  %v2098_v32 = vsel %vm2091_vm12, %v2094_v13, %v2097_v16  ;;  %v7040_v42 = vmov 1   ;;  %v1683_v18 = vsel %vm1672_vm11, nan, %v1682_v25  ;;  %v2205_v15 = vld [vmem:[%s11821_s1 + $0x8] sm:$0xff] }
 0x2ab   : > { %6755 = vset.pattern.permute.xlu0 %v7040_v42  ;;  %6756 = vset.pattern.permute.xlu1 %v7040_v42  ;;  %v2099_v6 = vsel %vm2088_vm8, nan, %v2098_v32  ;;  %v12141_v3 = vmov 0.0  }
 0x2ac   : > { %6307 = vmatmul.mubr.msk.f32.vlgmr.msra.gmra.mrb[8].mxu0 %vm11922_vm9, %v2204_v49  ;;  %2209 = vperm.xlu0 %6755, %v6960_v1   ;;  %v6477_v44 = vpack.c.bf16 %v2099_v6, %v1683_v18 }
 0x2ad   : > { %2307 = vmatprep.mubr.f32.mxu0 %v12141_v3  ;;  %2213 = vperm.xlu1 %6756, %v6961_v23  }
 0x2ae   : > { %6478 = vmatpush1.bf16.msra.mxu1 %v6477_v44 }
 0x2b0   : > { %6308 = vmatmul.mubr.msk.f32.gmra.mrb[10].mxu0 %vm11922_vm9, %v2205_v15  ;;  %2221 = vperm.xlu0 %6755, %v6962_v24  }
 0x2b1   : > { %2313 = vmatprep.mubr.f32.mxu0 %v12141_v3  ;;  %2217 = vperm.xlu1 %6756, %v6963_v34  }
 0x2b2   : > { %6311 = vmatmul.mubr.msk.f32.vlgmr.msra.gmra.mrb[8].mxu1 %vm11922_vm9, %v2204_v49 }
 0x2b3   : > { %2396 = vmatprep.mubr.f32.mxu1 %v12141_v3 }
 0x2b4   : > { %6309 = vmatmul.mubr.msk.f32.gmra.mrb[12].mxu0 %vm11922_vm9, %v2206_v31 }
 0x2b5   : > { %2319 = vmatprep.mubr.f32.mxu0 %v12141_v3 }
 0x2b6   : > { %6312 = vmatmul.mubr.msk.f32.gmra.mrb[10].mxu1 %vm11922_vm9, %v2205_v15 }
 0x2b7   : > { %2402 = vmatprep.mubr.f32.mxu1 %v12141_v3 }
 0x2b8   : > { %6310 = vmatmul.mubr.msk.f32.gmra.mrb[14].mxu0 %vm11922_vm9, %v2207_v46 }
 0x2b9   : > { %4176 = vmatprep.mubr.f32.mxu0 %v12141_v3 }
 0x2ba   : > { %6313 = vmatmul.mubr.msk.f32.gmra.mrb[12].mxu1 %vm11922_vm9, %v2206_v31 }
 0x2bb   : > { %2408 = vmatprep.mubr.f32.mxu1 %v12141_v3 }
 0x2be   : > { %6314 = vmatmul.mubr.msk.f32.gmra.mrb[14].mxu1 %vm11922_vm9, %v2207_v46 }
 0x2bf   : > { %4265 = vmatprep.mubr.f32.mxu1 %v12141_v3 }
 0x32b   : > { %v8720_v9 = vpop.permute.xlu0 %2209 }
 0x37f   : > { %v2303_v62 = vpop.f32.mrb[8].mxu0 }
 0x380   : > { %v8723_v43 = vadd.f32 %v2303_v62, %v8720_v9  ;;  %v2305_v2 = vpop.f32.mrb[9].mxu0 }
 0x381   : > { %v8726_v53 = vadd.f32 %v2305_v2, %v8720_v9 }
 0x382   : > { %12142 = vst [vmem:[#allocation19_spill] sm:$0xff] %v8723_v43  ;;  %v2415_v10 = vand.u32 2147483647, %v8723_v43  ;;  %v2418_v39 = vand.u32 2139095040, %v8723_v43 }
 0x383   : > { %v2522_v55 = vand.u32 2139095040, %v8726_v53  ;;  %v8731_v48 = vpop.f32.mrb[10].mxu0  ;;  %v11895_v0 = vand.u32 2147483647, %v8726_v53 }
 0x384   : > { %v2419_v41 = vshrl.u32 %v2418_v39, 23  ;;  %v8733_v27 = vpop.f32.mrb[11].mxu0  ;;  %v2422_v17 = vand.u32 8388607, %v2415_v10 }
 0x385   : > { %v2392_v60 = vpop.f32.mrb[8].mxu1  ;;  %v2523_v12 = vshrl.u32 %v2522_v55, 23  ;;  %v8755_v29 = vand.u32 8388607, %v11895_v0 }
 0x386   : > { %v6315_v45 = vadd.s32 4294967169, %v2419_v41  ;;  %v8738_v8 = vadd.f32 %v2392_v60, %v8720_v9  ;;  %v8740_v63 = vpop.f32.mrb[9].mxu1  ;;  %v2423_v4 = vor.u32 8388608, %v2422_v17 }
 0x387   : > { %v6319_v30 = vadd.s32 4294967169, %v2523_v12  ;;  %v8770_v39 = vpop.f32.mrb[12].mxu0 }
 0x388   : > { %12143 = vst [vmem:[#allocation22_spill] sm:$0xff] %v8738_v8  ;;  %v2425_v57 = vadd.s32 1, %v6315_v45  ;;  %v2623_v58 = vand.u32 2147483647, %v8738_v8  ;;  %v2626_v47 = vand.u32 2139095040, %v8738_v8  ;;  %v8751_v7 = vshll.u32 %v2423_v4, 8 }
 0x389   : > { %v2529_v52 = vadd.s32 1, %v6319_v30  ;;  %v8745_v61 = vpop.f32.mrb[10].mxu1 }
 0x38a   : > { %vm2426_vm15 = vcmp.gt.s32.totalorder %v2425_v57, 0  ;;  %v2630_v19 = vand.u32 8388607, %v2623_v58  ;;  %v2627_v37 = vshrl.u32 %v2626_v47, 23  ;;  %v8749_v21 = vpop.f32.mrb[11].mxu1 }
 0x38b   : > { %v2427_v11 = vsel %vm2426_vm15, %v2425_v57, 0  ;;  %vm2530_vm2 = vcmp.gt.s32.totalorder %v2529_v52, 0 }
 0x38c   : > { %v2429_v5 = vand.u32 31, %v2427_v11  ;;  %v2531_v36 = vsel %vm2530_vm2, %v2529_v52, 0  ;;  %v2428_v51 = vshrl.u32 %v2427_v11, 5  ;;  %v6323_v26 = vadd.s32 4294967169, %v2627_v37 }
 0x38d   : > { %v2631_v22 = vor.u32 8388608, %v2630_v19  ;;  %v8757_v56 = vand.u32 31, %v2531_v36 }
 0x38e   : > { %v2430_v50 = vsub.s32 32, %v2429_v5  ;;  %v2432_v33 = vshll.u32 %v12026_v28, %v2429_v5  ;;  %v2435_v40 = vshll.u32 %v12027_v35, %v2429_v5  ;;  %v2438_v25 = vshll.u32 %v12028_v54, %v2429_v5 }
 0x38f   : > { %v2441_v49 = vshll.u32 %v12029_v14, %v2429_v5  ;;  %v2444_v32 = vshll.u32 %v12030_v20, %v2429_v5  ;;  %vm2447_vm1 = vcmp.lt.s32.totalorder %v2428_v51, 1  ;;  %v2633_v23 = vadd.s32 1, %v6323_v26 }
 0x390   : > { %v2433_v13 = vshrl.u32 %v12027_v35, %v2430_v50  ;;  %v2436_v16 = vshrl.u32 %v12028_v54, %v2430_v50  ;;  %v2439_v59 = vshrl.u32 %v12029_v14, %v2430_v50  ;;  %v2431_v42 = vshrl.u32 %v12026_v28, %v2430_v50 }
 0x391   : > { %v2442_v18 = vshrl.u32 %v12030_v20, %v2430_v50  ;;  %v2445_v6 = vshrl.u32 %v12022_v38, %v2430_v50  ;;  %vm2449_vm14 = vcmp.lt.s32.totalorder %v2428_v51, 3  ;;  %vm2450_vm13 = vcmp.lt.s32.totalorder %v2428_v51, 4 }
 0x392   : > { %v2434_v1 = vor.u32 %v2433_v13, %v2432_v33  ;;  %v2437_v44 = vor.u32 %v2436_v16, %v2435_v40  ;;  %v2440_v15 = vor.u32 %v2439_v59, %v2438_v25  ;;  %vm2634_vm3 = vcmp.gt.s32.totalorder %v2633_v23, 0 }
 0x393   : > { %v2443_v24 = vor.u32 %v2442_v18, %v2441_v49  ;;  %v2446_v31 = vor.u32 %v2445_v6, %v2444_v32  ;;  %vm2448_vm7 = vcmp.lt.s32.totalorder %v2428_v51, 2  ;;  %v2635_v45 = vsel %vm2634_vm3, %v2633_v23, 0 }
 0x394   : > { %v2451_v34 = vsel %vm2447_vm1, %v2431_v42, %v2434_v1  ;;  %v2452_v46 = vsel %vm2450_vm13, %v2440_v15, 2102212464  ;;  %v2455_v62 = vsel %vm2447_vm1, %v2434_v1, %v2437_v44  ;;  %v2459_v2 = vsel %vm2447_vm1, %v2437_v44, %v2440_v15 }
 0x395   : > { %v2453_v55 = vsel %vm2449_vm14, %v2437_v44, %v2452_v46  ;;  %v2456_v41 = vsel %vm2450_vm13, %v2443_v24, 920167782  ;;  %v2460_v17 = vsel %vm2450_vm13, %v2446_v31, 1326507024  ;;  %v2636_v47 = vshrl.u32 %v2635_v45, 5 }
 0x396   : > { %v2457_v60 = vsel %vm2449_vm14, %v2440_v15, %v2456_v41  ;;  %v2461_v12 = vsel %vm2449_vm14, %v2443_v24, %v2460_v17  ;;  %v2454_v30 = vsel %vm2448_vm7, %v2451_v34, %v2453_v55  ;;  %v2637_v5 = vand.u32 31, %v2635_v45  ;;  %v8812_v41 = vpop.f32.mrb[12].mxu1 }
 0x397   : > { %v2458_v57 = vsel %vm2448_vm7, %v2455_v62, %v2457_v60  ;;  %v2462_v4 = vsel %vm2448_vm7, %v2459_v2, %v2461_v12  ;;  %v2527_v50 = vor.u32 8388608, %v8755_v29  ;;  %v8782_v51 = vshrl.u32 %v2531_v36, 5 }
 0x398   : > { %v8773_v52 = vmul.u32.u64.low %v8751_v7, %v2462_v4  ;;  %v8774_v19 = vmul.u32.u64.high %v8751_v7, %v2462_v4, %v8773_v52  ;;  %v8777_v11 = vmul.u32.u64.low %v8751_v7, %v2458_v57  ;;  %v8778_v37 = vmul.u32.u64.high %v8751_v7, %v2458_v57, %v8777_v11 }
 0x399   : > { %v8786_v26 = vadd.f32 %v8740_v63, %v8720_v9  ;;  %v2470_v33 = vmul.u32 %v8751_v7, %v2454_v30  ;;  %vm2655_vm10 = vcmp.lt.s32.totalorder %v2636_v47, 1  ;;  %v8789_v40 = vshll.u32 %v2631_v22, 8 }
 0x39a   : > { %v8792_v25 = vsub.s32 32, %v8757_v56  ;;  %v2638_v49 = vsub.s32 32, %v2637_v5  ;;  %v2640_v13 = vshll.u32 %v12026_v28, %v2637_v5  ;;  %vm2656_vm4 = vcmp.lt.s32.totalorder %v2636_v47, 2 }
 0x39b   : > { %12144 = vst [vmem:[#allocation18_spill] sm:$0xff] %v8786_v26  ;;  %vm2657_vm6 = vcmp.lt.s32.totalorder %v2636_v47, 3  ;;  %vm2472_vm0 = vc.u32 %v8774_v19, %v8777_v11  ;;  %v2473_v36 = vadd.s32 1, %v8778_v37  ;;  %v2643_v9 = vshll.u32 %v12027_v35, %v2637_v5 }
 0x39c   : > { %v2646_v63 = vshll.u32 %v12028_v54, %v2637_v5  ;;  %v2641_v7 = vshrl.u32 %v12027_v35, %v2638_v49  ;;  %v2644_v22 = vshrl.u32 %v12028_v54, %v2638_v49  ;;  %v2647_v16 = vshrl.u32 %v12029_v14, %v2638_v49 }
 0x39d   : > { %v2649_v59 = vshll.u32 %v12029_v14, %v2637_v5  ;;  %v2474_v32 = vsel %vm2472_vm0, %v2473_v36, %v8778_v37  ;;  %v2650_v42 = vshrl.u32 %v12030_v20, %v2638_v49  ;;  %v2652_v18 = vshll.u32 %v12030_v20, %v2637_v5 }
 0x39e   : > { %v2653_v6 = vshrl.u32 %v12022_v38, %v2638_v49  ;;  %v2475_v1 = vadd.s32 %v2474_v32, %v2470_v33  ;;  %v2642_v44 = vor.u32 %v2641_v7, %v2640_v13  ;;  %v2645_v15 = vor.u32 %v2644_v22, %v2643_v9 }
 0x39f   : > { %v2648_v23 = vor.u32 %v2647_v16, %v2646_v63  ;;  %v2639_v24 = vshrl.u32 %v12026_v28, %v2638_v49  ;;  %v2651_v31 = vor.u32 %v2650_v42, %v2649_v59  ;;  %vm2658_vm5 = vcmp.lt.s32.totalorder %v2636_v47, 4 }
 0x3a0   : > { %v2654_v34 = vor.u32 %v2653_v6, %v2652_v18  ;;  %v2476_v46 = vadd.s32 536870912, %v2475_v1  ;;  %v2663_v2 = vsel %vm2655_vm10, %v2642_v44, %v2645_v15  ;;  %v2537_v55 = vshrl.u32 %v12027_v35, %v8792_v25 }
 0x3a1   : > { %v2660_v62 = vsel %vm2658_vm5, %v2648_v23, 2102212464  ;;  %v2659_v17 = vsel %vm2655_vm10, %v2639_v24, %v2642_v44  ;;  %v2664_v60 = vsel %vm2658_vm5, %v2651_v31, 920167782  ;;  %v2667_v12 = vsel %vm2655_vm10, %v2645_v15, %v2648_v23 }
 0x3a2   : > { %v2668_v45 = vsel %vm2658_vm5, %v2654_v34, 1326507024  ;;  %v8816_v30 = vshrl.u32 %v2476_v46, 30  ;;  %v2661_v57 = vsel %vm2657_vm6, %v2645_v15, %v2660_v62  ;;  %v2665_v4 = vsel %vm2657_vm6, %v2648_v23, %v2664_v60 }
 0x3a3   : > { %v2669_v52 = vsel %vm2657_vm6, %v2651_v31, %v2668_v45  ;;  %v2666_v37 = vsel %vm2656_vm4, %v2663_v2, %v2665_v4  ;;  %v2536_v33 = vshll.u32 %v12026_v28, %v8757_v56  ;;  %v2540_v49 = vshrl.u32 %v12028_v54, %v8792_v25 }
 0x3a4   : > { %v2670_v5 = vsel %vm2656_vm4, %v2667_v12, %v2669_v52  ;;  %v2478_v13 = vshll.u32 %v8816_v30, 30  ;;  %v2539_v63 = vshll.u32 %v12027_v35, %v8757_v56  ;;  %v2662_v7 = vsel %vm2656_vm4, %v2659_v17, %v2661_v57 }
 0x3a5   : > { %v8829_v36 = vmul.u32.u64.low %v8789_v40, %v2670_v5  ;;  %v8830_v9 = vmul.u32.u64.high %v8789_v40, %v2670_v5, %v8829_v36  ;;  %v8836_v22 = vmul.u32.u64.low %v8789_v40, %v2666_v37  ;;  %v8837_v16 = vmul.u32.u64.high %v8789_v40, %v2666_v37, %v8836_v22 }
 0x3a6   : > { %v2538_v59 = vor.u32 %v2537_v55, %v2536_v33  ;;  %v8840_v32 = vsub.s32 %v2475_v1, %v2478_v13  ;;  %v2541_v42 = vor.u32 %v2540_v49, %v2539_v63  ;;  %v2542_v18 = vshll.u32 %v12028_v54, %v8757_v56 }
 0x3a7   : > { %v2543_v6 = vshrl.u32 %v12029_v14, %v8792_v25  ;;  %v2545_v44 = vshll.u32 %v12029_v14, %v8757_v56  ;;  %v2546_v47 = vshrl.u32 %v12030_v20, %v8792_v25  ;;  %v2548_v15 = vshll.u32 %v12030_v20, %v8757_v56 }
 0x3a8   : > { %v2549_v1 = vshrl.u32 %v12022_v38, %v8792_v25  ;;  %v2481_v23 = vsub.s32 0, %v8840_v32  ;;  %vm2680_vm12 = vc.u32 %v8830_v9, %v8836_v22  ;;  %v2567_v24 = vshll.u32 %v2527_v50, 8 }
 0x3a9   : > { %v2730_v31 = vand.u32 2139095040, %v8786_v26  ;;  %v2681_v34 = vadd.s32 1, %v8837_v16  ;;  %v2544_v46 = vor.u32 %v2543_v6, %v2542_v18  ;;  %v2547_v62 = vor.u32 %v2546_v47, %v2545_v44 }
 0x3aa   : > { %v2550_v2 = vor.u32 %v2549_v1, %v2548_v15  ;;  %v6316_v56 = vmin.u32 %v2481_v23, %v8840_v32  ;;  %v2678_v55 = vmul.u32 %v8789_v40, %v2662_v7  ;;  %v2535_v17 = vshrl.u32 %v12026_v28, %v8792_v25 }
 0x3ab   : > { %vm2551_vm11 = vcmp.lt.s32.totalorder %v8782_v51, 1  ;;  %v2682_v60 = vsel %vm2680_vm12, %v2681_v34, %v8837_v16  ;;  %vm2553_vm8 = vcmp.lt.s32.totalorder %v8782_v51, 3  ;;  %vm2554_vm15 = vcmp.lt.s32.totalorder %v8782_v51, 4 }
 0x3ac   : > { %v2559_v29 = vsel %vm2551_vm11, %v2538_v59, %v2541_v42  ;;  %v2483_v50 = vclz %v6316_v56  ;;  %v2683_v12 = vadd.s32 %v2682_v60, %v2678_v55  ;;  %v2556_v45 = vsel %vm2554_vm15, %v2544_v46, 2102212464  ;;  %v8900_v55 = vpop.f32.mrb[13].mxu0 }
 0x3ad   : > { %v2560_v57 = vsel %vm2554_vm15, %v2547_v62, 920167782  ;;  %vm2552_vm2 = vcmp.lt.s32.totalorder %v8782_v51, 2  ;;  %v2563_v4 = vsel %vm2551_vm11, %v2541_v42, %v2544_v46  ;;  %v2564_v25 = vsel %vm2554_vm15, %v2550_v2, 1326507024  ;;  %v8903_v51 = vpop.permute.xlu1 %2213 }
 0x3ae   : > { %v2561_v40 = vsel %vm2553_vm8, %v2544_v46, %v2560_v57  ;;  %v6317_v52 = vadd.s32 4294967294, %v2483_v50  ;;  %v2684_v37 = vadd.s32 536870912, %v2683_v12  ;;  %v2555_v5 = vsel %vm2551_vm11, %v2535_v17, %v2538_v59 }
 0x3af   : > { %v2562_v33 = vsel %vm2552_vm2, %v2559_v29, %v2561_v40  ;;  %v2557_v49 = vsel %vm2553_vm8, %v2541_v42, %v2556_v45  ;;  %v2565_v13 = vsel %vm2553_vm8, %v2547_v62, %v2564_v25  ;;  %v2731_v59 = vshrl.u32 %v2730_v31, 23 }
 0x3b0   : > { %v8878_v36 = vmul.u32.u64.low %v2567_v24, %v2562_v33  ;;  %v8879_v63 = vmul.u32.u64.high %v2567_v24, %v2562_v33, %v8878_v36  ;;  %vm6318_vm1 = vcmp.lt.s32.totalorder %v6317_v52, 0  ;;  %v8882_v7 = vshrl.u32 %v2684_v37, 30 }
 0x3b1   : > { %v2566_v16 = vsel %vm2552_vm2, %v2563_v4, %v2565_v13  ;;  %v2486_v18 = vsel %vm6318_vm1, 0, %v6317_v52  ;;  %v11893_v1 = vand.u32 2147483647, %v8786_v26  ;;  %v2558_v23 = vsel %vm2552_vm2, %v2555_v5, %v2557_v49 }
 0x3b2   : > { %v8886_v6 = vmul.u32.u64.low %v2567_v24, %v2566_v16  ;;  %v8887_v44 = vmul.u32.u64.high %v2567_v24, %v2566_v16, %v8886_v6  ;;  %v2487_v47 = vsub.s32 32, %v2486_v18  ;;  %v2491_v42 = vsub.s32 4294967266, %v2486_v18 }
 0x3b3   : > { %v2686_v15 = vshll.u32 %v8882_v7, 30  ;;  %v2577_v34 = vadd.s32 1, %v8879_v63  ;;  %v6327_v46 = vadd.s32 4294967169, %v2731_v59  ;;  %v2471_v62 = vadd.s32 %v8777_v11, %v8774_v19 }
 0x3b4   : > { %v2492_v31 = vadd.s32 127, %v2491_v42  ;;  %vm2576_vm14 = vc.u32 %v8887_v44, %v8878_v36  ;;  %v2574_v29 = vmul.u32 %v2567_v24, %v2558_v23  ;;  %v2734_v50 = vand.u32 8388607, %v11893_v1 }
 0x3b5   : > { %v8896_v2 = vsub.s32 %v2683_v12, %v2686_v15  ;;  %v2737_v56 = vadd.s32 1, %v6327_v46  ;;  %v2489_v17 = vshrl.u32 %v2471_v62, %v2487_v47  ;;  %v2578_v19 = vsel %vm2576_vm14, %v2577_v34, %v8879_v63 }
 0x3b6   : > { %v2488_v11 = vshll.u32 %v8840_v32, %v2486_v18  ;;  %v2493_v12 = vshll.u32 %v2492_v31, 23  ;;  %v2579_v57 = vadd.s32 %v2578_v19, %v2574_v29  ;;  %v8912_v4 = vadd.f32 %v8731_v48, %v8903_v51 }
 0x3b7   : > { %v2689_v60 = vsub.s32 0, %v8896_v2  ;;  %vm2738_vm13 = vcmp.gt.s32.totalorder %v2737_v56, 0  ;;  %v2735_v37 = vor.u32 8388608, %v2734_v50  ;;  %v2679_v32 = vadd.s32 %v8836_v22, %v8830_v9 }
 0x3b8   : > { %v2739_v40 = vsel %vm2738_vm13, %v2737_v56, 0  ;;  %12145 = vst [vmem:[#allocation31_spill] sm:$0xff] %v8912_v4  ;;  %v8914_v25 = vor.u32 %v2489_v17, %v2488_v11  ;;  %v2580_v52 = vadd.s32 536870912, %v2579_v57  ;;  %v8916_v33 = vor.u32 4788187, %v2493_v12 }
 0x3b9   : > { %v6324_v45 = vmin.u32 %v2689_v60, %v8896_v2  ;;  %v2741_v5 = vand.u32 31, %v2739_v40  ;;  %v11894_v16 = vand.u32 2147483647, %v8912_v4  ;;  %v8925_v18 = vshll.u32 %v2735_v37, 8 }
 0x3ba   : > { %v8918_v13 = vshrl.u32 %v2580_v52, 30  ;;  %v2497_v48 = vcvt.s32.f32 %v8914_v25  ;;  %v2834_v15 = vand.u32 2139095040, %v8912_v4  ;;  %v2495_v23 = vand.u32 2147483647, %v8916_v33 }
 0x3bb   : > { %v2691_v24 = vclz %v6324_v45  ;;  %v2742_v63 = vsub.s32 32, %v2741_v5  ;;  %v2744_v34 = vshll.u32 %v12026_v28, %v2741_v5  ;;  %v2740_v62 = vshrl.u32 %v2739_v40, 5 }
 0x3bc   : > { %v2582_v59 = vshll.u32 %v8918_v13, 30  ;;  %v2747_v31 = vshll.u32 %v12027_v35, %v2741_v5  ;;  %v2750_v56 = vshll.u32 %v12028_v54, %v2741_v5  ;;  %v2753_v50 = vshll.u32 %v12029_v14, %v2741_v5 }
 0x3bd   : > { %v6325_v49 = vadd.s32 4294967294, %v2691_v24  ;;  %v2745_v47 = vshrl.u32 %v12027_v35, %v2742_v63  ;;  %v2748_v42 = vshrl.u32 %v12028_v54, %v2742_v63  ;;  %v2751_v29 = vshrl.u32 %v12029_v14, %v2742_v63 }
 0x3be   : > { %v8932_v46 = vsub.s32 %v2579_v57, %v2582_v59  ;;  %v2754_v45 = vshrl.u32 %v12030_v20, %v2742_v63  ;;  %v2756_v57 = vshll.u32 %v12030_v20, %v2741_v5  ;;  %v2757_v40 = vshrl.u32 %v12022_v38, %v2742_v63 }
 0x3bf   : > { %vm6326_vm3 = vcmp.lt.s32.totalorder %v6325_v49, 0  ;;  %v2746_v60 = vor.u32 %v2745_v47, %v2744_v34  ;;  %v2749_v12 = vor.u32 %v2748_v42, %v2747_v31  ;;  %v2752_v25 = vor.u32 %v2751_v29, %v2750_v56 }
 0x3c0   : > { %v2694_v6 = vsel %vm6326_vm3, 0, %v6325_v49  ;;  %v2585_v11 = vsub.s32 0, %v8932_v46  ;;  %v2835_v24 = vshrl.u32 %v2834_v15, 23  ;;  %v2755_v49 = vor.u32 %v2754_v45, %v2753_v50 }
 0x3c1   : > { %v2695_v9 = vsub.s32 32, %v2694_v6  ;;  %v2699_v22 = vsub.s32 4294967266, %v2694_v6  ;;  %v2696_v52 = vshll.u32 %v8896_v2, %v2694_v6  ;;  %v2743_v59 = vshrl.u32 %v12026_v28, %v2742_v63 }
 0x3c2   : > { %v6320_v33 = vmin.u32 %v2585_v11, %v8932_v46  ;;  %vm2759_vm7 = vcmp.lt.s32.totalorder %v2740_v62, 1  ;;  %vm2762_vm10 = vcmp.lt.s32.totalorder %v2740_v62, 4  ;;  %vm2760_vm4 = vcmp.lt.s32.totalorder %v2740_v62, 2 }
 0x3c3   : > { %v2700_v17 = vadd.s32 127, %v2699_v22  ;;  %v2697_v19 = vshrl.u32 %v2679_v32, %v2695_v9  ;;  %v2758_v32 = vor.u32 %v2757_v40, %v2756_v57  ;;  %v2764_v9 = vsel %vm2762_vm10, %v2752_v25, 2102212464 }
 0x3c4   : > { %v2587_v42 = vclz %v6320_v33  ;;  %v2767_v22 = vsel %vm2759_vm7, %v2746_v60, %v2749_v12  ;;  %vm2761_vm6 = vcmp.lt.s32.totalorder %v2740_v62, 3  ;;  %v2768_v5 = vsel %vm2762_vm10, %v2755_v49, 920167782 }
 0x3c5   : > { %v2701_v37 = vshll.u32 %v2700_v17, 23  ;;  %v2698_v47 = vor.u32 %v2697_v19, %v2696_v52  ;;  %v2771_v34 = vsel %vm2759_vm7, %v2749_v12, %v2752_v25  ;;  %v2769_v2 = vsel %vm2761_vm6, %v2752_v25, %v2768_v5 }
 0x3c6   : > { %v6321_v31 = vadd.s32 4294967294, %v2587_v42  ;;  %v2772_v6 = vsel %vm2762_vm10, %v2758_v32, 1326507024  ;;  %v2763_v56 = vsel %vm2759_vm7, %v2743_v59, %v2746_v60  ;;  %v2765_v17 = vsel %vm2761_vm6, %v2749_v12, %v2764_v9  ;;  %v8966_v9 = vpop.f32.mrb[13].mxu1 }
 0x3c7   : > { %v2702_v15 = vor.u32 4788187, %v2701_v37  ;;  %v2770_v29 = vsel %vm2760_vm4, %v2767_v22, %v2769_v2  ;;  %v2773_v63 = vsel %vm2761_vm6, %v2755_v49, %v2772_v6  ;;  %v2498_v25 = vmul.f32 %v2497_v48, %v2495_v23 }
 0x3c8   : > { %vm6322_vm0 = vcmp.lt.s32.totalorder %v6321_v31, 0  ;;  %v2774_v50 = vsel %vm2760_vm4, %v2771_v34, %v2773_v63  ;;  %v8948_v19 = vmul.u32.u64.low %v8925_v18, %v2770_v29  ;;  %v8949_v11 = vmul.u32.u64.high %v8925_v18, %v2770_v29, %v8948_v19 }
 0x3c9   : > { %v8952_v45 = vsel %vm6322_vm0, 0, %v6321_v31  ;;  %v8955_v57 = vmul.u32.u64.low %v8925_v18, %v2774_v50  ;;  %v8956_v40 = vmul.u32.u64.high %v8925_v18, %v2774_v50, %v8955_v57  ;;  %v2703_v60 = vand.u32 2147483647, %v2702_v15 }
 0x3ca   : > { %v2766_v12 = vsel %vm2760_vm4, %v2763_v56, %v2765_v17  ;;  %v6331_v52 = vadd.s32 4294967169, %v2835_v24  ;;  %vm2417_vm5 = vcmp.lt.s32.totalorder %v8723_v43, 0  ;;  %v2501_v37 = vsub.s32 4, %v8816_v30 }
 0x3cb   : > { %v2595_v33 = vsub.s32 4294967266, %v8952_v45  ;;  %v2705_v49 = vcvt.s32.f32 %v2698_v47  ;;  %v2709_v59 = vsub.s32 4, %v8882_v7  ;;  %v2785_v32 = vadd.s32 1, %v8949_v11 }
 0x3cc   : > { %v2838_v42 = vand.u32 8388607, %v11894_v16  ;;  %v2782_v48 = vmul.u32 %v8925_v18, %v2766_v12  ;;  %vm2784_vm12 = vc.u32 %v8956_v40, %v8948_v19  ;;  %v2841_v23 = vadd.s32 1, %v6331_v52 }
 0x3cd   : > { %v8973_v62 = vadd.f32 %v8745_v61, %v8903_v51  ;;  %v2499_v24 = vxor.u32 2147483648, %v2498_v25  ;;  %v8975_v47 = vmul.f32 %v2705_v49, %v2703_v60  ;;  %v2591_v22 = vsub.s32 32, %v8952_v45 }
 0x3ce   : > { %v2786_v5 = vsel %vm2784_vm12, %v2785_v32, %v8949_v11  ;;  %v2596_v34 = vadd.s32 127, %v2595_v33  ;;  %vm2842_vm11 = vcmp.gt.s32.totalorder %v2841_v23, 0  ;;  %v8981_v18 = vadd.f32 %v8733_v27, %v8903_v51 }
 0x3cf   : > { %12146 = vst [vmem:[#allocation30_spill] sm:$0xff] %v8973_v62  ;;  %v2787_v15 = vadd.s32 %v2786_v5, %v2782_v48  ;;  %v8986_v31 = vsel %vm2417_vm5, %v2501_v37, %v8816_v30  ;;  %vm2625_vm8 = vcmp.lt.s32.totalorder %v8738_v8, 0  ;;  %v2575_v61 = vadd.s32 %v8878_v36, %v8887_v44 }
 0x3d0   : > { %v2843_v2 = vsel %vm2842_vm11, %v2841_v23, 0  ;;  %v8994_v6 = vsel %vm2625_vm8, %v2709_v59, %v8882_v7  ;;  %v2839_v17 = vor.u32 8388608, %v2838_v42  ;;  %v2500_v29 = vsel %vm2417_vm5, %v2499_v24, %v2498_v25 }
 0x3d1   : > { %v2788_v56 = vadd.s32 536870912, %v2787_v15  ;;  %v2845_v27 = vand.u32 31, %v2843_v2  ;;  %v2707_v30 = vxor.u32 2147483648, %v8975_v47  ;;  %v2593_v63 = vshrl.u32 %v2575_v61, %v2591_v22 }
 0x3d2   : > { %v11897_v50 = vand.u32 2147483647, %v8973_v62  ;;  %v2597_v11 = vshll.u32 %v2596_v34, 23  ;;  %v3042_v44 = vand.u32 2139095040, %v8973_v62  ;;  %v2844_v60 = vshrl.u32 %v2843_v2, 5 }
 0x3d3   : > { %v9000_v57 = vshrl.u32 %v2788_v56, 30  ;;  %v2846_v36 = vsub.s32 32, %v2845_v27  ;;  %v2848_v7 = vshll.u32 %v12026_v28, %v2845_v27  ;;  %v2851_v12 = vshll.u32 %v12027_v35, %v2845_v27 }
 0x3d4   : > { %v2854_v52 = vshll.u32 %v12028_v54, %v2845_v27  ;;  %v2857_v49 = vshll.u32 %v12029_v14, %v2845_v27  ;;  %v2860_v42 = vshll.u32 %v12030_v20, %v2845_v27  ;;  %vm9016_vm15 = vcmp.le.f32.partialorder %v2415_v10, 0.7853982 }
 0x3d5   : > { %v2790_v25 = vshll.u32 %v9000_v57, 30  ;;  %v2849_v37 = vshrl.u32 %v12027_v35, %v2846_v36  ;;  %v2852_v33 = vshrl.u32 %v12028_v54, %v2846_v36  ;;  %v2855_v59 = vshrl.u32 %v12029_v14, %v2846_v36 }
 0x3d6   : > { %v2858_v32 = vshrl.u32 %v12030_v20, %v2846_v36  ;;  %v2861_v48 = vshrl.u32 %v12022_v38, %v2846_v36  ;;  %v2592_v24 = vshll.u32 %v8932_v46, %v8952_v45  ;;  %v2879_v1 = vshll.u32 %v2839_v17, 8 }
 0x3d7   : > { %v9022_v22 = vsub.s32 %v2787_v15, %v2790_v25  ;;  %v2850_v5 = vor.u32 %v2849_v37, %v2848_v7  ;;  %v2853_v34 = vor.u32 %v2852_v33, %v2851_v12  ;;  %v2856_v61 = vor.u32 %v2855_v59, %v2854_v52 }
 0x3d8   : > { %v2859_v2 = vor.u32 %v2858_v32, %v2857_v49  ;;  %v2862_v56 = vor.u32 %v2861_v48, %v2860_v42  ;;  %vm9026_vm2 = vcmp.le.f32.partialorder %v2623_v58, 0.7853982  ;;  %v2594_v10 = vor.u32 %v2593_v63, %v2592_v24 }
 0x3d9   : > { %v2598_v16 = vor.u32 4788187, %v2597_v11  ;;  %v2793_v0 = vsub.s32 0, %v9022_v22  ;;  %vm2863_vm1 = vcmp.lt.s32.totalorder %v2844_v60, 1  ;;  %v2847_v46 = vshrl.u32 %v12026_v28, %v2846_v36 }
 0x3da   : > { %vm2866_vm14 = vcmp.lt.s32.totalorder %v2844_v60, 4  ;;  %v2871_v45 = vsel %vm2863_vm1, %v2850_v5, %v2853_v34  ;;  %v3043_v15 = vshrl.u32 %v3042_v44, 23  ;;  %vm2865_vm13 = vcmp.lt.s32.totalorder %v2844_v60, 3 }
 0x3db   : > { %v6328_v7 = vmin.u32 %v2793_v0, %v9022_v22  ;;  %v2868_v17 = vsel %vm2866_vm14, %v2856_v61, 2102212464  ;;  %v2872_v12 = vsel %vm2866_vm14, %v2859_v2, 920167782  ;;  %vm2864_vm3 = vcmp.lt.s32.totalorder %v2844_v60, 2 }
 0x3dc   : > { %v2873_v58 = vsel %vm2865_vm13, %v2856_v61, %v2872_v12  ;;  %v2875_v52 = vsel %vm2863_vm1, %v2853_v34, %v2856_v61  ;;  %v2876_v25 = vsel %vm2866_vm14, %v2862_v56, 1326507024  ;;  %v2867_v63 = vsel %vm2863_vm1, %v2847_v46, %v2850_v5 }
 0x3dd   : > { %v2795_v37 = vclz %v6328_v7  ;;  %v2874_v11 = vsel %vm2864_vm3, %v2871_v45, %v2873_v58  ;;  %v2877_v33 = vsel %vm2865_vm13, %v2859_v2, %v2876_v25  ;;  %v2869_v49 = vsel %vm2865_vm13, %v2853_v34, %v2868_v17  ;;  %v9053_v45 = vpop.f32.mrb[14].mxu0 }
 0x3de   : > { %v2878_v36 = vsel %vm2864_vm3, %v2875_v52, %v2877_v33  ;;  %v9035_v59 = vmul.u32.u64.low %v2879_v1, %v2874_v11  ;;  %v9036_v32 = vmul.u32.u64.high %v2879_v1, %v2874_v11, %v9035_v59  ;;  %v6339_v48 = vadd.s32 4294967169, %v3043_v15 }
 0x3df   : > { %v6329_v0 = vadd.s32 4294967294, %v2795_v37  ;;  %v9039_v44 = vmul.u32.u64.low %v2879_v1, %v2878_v36  ;;  %v9040_v42 = vmul.u32.u64.high %v2879_v1, %v2878_v36, %v9039_v44  ;;  %v2503_v24 = vsel %vm9016_vm15, %v8723_v43, %v2500_v29 }
 0x3e0   : > { %v2504_v5 = vsel %vm9016_vm15, 0, %v8986_v31  ;;  %v2708_v34 = vsel %vm2625_vm8, %v2707_v30, %v8975_v47  ;;  %v2599_v61 = vand.u32 2147483647, %v2598_v16  ;;  %v2870_v2 = vsel %vm2864_vm3, %v2867_v63, %v2869_v49 }
 0x3e1   : > { %vm6330_vm7 = vcmp.lt.s32.totalorder %v6329_v0, 0  ;;  %v3049_v56 = vadd.s32 1, %v6339_v48  ;;  %v2938_v46 = vand.u32 2139095040, %v8981_v18  ;;  %v2712_v29 = vsel %vm9026_vm2, 0, %v8994_v6 }
 0x3e2   : > { %v2601_v15 = vcvt.s32.f32 %v2594_v10  ;;  %v9058_v23 = vsel %vm6330_vm7, 0, %v6329_v0  ;;  %v2889_v31 = vadd.s32 1, %v9036_v32  ;;  %6824 = vcosq.f32 %v2503_v24 }
 0x3e3   : > { %v9064_v16 = vsel %vm9026_vm2, %v8738_v8, %v2708_v34  ;;  %v3046_v47 = vand.u32 8388607, %v11897_v50  ;;  %v11896_v30 = vand.u32 2147483647, %v8981_v18  ;;  %v2886_v7 = vmul.u32 %v2879_v1, %v2870_v2 }
 0x3e4   : > { %v2602_v60 = vmul.f32 %v2601_v15, %v2599_v61  ;;  %vm2888_vm10 = vc.u32 %v9040_v42, %v9035_v59  ;;  %vm3050_vm4 = vcmp.gt.s32.totalorder %v3049_v56, 0  ;;  %v2803_v6 = vsub.s32 4294967266, %v9058_v23 }
 0x3e5   : > { %v2890_v10 = vsel %vm2888_vm10, %v2889_v31, %v9036_v32  ;;  %v3051_v17 = vsel %vm3050_vm4, %v3049_v56, 0  ;;  %v2939_v12 = vshrl.u32 %v2938_v46, 23  ;;  %6826 = vsinq.f32 %v2503_v24 }
 0x3e6   : > { %vm2521_vm6 = vcmp.lt.s32.totalorder %v8726_v53, 0  ;;  %v2891_v27 = vadd.s32 %v2890_v10, %v2886_v7  ;;  %v3053_v58 = vand.u32 31, %v3051_v17  ;;  %v9074_v52 = vadd.s32 3, %v2504_v5 }
 0x3e7   : > { %6828 = vcosq.f32 %v9064_v16  ;;  %v9077_v1 = vadd.s32 3, %v2712_v29  ;;  %v3047_v25 = vor.u32 8388608, %v3046_v47  ;;  %v2603_v37 = vxor.u32 2147483648, %v2602_v60 }
 0x3e8   : > { %12151 = vst [vmem:[#allocation10_spill] sm:$0xff] %v9074_v52  ;;  %v2892_v63 = vadd.s32 536870912, %v2891_v27  ;;  %v3054_v11 = vsub.s32 32, %v3053_v58  ;;  %v9081_v33 = vand.u32 8388607, %v11896_v30  ;;  %v2799_v49 = vsub.s32 32, %v9058_v23 }
 0x3e9   : > { %12152 = vst [vmem:[#allocation12_spill] sm:$0xff] %v9077_v1  ;;  %v2804_v36 = vadd.s32 127, %v2803_v6  ;;  %v3056_v32 = vshll.u32 %v12026_v28, %v3053_v58  ;;  %v6335_v0 = vadd.s32 4294967169, %v2939_v12  ;;  %v3059_v24 = vshll.u32 %v12027_v35, %v3053_v58 }
 0x3ea   : > { %v9085_v44 = vshrl.u32 %v2892_v63, 30  ;;  %v3057_v48 = vshrl.u32 %v12027_v35, %v3054_v11  ;;  %v3060_v5 = vshrl.u32 %v12028_v54, %v3054_v11  ;;  %v3062_v34 = vshll.u32 %v12028_v54, %v3053_v58 }
 0x3eb   : > { %v3063_v61 = vshrl.u32 %v12029_v14, %v3054_v11  ;;  %v3065_v2 = vshll.u32 %v12029_v14, %v3053_v58  ;;  %v3066_v56 = vshrl.u32 %v12030_v20, %v3054_v11  ;;  %v2783_v46 = vadd.s32 %v8948_v19, %v8956_v40 }
 0x3ec   : > { %v2894_v29 = vshll.u32 %v9085_v44, 30  ;;  %v3052_v15 = vshrl.u32 %v3051_v17, 5  ;;  %v3058_v31 = vor.u32 %v3057_v48, %v3056_v32  ;;  %v9097_v47 = vpop.eup %6824  ;;  %v3061_v7 = vor.u32 %v3060_v5, %v3059_v24 }
 0x3ed   : > { %12153 = vst [vmem:[#allocation11_spill] sm:$0xff] %v9097_v47  ;;  %v3064_v6 = vor.u32 %v3063_v61, %v3062_v34  ;;  %v3067_v10 = vor.u32 %v3066_v56, %v3065_v2  ;;  %v3069_v12 = vshrl.u32 %v12022_v38, %v3054_v11  ;;  %v2604_v63 = vsel %vm2521_vm6, %v2603_v37, %v2602_v60 }
 0x3ee   : > { %v9102_v30 = vsub.s32 %v2891_v27, %v2894_v29  ;;  %v3068_v50 = vshll.u32 %v12030_v20, %v3053_v58  ;;  %v9105_v3 = vshll.u32 %v3047_v25, 8  ;;  %v12154_v19 = vand.u32 2147483647, %v8726_v53 }
 0x3ef   : > { %v2801_v17 = vshrl.u32 %v2783_v46, %v2799_v49  ;;  %v2805_v32 = vshll.u32 %v2804_v36, 23  ;;  %v2943_v48 = vor.u32 8388608, %v9081_v33  ;;  %v2945_v24 = vadd.s32 1, %v6335_v0  ;;  %v9114_v5 = vpop.eup %6826 }
 0x3f0   : > { %vm9109_vm0 = vcmp.le.f32.partialorder %v12154_v19, 0.7853982  ;;  %12157 = vst [vmem:[#allocation17_spill] sm:$0xff] %v9114_v5  ;;  %v2897_v60 = vsub.s32 0, %v9102_v30  ;;  %v3070_v27 = vor.u32 %v3069_v12, %v3068_v50  ;;  %vm3071_vm5 = vcmp.lt.s32.totalorder %v3052_v15, 1 }
 0x3f1   : > { %vm3074_vm12 = vcmp.lt.s32.totalorder %v3052_v15, 4  ;;  %v9117_v58 = vpop.eup %6828  ;;  %vm3073_vm11 = vcmp.lt.s32.totalorder %v3052_v15, 3  ;;  %v3079_v37 = vsel %vm3071_vm5, %v3058_v31, %v3061_v7  ;;  %v3055_v33 = vshrl.u32 %v12026_v28, %v3054_v11 }
 0x3f2   : > { %12158 = vst [vmem:[#allocation6_spill] sm:$0xff] %v9117_v58  ;;  %v3076_v25 = vsel %vm3074_vm12, %v3064_v6, 2102212464  ;;  %v3080_v49 = vsel %vm3074_vm12, %v3067_v10, 920167782  ;;  %v6332_v36 = vmin.u32 %v2897_v60, %v9102_v30  ;;  %vm3072_vm8 = vcmp.lt.s32.totalorder %v3052_v15, 2 }
 0x3f3   : > { %v3081_v0 = vsel %vm3073_vm11, %v3064_v6, %v3080_v49  ;;  %v2800_v50 = vshll.u32 %v9022_v22, %v9058_v23  ;;  %v2806_v34 = vor.u32 4788187, %v2805_v32  ;;  %v3083_v2 = vsel %vm3071_vm5, %v3061_v7, %v3064_v6  ;;  %v9138_v22 = vpop.f32.mrb[14].mxu1 }
 0x3f4   : > { %v3082_v61 = vsel %vm3072_vm8, %v3079_v37, %v3081_v0  ;;  %v2899_v56 = vclz %v6332_v36  ;;  %v3075_v46 = vsel %vm3071_vm5, %v3055_v33, %v3058_v31  ;;  %v3077_v29 = vsel %vm3073_vm11, %v3061_v7, %v3076_v25 }
 0x3f5   : > { %v3084_v12 = vsel %vm3074_vm12, %v3070_v27, 1326507024  ;;  %v9134_v19 = vmul.u32.u64.low %v9105_v3, %v3082_v61  ;;  %v9135_v60 = vmul.u32.u64.high %v9105_v3, %v3082_v61, %v9134_v19  ;;  %vm2946_vm15 = vcmp.gt.s32.totalorder %v2945_v24, 0 }
 0x3f6   : > { %v3085_v11 = vsel %vm3073_vm11, %v3067_v10, %v3084_v12  ;;  %v2802_v23 = vor.u32 %v2801_v17, %v2800_v50  ;;  %v6333_v32 = vadd.s32 4294967294, %v2899_v56  ;;  %v2947_v37 = vsel %vm2946_vm15, %v2945_v24, 0  ;;  %v9146_v10 = vpop.permute.xlu1 %2217 }
 0x3f7   : > { %v3086_v6 = vsel %vm3072_vm8, %v3083_v2, %v3085_v11  ;;  %6830 = vsinq.f32 %v9064_v16  ;;  %v2949_v27 = vand.u32 31, %v2947_v37  ;;  %v9151_v25 = vsel %vm9109_vm0, %v8726_v53, %v2604_v63 }
 0x3f8   : > { %v9143_v31 = vmul.u32.u64.low %v9105_v3, %v3086_v6  ;;  %v9144_v7 = vmul.u32.u64.high %v9105_v3, %v3086_v6, %v9143_v31  ;;  %vm2833_vm2 = vcmp.lt.s32.totalorder %v8912_v4, 0  ;;  %vm6334_vm1 = vcmp.lt.s32.totalorder %v6333_v32, 0 }
 0x3f9   : > { %v3078_v17 = vsel %vm3072_vm8, %v3075_v46, %v3077_v29  ;;  %v9157_v16 = vadd.f32 %v8749_v21, %v8903_v51  ;;  %v2807_v24 = vand.u32 2147483647, %v2806_v34  ;;  %v9159_v49 = vsel %vm6334_vm1, 0, %v6333_v32 }
 0x3fa   : > { %v3097_v36 = vadd.s32 1, %v9135_v60  ;;  %v2950_v33 = vsub.s32 32, %v2949_v27  ;;  %v2809_v0 = vcvt.s32.f32 %v2802_v23  ;;  %v2887_v63 = vadd.s32 %v9035_v59, %v9040_v42 }
 0x3fb   : > { %v9164_v50 = vshll.u32 %v2943_v48, 8  ;;  %v9168_v15 = vadd.f32 %v8770_v39, %v9146_v10  ;;  %v2917_v61 = vsub.s32 4, %v9085_v44  ;;  %v3094_v21 = vmul.u32 %v9105_v3, %v3078_v17 }
 0x3fc   : > { %vm3096_vm14 = vc.u32 %v9144_v7, %v9134_v19  ;;  %v2953_v51 = vshrl.u32 %v12027_v35, %v2950_v33  ;;  %v2907_v34 = vsub.s32 4294967266, %v9159_v49  ;;  %v2952_v59 = vshll.u32 %v12026_v28, %v2949_v27 }
 0x3fd   : > { %12159 = vst [vmem:[#allocation24_spill] sm:$0xff] %v9168_v15  ;;  %v3098_v2 = vsel %vm3096_vm14, %v3097_v36, %v9135_v60  ;;  %v2956_v42 = vshrl.u32 %v12028_v54, %v2950_v33  ;;  %v2810_v48 = vmul.f32 %v2809_v0, %v2807_v24  ;;  %v2955_v56 = vshll.u32 %v12027_v35, %v2949_v27 }
 0x3fe   : > { %v3099_v39 = vadd.s32 %v3098_v2, %v3094_v21  ;;  %v2959_v46 = vshrl.u32 %v12029_v14, %v2950_v33  ;;  %v2948_v3 = vshrl.u32 %v2947_v37, 5  ;;  %v2954_v29 = vor.u32 %v2953_v51, %v2952_v59 }
 0x3ff   : > { %v2958_v12 = vshll.u32 %v12028_v54, %v2949_v27  ;;  %v2957_v32 = vor.u32 %v2956_v42, %v2955_v56  ;;  %v2961_v60 = vshll.u32 %v12029_v14, %v2949_v27  ;;  %v2962_v6 = vshrl.u32 %v12030_v20, %v2950_v33 }
 0x400   : > { %v3100_v23 = vadd.s32 536870912, %v3099_v39  ;;  %v2908_v31 = vadd.s32 127, %v2907_v34  ;;  %v2964_v24 = vshll.u32 %v12030_v20, %v2949_v27  ;;  %v2965_v36 = vshrl.u32 %v12022_v38, %v2950_v33 }
 0x401   : > { %v2960_v17 = vor.u32 %v2959_v46, %v2958_v12  ;;  %v9187_v0 = vpop.eup %6830  ;;  %v2811_v37 = vxor.u32 2147483648, %v2810_v48  ;;  %v9192_v21 = vsel %vm2833_vm2, %v2917_v61, %v9085_v44  ;;  %v2963_v2 = vor.u32 %v2962_v6, %v2961_v60 }
 0x402   : > { %12160 = vst [vmem:[#allocation23_spill] sm:$0xff] %v9187_v0  ;;  %v9194_v51 = vshrl.u32 %v3100_v23, 30  ;;  %vm11937_vm13 = vcmp.lt.s32.totalorder %v8786_v26, 0  ;;  %v12161_v34 = vand.u32 2147483647, %v8912_v4  ;;  %v2903_v27 = vsub.s32 32, %v9159_v49 }
 0x403   : > { %v2966_v42 = vor.u32 %v2965_v36, %v2964_v24  ;;  %vm2967_vm7 = vcmp.lt.s32.totalorder %v2948_v3, 1  ;;  %v3146_v56 = vand.u32 2139095040, %v9157_v16  ;;  %v2951_v61 = vshrl.u32 %v12026_v28, %v2950_v33 }
 0x404   : > { %vm9199_vm3 = vcmp.le.f32.partialorder %v12161_v34, 0.7853982  ;;  %v3102_v44 = vshll.u32 %v9194_v51, 30  ;;  %vm2970_vm10 = vcmp.lt.s32.totalorder %v2948_v3, 4  ;;  %v2975_v46 = vsel %vm2967_vm7, %v2954_v29, %v2957_v32 }
 0x405   : > { %v2909_v12 = vshll.u32 %v2908_v31, 23  ;;  %vm2969_vm4 = vcmp.lt.s32.totalorder %v2948_v3, 3  ;;  %v2972_v23 = vsel %vm2970_vm10, %v2960_v17, 2102212464  ;;  %v2976_v60 = vsel %vm2970_vm10, %v2963_v2, 920167782 }
 0x406   : > { %v9208_v6 = vsub.s32 %v3099_v39, %v3102_v44  ;;  %vm2968_vm5 = vcmp.lt.s32.totalorder %v2948_v3, 2  ;;  %v2977_v34 = vsel %vm2969_vm4, %v2960_v17, %v2976_v60  ;;  %v2979_v24 = vsel %vm2967_vm7, %v2957_v32, %v2960_v17 }
 0x407   : > { %v12164_v36 = vand.u32 2147483647, %v8786_v26  ;;  %v12165_v11 = vmov 0  ;;  %v2904_v33 = vshll.u32 %v9102_v30, %v9159_v49  ;;  %v2905_v8 = vshrl.u32 %v2887_v63, %v2903_v27 }
 0x408   : > { %v2978_v31 = vsel %vm2968_vm5, %v2975_v46, %v2977_v34  ;;  %v2980_v58 = vsel %vm2970_vm10, %v2966_v42, 1326507024  ;;  %v3105_v39 = vsub.s32 0, %v9208_v6  ;;  %v2971_v44 = vsel %vm2967_vm7, %v2951_v61, %v2954_v29  ;;  %v9242_v61 = vpop.f32.mrb[15].mxu0 }
 0x409   : > { %vm9213_vm12 = vcmp.le.f32.partialorder %v12164_v36, 0.7853982  ;;  %v2973_v60 = vsel %vm2969_vm4, %v2957_v32, %v2972_v23  ;;  %v2981_v0 = vsel %vm2969_vm4, %v2963_v2, %v2980_v58  ;;  %v2910_v17 = vor.u32 4788187, %v2909_v12 }
 0x40a   : > { %v12166_v11 = vsel %vm9213_vm12, 4294967295, %v12165_v11  ;;  %v2982_v1 = vsel %vm2968_vm5, %v2979_v24, %v2981_v0  ;;  %v9224_v36 = vmul.u32.u64.low %v9164_v50, %v2978_v31  ;;  %v9225_v43 = vmul.u32.u64.high %v9164_v50, %v2978_v31, %v9224_v36 }
 0x40b   : > { %12167 = vst [vmem:[#allocation13_spill] sm:$0xff] %v12166_v11  ;;  %6832 = vcosq.f32 %v9151_v25  ;;  %v6340_v30 = vmin.u32 %v3105_v39, %v9208_v6  ;;  %v9231_v49 = vmul.u32.u64.low %v9164_v50, %v2982_v1  ;;  %v9232_v63 = vmul.u32.u64.high %v9164_v50, %v2982_v1, %v9231_v49 }
 0x40c   : > { %6834 = vsinq.f32 %v9151_v25  ;;  %v2906_v29 = vor.u32 %v2905_v8, %v2904_v33  ;;  %v2974_v58 = vsel %vm2968_vm5, %v2971_v44, %v2973_v60  ;;  %v3147_v32 = vshrl.u32 %v3146_v56, 23 }
 0x40d   : > { %v2812_v0 = vsel %vm11937_vm13, %v2811_v37, %v2810_v48  ;;  %v2920_v2 = vsel %vm9199_vm3, 0, %v9192_v21  ;;  %v3107_v27 = vclz %v6340_v30  ;;  %v3250_v42 = vand.u32 2139095040, %v9168_v15 }
 0x40e   : > { %v2911_v1 = vand.u32 2147483647, %v2910_v17  ;;  %v2993_v46 = vadd.s32 1, %v9225_v43  ;;  %v6343_v25 = vadd.s32 4294967169, %v3147_v32  ;;  %v12168_v8 = vand.u32 2147483647, %v9157_v16 }
 0x40f   : > { %v6341_v56 = vadd.s32 4294967294, %v3107_v27  ;;  %v2990_v12 = vmul.u32 %v9164_v50, %v2974_v58  ;;  %vm2992_vm11 = vc.u32 %v9232_v63, %v9224_v36  ;;  %v11903_v48 = vand.u32 2147483647, %v9168_v15 }
 0x410   : > { %v3150_v3 = vand.u32 8388607, %v12168_v8  ;;  %v2913_v37 = vcvt.s32.f32 %v2906_v29  ;;  %v2994_v21 = vsel %vm2992_vm11, %v2993_v46, %v9225_v43  ;;  %v3153_v23 = vadd.s32 1, %v6343_v25 }
 0x411   : > { %v3251_v34 = vshrl.u32 %v3250_v42, 23  ;;  %v9255_v24 = vsel %vm9213_vm12, %v8786_v26, %v2812_v0  ;;  %v3095_v33 = vadd.s32 %v9134_v19, %v9144_v7  ;;  %vm6342_vm8 = vcmp.lt.s32.totalorder %v6341_v56, 0 }
 0x412   : > { %v2995_v50 = vadd.s32 %v2994_v21, %v2990_v12  ;;  %v9259_v31 = vmul.f32 %v2913_v37, %v2911_v1  ;;  %v3110_v39 = vsel %vm6342_vm8, 0, %v6341_v56  ;;  %v3151_v44 = vor.u32 8388608, %v3150_v3 }
 0x413   : > { %vm3154_vm15 = vcmp.gt.s32.totalorder %v3153_v23, 0  ;;  %v3111_v60 = vsub.s32 32, %v3110_v39  ;;  %v3115_v17 = vsub.s32 4294967266, %v3110_v39  ;;  %v9263_v30 = vand.u32 8388607, %v11903_v48 }
 0x414   : > { %v2996_v43 = vadd.s32 536870912, %v2995_v50  ;;  %v9265_v49 = vadd.s32 3, %v2920_v2  ;;  %v3155_v29 = vsel %vm3154_vm15, %v3153_v23, 0  ;;  %v6347_v58 = vadd.s32 4294967169, %v3251_v34 }
 0x415   : > { %v9269_v19 = vadd.f32 %v8812_v41, %v9146_v10  ;;  %v9271_v7 = vpop.eup %6832  ;;  %6836 = vcosq.f32 %v9255_v24  ;;  %v3113_v32 = vshrl.u32 %v3095_v33, %v3111_v60  ;;  %v3116_v0 = vadd.s32 127, %v3115_v17 }
 0x416   : > { %12169 = vst [vmem:[#allocation15_spill] sm:$0xff] %v9265_v49  ;;  %v9274_v27 = vshrl.u32 %v2996_v43, 30  ;;  %v9276_v42 = vpop.eup %6834  ;;  %v3112_v2 = vshll.u32 %v9208_v6, %v3110_v39  ;;  %v3125_v46 = vsub.s32 4, %v9194_v51  ;;  %v3157_v25 = vand.u32 31, %v3155_v29 }
 0x417   : > { %12170 = vst [vmem:[#allocation14_spill] sm:$0xff] %v9269_v19  ;;  %v3117_v8 = vshll.u32 %v3116_v0, 23  ;;  %v9282_v3 = vshll.u32 %v3151_v44, 8  ;;  %v3156_v37 = vshrl.u32 %v3155_v29, 5  ;;  %v3257_v23 = vadd.s32 1, %v6347_v58 }
 0x418   : > { %v2998_v41 = vshll.u32 %v9274_v27, 30  ;;  %v3114_v12 = vor.u32 %v3113_v32, %v3112_v2  ;;  %v3158_v21 = vsub.s32 32, %v3157_v25  ;;  %v3160_v60 = vshll.u32 %v12026_v28, %v3157_v25 }
 0x419   : > { %v3118_v34 = vor.u32 4788187, %v3117_v8  ;;  %v3163_v6 = vshll.u32 %v12027_v35, %v3157_v25  ;;  %v3166_v44 = vshll.u32 %v12028_v54, %v3157_v25  ;;  %vm3041_vm1 = vcmp.lt.s32.totalorder %v8973_v62, 0 }
 0x41a   : > { %v9285_v33 = vsub.s32 %v2995_v50, %v2998_v41  ;;  %v3161_v39 = vshrl.u32 %v12027_v35, %v3158_v21  ;;  %v3164_v17 = vshrl.u32 %v12028_v54, %v3158_v21  ;;  %v3167_v43 = vshrl.u32 %v12029_v14, %v3158_v21 }
 0x41b   : > { %v3169_v58 = vshll.u32 %v12029_v14, %v3157_v25  ;;  %v3170_v50 = vshrl.u32 %v12030_v20, %v3158_v21  ;;  %v3172_v32 = vshll.u32 %v12030_v20, %v3157_v25  ;;  %v3173_v41 = vshrl.u32 %v12022_v38, %v3158_v21 }
 0x41c   : > { %v3001_v29 = vsub.s32 0, %v9285_v33  ;;  %v3162_v0 = vor.u32 %v3161_v39, %v3160_v60  ;;  %v3165_v2 = vor.u32 %v3164_v17, %v3163_v6  ;;  %v3168_v8 = vor.u32 %v3167_v43, %v3166_v44 }
 0x41d   : > { %v3119_v48 = vand.u32 2147483647, %v3118_v34  ;;  %v3171_v1 = vor.u32 %v3170_v50, %v3169_v58  ;;  %vm3258_vm14 = vcmp.gt.s32.totalorder %v3257_v23, 0  ;;  %v3121_v49 = vcvt.s32.f32 %v3114_v12 }
 0x41e   : > { %v6336_v56 = vmin.u32 %v3001_v29, %v9285_v33  ;;  %v3174_v47 = vor.u32 %v3173_v41, %v3172_v32  ;;  %vm3175_vm7 = vcmp.lt.s32.totalorder %v3156_v37, 1  ;;  %vm3178_vm10 = vcmp.lt.s32.totalorder %v3156_v37, 4 }
 0x41f   : > { %v9300_v5 = vpop.eup %6836  ;;  %v3159_v11 = vshrl.u32 %v12026_v28, %v3158_v21  ;;  %vm3177_vm4 = vcmp.lt.s32.totalorder %v3156_v37, 3  ;;  %v3180_v25 = vsel %vm3178_vm10, %v3168_v8, 2102212464  ;;  %v3183_v60 = vsel %vm3175_vm7, %v3162_v0, %v3165_v2  ;;  %v9309_v21 = vpop.f32.mrb[15].mxu1 }
 0x420   : > { %12171 = vst [vmem:[#allocation8_spill] sm:$0xff] %v9300_v5  ;;  %v3003_v52 = vclz %v6336_v56  ;;  %v3184_v6 = vsel %vm3178_vm10, %v3171_v1, 920167782  ;;  %v3187_v34 = vsel %vm3175_vm7, %v3165_v2, %v3168_v8  ;;  %v3188_v39 = vsel %vm3178_vm10, %v3174_v47, 1326507024 }
 0x421   : > { %v9305_v17 = vmul.f32 %v3121_v49, %v3119_v48  ;;  %v3185_v12 = vsel %vm3177_vm4, %v3168_v8, %v3184_v6  ;;  %v3458_v43 = vand.u32 2139095040, %v9269_v19  ;;  %vm3176_vm5 = vcmp.lt.s32.totalorder %v3156_v37, 2 }
 0x422   : > { %v6337_v44 = vadd.s32 4294967294, %v3003_v52  ;;  %v3179_v29 = vsel %vm3175_vm7, %v3159_v11, %v3162_v0  ;;  %v3181_v56 = vsel %vm3177_vm4, %v3165_v2, %v3180_v25  ;;  %v3189_v58 = vsel %vm3177_vm4, %v3171_v1, %v3188_v39 }
 0x423   : > { %v3186_v50 = vsel %vm3176_vm5, %v3183_v60, %v3185_v12  ;;  %v3190_v32 = vsel %vm3176_vm5, %v3187_v34, %v3189_v58  ;;  %v3259_v41 = vsel %vm3258_vm14, %v3257_v23, 0  ;;  %v9315_v47 = vsel %vm3041_vm1, %v3125_v46, %v9194_v51 }
 0x424   : > { %vm6338_vm11 = vcmp.lt.s32.totalorder %v6337_v44, 0  ;;  %v9318_v48 = vmul.u32.u64.low %v9282_v3, %v3190_v32  ;;  %v9319_v49 = vmul.u32.u64.high %v9282_v3, %v3190_v32, %v9318_v48  ;;  %v12172_v11 = vxor.u32 2147483648, %v9259_v31 }
 0x425   : > { %v3006_v52 = vsel %vm6338_vm11, 0, %v6337_v44  ;;  %v3182_v0 = vsel %vm3176_vm5, %v3179_v29, %v3181_v56  ;;  %v3459_v23 = vshrl.u32 %v3458_v43, 23  ;;  %v2991_v2 = vadd.s32 %v9224_v36, %v9232_v63 }
 0x426   : > { %v9326_v1 = vsel %vm2833_vm2, %v12172_v11, %v9259_v31  ;;  %v3011_v37 = vsub.s32 4294967266, %v3006_v52  ;;  %v9331_v51 = vmul.u32.u64.low %v9282_v3, %v3186_v50  ;;  %v9332_v46 = vmul.u32.u64.high %v9282_v3, %v3186_v50, %v9331_v51 }
 0x427   : > { %v3261_v8 = vand.u32 31, %v3259_v41  ;;  %v12173_v6 = vor.u32 8388608, %v9263_v30  ;;  %v3007_v39 = vsub.s32 32, %v3006_v52  ;;  %v3008_v44 = vshll.u32 %v9285_v33, %v3006_v52 }
 0x428   : > { %v3012_v60 = vadd.s32 127, %v3011_v37  ;;  %v3198_v36 = vmul.u32 %v9282_v3, %v3182_v0  ;;  %vm3200_vm2 = vc.u32 %v9319_v49, %v9331_v51  ;;  %v3260_v12 = vshrl.u32 %v3259_v41, 5 }
 0x429   : > { %v9338_v34 = vshll.u32 %v12173_v6, 8  ;;  %v3262_v63 = vsub.s32 32, %v3261_v8  ;;  %v3264_v43 = vshll.u32 %v12026_v28, %v3261_v8  ;;  %v6355_v29 = vadd.s32 4294967169, %v3459_v23 }
 0x42a   : > { %v3201_v56 = vadd.s32 1, %v9332_v46  ;;  %v3267_v58 = vshll.u32 %v12027_v35, %v3261_v8  ;;  %v3013_v32 = vshll.u32 %v3012_v60, 23  ;;  %v3270_v33 = vshll.u32 %v12028_v54, %v3261_v8 }
 0x42b   : > { %v3265_v30 = vshrl.u32 %v12027_v35, %v3262_v63  ;;  %v3268_v50 = vshrl.u32 %v12028_v54, %v3262_v63  ;;  %v3271_v3 = vshrl.u32 %v12029_v14, %v3262_v63  ;;  %v3273_v52 = vshll.u32 %v12029_v14, %v3261_v8 }
 0x42c   : > { %v3202_v41 = vsel %vm3200_vm2, %v3201_v56, %v9332_v46  ;;  %v3274_v37 = vshrl.u32 %v12030_v20, %v3262_v63  ;;  %v3009_v0 = vshrl.u32 %v2991_v2, %v3007_v39  ;;  %vm3279_vm8 = vcmp.lt.s32.totalorder %v3260_v12, 1 }
 0x42d   : > { %v3266_v48 = vor.u32 %v3265_v30, %v3264_v43  ;;  %v3269_v11 = vor.u32 %v3268_v50, %v3267_v58  ;;  %v3203_v23 = vadd.s32 %v3202_v41, %v3198_v36  ;;  %v3272_v6 = vor.u32 %v3271_v3, %v3270_v33 }
 0x42e   : > { %v12174_v25 = vand.u32 2147483647, %v8973_v62  ;;  %v3263_v31 = vshrl.u32 %v12026_v28, %v3262_v63  ;;  %v3275_v5 = vor.u32 %v3274_v37, %v3273_v52  ;;  %v3276_v26 = vshll.u32 %v12030_v20, %v3261_v8 }
 0x42f   : > { %v3277_v46 = vshrl.u32 %v12022_v38, %v3262_v63  ;;  %v3014_v43 = vor.u32 4788187, %v3013_v32  ;;  %v3204_v56 = vadd.s32 536870912, %v3203_v23  ;;  %vm3281_vm14 = vcmp.lt.s32.totalorder %v3260_v12, 3 }
 0x430   : > { %vm9357_vm15 = vcmp.le.f32.partialorder %v12174_v25, 0.7853982  ;;  %vm3282_vm7 = vcmp.lt.s32.totalorder %v3260_v12, 4  ;;  %v3287_v36 = vsel %vm3279_vm8, %v3266_v48, %v3269_v11  ;;  %v3010_v25 = vor.u32 %v3009_v0, %v3008_v44 }
 0x431   : > { %v3278_v2 = vor.u32 %v3277_v46, %v3276_v26  ;;  %v3284_v39 = vsel %vm3282_vm7, %v3272_v6, 2102212464  ;;  %v3288_v30 = vsel %vm3282_vm7, %v3275_v5, 920167782  ;;  %v9365_v58 = vshrl.u32 %v3204_v56, 30 }
 0x432   : > { %vm3280_vm10 = vcmp.lt.s32.totalorder %v3260_v12, 2  ;;  %v3289_v50 = vsel %vm3281_vm14, %v3272_v6, %v3288_v30  ;;  %v3283_v33 = vsel %vm3279_vm8, %v3263_v31, %v3266_v48  ;;  %v3291_v63 = vsel %vm3279_vm8, %v3269_v11, %v3272_v6 }
 0x433   : > { %12177 = vst [vmem:[#allocation26_spill] sm:$0xff] %v9365_v58  ;;  %v3290_v8 = vsel %vm3280_vm10, %v3287_v36, %v3289_v50  ;;  %v3292_v32 = vsel %vm3282_vm7, %v3278_v2, 1326507024  ;;  %v3206_v3 = vshll.u32 %v9365_v58, 30  ;;  %v3285_v26 = vsel %vm3281_vm14, %v3269_v11, %v3284_v39 }
 0x434   : > { %v3293_v52 = vsel %vm3281_vm14, %v3275_v5, %v3292_v32  ;;  %v3465_v41 = vadd.s32 1, %v6355_v29  ;;  %v3015_v44 = vand.u32 2147483647, %v3014_v43  ;;  %6838 = vsinq.f32 %v9255_v24 }
 0x435   : > { %v3294_v37 = vsel %vm3280_vm10, %v3291_v63, %v3293_v52  ;;  %v9376_v0 = vmul.u32.u64.low %v9338_v34, %v3290_v8  ;;  %v9377_v46 = vmul.u32.u64.high %v9338_v34, %v3290_v8, %v9376_v0  ;;  %v9381_v31 = vsub.s32 %v3203_v23, %v3206_v3 }
 0x436   : > { %v9384_v48 = vmul.u32.u64.low %v9338_v34, %v3294_v37  ;;  %v9385_v6 = vmul.u32.u64.high %v9338_v34, %v3294_v37, %v9384_v48  ;;  %v2919_v5 = vsel %vm9199_vm3, %v8912_v4, %v9326_v1  ;;  %v3017_v29 = vcvt.s32.f32 %v3010_v25 }
 0x437   : > { %v3286_v11 = vsel %vm3280_vm10, %v3283_v33, %v3285_v26  ;;  %vm3466_vm4 = vcmp.gt.s32.totalorder %v3465_v41, 0  ;;  %v3128_v43 = vsel %vm9357_vm15, 0, %v9315_v47  ;;  %v3209_v24 = vsub.s32 0, %v9381_v31 }
 0x438   : > { %v12178_v23 = vand.u32 2147483647, %v9269_v19  ;;  %v3467_v2 = vsel %vm3466_vm4, %v3465_v41, 0  ;;  %v12179_v39 = vxor.u32 2147483648, %v9305_v17  ;;  %v3018_v1 = vmul.f32 %v3017_v29, %v3015_v44 }
 0x439   : > { %v3305_v12 = vadd.s32 1, %v9377_v46  ;;  %v3469_v36 = vand.u32 31, %v3467_v2  ;;  %6840 = vcosq.f32 %v2919_v5  ;;  %vm2937_vm3 = vcmp.lt.s32.totalorder %v8981_v18, 0 }
 0x43a   : > { %v3462_v56 = vand.u32 8388607, %v12178_v23  ;;  %v3124_v59 = vsel %vm3041_vm1, %v12179_v39, %v9305_v17  ;;  %v6344_v47 = vmin.u32 %v3209_v24, %v9381_v31  ;;  %v3302_v30 = vmul.u32 %v9338_v34, %v3286_v11 }
 0x43b   : > { %vm3304_vm5 = vc.u32 %v9385_v6, %v9376_v0  ;;  %6842 = vsinq.f32 %v2919_v5  ;;  %v9409_v25 = vadd.s32 3, %v3128_v43  ;;  %v3470_v17 = vsub.s32 32, %v3469_v36 }
 0x43c   : > { %v3306_v50 = vsel %vm3304_vm5, %v3305_v12, %v9377_v46  ;;  %v9415_v33 = vsel %vm9357_vm15, %v8973_v62, %v3124_v59  ;;  %v3211_v8 = vclz %v6344_v47  ;;  %v3463_v32 = vor.u32 8388608, %v3462_v56 }
 0x43d   : > { %12180 = vst [vmem:[#allocation29_spill] sm:$0xff] %v9409_v25  ;;  %v3307_v63 = vadd.s32 %v3306_v50, %v3302_v30  ;;  %v3019_v3 = vxor.u32 2147483648, %v3018_v1  ;;  %v9417_v26 = vshrl.u32 %v3467_v2, 5  ;;  %v3473_v34 = vshrl.u32 %v12027_v35, %v3470_v17 }
 0x43e   : > { %v3476_v52 = vshrl.u32 %v12028_v54, %v3470_v17  ;;  %v6345_v41 = vadd.s32 4294967294, %v3211_v8  ;;  %v3479_v37 = vshrl.u32 %v12029_v14, %v3470_v17  ;;  %v3482_v46 = vshrl.u32 %v12030_v20, %v3470_v17  ;;  %v9427_v11 = vpop.eup %6838 }
 0x43f   : > { %v3308_v44 = vadd.s32 536870912, %v3307_v63  ;;  %v3472_v60 = vshll.u32 %v12026_v28, %v3469_v36  ;;  %v3475_v48 = vshll.u32 %v12027_v35, %v3469_v36  ;;  %v3481_v5 = vshll.u32 %v12029_v14, %v3469_v36  ;;  %12181 = vst [vmem:[#allocation28_spill] sm:$0xff] %v9427_v11 }
 0x440   : > { %v3485_v29 = vshrl.u32 %v12022_v38, %v3470_v17  ;;  %vm6346_vm1 = vcmp.lt.s32.totalorder %v6345_v41, 0  ;;  %v3478_v24 = vshll.u32 %v12028_v54, %v3469_v36  ;;  %v3484_v23 = vshll.u32 %v12030_v20, %v3469_v36 }
 0x441   : > { %v9429_v43 = vshrl.u32 %v3308_v44, 30  ;;  %v3214_v56 = vsel %vm6346_vm1, 0, %v6345_v41  ;;  %v3474_v2 = vor.u32 %v3473_v34, %v3472_v60  ;;  %v3477_v39 = vor.u32 %v3476_v52, %v3475_v48 }
 0x442   : > { %v3483_v59 = vor.u32 %v3482_v46, %v3481_v5  ;;  %6844 = vcosq.f32 %v9415_v33  ;;  %v3219_v12 = vsub.s32 4294967266, %v3214_v56  ;;  %v3480_v30 = vor.u32 %v3479_v37, %v3478_v24 }
 0x443   : > { %v3310_v47 = vshll.u32 %v9429_v43, 30  ;;  %v12182_v50 = vand.u32 2147483647, %v8981_v18  ;;  %v3020_v44 = vsel %vm2937_vm3, %v3019_v3, %v3018_v1  ;;  %v3199_v36 = vadd.s32 %v9331_v51, %v9319_v49  ;;  %v9447_v41 = vpop.eup %6840 }
 0x444   : > { %v3486_v34 = vor.u32 %v3485_v29, %v3484_v23  ;;  %v9445_v52 = vshll.u32 %v3463_v32, 8  ;;  %12185 = vst [vmem:[#allocation7_spill] sm:$0xff] %v9447_v41  ;;  %v3220_v46 = vadd.s32 127, %v3219_v12  ;;  %vm3487_vm2 = vcmp.lt.s32.totalorder %v9417_v26, 1 }
 0x445   : > { %vm9437_vm11 = vcmp.le.f32.partialorder %v12182_v50, 0.7853982  ;;  %v9449_v60 = vsub.s32 %v3307_v63, %v3310_v47  ;;  %vm3490_vm8 = vcmp.lt.s32.totalorder %v9417_v26, 4  ;;  %v9453_v37 = vpop.eup %6842  ;;  %v3215_v48 = vsub.s32 32, %v3214_v56 }
 0x446   : > { %12186 = vst [vmem:[#allocation32_spill] sm:$0xff] %v9453_v37  ;;  %v3495_v1 = vsel %vm3487_vm2, %v3474_v2, %v3477_v39  ;;  %v3496_v3 = vsel %vm3490_vm8, %v3483_v59, 920167782  ;;  %v9459_v49 = vadd.f32 %v8900_v55, %v9146_v10  ;;  %vm3488_vm15 = vcmp.lt.s32.totalorder %v9417_v26, 2  ;;  %v12240_v37 = vld [vmem:[#allocation11_spill] sm:$0xff] }
 0x447   : > { %v3313_v51 = vsub.s32 0, %v9449_v60  ;;  %vm3489_vm14 = vcmp.lt.s32.totalorder %v9417_v26, 3  ;;  %v3492_v63 = vsel %vm3490_vm8, %v3480_v30, 2102212464  ;;  %v3221_v32 = vshll.u32 %v3220_v46, 23 }
 0x448   : > { %v3497_v5 = vsel %vm3489_vm14, %v3480_v30, %v3496_v3  ;;  %v3499_v29 = vsel %vm3487_vm2, %v3477_v39, %v3480_v30  ;;  %v3500_v24 = vsel %vm3490_vm8, %v3486_v34, 1326507024  ;;  %v3216_v23 = vshll.u32 %v9381_v31, %v3214_v56 }
 0x449   : > { %v6348_v12 = vmin.u32 %v3313_v51, %v9449_v60  ;;  %v3471_v55 = vshrl.u32 %v12026_v28, %v3470_v17  ;;  %v3498_v47 = vsel %vm3488_vm15, %v3495_v1, %v3497_v5  ;;  %v3217_v50 = vshrl.u32 %v3199_v36, %v3215_v48 }
 0x44a   : > { %v3501_v62 = vsel %vm3489_vm14, %v3483_v59, %v3500_v24  ;;  %v9472_v25 = vmul.u32.u64.low %v9445_v52, %v3498_v47  ;;  %v9473_v41 = vmul.u32.u64.high %v9445_v52, %v3498_v47, %v9472_v25  ;;  %v3493_v34 = vsel %vm3489_vm14, %v3477_v39, %v3492_v63 }
 0x44b   : > { %v3315_v46 = vclz %v6348_v12  ;;  %v3491_v30 = vsel %vm3487_vm2, %v3471_v55, %v3474_v2  ;;  %v3502_v31 = vsel %vm3488_vm15, %v3499_v29, %v3501_v62  ;;  %v3222_v56 = vor.u32 4788187, %v3221_v32 }
 0x44c   : > { %v9481_v17 = vmul.u32.u64.low %v9445_v52, %v3502_v31  ;;  %v9482_v3 = vmul.u32.u64.high %v9445_v52, %v3502_v31, %v9481_v17  ;;  %v3354_v59 = vand.u32 2139095040, %v9459_v49  ;;  %v9485_v36 = vpop.eup %6844  ;;  %6846 = vsinq.f32 %v9415_v33 }
 0x44d   : > { %12187 = vst [vmem:[#allocation9_spill] sm:$0xff] %v9485_v36  ;;  %v3023_v48 = vsel %vm9437_vm11, %v8981_v18, %v3020_v44  ;;  %vm3249_vm7 = vcmp.lt.s32.totalorder %v9168_v15, 0  ;;  %v6349_v2 = vadd.s32 4294967294, %v3315_v46  ;;  %v3218_v39 = vor.u32 %v3217_v50, %v3216_v23 }
 0x44e   : > { %v3494_v62 = vsel %vm3488_vm15, %v3491_v30, %v3493_v34  ;;  %v3513_v1 = vadd.s32 1, %v9473_v41  ;;  %v3355_v51 = vshrl.u32 %v3354_v59, 23  ;;  %v3333_v63 = vsub.s32 4, %v9429_v43 }
 0x44f   : > { %vm6350_vm10 = vcmp.lt.s32.totalorder %v6349_v2, 0  ;;  %v11913_v32 = vand.u32 2147483647, %v9459_v49  ;;  %v9499_v33 = vadd.f32 %v8966_v9, %v9146_v10  ;;  %v3223_v44 = vand.u32 2147483647, %v3222_v56 }
 0x450   : > { %v3318_v5 = vsel %vm6350_vm10, 0, %v6349_v2  ;;  %vm3512_vm4 = vc.u32 %v9482_v3, %v9472_v25  ;;  %v6351_v29 = vadd.s32 4294967169, %v3355_v51  ;;  %6848 = vcosq.f32 %v3023_v48 }
 0x451   : > { %12188 = vst [vmem:[#allocation21_spill] sm:$0xff] %v9499_v33  ;;  %v3319_v26 = vsub.s32 32, %v3318_v5  ;;  %v3323_v24 = vsub.s32 4294967266, %v3318_v5  ;;  %v3510_v23 = vmul.u32 %v9445_v52, %v3494_v62  ;;  %v3225_v12 = vcvt.s32.f32 %v3218_v39 }
 0x452   : > { %v3303_v55 = vadd.s32 %v9376_v0, %v9385_v6  ;;  %v3514_v47 = vsel %vm3512_vm4, %v3513_v1, %v9473_v41  ;;  %v3361_v50 = vadd.s32 1, %v6351_v29  ;;  %vm11936_vm5 = vcmp.lt.s32.totalorder %v9157_v16, 0  ;;  %v9517_v6 = vpop.permute.xlu0 %2221 }
 0x453   : > { %v3324_v9 = vadd.s32 127, %v3323_v24  ;;  %v9511_v10 = vsel %vm3249_vm7, %v3333_v63, %v9429_v43  ;;  %v3515_v46 = vadd.s32 %v3514_v47, %v3510_v23  ;;  %v3358_v30 = vand.u32 8388607, %v11913_v32 }
 0x454   : > { %v3226_v52 = vmul.f32 %v3225_v12, %v3223_v44  ;;  %vm3362_vm1 = vcmp.gt.s32.totalorder %v3361_v50, 0  ;;  %v11912_v34 = vand.u32 2147483647, %v9499_v33  ;;  %v3562_v0 = vand.u32 2139095040, %v9499_v33 }
 0x455   : > { %v3321_v41 = vshrl.u32 %v3303_v55, %v3319_v26  ;;  %v3325_v31 = vshll.u32 %v3324_v9, 23  ;;  %v3516_v56 = vadd.s32 536870912, %v3515_v46  ;;  %v3363_v17 = vsel %vm3362_vm1, %v3361_v50, 0 }
 0x456   : > { %6850 = vsinq.f32 %v3023_v48  ;;  %v12189_v43 = vand.u32 2147483647, %v9168_v15  ;;  %v3365_v2 = vand.u32 31, %v3363_v17  ;;  %v9527_v39 = vadd.f32 %v9053_v45, %v9517_v6  ;;  %v9529_v62 = vpop.eup %6846 }
 0x457   : > { %12192 = vst [vmem:[#allocation37_spill] sm:$0xff] %v9529_v62  ;;  %v3320_v1 = vshll.u32 %v9449_v60, %v3318_v5  ;;  %v9535_v48 = vshrl.u32 %v3516_v56, 30  ;;  %v3359_v63 = vor.u32 8388608, %v3358_v30  ;;  %v3227_v44 = vxor.u32 2147483648, %v3226_v52 }
 0x458   : > { %vm9521_vm2 = vcmp.le.f32.partialorder %v12189_v43, 0.7853982  ;;  %v3326_v29 = vor.u32 4788187, %v3325_v31  ;;  %v3366_v26 = vsub.s32 32, %v3365_v2  ;;  %v9543_v23 = vadd.s32 %v9472_v25, %v9482_v3 }
 0x459   : > { %v9539_v24 = vand.u32 8388607, %v11912_v34  ;;  %v3322_v45 = vor.u32 %v3321_v41, %v3320_v1  ;;  %v3518_v60 = vshll.u32 %v9535_v48, 30  ;;  %v3563_v5 = vshrl.u32 %v3562_v0, 23 }
 0x45a   : > { %v3368_v12 = vshll.u32 %v12026_v28, %v3365_v2  ;;  %v3369_v55 = vshrl.u32 %v12027_v35, %v3366_v26  ;;  %v3372_v47 = vshrl.u32 %v12028_v54, %v3366_v26  ;;  %v3375_v50 = vshrl.u32 %v12029_v14, %v3366_v26  ;;  %v9550_v9 = vpop.eup %6848 }
 0x45b   : > { %v9552_v30 = vsub.s32 %v3515_v46, %v3518_v60  ;;  %v3371_v41 = vshll.u32 %v12027_v35, %v3365_v2  ;;  %v3374_v25 = vshll.u32 %v12028_v54, %v3365_v2  ;;  %v3378_v3 = vshrl.u32 %v12030_v20, %v3366_v26 }
 0x45c   : > { %v3228_v0 = vsel %vm11936_vm5, %v3227_v44, %v3226_v52  ;;  %v3327_v31 = vand.u32 2147483647, %v3326_v29  ;;  %v3364_v56 = vshrl.u32 %v3363_v17, 5  ;;  %v3377_v43 = vshll.u32 %v12029_v14, %v3365_v2 }
 0x45d   : > { %v3521_v1 = vsub.s32 0, %v9552_v30  ;;  %v3370_v34 = vor.u32 %v3369_v55, %v3368_v12  ;;  %v3373_v32 = vor.u32 %v3372_v47, %v3371_v41  ;;  %v3376_v51 = vor.u32 %v3375_v50, %v3374_v25 }
 0x45e   : > { %v3379_v46 = vor.u32 %v3378_v3, %v3377_v43  ;;  %v3380_v60 = vshll.u32 %v12030_v20, %v3365_v2  ;;  %v3381_v36 = vshrl.u32 %v12022_v38, %v3366_v26  ;;  %v3399_v62 = vshll.u32 %v3359_v63, 8 }
 0x45f   : > { %v12193_v4 = vand.u32 2147483647, %v9157_v16  ;;  %v3329_v52 = vcvt.s32.f32 %v3322_v45  ;;  %v6356_v17 = vmin.u32 %v3521_v1, %v9552_v30  ;;  %v6359_v44 = vadd.s32 4294967169, %v3563_v5 }
 0x460   : > { %v3567_v29 = vor.u32 8388608, %v9539_v24  ;;  %v9571_v12 = vpop.eup %6850  ;;  %v3367_v55 = vshrl.u32 %v12026_v28, %v3366_v26  ;;  %v3382_v2 = vor.u32 %v3381_v36, %v3380_v60  ;;  %vm3383_vm15 = vcmp.lt.s32.totalorder %v3364_v56, 1 }
 0x461   : > { %vm9565_vm8 = vcmp.le.f32.partialorder %v12193_v4, 0.7853982  ;;  %vm3386_vm14 = vcmp.lt.s32.totalorder %v3364_v56, 4  ;;  %v3330_v63 = vmul.f32 %v3329_v52, %v3327_v31  ;;  %v3523_v47 = vclz %v6356_v17 }
 0x462   : > { %v3388_v50 = vsel %vm3386_vm14, %v3376_v51, 2102212464  ;;  %v3391_v4 = vsel %vm3383_vm15, %v3370_v34, %v3373_v32  ;;  %vm3384_vm10 = vcmp.lt.s32.totalorder %v3364_v56, 2  ;;  %vm3385_vm4 = vcmp.lt.s32.totalorder %v3364_v56, 3 }
 0x463   : > { %v3392_v41 = vsel %vm3386_vm14, %v3379_v46, 920167782  ;;  %v3395_v45 = vsel %vm3383_vm15, %v3373_v32, %v3376_v51  ;;  %v6357_v25 = vadd.s32 4294967294, %v3523_v47  ;;  %v3387_v3 = vsel %vm3383_vm15, %v3367_v55, %v3370_v34 }
 0x464   : > { %v3393_v5 = vsel %vm3385_vm4, %v3376_v51, %v3392_v41  ;;  %v3396_v43 = vsel %vm3386_vm14, %v3382_v2, 1326507024  ;;  %v3389_v24 = vsel %vm3385_vm4, %v3373_v32, %v3388_v50  ;;  %v3569_v26 = vadd.s32 1, %v6359_v44 }
 0x465   : > { %v3394_v1 = vsel %vm3384_vm10, %v3391_v4, %v3393_v5  ;;  %v3397_v58 = vsel %vm3385_vm4, %v3379_v46, %v3396_v43  ;;  %vm6358_vm1 = vcmp.lt.s32.totalorder %v6357_v25, 0  ;;  %v3390_v32 = vsel %vm3384_vm10, %v3387_v3, %v3389_v24 }
 0x466   : > { %v3398_v36 = vsel %vm3384_vm10, %v3395_v45, %v3397_v58  ;;  %v9576_v31 = vmul.u32.u64.low %v3399_v62, %v3394_v1  ;;  %v9577_v60 = vmul.u32.u64.high %v3399_v62, %v3394_v1, %v9576_v31  ;;  %v3526_v52 = vsel %vm6358_vm1, 0, %v6357_v25 }
 0x467   : > { %v9580_v17 = vmul.u32.u64.low %v3399_v62, %v3398_v36  ;;  %v9581_v11 = vmul.u32.u64.high %v3399_v62, %v3398_v36, %v9580_v17  ;;  %vm3570_vm9 = vcmp.gt.s32.totalorder %v3569_v26, 0  ;;  %v3527_v34 = vsub.s32 32, %v3526_v52 }
 0x468   : > { %v3531_v51 = vsub.s32 4294967266, %v3526_v52  ;;  %v3571_v55 = vsel %vm3570_vm9, %v3569_v26, 0  ;;  %v9587_v46 = vsel %vm9565_vm8, %v9157_v16, %v3228_v0  ;;  %v9589_v44 = vshll.u32 %v3567_v29, 8 }
 0x469   : > { %v3573_v58 = vand.u32 31, %v3571_v55  ;;  %v11923_v2 = vand.u32 2147483647, %v9527_v39  ;;  %v3528_v47 = vshll.u32 %v9552_v30, %v3526_v52  ;;  %v3529_v50 = vshrl.u32 %v9543_v23, %v3527_v34 }
 0x46a   : > { %v3532_v4 = vadd.s32 127, %v3531_v51  ;;  %v3409_v41 = vadd.s32 1, %v9577_v60  ;;  %v3331_v56 = vxor.u32 2147483648, %v3330_v63  ;;  %v3406_v45 = vmul.u32 %v3399_v62, %v3390_v32 }
 0x46b   : > { %vm3408_vm9 = vc.u32 %v9581_v11, %v9576_v31  ;;  %v3574_v25 = vsub.s32 32, %v3573_v58  ;;  %v3530_v0 = vor.u32 %v3529_v50, %v3528_v47  ;;  %v3576_v5 = vshll.u32 %v12026_v28, %v3573_v58 }
 0x46c   : > { %v3533_v3 = vshll.u32 %v3532_v4, 23  ;;  %v3410_v29 = vsel %vm3408_vm9, %v3409_v41, %v9577_v60  ;;  %v3579_v23 = vshll.u32 %v12027_v35, %v3573_v58  ;;  %v3572_v26 = vshrl.u32 %v3571_v55, 5 }
 0x46d   : > { %v3411_v43 = vadd.s32 %v3410_v29, %v3406_v45  ;;  %v3577_v30 = vshrl.u32 %v12027_v35, %v3574_v25  ;;  %v3580_v24 = vshrl.u32 %v12028_v54, %v3574_v25  ;;  %v3582_v62 = vshll.u32 %v12028_v54, %v3573_v58 }
 0x46e   : > { %v3534_v1 = vor.u32 4788187, %v3533_v3  ;;  %v3583_v36 = vshrl.u32 %v12029_v14, %v3574_v25  ;;  %v3537_v52 = vcvt.s32.f32 %v3530_v0  ;;  %v3585_v47 = vshll.u32 %v12029_v14, %v3573_v58 }
 0x46f   : > { %v3412_v17 = vadd.s32 536870912, %v3411_v43  ;;  %v3578_v34 = vor.u32 %v3577_v30, %v3576_v5  ;;  %v3581_v51 = vor.u32 %v3580_v24, %v3579_v23  ;;  %v3586_v50 = vshrl.u32 %v12030_v20, %v3574_v25 }
 0x470   : > { %v3535_v60 = vand.u32 2147483647, %v3534_v1  ;;  %v3584_v32 = vor.u32 %v3583_v36, %v3582_v62  ;;  %v3332_v4 = vsel %vm3249_vm7, %v3331_v56, %v3330_v63  ;;  %v3588_v55 = vshll.u32 %v12030_v20, %v3573_v58 }
 0x471   : > { %v9608_v41 = vshrl.u32 %v3412_v17, 30  ;;  %v3589_v45 = vshrl.u32 %v12022_v38, %v3574_v25  ;;  %vm3457_vm15 = vcmp.lt.s32.totalorder %v9269_v19, 0  ;;  %v3575_v3 = vshrl.u32 %v12026_v28, %v3574_v25 }
 0x472   : > { %v3538_v0 = vmul.f32 %v3537_v52, %v3535_v60  ;;  %v3587_v29 = vor.u32 %v3586_v50, %v3585_v47  ;;  %v3666_v5 = vand.u32 2139095040, %v9527_v39  ;;  %vm3591_vm14 = vcmp.lt.s32.totalorder %v3572_v26, 1 }
 0x473   : > { %12196 = vst [vmem:[#allocation42_spill] sm:$0xff] %v9608_v41  ;;  %v3414_v30 = vshll.u32 %v9608_v41, 30  ;;  %v3590_v23 = vor.u32 %v3589_v45, %v3588_v55  ;;  %vm3594_vm10 = vcmp.lt.s32.totalorder %v3572_v26, 4  ;;  %vm3593_vm7 = vcmp.lt.s32.totalorder %v3572_v26, 3 }
 0x474   : > { %v3596_v63 = vsel %vm3594_vm10, %v3584_v32, 2102212464  ;;  %v3599_v56 = vsel %vm3591_vm14, %v3578_v34, %v3581_v51  ;;  %v3600_v24 = vsel %vm3594_vm10, %v3587_v29, 920167782  ;;  %vm3592_vm4 = vcmp.lt.s32.totalorder %v3572_v26, 2 }
 0x475   : > { %v9616_v58 = vsub.s32 %v3411_v43, %v3414_v30  ;;  %v3601_v1 = vsel %vm3593_vm7, %v3584_v32, %v3600_v24  ;;  %v3603_v62 = vsel %vm3591_vm14, %v3581_v51, %v3584_v32  ;;  %v12197_v36 = vand.u32 2147483647, %v9269_v19 }
 0x476   : > { %v12198_v25 = vmov 0  ;;  %v3539_v52 = vxor.u32 2147483648, %v3538_v0  ;;  %v3595_v17 = vsel %vm3591_vm14, %v3575_v3, %v3578_v34  ;;  %v3602_v60 = vsel %vm3592_vm4, %v3599_v56, %v3601_v1 }
 0x477   : > { %vm9620_vm1 = vcmp.le.f32.partialorder %v12197_v36, 0.7853982  ;;  %v3604_v47 = vsel %vm3594_vm10, %v3590_v23, 1326507024  ;;  %v3417_v50 = vsub.s32 0, %v9616_v58  ;;  %v3597_v55 = vsel %vm3593_vm7, %v3581_v51, %v3596_v63 }
 0x478   : > { %v12199_v25 = vsel %vm9620_vm1, 4294967295, %v12198_v25  ;;  %v3605_v45 = vsel %vm3593_vm7, %v3587_v29, %v3604_v47  ;;  %v3667_v43 = vshrl.u32 %v3666_v5, 23  ;;  %v3670_v36 = vand.u32 8388607, %v11923_v2 }
 0x479   : > { %12200 = vst [vmem:[#allocation41_spill] sm:$0xff] %v12199_v25  ;;  %v3606_v30 = vsel %vm3592_vm4, %v3603_v62, %v3605_v45  ;;  %v9628_v32 = vmul.u32.u64.low %v9589_v44, %v3602_v60  ;;  %v9629_v24 = vmul.u32.u64.high %v9589_v44, %v3602_v60, %v9628_v32  ;;  %v3541_v34 = vsub.s32 4, %v9535_v48 }
 0x47a   : > { %v6352_v3 = vmin.u32 %v3417_v50, %v9616_v58  ;;  %v9637_v23 = vmul.u32.u64.low %v9589_v44, %v3606_v30  ;;  %v9638_v56 = vmul.u32.u64.high %v9589_v44, %v3606_v30, %v9637_v23  ;;  %6852 = vcosq.f32 %v9587_v46 }
 0x47b   : > { %v12201_v51 = vsel %vm9521_vm2, 0, %v9511_v10  ;;  %v3598_v5 = vsel %vm3592_vm4, %v3595_v17, %v3597_v55  ;;  %v6363_v63 = vadd.s32 4294967169, %v3667_v43  ;;  %6854 = vsinq.f32 %v9587_v46 }
 0x47c   : > { %v9645_v29 = vadd.s32 3, %v12201_v51  ;;  %v9652_v1 = vsel %vm9521_vm2, %v9168_v15, %v3332_v4  ;;  %v3540_v62 = vsel %vm3457_vm15, %v3539_v52, %v3538_v0  ;;  %v3419_v60 = vclz %v6352_v3 }
 0x47d   : > { %v3617_v47 = vadd.s32 1, %v9629_v24  ;;  %v3671_v50 = vor.u32 8388608, %v3670_v36  ;;  %v3673_v10 = vadd.s32 1, %v6363_v63  ;;  %v9659_v26 = vadd.f32 %v9138_v22, %v9517_v6 }
 0x47e   : > { %12202 = vst [vmem:[#allocation34_spill] sm:$0xff] %v9645_v29  ;;  %v9664_v46 = vsel %vm3457_vm15, %v3541_v34, %v9535_v48  ;;  %v6353_v59 = vadd.s32 4294967294, %v3419_v60  ;;  %v3614_v4 = vmul.u32 %v9589_v44, %v3598_v5  ;;  %vm3616_vm2 = vc.u32 %v9638_v56, %v9628_v32 }
 0x47f   : > { %12203 = vst [vmem:[#allocation25_spill] sm:$0xff] %v9664_v46  ;;  %6856 = vcosq.f32 %v9652_v1  ;;  %v3407_v0 = vadd.s32 %v9576_v31, %v9581_v11  ;;  %v3618_v52 = vsel %vm3616_vm2, %v3617_v47, %v9629_v24  ;;  %vm3674_vm9 = vcmp.gt.s32.totalorder %v3673_v10, 0 }
 0x480   : > { %v9676_v22 = vsel %vm9620_vm1, %v9269_v19, %v3540_v62  ;;  %vm6354_vm15 = vcmp.lt.s32.totalorder %v6353_v59, 0  ;;  %v3619_v48 = vadd.s32 %v3618_v52, %v3614_v4  ;;  %v3675_v17 = vsel %vm3674_vm9, %v3673_v10, 0 }
 0x481   : > { %v3422_v44 = vsel %vm6354_vm15, 0, %v6353_v59  ;;  %v3677_v55 = vand.u32 31, %v3675_v17  ;;  %v9678_v45 = vshll.u32 %v3671_v50, 8  ;;  %v3874_v43 = vand.u32 2139095040, %v9659_v26 }
 0x482   : > { %v3423_v30 = vsub.s32 32, %v3422_v44  ;;  %v3427_v36 = vsub.s32 4294967266, %v3422_v44  ;;  %v3620_v11 = vadd.s32 536870912, %v3619_v48  ;;  %v9681_v31 = vshrl.u32 %v3675_v17, 5 }
 0x483   : > { %v3424_v24 = vshll.u32 %v9616_v58, %v3422_v44  ;;  %v3678_v34 = vsub.s32 32, %v3677_v55  ;;  %v3680_v3 = vshll.u32 %v12026_v28, %v3677_v55  ;;  %v3683_v23 = vshll.u32 %v12027_v35, %v3677_v55 }
 0x484   : > { %v3425_v51 = vshrl.u32 %v3407_v0, %v3423_v30  ;;  %v3428_v5 = vadd.s32 127, %v3427_v36  ;;  %v9686_v63 = vshrl.u32 %v3620_v11, 30  ;;  %v3686_v62 = vshll.u32 %v12028_v54, %v3677_v55  ;;  %v9689_v60 = vpop.eup %6852 }
 0x485   : > { %12204 = vst [vmem:[#allocation40_spill] sm:$0xff] %v9689_v60  ;;  %v3681_v47 = vshrl.u32 %v12027_v35, %v3678_v34  ;;  %v3684_v50 = vshrl.u32 %v12028_v54, %v3678_v34  ;;  %v3687_v10 = vshrl.u32 %v12029_v14, %v3678_v34  ;;  %v3689_v58 = vshll.u32 %v12029_v14, %v3677_v55  ;;  %v9695_v59 = vpop.eup %6854 }
 0x486   : > { %v3426_v4 = vor.u32 %v3425_v51, %v3424_v24  ;;  %v3429_v52 = vshll.u32 %v3428_v5, 23  ;;  %v3622_v0 = vshll.u32 %v9686_v63, 30  ;;  %v3690_v17 = vshrl.u32 %v12030_v20, %v3678_v34 }
 0x487   : > { %v3682_v44 = vor.u32 %v3681_v47, %v3680_v3  ;;  %v3685_v30 = vor.u32 %v3684_v50, %v3683_v23  ;;  %v3688_v36 = vor.u32 %v3687_v10, %v3686_v62  ;;  %v3875_v11 = vshrl.u32 %v3874_v43, 23 }
 0x488   : > { %v3430_v2 = vor.u32 4788187, %v3429_v52  ;;  %v9699_v19 = vsub.s32 %v3619_v48, %v3622_v0  ;;  %v3679_v15 = vshrl.u32 %v12026_v28, %v3678_v34  ;;  %v3691_v29 = vor.u32 %v3690_v17, %v3689_v58 }
 0x489   : > { %v9702_v41 = vpop.eup %6856  ;;  %v3433_v60 = vcvt.s32.f32 %v3426_v4  ;;  %v3692_v24 = vshll.u32 %v12030_v20, %v3677_v55  ;;  %v3693_v51 = vshrl.u32 %v12022_v38, %v3678_v34  ;;  %vm3695_vm14 = vcmp.lt.s32.totalorder %v9681_v31, 1 }
 0x48a   : > { %12205 = vst [vmem:[#allocation27_spill] sm:$0xff] %v9702_v41  ;;  %v3431_v5 = vand.u32 2147483647, %v3430_v2  ;;  %v3625_v3 = vsub.s32 0, %v9699_v19  ;;  %vm3697_vm10 = vcmp.lt.s32.totalorder %v9681_v31, 3  ;;  %vm3698_vm7 = vcmp.lt.s32.totalorder %v9681_v31, 4 }
 0x48b   : > { %vm11935_vm4 = vcmp.lt.s32.totalorder %v9459_v49, 0  ;;  %v3694_v48 = vor.u32 %v3693_v51, %v3692_v24  ;;  %v3700_v43 = vsel %vm3698_vm7, %v3688_v36, 2102212464  ;;  %v3703_v23 = vsel %vm3695_vm14, %v3682_v44, %v3685_v30 }
 0x48c   : > { %v3704_v62 = vsel %vm3698_vm7, %v3691_v29, 920167782  ;;  %v3434_v55 = vmul.f32 %v3433_v60, %v3431_v5  ;;  %v6360_v34 = vmin.u32 %v3625_v3, %v9699_v19  ;;  %vm3696_vm2 = vcmp.lt.s32.totalorder %v9681_v31, 2 }
 0x48d   : > { %v3705_v2 = vsel %vm3697_vm10, %v3688_v36, %v3704_v62  ;;  %v3707_v50 = vsel %vm3695_vm14, %v3685_v30, %v3688_v36  ;;  %v3708_v10 = vsel %vm3698_vm7, %v3694_v48, 1326507024  ;;  %v11930_v58 = vand.u32 2147483647, %v9659_v26 }
 0x48e   : > { %v3706_v47 = vsel %vm3696_vm2, %v3703_v23, %v3705_v2  ;;  %v3627_v4 = vclz %v6360_v34  ;;  %v3699_v60 = vsel %vm3695_vm14, %v3679_v15, %v3682_v44  ;;  %v3701_v52 = vsel %vm3697_vm10, %v3685_v30, %v3700_v43 }
 0x48f   : > { %v3709_v0 = vsel %vm3697_vm10, %v3691_v29, %v3708_v10  ;;  %v9731_v24 = vmul.u32.u64.low %v9678_v45, %v3706_v47  ;;  %v9732_v51 = vmul.u32.u64.high %v9678_v45, %v3706_v47, %v9731_v24  ;;  %v6371_v36 = vadd.s32 4294967169, %v3875_v11 }
 0x490   : > { %v3710_v17 = vsel %vm3696_vm2, %v3707_v50, %v3709_v0  ;;  %v3435_v5 = vxor.u32 2147483648, %v3434_v55  ;;  %v6361_v3 = vadd.s32 4294967294, %v3627_v4  ;;  %6858 = vsinq.f32 %v9652_v1 }
 0x491   : > { %v9736_v48 = vmul.u32.u64.low %v9678_v45, %v3710_v17  ;;  %v9737_v15 = vmul.u32.u64.high %v9678_v45, %v3710_v17, %v9736_v48  ;;  %v12206_v44 = vand.u32 2147483647, %v9459_v49  ;;  %v3881_v43 = vadd.s32 1, %v6371_v36 }
 0x492   : > { %6860 = vcosq.f32 %v9676_v22  ;;  %vm6362_vm15 = vcmp.lt.s32.totalorder %v6361_v3, 0  ;;  %v3702_v11 = vsel %vm3696_vm2, %v3699_v60, %v3701_v52  ;;  %v9754_v1 = vadd.f32 %v9242_v61, %v9517_v6 }
 0x493   : > { %vm9745_vm9 = vcmp.le.f32.partialorder %v12206_v44, 0.7853982  ;;  %v3615_v23 = vadd.s32 %v9628_v32, %v9638_v56  ;;  %v3630_v62 = vsel %vm6362_vm15, 0, %v6361_v3  ;;  %v3721_v34 = vadd.s32 1, %v9732_v51 }
 0x494   : > { %vm3882_vm14 = vcmp.gt.s32.totalorder %v3881_v43, 0  ;;  %v3436_v2 = vsel %vm11935_vm4, %v3435_v5, %v3434_v55  ;;  %v3631_v47 = vsub.s32 32, %v3630_v62  ;;  %v3635_v50 = vsub.s32 4294967266, %v3630_v62 }
 0x495   : > { %v3878_v31 = vand.u32 8388607, %v11930_v58  ;;  %6862 = vsinq.f32 %v9676_v22  ;;  %v3718_v61 = vmul.u32 %v9678_v45, %v3702_v11  ;;  %vm3720_vm10 = vc.u32 %v9737_v15, %v9731_v24 }
 0x496   : > { %v3883_v32 = vsel %vm3882_vm14, %v3881_v43, 0  ;;  %v3632_v56 = vshll.u32 %v9699_v19, %v3630_v62  ;;  %v3633_v10 = vshrl.u32 %v3615_v23, %v3631_v47  ;;  %v3636_v4 = vadd.s32 127, %v3635_v50 }
 0x497   : > { %v3722_v60 = vsel %vm3720_vm10, %v3721_v34, %v9732_v51  ;;  %v9772_v55 = vsel %vm9745_vm9, %v9459_v49, %v3436_v2  ;;  %v3885_v0 = vand.u32 31, %v3883_v32  ;;  %v9776_v22 = vadd.f32 %v9309_v21, %v9517_v6 }
 0x498   : > { %v3723_v52 = vadd.s32 %v3722_v60, %v3718_v61  ;;  %v3634_v45 = vor.u32 %v3633_v10, %v3632_v56  ;;  %v3637_v17 = vshll.u32 %v3636_v4, 23  ;;  %v3879_v36 = vor.u32 8388608, %v3878_v31 }
 0x499   : > { %v9779_v3 = vshrl.u32 %v3883_v32, 5  ;;  %v3886_v51 = vsub.s32 32, %v3885_v0  ;;  %v3770_v48 = vand.u32 2139095040, %v9754_v1  ;;  %vm11942_vm7 = vcmp.lt.s32.totalorder %v9499_v33, 0 }
 0x49a   : > { %v3724_v5 = vadd.s32 536870912, %v3723_v52  ;;  %v3638_v44 = vor.u32 4788187, %v3637_v17  ;;  %v3641_v43 = vcvt.s32.f32 %v3634_v45  ;;  %v3888_v11 = vshll.u32 %v12026_v28, %v3885_v0  ;;  %v9785_v6 = vpop.eup %6858 }
 0x49b   : > { %v3891_v21 = vshll.u32 %v12027_v35, %v3885_v0  ;;  %12209 = vst [vmem:[#allocation36_spill] sm:$0xff] %v9785_v6  ;;  %vm3665_vm2 = vcmp.lt.s32.totalorder %v9527_v39, 0  ;;  %v3889_v62 = vshrl.u32 %v12027_v35, %v3886_v51  ;;  %v3892_v34 = vshrl.u32 %v12028_v54, %v3886_v51 }
 0x49c   : > { %v3725_v23 = vshrl.u32 %v3724_v5, 30  ;;  %v3894_v2 = vshll.u32 %v12028_v54, %v3885_v0  ;;  %v9791_v47 = vpop.eup %6860  ;;  %v3639_v50 = vand.u32 2147483647, %v3638_v44  ;;  %v3895_v31 = vshrl.u32 %v12029_v14, %v3886_v51 }
 0x49d   : > { %12210 = vst [vmem:[#allocation16_spill] sm:$0xff] %v9791_v47  ;;  %v3897_v61 = vshll.u32 %v12029_v14, %v3885_v0  ;;  %v3898_v32 = vshrl.u32 %v12030_v20, %v3886_v51  ;;  %v12211_v56 = vand.u32 2147483647, %v9499_v33  ;;  %v12212_v10 = vmov 0 }
 0x49e   : > { %v3726_v4 = vshll.u32 %v3725_v23, 30  ;;  %v3890_v60 = vor.u32 %v3889_v62, %v3888_v11  ;;  %v3893_v45 = vor.u32 %v3892_v34, %v3891_v21  ;;  %v3900_v17 = vshll.u32 %v12030_v20, %v3885_v0  ;;  %v12273_v11 = vld [vmem:[#allocation24_spill] sm:$0xff] }
 0x49f   : > { %vm9798_vm15 = vcmp.le.f32.partialorder %v12211_v56, 0.7853982  ;;  %v3642_v5 = vmul.f32 %v3641_v43, %v3639_v50  ;;  %v3896_v29 = vor.u32 %v3895_v31, %v3894_v2  ;;  %v3899_v44 = vor.u32 %v3898_v32, %v3897_v61  ;;  %v9804_v19 = vpop.eup %6862 }
 0x4a0   : > { %v12213_v10 = vsel %vm9798_vm15, 4294967295, %v12212_v10  ;;  %v3901_v58 = vshrl.u32 %v12022_v38, %v3886_v51  ;;  %12215 = vst [vmem:[#allocation33_spill] sm:$0xff] %v9804_v19  ;;  %6864 = vcosq.f32 %v9772_v55  ;;  %v9807_v47 = vsub.s32 %v3723_v52, %v3726_v4 }
 0x4a1   : > { %12214 = vst [vmem:[#allocation35_spill] sm:$0xff] %v12213_v10  ;;  %v3919_v56 = vshll.u32 %v3879_v36, 8  ;;  %v3771_v41 = vshrl.u32 %v3770_v48, 23  ;;  %v3643_v6 = vxor.u32 2147483648, %v3642_v5  ;;  %v12216_v46 = vand.u32 2147483647, %v9527_v39 }
 0x4a2   : > { %v3749_v0 = vsub.s32 4, %v3725_v23  ;;  %v3902_v43 = vor.u32 %v3901_v58, %v3900_v17  ;;  %vm3903_vm10 = vcmp.lt.s32.totalorder %v9779_v3, 1  ;;  %v3729_v21 = vsub.s32 0, %v9807_v47 }
 0x4a3   : > { %vm9811_vm14 = vcmp.le.f32.partialorder %v12216_v46, 0.7853982  ;;  %vm3904_vm4 = vcmp.lt.s32.totalorder %v9779_v3, 2  ;;  %vm3906_vm5 = vcmp.lt.s32.totalorder %v9779_v3, 4  ;;  %v3911_v52 = vsel %vm3903_vm10, %v3890_v60, %v3893_v45 }
 0x4a4   : > { %v3887_v36 = vshrl.u32 %v12026_v28, %v3886_v51  ;;  %vm3905_vm13 = vcmp.lt.s32.totalorder %v9779_v3, 3  ;;  %v3908_v48 = vsel %vm3906_vm5, %v3896_v29, 2102212464  ;;  %v3912_v46 = vsel %vm3906_vm5, %v3899_v44, 920167782 }
 0x4a5   : > { %v3644_v62 = vsel %vm11942_vm7, %v3643_v6, %v3642_v5  ;;  %v6364_v58 = vmin.u32 %v3729_v21, %v9807_v47  ;;  %v3913_v34 = vsel %vm3905_vm13, %v3896_v29, %v3912_v46  ;;  %v3915_v2 = vsel %vm3903_vm10, %v3893_v45, %v3896_v29 }
 0x4a6   : > { %v9826_v50 = vsel %vm3665_vm2, %v3749_v0, %v3725_v23  ;;  %v3907_v31 = vsel %vm3903_vm10, %v3887_v36, %v3890_v60  ;;  %v3914_v61 = vsel %vm3904_vm4, %v3911_v52, %v3913_v34  ;;  %v3916_v51 = vsel %vm3906_vm5, %v3902_v43, 1326507024 }
 0x4a7   : > { %12219 = vst [vmem:[#allocation39_spill] sm:$0xff] %v9826_v50  ;;  %v3731_v32 = vclz %v6364_v58  ;;  %v3909_v4 = vsel %vm3905_vm13, %v3893_v45, %v3908_v48  ;;  %v3917_v17 = vsel %vm3905_vm13, %v3899_v44, %v3916_v51  ;;  %v6367_v19 = vadd.s32 4294967169, %v3771_v41 }
 0x4a8   : > { %v3647_v6 = vsel %vm9798_vm15, %v9499_v33, %v3644_v62  ;;  %v3918_v29 = vsel %vm3904_vm4, %v3915_v2, %v3917_v17  ;;  %v9835_v5 = vmul.u32.u64.low %v3919_v56, %v3914_v61  ;;  %v9836_v21 = vmul.u32.u64.high %v3919_v56, %v3914_v61, %v9835_v5 }
 0x4a9   : > { %v6365_v23 = vadd.s32 4294967294, %v3731_v32  ;;  %v9839_v60 = vmul.u32.u64.low %v3919_v56, %v3918_v29  ;;  %v9840_v0 = vmul.u32.u64.high %v3919_v56, %v3918_v29, %v9839_v60  ;;  %v3777_v43 = vadd.s32 1, %v6367_v19 }
 0x4aa   : > { %6866 = vsinq.f32 %v9772_v55  ;;  %v3910_v41 = vsel %vm3904_vm4, %v3907_v31, %v3909_v4  ;;  %v12220_v45 = vand.u32 2147483647, %v9754_v1  ;;  %v2605_v52 = vsub.s32 4, %v8918_v13  ;;  %v9848_v36 = vpop.eup %6864 }
 0x4ab   : > { %v3719_v48 = vadd.s32 %v9731_v24, %v9737_v15  ;;  %vm6366_vm13 = vcmp.lt.s32.totalorder %v6365_v23, 0  ;;  %vm3778_vm5 = vcmp.gt.s32.totalorder %v3777_v43, 0  ;;  %6868 = vcosq.f32 %v3647_v6 }
 0x4ac   : > { %v3774_v44 = vand.u32 8388607, %v12220_v45  ;;  %v3734_v55 = vsel %vm6366_vm13, 0, %v6365_v23  ;;  %v3929_v3 = vadd.s32 1, %v9836_v21  ;;  %v3779_v46 = vsel %vm3778_vm5, %v3777_v43, 0 }
 0x4ad   : > { %6870 = vsinq.f32 %v3647_v6  ;;  %v3735_v62 = vsub.s32 32, %v3734_v55  ;;  %v3739_v58 = vsub.s32 4294967266, %v3734_v55  ;;  %v3926_v34 = vmul.u32 %v3919_v56, %v3910_v41 }
 0x4ae   : > { %vm3928_vm4 = vc.u32 %v9840_v0, %v9835_v5  ;;  %v3775_v2 = vor.u32 8388608, %v3774_v44  ;;  %v3781_v24 = vand.u32 31, %v3779_v46  ;;  %v3736_v31 = vshll.u32 %v9807_v47, %v3734_v55 }
 0x4af   : > { %v3737_v61 = vshrl.u32 %v3719_v48, %v3735_v62  ;;  %v3740_v51 = vadd.s32 127, %v3739_v58  ;;  %v3930_v32 = vsel %vm3928_vm4, %v3929_v3, %v9836_v21  ;;  %v9861_v17 = vshrl.u32 %v3779_v46, 5 }
 0x4b0   : > { %v3931_v4 = vadd.s32 %v3930_v32, %v3926_v34  ;;  %v3782_v6 = vsub.s32 32, %v3781_v24  ;;  %v3978_v29 = vand.u32 2139095040, %v9776_v22  ;;  %v3784_v60 = vshll.u32 %v12026_v28, %v3781_v24 }
 0x4b1   : > { %v3738_v56 = vor.u32 %v3737_v61, %v3736_v31  ;;  %v3741_v23 = vshll.u32 %v3740_v51, 23  ;;  %v3787_v43 = vshll.u32 %v12027_v35, %v3781_v24  ;;  %v3790_v44 = vshll.u32 %v12028_v54, %v3781_v24 }
 0x4b2   : > { %v3932_v41 = vadd.s32 536870912, %v3931_v4  ;;  %v3785_v45 = vshrl.u32 %v12027_v35, %v3782_v6  ;;  %v3788_v47 = vshrl.u32 %v12028_v54, %v3782_v6  ;;  %v3791_v48 = vshrl.u32 %v12029_v14, %v3782_v6 }
 0x4b3   : > { %v3742_v21 = vor.u32 4788187, %v3741_v23  ;;  %v3793_v55 = vshll.u32 %v12029_v14, %v3781_v24  ;;  %v3794_v3 = vshrl.u32 %v12030_v20, %v3782_v6  ;;  %v3745_v62 = vcvt.s32.f32 %v3738_v56 }
 0x4b4   : > { %v9872_v46 = vpop.eup %6866  ;;  %vm3873_vm10 = vcmp.lt.s32.totalorder %v9659_v26, 0  ;;  %v3933_v58 = vshrl.u32 %v3932_v41, 30  ;;  %v3786_v34 = vor.u32 %v3785_v45, %v3784_v60  ;;  %v3789_v31 = vor.u32 %v3788_v47, %v3787_v43 }
 0x4b5   : > { %v3743_v61 = vand.u32 2147483647, %v3742_v21  ;;  %v3792_v51 = vor.u32 %v3791_v48, %v3790_v44  ;;  %v3796_v32 = vshll.u32 %v12030_v20, %v3781_v24  ;;  %v3797_v23 = vshrl.u32 %v12022_v38, %v3782_v6  ;;  %v9877_v19 = vpop.eup %6868 }
 0x4b6   : > { %12221 = vst [vmem:[#allocation38_spill] sm:$0xff] %v9877_v19  ;;  %v3934_v15 = vshll.u32 %v3933_v58, 30  ;;  %v3795_v50 = vor.u32 %v3794_v3, %v3793_v55  ;;  %v3815_v25 = vshll.u32 %v3775_v2, 8  ;;  %v2606_v56 = vsel %vm2521_vm6, %v2605_v52, %v8918_v13 }
 0x4b7   : > { %v9882_v10 = vpop.eup %6870  ;;  %v3746_v41 = vmul.f32 %v3745_v62, %v3743_v61  ;;  %v12223_v60 = vand.u32 2147483647, %v9659_v26  ;;  %v3798_v24 = vor.u32 %v3797_v23, %v3796_v32  ;;  %v3979_v45 = vshrl.u32 %v3978_v29, 23 }
 0x4b8   : > { %12222 = vst [vmem:[#allocation20_spill] sm:$0xff] %v9882_v10  ;;  %v12226_v47 = vand.u32 2147483647, %v9776_v22  ;;  %v9892_v21 = vsub.s32 %v3931_v4, %v3934_v15  ;;  %v3783_v2 = vshrl.u32 %v12026_v28, %v3782_v6  ;;  %vm3799_vm6 = vcmp.lt.s32.totalorder %v9861_v17, 1 }
 0x4b9   : > { %vm9886_vm13 = vcmp.le.f32.partialorder %v12223_v60, 0.7853982  ;;  %vm3802_vm5 = vcmp.lt.s32.totalorder %v9861_v17, 4  ;;  %v3957_v13 = vsub.s32 4, %v3933_v58  ;;  %vm3800_vm4 = vcmp.lt.s32.totalorder %v9861_v17, 2 }
 0x4ba   : > { %v3982_v44 = vand.u32 8388607, %v12226_v47  ;;  %v3804_v52 = vsel %vm3802_vm5, %v3792_v51, 2102212464  ;;  %v3807_v48 = vsel %vm3799_vm6, %v3786_v34, %v3789_v31  ;;  %v3747_v55 = vxor.u32 2147483648, %v3746_v41 }
 0x4bb   : > { %v3937_v3 = vsub.s32 0, %v9892_v21  ;;  %vm3801_vm7 = vcmp.lt.s32.totalorder %v9861_v17, 3  ;;  %v3808_v29 = vsel %vm3802_vm5, %v3795_v50, 920167782  ;;  %v3803_v62 = vsel %vm3799_vm6, %v3783_v2, %v3786_v34 }
 0x4bc   : > { %v3809_v15 = vsel %vm3801_vm7, %v3792_v51, %v3808_v29  ;;  %v3811_v4 = vsel %vm3799_vm6, %v3789_v31, %v3792_v51  ;;  %v3812_v61 = vsel %vm3802_vm5, %v3798_v24, 1326507024  ;;  %v3805_v32 = vsel %vm3801_vm7, %v3789_v31, %v3804_v52 }
 0x4bd   : > { %v6372_v6 = vmin.u32 %v3937_v3, %v9892_v21  ;;  %v3810_v23 = vsel %vm3800_vm4, %v3807_v48, %v3809_v15  ;;  %v3813_v60 = vsel %vm3801_vm7, %v3795_v50, %v3812_v61  ;;  %v9905_v47 = vsel %vm3873_vm10, %v3957_v13, %v3933_v58 }
 0x4be   : > { %v3814_v19 = vsel %vm3800_vm4, %v3811_v4, %v3813_v60  ;;  %v9909_v10 = vmul.u32.u64.low %v3815_v25, %v3810_v23  ;;  %v9910_v33 = vmul.u32.u64.high %v3815_v25, %v3810_v23, %v9909_v10  ;;  %v3748_v34 = vsel %vm3665_vm2, %v3747_v55, %v3746_v41 }
 0x4bf   : > { %v3939_v51 = vclz %v6372_v6  ;;  %v9915_v31 = vmul.u32.u64.low %v3815_v25, %v3814_v19  ;;  %v9916_v24 = vmul.u32.u64.high %v3815_v25, %v3814_v19, %v9915_v31  ;;  %v3806_v50 = vsel %vm3800_vm4, %v3803_v62, %v3805_v32 }
 0x4c0   : > { %v6375_v2 = vadd.s32 4294967169, %v3979_v45  ;;  %v2608_v58 = vsel %vm9109_vm0, 0, %v2606_v56  ;;  %v2616_v13 = vxor.u32 2147483648, %v9276_v42  ;;  %v3927_v52 = vadd.s32 %v9835_v5, %v9840_v0 }
 0x4c1   : > { %v6373_v48 = vadd.s32 4294967294, %v3939_v51  ;;  %v2612_v55 = vadd.s32 3, %v2608_v58  ;;  %v3751_v19 = vsel %vm9811_vm14, %v9527_v39, %v3748_v34  ;;  %v3825_v17 = vadd.s32 1, %v9910_v33 }
 0x4c2   : > { %v3983_v45 = vor.u32 8388608, %v3982_v44  ;;  %v3985_v40 = vadd.s32 1, %v6375_v2  ;;  %v3822_v56 = vmul.u32 %v3815_v25, %v3806_v50  ;;  %vm3824_vm7 = vc.u32 %v9916_v24, %v9909_v10 }
 0x4c3   : > { %vm6374_vm0 = vcmp.lt.s32.totalorder %v6373_v48, 0  ;;  %v3021_v5 = vsub.s32 4, %v9274_v27  ;;  %v3826_v3 = vsel %vm3824_vm7, %v3825_v17, %v9910_v33  ;;  %v9936_v29 = vand.u32 3, %v2612_v55 }
 0x4c4   : > { %v3942_v0 = vsel %vm6374_vm0, 0, %v6373_v48  ;;  %vm3986_vm2 = vcmp.gt.s32.totalorder %v3985_v40, 0  ;;  %6872 = vcosq.f32 %v3751_v19  ;;  %v3827_v4 = vadd.s32 %v3826_v3, %v3822_v56 }
 0x4c5   : > { %v3943_v62 = vsub.s32 32, %v3942_v0  ;;  %v3947_v15 = vsub.s32 4294967266, %v3942_v0  ;;  %6874 = vsinq.f32 %v3751_v19  ;;  %v3987_v44 = vsel %vm3986_vm2, %v3985_v40, 0 }
 0x4c6   : > { %v9938_v61 = vshll.u32 %v3983_v45, 8  ;;  %v2619_v25 = vxor.u32 2147483648, %v9271_v7  ;;  %v3944_v6 = vshll.u32 %v9892_v21, %v3942_v0  ;;  %v3828_v60 = vadd.s32 536870912, %v3827_v4 }
 0x4c7   : > { %v3945_v32 = vshrl.u32 %v3927_v52, %v3943_v62  ;;  %v3948_v23 = vadd.s32 127, %v3947_v15  ;;  %v3988_v34 = vshrl.u32 %v3987_v44, 5  ;;  %v3989_v33 = vand.u32 31, %v3987_v44 }
 0x4c8   : > { %vm2615_vm6 = vcmp.eq.s32.totalorder %v9936_v29, 0  ;;  %v9946_v51 = vsel %vm2937_vm3, %v3021_v5, %v9274_v27  ;;  %v9948_v2 = vshrl.u32 %v3828_v60, 30  ;;  %vm2618_vm5 = vcmp.eq.s32.totalorder %v9936_v29, 2 }
 0x4c9   : > { %v3946_v31 = vor.u32 %v3945_v32, %v3944_v6  ;;  %v3949_v50 = vshll.u32 %v3948_v23, 23  ;;  %v2617_v58 = vsel %vm2615_vm6, %v9271_v7, %v2616_v13  ;;  %v3990_v48 = vsub.s32 32, %v3989_v33 }
 0x4ca   : > { %v3992_v21 = vshll.u32 %v12026_v28, %v3989_v33  ;;  %v3995_v52 = vshll.u32 %v12027_v35, %v3989_v33  ;;  %v3998_v55 = vshll.u32 %v12028_v54, %v3989_v33  ;;  %v3830_v27 = vshll.u32 %v9948_v2, 30 }
 0x4cb   : > { %v3950_v19 = vor.u32 4788187, %v3949_v50  ;;  %v3953_v17 = vcvt.s32.f32 %v3946_v31  ;;  %v4001_v45 = vshll.u32 %v12029_v14, %v3989_v33  ;;  %v3991_v40 = vshrl.u32 %v12026_v28, %v3990_v48 }
 0x4cc   : > { %v3993_v56 = vshrl.u32 %v12027_v35, %v3990_v48  ;;  %v3996_v7 = vshrl.u32 %v12028_v54, %v3990_v48  ;;  %v3999_v13 = vshrl.u32 %v12029_v14, %v3990_v48  ;;  %v9961_v0 = vsub.s32 %v3827_v4, %v3830_v27 }
 0x4cd   : > { %v3951_v5 = vand.u32 2147483647, %v3950_v19  ;;  %v4002_v3 = vshrl.u32 %v12030_v20, %v3990_v48  ;;  %v4004_v62 = vshll.u32 %v12030_v20, %v3989_v33  ;;  %v4005_v32 = vshrl.u32 %v12022_v38, %v3990_v48 }
 0x4ce   : > { %v3994_v15 = vor.u32 %v3993_v56, %v3992_v21  ;;  %v3997_v44 = vor.u32 %v3996_v7, %v3995_v52  ;;  %v4000_v6 = vor.u32 %v3999_v13, %v3998_v55  ;;  %v9966_v23 = vpop.eup %6872  ;;  %v3833_v31 = vsub.s32 0, %v9961_v0 }
 0x4cf   : > { %v3954_v60 = vmul.f32 %v3953_v17, %v3951_v5  ;;  %v4003_v50 = vor.u32 %v4002_v3, %v4001_v45  ;;  %vm4007_vm3 = vcmp.lt.s32.totalorder %v3988_v34, 1  ;;  %v9969_v41 = vpop.eup %6874  ;;  %v4006_v4 = vor.u32 %v4005_v32, %v4004_v62 }
 0x4d0   : > { %vm4009_vm4 = vcmp.lt.s32.totalorder %v3988_v34, 3  ;;  %vm4010_vm0 = vcmp.lt.s32.totalorder %v3988_v34, 4  ;;  %v4011_v19 = vsel %vm4007_vm3, %v3991_v40, %v3994_v15  ;;  %v6368_v33 = vmin.u32 %v3833_v31, %v9961_v0 }
 0x4d1   : > { %v3955_v27 = vxor.u32 2147483648, %v3954_v60  ;;  %v4012_v21 = vsel %vm4010_vm0, %v4000_v6, 2102212464  ;;  %v4015_v52 = vsel %vm4007_vm3, %v3994_v15, %v3997_v44  ;;  %vm2611_vm7 = vweird.f32 %v8726_v53 }
 0x4d2   : > { %v4013_v48 = vsel %vm4009_vm4, %v3997_v44, %v4012_v21  ;;  %v4016_v55 = vsel %vm4010_vm0, %v4003_v50, 920167782  ;;  %v4019_v17 = vsel %vm4007_vm3, %v3997_v44, %v4000_v6  ;;  %v4020_v56 = vsel %vm4010_vm0, %v4006_v4, 1326507024  ;;  %v12227_v21 = vld [vmem:[#allocation18_spill] sm:$0xff] }
 0x4d3   : > { %v3835_v45 = vclz %v6368_v33  ;;  %vm4008_vm2 = vcmp.lt.s32.totalorder %v3988_v34, 2  ;;  %v4017_v7 = vsel %vm4009_vm4, %v4000_v6, %v4016_v55  ;;  %v2620_v40 = vsel %vm2618_vm5, %v2619_v25, %v9276_v42 }
 0x4d4   : > { %v4018_v13 = vsel %vm4008_vm2, %v4015_v52, %v4017_v7  ;;  %v4021_v5 = vsel %vm4009_vm4, %v4003_v50, %v4020_v56  ;;  %vm2614_vm6 = vcmp.lt.s32.totalorder %v9936_v29, 2  ;;  %v3024_v3 = vsel %vm9437_vm11, 0, %v9946_v51 }
 0x4d5   : > { %v3956_v62 = vsel %vm3873_vm10, %v3955_v27, %v3954_v60  ;;  %v6369_v15 = vadd.s32 4294967294, %v3835_v45  ;;  %v4014_v44 = vsel %vm4008_vm2, %v4011_v19, %v4013_v48  ;;  %v4022_v32 = vsel %vm4008_vm2, %v4019_v17, %v4021_v5 }
 0x4d6   : > { %v3823_v6 = vadd.s32 %v9909_v10, %v9916_v24  ;;  %v9988_v42 = vmul.u32.u64.low %v9938_v61, %v4022_v32  ;;  %v9989_v25 = vmul.u32.u64.high %v9938_v61, %v4022_v32, %v9988_v42  ;;  %v2621_v34 = vsel %vm2614_vm6, %v2617_v58, %v2620_v40  ;;  %v12231_v32 = vld [vmem:[#allocation8_spill] sm:$0xff] }
 0x4d7   : > { %vm6370_vm5 = vcmp.lt.s32.totalorder %v6369_v15, 0  ;;  %v9992_v29 = vmul.u32.u64.low %v9938_v61, %v4018_v13  ;;  %v9993_v31 = vmul.u32.u64.high %v9938_v61, %v4018_v13, %v9992_v29  ;;  %vm3027_vm11 = vweird.f32 %v8981_v18  ;;  %v12232_v42 = vld [vmem:[#allocation26_spill] sm:$0xff] }
 0x4d8   : > { %v3028_v8 = vadd.s32 3, %v3024_v3  ;;  %v9999_v51 = vsel %vm9886_vm13, %v9659_v26, %v3956_v62  ;;  %v3838_v60 = vsel %vm6370_vm5, 0, %v6369_v15  ;;  %v4030_v10 = vmul.u32 %v9938_v61, %v4014_v44  ;;  %v12230_v3 = vld [vmem:[#allocation28_spill] sm:$0xff] }
 0x4d9   : > { %v2813_v24 = vsub.s32 4, %v9000_v57  ;;  %v3839_v50 = vsub.s32 32, %v3838_v60  ;;  %v3843_v58 = vsub.s32 4294967266, %v3838_v60  ;;  %v3032_v19 = vxor.u32 2147483648, %v9571_v12 }
 0x4da   : > { %v3029_v4 = vand.u32 3, %v3028_v8  ;;  %vm4032_vm10 = vc.u32 %v9989_v25, %v9992_v29  ;;  %v2622_v27 = vsel %vm2611_vm7, nan, %v2621_v34  ;;  %v3035_v33 = vxor.u32 2147483648, %v9550_v9 }
 0x4db   : > { %vm12228_vm3 = vcmp.lt.s32.totalorder %v12227_v21, 0  ;;  %v3840_v61 = vshll.u32 %v9961_v0, %v3838_v60  ;;  %v3841_v48 = vshrl.u32 %v3823_v6, %v3839_v50  ;;  %v3844_v55 = vadd.s32 127, %v3843_v58 }
 0x4dc   : > { %v2814_v52 = vsel %vm12228_vm3, %v2813_v24, %v9000_v57  ;;  %v4033_v17 = vadd.s32 1, %v9993_v31  ;;  %vm3030_vm4 = vcmp.lt.s32.totalorder %v3029_v4, 2  ;;  %vm3031_vm0 = vcmp.eq.s32.totalorder %v3029_v4, 0 }
 0x4dd   : > { %vm3034_vm2 = vcmp.eq.s32.totalorder %v3029_v4, 2  ;;  %v2816_v45 = vsel %vm9213_vm12, 0, %v2814_v52  ;;  %v3842_v53 = vor.u32 %v3841_v48, %v3840_v61  ;;  %v3845_v7 = vshll.u32 %v3844_v55, 23 }
 0x4de   : > { %v4034_v40 = vsel %vm4032_vm10, %v4033_v17, %v9993_v31  ;;  %v3033_v13 = vsel %vm3031_vm0, %v9550_v9, %v3032_v19  ;;  %vm3769_vm7 = vcmp.lt.s32.totalorder %v9754_v1, 0  ;;  %v3036_v0 = vsel %vm3034_vm2, %v3035_v33, %v9571_v12  ;;  %v12237_v17 = vld [vmem:[#allocation40_spill] sm:$0xff] }
 0x4df   : > { %v4035_v57 = vadd.s32 %v4034_v40, %v4030_v10  ;;  %v2820_v5 = vadd.s32 3, %v2816_v45  ;;  %v2824_v62 = vxor.u32 2147483648, %v12230_v3  ;;  %v3846_v15 = vor.u32 4788187, %v3845_v7  ;;  %v12238_v45 = vld [vmem:[#allocation10_spill] sm:$0xff] }
 0x4e0   : > { %v3037_v44 = vsel %vm3030_vm4, %v3033_v13, %v3036_v0  ;;  %v2827_v6 = vxor.u32 2147483648, %v12231_v32  ;;  %v3229_v34 = vsub.s32 4, %v12232_v42  ;;  %v12233_v8 = vand.u32 2147483647, %v9754_v1  ;;  %v12239_v13 = vld [vmem:[#allocation17_spill] sm:$0xff] }
 0x4e1   : > { %v10029_v9 = vadd.s32 %v9992_v29, %v9989_v25  ;;  %v4036_v60 = vadd.s32 536870912, %v4035_v57  ;;  %v3038_v12 = vsel %vm3027_vm11, nan, %v3037_v44  ;;  %v2821_v10 = vand.u32 3, %v2820_v5 }
 0x4e2   : > { %vm10024_vm12 = vcmp.le.f32.partialorder %v12233_v8, 0.7853982  ;;  %v3847_v24 = vand.u32 2147483647, %v3846_v15  ;;  %v3849_v50 = vcvt.s32.f32 %v3842_v53  ;;  %v6479_v58 = vpack.c.bf16 %v3038_v12, %v2622_v27  ;;  %v12241_v8 = vld [vmem:[#allocation19_spill] sm:$0xff] }
 0x4e3   : > { %vm12236_vm6 = vcmp.lt.s32.totalorder %v9157_v16, 0  ;;  %v10036_v19 = vshrl.u32 %v4036_v60, 30  ;;  %vm2822_vm5 = vcmp.lt.s32.totalorder %v2821_v10, 2  ;;  %vm2823_vm10 = vcmp.eq.s32.totalorder %v2821_v10, 0  ;;  %v12242_v12 = vld [vmem:[#allocation15_spill] sm:$0xff] }
 0x4e4   : > { %v3230_v4 = vsel %vm12236_vm6, %v3229_v34, %v12232_v42  ;;  %vm2826_vm3 = vcmp.eq.s32.totalorder %v2821_v10, 2  ;;  %v3850_v33 = vmul.f32 %v3849_v50, %v3847_v24  ;;  %6480 = vmatprep.subr.bf16.mxu0 %v6479_v58  ;;  %v2825_v25 = vsel %vm2823_vm10, %v12231_v32, %v2824_v62  ;;  %v12243_v58 = vld [vmem:[#allocation32_spill] sm:$0xff] }
 0x4e5   : > { %v2828_v18 = vsel %vm2826_vm3, %v2827_v6, %v12230_v3  ;;  %v3232_v29 = vsel %vm9565_vm8, 0, %v3230_v4  ;;  %v4038_v27 = vshll.u32 %v10036_v19, 30  ;;  %vm2819_vm11 = vweird.f32 %v12227_v21 }
 0x4e6   : > { %v2829_v52 = vsel %vm2822_vm5, %v2825_v25, %v2828_v18  ;;  %v3236_v61 = vadd.s32 3, %v3232_v29  ;;  %v3851_v48 = vxor.u32 2147483648, %v3850_v33  ;;  %v3240_v55 = vxor.u32 2147483648, %v9695_v59  ;;  %v12244_v25 = vld [vmem:[#allocation31_spill] sm:$0xff] }
 0x4e7   : > { %v3243_v56 = vxor.u32 2147483648, %v12237_v17  ;;  %v2509_v53 = vand.u32 3, %v12238_v45  ;;  %v10047_v7 = vsub.s32 %v4035_v57, %v4038_v27  ;;  %v2512_v0 = vxor.u32 2147483648, %v12239_v13  ;;  %v12245_v29 = vld [vmem:[#allocation7_spill] sm:$0xff] }
 0x4e8   : > { %v3237_v40 = vand.u32 3, %v3236_v61  ;;  %v2515_v5 = vxor.u32 2147483648, %v12240_v37  ;;  %v3852_v3 = vsel %vm3769_vm7, %v3851_v48, %v3850_v33  ;;  %v2830_v21 = vsel %vm2819_vm11, nan, %v2829_v52  ;;  %v12246_v61 = vld [vmem:[#allocation12_spill] sm:$0xff] }
 0x4e9   : > { %vm3235_vm8 = vweird.f32 %v9157_v16  ;;  %vm2510_vm4 = vcmp.lt.s32.totalorder %v2509_v53, 2  ;;  %v4041_v62 = vsub.s32 0, %v10047_v7  ;;  %vm2511_vm2 = vcmp.eq.s32.totalorder %v2509_v53, 0  ;;  %v12247_v16 = vld [vmem:[#allocation23_spill] sm:$0xff] }
 0x4ea   : > { %vm3239_vm0 = vcmp.eq.s32.totalorder %v3237_v40, 0  ;;  %vm2514_vm6 = vcmp.eq.s32.totalorder %v2509_v53, 2  ;;  %v3855_v57 = vsel %vm10024_vm12, %v9754_v1, %v3852_v3  ;;  %vm3242_vm5 = vcmp.eq.s32.totalorder %v3237_v40, 2  ;;  %v12249_v53 = vld [vmem:[#allocation29_spill] sm:$0xff] }
 0x4eb   : > { %v3241_v15 = vsel %vm3239_vm0, %v12237_v17, %v3240_v55  ;;  %v2513_v44 = vsel %vm2511_vm2, %v12240_v37, %v2512_v0  ;;  %v6376_v32 = vmin.u32 %v4041_v62, %v10047_v7  ;;  %vm3238_vm10 = vcmp.lt.s32.totalorder %v3237_v40, 2  ;;  %v12250_v37 = vld [vmem:[#allocation37_spill] sm:$0xff] }
 0x4ec   : > { %v3244_v6 = vsel %vm3242_vm5, %v3243_v56, %v9695_v59  ;;  %v2516_v42 = vsel %vm2514_vm6, %v2515_v5, %v12239_v13  ;;  %vm2507_vm3 = vweird.f32 %v12241_v8  ;;  %v2925_v10 = vand.u32 3, %v12242_v12  ;;  %v12248_v56 = vld [vmem:[#allocation6_spill] sm:$0xff]  ;;  %v12251_v8 = vld [vmem:[#allocation9_spill] sm:$0xff] }
 0x4ed   : > { %v3245_v34 = vsel %vm3238_vm10, %v3241_v15, %v3244_v6  ;;  %v2517_v60 = vsel %vm2510_vm4, %v2513_v44, %v2516_v42  ;;  %6876 = vcosq.f32 %v3855_v57  ;;  %v4043_v24 = vclz %v6376_v32 }
 0x4ee   : > { %v3246_v50 = vsel %vm3235_vm8, nan, %v3245_v34  ;;  %v2928_v4 = vxor.u32 2147483648, %v12243_v58  ;;  %6878 = vsinq.f32 %v3855_v57  ;;  %vm2923_vm11 = vweird.f32 %v12244_v25 }
 0x4ef   : > { %v6487_v33 = vpack.c.bf16 %v3246_v50, %v2830_v21  ;;  %vm2927_vm0 = vcmp.eq.s32.totalorder %v2925_v10, 0  ;;  %v6377_v59 = vadd.s32 4294967294, %v4043_v24  ;;  %v2518_v18 = vsel %vm2507_vm3, nan, %v2517_v60  ;;  %v12252_v50 = vld [vmem:[#allocation42_spill] sm:$0xff] }
 0x4f0   : > { %v2929_v27 = vsel %vm2927_vm0, %v12245_v29, %v2928_v4  ;;  %v2931_v52 = vxor.u32 2147483648, %v12245_v29  ;;  %vm2926_vm4 = vcmp.lt.s32.totalorder %v2925_v10, 2  ;;  %vm2930_vm2 = vcmp.eq.s32.totalorder %v2925_v10, 2  ;;  %v12253_v4 = vld [vmem:[#allocation22_spill] sm:$0xff] }
 0x4f1   : > { %6488 = vmatprep.subr.bf16.mxu1 %v6487_v33  ;;  %v2717_v48 = vand.u32 3, %v12246_v61  ;;  %v2720_v55 = vxor.u32 2147483648, %v12247_v16  ;;  %vm6378_vm8 = vcmp.lt.s32.totalorder %v6377_v59, 0  ;;  %v2723_v45 = vxor.u32 2147483648, %v12248_v56  ;;  %v12257_v29 = vld [vmem:[#allocation30_spill] sm:$0xff] }
 0x4f2   : > { %v2932_v17 = vsel %vm2930_vm2, %v2931_v52, %v12243_v58  ;;  %v3133_v40 = vand.u32 3, %v12249_v53  ;;  %v4046_v13 = vsel %vm6378_vm8, 0, %v6377_v59  ;;  %v3136_v5 = vxor.u32 2147483648, %v12250_v37 }
 0x4f3   : > { %v2933_v0 = vsel %vm2926_vm4, %v2929_v27, %v2932_v17  ;;  %vm2718_vm6 = vcmp.lt.s32.totalorder %v2717_v48, 2  ;;  %v4047_v3 = vsub.s32 32, %v4046_v13  ;;  %v4051_v21 = vsub.s32 4294967266, %v4046_v13 }
 0x4f4   : > { %v2934_v62 = vsel %vm2923_vm11, nan, %v2933_v0  ;;  %vm2719_vm5 = vcmp.eq.s32.totalorder %v2717_v48, 0  ;;  %v4048_v57 = vshll.u32 %v10047_v7, %v4046_v13  ;;  %vm2722_vm10 = vcmp.eq.s32.totalorder %v2717_v48, 2 }
 0x4f5   : > { %v6481_v15 = vpack.c.bf16 %v2934_v62, %v2518_v18  ;;  %v2721_v44 = vsel %vm2719_vm5, %v12248_v56, %v2720_v55  ;;  %v4049_v32 = vshrl.u32 %v10029_v9, %v4047_v3  ;;  %v4052_v6 = vadd.s32 127, %v4051_v21 }
 0x4f6   : > { %v2724_v42 = vsel %vm2722_vm10, %v2723_v45, %v12247_v16  ;;  %vm3135_vm3 = vcmp.eq.s32.totalorder %v3133_v40, 0  ;;  %6880 = vcosq.f32 %v9999_v51  ;;  %v3139_v12 = vxor.u32 2147483648, %v12251_v8 }
 0x4f7   : > { %6482 = vmatpush1.bf16.msra.mxu0 %v6481_v15  ;;  %v2725_v34 = vsel %vm2718_vm6, %v2721_v44, %v2724_v42  ;;  %v3137_v60 = vsel %vm3135_vm3, %v12251_v8, %v3136_v5  ;;  %v10087_v7 = vpop.eup %6876  ;;  %v4050_v10 = vor.u32 %v4049_v32, %v4048_v57  ;;  %v4053_v24 = vshll.u32 %v4052_v6, 23  ;;  %v12259_v57 = vld [vmem:[#allocation21_spill] sm:$0xff]  ;;  %v12261_v32 = vld [vmem:[#allocation20_spill] sm:$0xff] }
 0x4f8   : > { %vm3138_vm11 = vcmp.eq.s32.totalorder %v3133_v40, 2  ;;  %v3437_v9 = vsub.s32 4, %v12252_v50  ;;  %v6879_v58 = vpop.eup %6878  ;;  %6882 = vsinq.f32 %v9999_v51  ;;  %vm3977_vm0 = vcmp.lt.s32.totalorder %v9776_v22, 0 }
 0x4f9   : > { %vm2715_vm4 = vweird.f32 %v12253_v4  ;;  %vm3134_vm2 = vcmp.lt.s32.totalorder %v3133_v40, 2  ;;  %v3140_v33 = vsel %vm3138_vm11, %v3139_v12, %v12250_v37  ;;  %v12254_v25 = vand.u32 2147483647, %v9776_v22 }
 0x4fa   : > { %v4054_v18 = vor.u32 4788187, %v4053_v24  ;;  %vm3131_vm6 = vweird.f32 %v12257_v29  ;;  %v3141_v27 = vsel %vm3134_vm2, %v3137_v60, %v3140_v33  ;;  %vm12258_vm5 = vcmp.lt.s32.totalorder %v9459_v49, 0 }
 0x4fb   : > { %vm10096_vm8 = vcmp.le.f32.partialorder %v12254_v25, 0.7853982  ;;  %v3438_v51 = vsel %vm12258_vm5, %v3437_v9, %v12252_v50  ;;  %v2726_v52 = vsel %vm2715_vm4, nan, %v2725_v34  ;;  %v3142_v61 = vsel %vm3131_vm6, nan, %v3141_v27  ;;  %v12263_v9 = vld [vmem:[#allocation38_spill] sm:$0xff] }
 0x4fc   : > { %v3440_v48 = vsel %vm9745_vm9, 0, %v3438_v51  ;;  %v3853_v16 = vsub.s32 4, %v9948_v2  ;;  %v4055_v55 = vand.u32 2147483647, %v4054_v18  ;;  %v4057_v17 = vcvt.s32.f32 %v4050_v10 }
 0x4fd   : > { %v6489_v56 = vpack.c.bf16 %v3142_v61, %v2726_v52  ;;  %v3444_v45 = vadd.s32 3, %v3440_v48  ;;  %vm3443_vm10 = vweird.f32 %v9459_v49  ;;  %v3448_v53 = vxor.u32 2147483648, %v9872_v46  ;;  %v12267_v49 = vld [vmem:[#allocation39_spill] sm:$0xff] }
 0x4fe   : > { %v3451_v40 = vxor.u32 2147483648, %v9848_v36  ;;  %v3854_v13 = vsel %vm3769_vm7, %v3853_v16, %v9948_v2  ;;  %v3645_v0 = vsub.s32 4, %v9686_v63  ;;  %v4058_v30 = vmul.f32 %v4057_v17, %v4055_v55 }
 0x4ff   : > { %6490 = vmatpush1.bf16.msra.mxu1 %v6489_v56  ;;  %v3445_v37 = vand.u32 3, %v3444_v45  ;;  %v3856_v5 = vsel %vm10024_vm12, 0, %v3854_v13  ;;  %vm3859_vm9 = vweird.f32 %v9754_v1  ;;  %v3864_v3 = vxor.u32 2147483648, %v6879_v58  ;;  %v12269_v45 = vld [vmem:[#allocation34_spill] sm:$0xff] }
 0x500   : > { %v3860_v21 = vadd.s32 3, %v3856_v5  ;;  %v3867_v62 = vxor.u32 2147483648, %v10087_v7  ;;  %vm12260_vm3 = vcmp.lt.s32.totalorder %v12259_v57, 0  ;;  %v4061_v2 = vsub.s32 4, %v10036_v19  ;;  %v10123_v42 = vpop.eup %6880 }
 0x501   : > { %v3646_v15 = vsel %vm12260_vm3, %v3645_v0, %v9686_v63  ;;  %v4059_v44 = vxor.u32 2147483648, %v4058_v30  ;;  %vm3447_vm7 = vcmp.eq.s32.totalorder %v3445_v37, 0  ;;  %vm3450_vm11 = vcmp.eq.s32.totalorder %v3445_v37, 2  ;;  %v12271_v0 = vld [vmem:[#allocation27_spill] sm:$0xff] }
 0x502   : > { %v3656_v6 = vxor.u32 2147483648, %v12261_v32  ;;  %v3449_v31 = vsel %vm3447_vm7, %v9848_v36, %v3448_v53  ;;  %v3452_v34 = vsel %vm3450_vm11, %v3451_v40, %v9872_v46  ;;  %v3861_v8 = vand.u32 3, %v3860_v21  ;;  %v10134_v50 = vpop.eup %6882  ;;  %v12270_v40 = vld [vmem:[#allocation36_spill] sm:$0xff] }
 0x503   : > { %v3648_v12 = vsel %vm9798_vm15, 0, %v3646_v15  ;;  %v4060_v63 = vsel %vm3977_vm0, %v4059_v44, %v4058_v30  ;;  %vm3446_vm12 = vcmp.lt.s32.totalorder %v3445_v37, 2  ;;  %v4062_v24 = vsel %vm3977_vm0, %v4061_v2, %v10036_v19 }
 0x504   : > { %v3652_v10 = vadd.s32 3, %v3648_v12  ;;  %v4063_v36 = vsel %vm10096_vm8, %v9776_v22, %v4060_v63  ;;  %v3453_v46 = vsel %vm3446_vm12, %v3449_v31, %v3452_v34  ;;  %vm3863_vm4 = vcmp.eq.s32.totalorder %v3861_v8, 0 }
 0x505   : > { %v3659_v4 = vxor.u32 2147483648, %v12263_v9  ;;  %6884 = vcosq.f32 %v4063_v36  ;;  %v3865_v33 = vsel %vm3863_vm4, %v10087_v7, %v3864_v3  ;;  %vm3866_vm15 = vcmp.eq.s32.totalorder %v3861_v8, 2 }
 0x506   : > { %v3653_v25 = vand.u32 3, %v3652_v10  ;;  %6886 = vsinq.f32 %v4063_v36  ;;  %vm3862_vm2 = vcmp.lt.s32.totalorder %v3861_v8, 2  ;;  %v3868_v18 = vsel %vm3866_vm15, %v3867_v62, %v6879_v58  ;;  %v12265_v58 = vld [vmem:[#allocation25_spill] sm:$0xff] }
 0x507   : > { %v4064_v19 = vsel %vm10096_vm8, 0, %v4062_v24  ;;  %v3454_v29 = vsel %vm3443_vm10, nan, %v3453_v46  ;;  %v3869_v27 = vsel %vm3862_vm2, %v3865_v33, %v3868_v18  ;;  %v12266_v16 = vsel %vm9620_vm1, 0, %v12265_v58 }
 0x508   : > { %vm3655_vm0 = vcmp.eq.s32.totalorder %v3653_v25, 0  ;;  %vm3658_vm6 = vcmp.eq.s32.totalorder %v3653_v25, 2  ;;  %v3870_v51 = vsel %vm3859_vm9, nan, %v3869_v27  ;;  %v4068_v61 = vadd.s32 3, %v4064_v19 }
 0x509   : > { %v3657_v52 = vsel %vm3655_vm0, %v12263_v9, %v3656_v6  ;;  %v3660_v7 = vsel %vm3658_vm6, %v3659_v4, %v12261_v32  ;;  %v3548_v59 = vadd.s32 3, %v12266_v16  ;;  %v12268_v55 = vsel %vm9811_vm14, 0, %v12267_v49  ;;  %v12274_v6 = vld [vmem:[#allocation33_spill] sm:$0xff]  ;;  %v12275_v9 = vld [vmem:[#allocation16_spill] sm:$0xff] }
 0x50a   : > { %v3756_v17 = vadd.s32 3, %v12268_v55  ;;  %v6483_v56 = vpack.c.bf16 %v3870_v51, %v3454_v29  ;;  %v3341_v53 = vand.u32 3, %v12269_v45  ;;  %vm3654_vm8 = vcmp.lt.s32.totalorder %v3653_v25, 2  ;;  %v6966_v45 = vld [vmem:[%s11822_s2 + $0x10] sm:$0xff] }
 0x50b   : > { %v4069_v1 = vand.u32 3, %v4068_v61  ;;  %v3344_v13 = vxor.u32 2147483648, %v12270_v40  ;;  %v3347_v30 = vxor.u32 2147483648, %v12271_v0  ;;  %v12272_v37 = vsel %vm9886_vm13, 0, %v9905_v47 }
 0x50c   : > { %v3964_v5 = vadd.s32 3, %v12272_v37  ;;  %6484 = vmatprep.subr.bf16.mxu0 %v6483_v56  ;;  %v3661_v3 = vsel %vm3654_vm8, %v3657_v52, %v3660_v7  ;;  %vm3339_vm1 = vweird.f32 %v12273_v11  ;;  %vm3343_vm14 = vcmp.eq.s32.totalorder %v3341_v53, 0  ;;  %v6379_v52 = vld [vmem:[%s11821_s1 + $0x20] sm:$0xff]  ;;  %v6381_v56 = vld [vmem:[%s11821_s1 + $0x30] sm:$0xff] }
 0x50d   : > { %vm3651_vm5 = vweird.f32 %v12259_v57  ;;  %vm4067_vm10 = vweird.f32 %v9776_v22  ;;  %vm3342_vm9 = vcmp.lt.s32.totalorder %v3341_v53, 2  ;;  %v3345_v21 = vsel %vm3343_vm14, %v12271_v0, %v3344_v13  ;;  %v12276_v57 = vld [vmem:[#allocation14_spill] sm:$0xff] }
 0x50e   : > { %vm3346_vm3 = vcmp.eq.s32.totalorder %v3341_v53, 2  ;;  %vm3755_vm7 = vweird.f32 %v9527_v39  ;;  %v3757_v62 = vand.u32 3, %v3756_v17  ;;  %v3760_v47 = vxor.u32 2147483648, %v9969_v41 }
 0x50f   : > { %v3348_v43 = vsel %vm3346_vm3, %v3347_v30, %v12270_v40  ;;  %v3763_v15 = vxor.u32 2147483648, %v9966_v23  ;;  %vm4070_vm13 = vcmp.lt.s32.totalorder %v4069_v1, 2  ;;  %vm4071_vm11 = vcmp.eq.s32.totalorder %v4069_v1, 0  ;;  %v6885_v32 = vpop.eup %6884  ;;  %v6967_v40 = vld [vmem:[%s11822_s2 + $0x18] sm:$0xff] }
 0x510   : > { %v3349_v2 = vsel %vm3342_vm9, %v3345_v21, %v3348_v43  ;;  %v3549_v44 = vand.u32 3, %v3548_v59  ;;  %vm4074_vm12 = vcmp.eq.s32.totalorder %v4069_v1, 2  ;;  %vm3759_vm4 = vcmp.eq.s32.totalorder %v3757_v62, 0  ;;  %v6887_v34 = vpop.eup %6886  ;;  %v6382_v1 = vld [vmem:[%s11821_s1 + $0x38] sm:$0xff] }
 0x511   : > { %vm3762_vm15 = vcmp.eq.s32.totalorder %v3757_v62, 2  ;;  %v3552_v31 = vxor.u32 2147483648, %v12274_v6  ;;  %v4075_v8 = vxor.u32 2147483648, %v6885_v32  ;;  %vm3758_vm2 = vcmp.lt.s32.totalorder %v3757_v62, 2 }
 0x512   : > { %v3761_v60 = vsel %vm3759_vm4, %v9966_v23, %v3760_v47  ;;  %v3764_v12 = vsel %vm3762_vm15, %v3763_v15, %v9969_v41  ;;  %v4072_v63 = vxor.u32 2147483648, %v6887_v34  ;;  %v3350_v10 = vsel %vm3339_vm1, nan, %v3349_v2 }
 0x513   : > { %v3765_v24 = vsel %vm3758_vm2, %v3761_v60, %v3764_v12  ;;  %vm3551_vm0 = vcmp.eq.s32.totalorder %v3549_v44, 0  ;;  %v4076_v36 = vsel %vm4074_vm12, %v4075_v8, %v6887_v34  ;;  %vm3554_vm6 = vcmp.eq.s32.totalorder %v3549_v44, 2 }
 0x514   : > { %v3766_v46 = vsel %vm3755_vm7, nan, %v3765_v24  ;;  %v3555_v4 = vxor.u32 2147483648, %v12275_v9  ;;  %v4073_v33 = vsel %vm4071_vm11, %v6885_v32, %v4072_v63  ;;  %v3553_v23 = vsel %vm3551_vm0, %v12275_v9, %v3552_v31 }
 0x515   : > { %v6485_v25 = vpack.c.bf16 %v3766_v46, %v3350_v10  ;;  %v3965_v18 = vand.u32 3, %v3964_v5  ;;  %v4077_v41 = vsel %vm4070_vm13, %v4073_v33, %v4076_v36  ;;  %v3968_v29 = vxor.u32 2147483648, %v10134_v50 }
 0x516   : > { %v3556_v19 = vsel %vm3554_vm6, %v3555_v4, %v12274_v6  ;;  %v3971_v27 = vxor.u32 2147483648, %v10123_v42  ;;  %v3662_v39 = vsel %vm3651_vm5, nan, %v3661_v3  ;;  %v4078_v51 = vsel %vm4067_vm10, nan, %v4077_v41 }
 0x517   : > { %6486 = vmatpush1.bf16.msra.mxu0 %v6485_v25  ;;  %vm3550_vm8 = vcmp.lt.s32.totalorder %v3549_v44, 2  ;;  %vm3967_vm1 = vcmp.eq.s32.totalorder %v3965_v18, 0  ;;  %v6491_v7 = vpack.c.bf16 %v4078_v51, %v3662_v39  ;;  %vm3970_vm14 = vcmp.eq.s32.totalorder %v3965_v18, 2 }
 0x518   : > { %v3557_v61 = vsel %vm3550_vm8, %v3553_v23, %v3556_v19  ;;  %v3969_v48 = vsel %vm3967_vm1, %v10123_v42, %v3968_v29  ;;  %vm3966_vm9 = vcmp.lt.s32.totalorder %v3965_v18, 2  ;;  %v3972_v58 = vsel %vm3970_vm14, %v3971_v27, %v10134_v50  ;;  %v6380_v42 = vld [vmem:[%s11821_s1 + $0x28] sm:$0xff]  ;;  %v6964_v50 = vld [vmem:[%s11822_s2] sm:$0xff] }
 0x519   : > { %6492 = vmatprep.subr.bf16.mxu1 %v6491_v7  ;;  %vm3547_vm5 = vweird.f32 %v12276_v57  ;;  %vm3963_vm10 = vweird.f32 %v9659_v26  ;;  %v3973_v22 = vsel %vm3966_vm9, %v3969_v48, %v3972_v58  ;;  %vm12277_vm3 = vcmask 261120   ;;  %v6965_v26 = vld [vmem:[%s11822_s2 + $0x8] sm:$0xff] }
 0x51a   : > { %6383 = vmatmul.mubr.msk.f32.vlgmr.msra.gmra.mrb[16].mxu0 %vm12277_vm3, %v6379_v52  ;;  %v3558_v16 = vsel %vm3547_vm5, nan, %v3557_v61  ;;  %v3974_v59 = vsel %vm3963_vm10, nan, %v3973_v22  ;;  %v12278_v49 = vmov 0.0   ;;  %v7041_v55 = vmov 2   ;;  %vm12279_vm7 = vmmov %vm12277_vm3 }
 0x51b   : > { %4182 = vmatprep.mubr.f32.mxu0 %v12278_v49  ;;  %6757 = vset.pattern.permute.xlu1 %v7041_v55  ;;  %v6493_v17 = vpack.c.bf16 %v3974_v59, %v3558_v16  ;;  %vm12280_vm13 = vmmov %vm12277_vm3  ;;  %v12281_v53 = vmov 0  }
 0x51c   : > { %4085 = vperm.xlu1 %6757, %v6964_v50   ;;  %6758 = vset.pattern.permute.xlu0 %v7041_v55  ;;  %vm12282_vm11 = vmmov %vm12277_vm3 }
 0x51d   : > { %4089 = vperm.xlu0 %6758, %v6965_v26   ;;  %6494 = vmatpush1.bf16.msra.mxu1 %v6493_v17  ;;  %vm12283_vm12 = vmmov %vm12277_vm3 }
 0x51e   : > { %6384 = vmatmul.mubr.msk.f32.gmra.mrb[18].mxu0 %vm12279_vm7, %v6380_v42  ;;  %vm12284_vm4 = vmmov %vm12277_vm3 }
 0x51f   : > { %4188 = vmatprep.mubr.f32.mxu0 %v12278_v49  ;;  %vm12285_vm15 = vmmov %vm12277_vm3 }
 0x520   : > { %4093 = vperm.xlu1 %6757, %v6966_v45   ;;  %6387 = vmatmul.mubr.msk.f32.vlgmr.msra.gmra.mrb[16].mxu1 %vm12280_vm13, %v6379_v52  ;;  %vm12286_vm2 = vmmov %vm12277_vm3 }
 0x521   : > { %6759 = vset.pattern.permute.xlu0 %v12281_v53  ;;  %4271 = vmatprep.mubr.f32.mxu1 %v12278_v49 }
 0x522   : > { %6385 = vmatmul.mubr.msk.f32.gmra.mrb[20].mxu0 %vm12282_vm11, %v6381_v56 }
 0x523   : > { %4194 = vmatprep.mubr.f32.mxu0 %v12278_v49 }
 0x524   : > { %4097 = vperm.xlu1 %6757, %v6967_v40   ;;  %6388 = vmatmul.mubr.msk.f32.gmra.mrb[18].mxu1 %vm12283_vm12, %v6380_v42 }
 0x525   : > { %4277 = vmatprep.mubr.f32.mxu1 %v12278_v49 }
 0x526   : > { %6386 = vmatmul.mubr.msk.f32.gmra.mrb[22].mxu0 %vm12284_vm4, %v6382_v1 }
 0x527   : > { %6032 = vmatprep.mubr.f32.mxu0 %v12278_v49 }
 0x528   : > { %6389 = vmatmul.mubr.msk.f32.gmra.mrb[20].mxu1 %vm12285_vm15, %v6381_v56 }
 0x529   : > { %4283 = vmatprep.mubr.f32.mxu1 %v12278_v49 }
 0x52c   : > { %6390 = vmatmul.mubr.msk.f32.gmra.mrb[22].mxu1 %vm12286_vm2, %v6382_v1 }
 0x52d   : > { %6103 = vmatprep.mubr.f32.mxu1 %v12278_v49 }
 0x59b   : > { %v10235_v13 = vpop.permute.xlu1 %4085 }
 0x5ed   : > { %v4178_v0 = vpop.f32.mrb[16].mxu0 }
 0x5ee   : > { %v10238_v30 = vadd.f32 %v4178_v0, %v10235_v13  ;;  %v4180_v37 = vpop.f32.mrb[17].mxu0 }
 0x5ef   : > { %v10241_v5 = vadd.f32 %v4180_v37, %v10235_v13 }
 0x5f0   : > { %12287 = vst [vmem:[#allocation18_spill] sm:$0xff] %v10238_v30  ;;  %v4290_v3 = vand.u32 2147483647, %v10238_v30  ;;  %v4293_v11 = vand.u32 2139095040, %v10238_v30 }
 0x5f1   : > { %12288 = vst [vmem:[#allocation13_spill] sm:$0xff] %v10241_v5  ;;  %v4397_v21 = vand.u32 2139095040, %v10241_v5  ;;  %v10246_v43 = vpop.f32.mrb[18].mxu0  ;;  %v4394_v60 = vand.u32 2147483647, %v10241_v5 }
 0x5f2   : > { %v4294_v62 = vshrl.u32 %v4293_v11, 23  ;;  %v10248_v47 = vpop.f32.mrb[19].mxu0  ;;  %v4297_v15 = vand.u32 8388607, %v4290_v3 }
 0x5f3   : > { %v4398_v2 = vshrl.u32 %v4397_v21, 23  ;;  %v4267_v32 = vpop.f32.mrb[16].mxu1  ;;  %v10270_v41 = vand.u32 8388607, %v4394_v60 }
 0x5f4   : > { %v6391_v44 = vadd.s32 4294967169, %v4294_v62  ;;  %v10253_v6 = vadd.f32 %v4267_v32, %v10235_v13  ;;  %v10255_v34 = vpop.f32.mrb[17].mxu1  ;;  %v4298_v12 = vor.u32 8388608, %v4297_v15 }
 0x5f5   : > { %v6395_v31 = vadd.s32 4294967169, %v4398_v2  ;;  %v10280_v16 = vpop.f32.mrb[20].mxu0 }
 0x5f6   : > { %12289 = vst [vmem:[#allocation28_spill] sm:$0xff] %v10253_v6  ;;  %v4300_v8 = vadd.s32 1, %v6391_v44  ;;  %v4498_v63 = vand.u32 2147483647, %v10253_v6  ;;  %v4501_v10 = vand.u32 2139095040, %v10253_v6  ;;  %v10266_v18 = vshll.u32 %v4298_v12, 8 }
 0x5f7   : > { %v4404_v24 = vadd.s32 1, %v6395_v31  ;;  %v10260_v36 = vpop.f32.mrb[18].mxu1 }
 0x5f8   : > { %vm4301_vm0 = vcmp.gt.s32.totalorder %v4300_v8, 0  ;;  %v4502_v9 = vshrl.u32 %v4501_v10, 23  ;;  %v4505_v4 = vand.u32 8388607, %v4498_v63  ;;  %v10264_v25 = vpop.f32.mrb[19].mxu1 }
 0x5f9   : > { %v4302_v46 = vsel %vm4301_vm0, %v4300_v8, 0  ;;  %vm4405_vm6 = vcmp.gt.s32.totalorder %v4404_v24, 0 }
 0x5fa   : > { %v4304_v33 = vand.u32 31, %v4302_v46  ;;  %v4303_v23 = vshrl.u32 %v4302_v46, 5  ;;  %v6399_v29 = vadd.s32 4294967169, %v4502_v9  ;;  %v4506_v27 = vor.u32 8388608, %v4505_v4 }
 0x5fb   : > { %v4406_v39 = vsel %vm4405_vm6, %v4404_v24, 0  ;;  %v4402_v4 = vor.u32 8388608, %v10270_v41 }
 0x5fc   : > { %v4305_v19 = vsub.s32 32, %v4304_v33  ;;  %v4307_v51 = vshll.u32 %v12026_v28, %v4304_v33  ;;  %v4310_v52 = vshll.u32 %v12027_v35, %v4304_v33  ;;  %v4313_v7 = vshll.u32 %v12028_v54, %v4304_v33 }
 0x5fd   : > { %v4316_v61 = vshll.u32 %v12029_v14, %v4304_v33  ;;  %v4319_v22 = vshll.u32 %v12030_v20, %v4304_v33  ;;  %vm4322_vm8 = vcmp.lt.s32.totalorder %v4303_v23, 1  ;;  %v4508_v26 = vadd.s32 1, %v6399_v29 }
 0x5fe   : > { %v4308_v48 = vshrl.u32 %v12027_v35, %v4305_v19  ;;  %v4311_v58 = vshrl.u32 %v12028_v54, %v4305_v19  ;;  %v4314_v57 = vshrl.u32 %v12029_v14, %v4305_v19  ;;  %v4306_v59 = vshrl.u32 %v12026_v28, %v4305_v19 }
 0x5ff   : > { %v4317_v49 = vshrl.u32 %v12030_v20, %v4305_v19  ;;  %v4320_v42 = vshrl.u32 %v12022_v38, %v4305_v19  ;;  %vm4324_vm1 = vcmp.lt.s32.totalorder %v4303_v23, 3  ;;  %vm4325_vm14 = vcmp.lt.s32.totalorder %v4303_v23, 4 }
 0x600   : > { %v4309_v55 = vor.u32 %v4308_v48, %v4307_v51  ;;  %v4312_v17 = vor.u32 %v4311_v58, %v4310_v52  ;;  %v4315_v50 = vor.u32 %v4314_v57, %v4313_v7  ;;  %vm4509_vm9 = vcmp.gt.s32.totalorder %v4508_v26, 0 }
 0x601   : > { %v4318_v56 = vor.u32 %v4317_v49, %v4316_v61  ;;  %v4321_v45 = vor.u32 %v4320_v42, %v4319_v22  ;;  %vm4323_vm5 = vcmp.lt.s32.totalorder %v4303_v23, 2  ;;  %v4510_v2 = vsel %vm4509_vm9, %v4508_v26, 0 }
 0x602   : > { %v4326_v53 = vsel %vm4322_vm8, %v4306_v59, %v4309_v55  ;;  %v4327_v1 = vsel %vm4325_vm14, %v4315_v50, 2102212464  ;;  %v4330_v40 = vsel %vm4322_vm8, %v4309_v55, %v4312_v17  ;;  %v4334_v0 = vsel %vm4322_vm8, %v4312_v17, %v4315_v50 }
 0x603   : > { %v4328_v37 = vsel %vm4324_vm1, %v4312_v17, %v4327_v1  ;;  %v4331_v11 = vsel %vm4325_vm14, %v4318_v56, 920167782  ;;  %v4335_v21 = vsel %vm4325_vm14, %v4321_v45, 1326507024  ;;  %v10285_v8 = vshrl.u32 %v4510_v2, 5 }
 0x604   : > { %v4332_v62 = vsel %vm4324_vm1, %v4315_v50, %v4331_v11  ;;  %v4336_v15 = vsel %vm4324_vm1, %v4318_v56, %v4335_v21  ;;  %v4329_v44 = vsel %vm4323_vm5, %v4326_v53, %v4328_v37  ;;  %v4512_v9 = vand.u32 31, %v4510_v2 }
 0x605   : > { %v4333_v32 = vsel %vm4323_vm5, %v4330_v40, %v4332_v62  ;;  %v4337_v31 = vsel %vm4323_vm5, %v4334_v0, %v4336_v15  ;;  %v4345_v33 = vmul.u32 %v10266_v18, %v4329_v44  ;;  %v10298_v23 = vshll.u32 %v4506_v27, 8 }
 0x606   : > { %v10288_v12 = vmul.u32.u64.low %v10266_v18, %v4337_v31  ;;  %v10289_v10 = vmul.u32.u64.high %v10266_v18, %v4337_v31, %v10288_v12  ;;  %v10292_v24 = vmul.u32.u64.low %v10266_v18, %v4333_v32  ;;  %v10293_v46 = vmul.u32.u64.high %v10266_v18, %v4333_v32, %v10292_v24  ;;  %v10346_v31 = vpop.f32.mrb[20].mxu1 }
 0x607   : > { %v10300_v19 = vshrl.u32 %v4406_v39, 5  ;;  %v10304_v29 = vadd.f32 %v10255_v34, %v10235_v13  ;;  %v4513_v51 = vsub.s32 32, %v4512_v9  ;;  %v4515_v52 = vshll.u32 %v12026_v28, %v4512_v9 }
 0x608   : > { %vm4530_vm10 = vcmp.lt.s32.totalorder %v10285_v8, 1  ;;  %v10308_v7 = vand.u32 31, %v4406_v39  ;;  %vm4347_vm3 = vc.u32 %v10289_v10, %v10292_v24  ;;  %v4348_v18 = vadd.s32 1, %v10293_v46 }
 0x609   : > { %v4518_v41 = vshll.u32 %v12027_v35, %v4512_v9  ;;  %v4521_v27 = vshll.u32 %v12028_v54, %v4512_v9  ;;  %v4516_v61 = vshrl.u32 %v12027_v35, %v4513_v51  ;;  %v4519_v13 = vshrl.u32 %v12028_v54, %v4513_v51 }
 0x60a   : > { %v4522_v34 = vshrl.u32 %v12029_v14, %v4513_v51  ;;  %v4524_v48 = vshll.u32 %v12029_v14, %v4512_v9  ;;  %v4349_v39 = vsel %vm4347_vm3, %v4348_v18, %v10293_v46  ;;  %v4525_v58 = vshrl.u32 %v12030_v20, %v4513_v51 }
 0x60b   : > { %v4527_v57 = vshll.u32 %v12030_v20, %v4512_v9  ;;  %v4528_v22 = vshrl.u32 %v12022_v38, %v4513_v51  ;;  %v4350_v59 = vadd.s32 %v4349_v39, %v4345_v33  ;;  %v4517_v49 = vor.u32 %v4516_v61, %v4515_v52 }
 0x60c   : > { %v4520_v42 = vor.u32 %v4519_v13, %v4518_v41  ;;  %v4523_v55 = vor.u32 %v4522_v34, %v4521_v27  ;;  %v4526_v17 = vor.u32 %v4525_v58, %v4524_v48  ;;  %vm4532_vm7 = vcmp.lt.s32.totalorder %v10285_v8, 3 }
 0x60d   : > { %v4529_v50 = vor.u32 %v4528_v22, %v4527_v57  ;;  %vm4533_vm13 = vcmp.lt.s32.totalorder %v10285_v8, 4  ;;  %v4351_v26 = vadd.s32 536870912, %v4350_v59  ;;  %v4514_v56 = vshrl.u32 %v12026_v28, %v4513_v51 }
 0x60e   : > { %v4538_v45 = vsel %vm4530_vm10, %v4517_v49, %v4520_v42  ;;  %v4409_v53 = vsub.s32 32, %v10308_v7  ;;  %v4535_v1 = vsel %vm4533_vm13, %v4523_v55, 2102212464  ;;  %v4539_v40 = vsel %vm4533_vm13, %v4526_v17, 920167782 }
 0x60f   : > { %v4542_v0 = vsel %vm4530_vm10, %v4520_v42, %v4523_v55  ;;  %v4543_v37 = vsel %vm4533_vm13, %v4529_v50, 1326507024  ;;  %v10331_v11 = vshrl.u32 %v4351_v26, 30  ;;  %vm4531_vm11 = vcmp.lt.s32.totalorder %v10285_v8, 2 }
 0x610   : > { %v4540_v21 = vsel %vm4532_vm7, %v4523_v55, %v4539_v40  ;;  %v4544_v62 = vsel %vm4532_vm7, %v4526_v17, %v4543_v37  ;;  %v4534_v15 = vsel %vm4530_vm10, %v4514_v56, %v4517_v49  ;;  %v10344_v32 = vshll.u32 %v4402_v4, 8 }
 0x611   : > { %v4541_v2 = vsel %vm4531_vm11, %v4538_v45, %v4540_v21  ;;  %v4545_v44 = vsel %vm4531_vm11, %v4542_v0, %v4544_v62  ;;  %v4353_v12 = vshll.u32 %v10331_v11, 30  ;;  %v4536_v46 = vsel %vm4532_vm7, %v4520_v42, %v4535_v1 }
 0x612   : > { %v10352_v9 = vmul.u32.u64.low %v10298_v23, %v4545_v44  ;;  %v10353_v33 = vmul.u32.u64.high %v10298_v23, %v4545_v44, %v10352_v9  ;;  %v10356_v51 = vmul.u32.u64.low %v10298_v23, %v4541_v2  ;;  %v10357_v52 = vmul.u32.u64.high %v10298_v23, %v4541_v2, %v10356_v51 }
 0x613   : > { %v4412_v18 = vshrl.u32 %v12027_v35, %v4409_v53  ;;  %v4605_v4 = vand.u32 2139095040, %v10304_v29  ;;  %v10362_v41 = vsub.s32 %v4350_v59, %v4353_v12  ;;  %v4411_v27 = vshll.u32 %v12026_v28, %v10308_v7 }
 0x614   : > { %v4415_v61 = vshrl.u32 %v12028_v54, %v4409_v53  ;;  %vm4426_vm12 = vcmp.lt.s32.totalorder %v10300_v19, 1  ;;  %v4537_v13 = vsel %vm4531_vm11, %v4534_v15, %v4536_v46  ;;  %v4414_v34 = vshll.u32 %v12027_v35, %v10308_v7 }
 0x615   : > { %v4417_v48 = vshll.u32 %v12028_v54, %v10308_v7  ;;  %v4418_v39 = vshrl.u32 %v12029_v14, %v4409_v53  ;;  %v4356_v58 = vsub.s32 0, %v10362_v41  ;;  %vm4555_vm4 = vc.u32 %v10353_v33, %v10356_v51 }
 0x616   : > { %v4413_v57 = vor.u32 %v4412_v18, %v4411_v27  ;;  %v4420_v22 = vshll.u32 %v12029_v14, %v10308_v7  ;;  %v4556_v8 = vadd.s32 1, %v10357_v52  ;;  %v4416_v59 = vor.u32 %v4415_v61, %v4414_v34  ;;  %v10402_v61 = vpop.permute.xlu0 %4089 }
 0x617   : > { %v4419_v49 = vor.u32 %v4418_v39, %v4417_v48  ;;  %v4421_v42 = vshrl.u32 %v12030_v20, %v4409_v53  ;;  %v6392_v55 = vmin.u32 %v4356_v58, %v10362_v41  ;;  %v4553_v17 = vmul.u32 %v10298_v23, %v4537_v13 }
 0x618   : > { %v4423_v50 = vshll.u32 %v12030_v20, %v10308_v7  ;;  %v4424_v26 = vshrl.u32 %v12022_v38, %v4409_v53  ;;  %v4557_v56 = vsel %vm4555_vm4, %v4556_v8, %v10357_v52  ;;  %v4410_v45 = vshrl.u32 %v12026_v28, %v4409_v53 }
 0x619   : > { %v4422_v1 = vor.u32 %v4421_v42, %v4420_v22  ;;  %vm4427_vm15 = vcmp.lt.s32.totalorder %v10300_v19, 2  ;;  %v4358_v40 = vclz %v6392_v55  ;;  %v4558_v0 = vadd.s32 %v4557_v56, %v4553_v17 }
 0x61a   : > { %v4425_v37 = vor.u32 %v4424_v26, %v4423_v50  ;;  %vm4429_vm2 = vcmp.lt.s32.totalorder %v10300_v19, 4  ;;  %vm4428_vm0 = vcmp.lt.s32.totalorder %v10300_v19, 3  ;;  %v4434_v7 = vsel %vm4426_vm12, %v4413_v57, %v4416_v59 }
 0x61b   : > { %v4431_v23 = vsel %vm4429_vm2, %v4419_v49, 2102212464  ;;  %v4435_v21 = vsel %vm4429_vm2, %v4422_v1, 920167782  ;;  %v6393_v62 = vadd.s32 4294967294, %v4358_v40  ;;  %v4559_v15 = vadd.s32 536870912, %v4558_v0 }
 0x61c   : > { %v4436_v2 = vsel %vm4428_vm0, %v4419_v49, %v4435_v21  ;;  %v4438_v53 = vsel %vm4426_vm12, %v4416_v59, %v4419_v49  ;;  %v4430_v44 = vsel %vm4426_vm12, %v4410_v45, %v4413_v57  ;;  %v4439_v46 = vsel %vm4429_vm2, %v4425_v37, 1326507024 }
 0x61d   : > { %v4437_v12 = vsel %vm4427_vm15, %v4434_v7, %v4436_v2  ;;  %v4606_v9 = vshrl.u32 %v4605_v4, 23  ;;  %vm6394_vm6 = vcmp.lt.s32.totalorder %v6393_v62, 0  ;;  %v10400_v52 = vshrl.u32 %v4559_v15, 30 }
 0x61e   : > { %v4432_v18 = vsel %vm4428_vm0, %v4416_v59, %v4431_v23  ;;  %v4440_v27 = vsel %vm4428_vm0, %v4422_v1, %v4439_v46  ;;  %v4361_v13 = vsel %vm6394_vm6, 0, %v6393_v62  ;;  %v10418_v59 = vadd.f32 %v10246_v43, %v10402_v61  ;;  %v10437_v23 = vpop.f32.mrb[21].mxu0 }
 0x61f   : > { %v4441_v34 = vsel %vm4427_vm15, %v4438_v53, %v4440_v27  ;;  %v10407_v48 = vmul.u32.u64.low %v10344_v32, %v4437_v12  ;;  %v10408_v39 = vmul.u32.u64.high %v10344_v32, %v4437_v12, %v10407_v48  ;;  %v4366_v58 = vsub.s32 4294967266, %v4361_v13 }
 0x620   : > { %v4561_v57 = vshll.u32 %v10400_v52, 30  ;;  %v10413_v4 = vmul.u32.u64.low %v10344_v32, %v4441_v34  ;;  %v10414_v22 = vmul.u32.u64.high %v10344_v32, %v4441_v34, %v10413_v4  ;;  %v6403_v8 = vadd.s32 4294967169, %v4606_v9  ;;  %12290 = vst [vmem:[#allocation8_spill] sm:$0xff] %v10418_v59 }
 0x621   : > { %v4433_v42 = vsel %vm4427_vm15, %v4430_v44, %v4432_v18  ;;  %v11950_v55 = vand.u32 2147483647, %v10304_v29  ;;  %v4452_v17 = vadd.s32 1, %v10408_v39  ;;  %v4362_v26 = vsub.s32 32, %v4361_v13 }
 0x622   : > { %v10420_v49 = vsub.s32 %v4558_v0, %v4561_v57  ;;  %v4612_v50 = vadd.s32 1, %v6403_v8  ;;  %v4367_v56 = vadd.s32 127, %v4366_v58  ;;  %v4449_v1 = vmul.u32 %v10344_v32, %v4433_v42 }
 0x623   : > { %vm4451_vm8 = vc.u32 %v10414_v22, %v10407_v48  ;;  %v4709_v43 = vand.u32 2139095040, %v10418_v59  ;;  %v4346_v19 = vadd.s32 %v10292_v24, %v10289_v10  ;;  %v4609_v37 = vand.u32 8388607, %v11950_v55 }
 0x624   : > { %v4564_v45 = vsub.s32 0, %v10420_v49  ;;  %vm4613_vm1 = vcmp.gt.s32.totalorder %v4612_v50, 0  ;;  %v4453_v0 = vsel %vm4451_vm8, %v4452_v17, %v10408_v39  ;;  %v4368_v62 = vshll.u32 %v4367_v56, 23 }
 0x625   : > { %v4454_v7 = vadd.s32 %v4453_v0, %v4449_v1  ;;  %v4614_v32 = vsel %vm4613_vm1, %v4612_v50, 0  ;;  %v4364_v21 = vshrl.u32 %v4346_v19, %v4362_v26  ;;  %v4363_v53 = vshll.u32 %v10362_v41, %v4361_v13 }
 0x626   : > { %v6400_v40 = vmin.u32 %v4564_v45, %v10420_v49  ;;  %v4616_v2 = vand.u32 31, %v4614_v32  ;;  %v4610_v10 = vor.u32 8388608, %v4609_v37  ;;  %v4710_v46 = vshrl.u32 %v4709_v43, 23 }
 0x627   : > { %v4455_v44 = vadd.s32 536870912, %v4454_v7  ;;  %v4554_v9 = vadd.s32 %v10356_v51, %v10353_v33  ;;  %v10444_v27 = vor.u32 %v4364_v21, %v4363_v53  ;;  %v10446_v34 = vor.u32 4788187, %v4368_v62 }
 0x628   : > { %v4566_v15 = vclz %v6400_v40  ;;  %v4617_v24 = vsub.s32 32, %v4616_v2  ;;  %v4619_v8 = vshll.u32 %v12026_v28, %v4616_v2  ;;  %v10453_v33 = vshll.u32 %v4610_v10, 8 }
 0x629   : > { %v10442_v18 = vshrl.u32 %v4455_v44, 30  ;;  %v6407_v51 = vadd.s32 4294967169, %v4710_v46  ;;  %v4615_v17 = vshrl.u32 %v4614_v32, 5  ;;  %v4622_v50 = vshll.u32 %v12027_v35, %v4616_v2 }
 0x62a   : > { %v6401_v12 = vadd.s32 4294967294, %v4566_v15  ;;  %v4620_v39 = vshrl.u32 %v12027_v35, %v4617_v24  ;;  %v4623_v13 = vshrl.u32 %v12028_v54, %v4617_v24  ;;  %v4626_v57 = vshrl.u32 %v12029_v14, %v4617_v24 }
 0x62b   : > { %v4457_v41 = vshll.u32 %v10442_v18, 30  ;;  %v4625_v26 = vshll.u32 %v12028_v54, %v4616_v2  ;;  %v4628_v43 = vshll.u32 %v12029_v14, %v4616_v2  ;;  %v4629_v37 = vshrl.u32 %v12030_v20, %v4617_v24 }
 0x62c   : > { %vm6402_vm14 = vcmp.lt.s32.totalorder %v6401_v12, 0  ;;  %v4621_v1 = vor.u32 %v4620_v39, %v4619_v8  ;;  %v4624_v40 = vor.u32 %v4623_v13, %v4622_v50  ;;  %v4370_v21 = vand.u32 2147483647, %v10446_v34 }
 0x62d   : > { %v4569_v58 = vsel %vm6402_vm14, 0, %v6401_v12  ;;  %v10455_v42 = vsub.s32 %v4454_v7, %v4457_v41  ;;  %v4627_v0 = vor.u32 %v4626_v57, %v4625_v26  ;;  %v4631_v7 = vshll.u32 %v12030_v20, %v4616_v2 }
 0x62e   : > { %v4574_v4 = vsub.s32 4294967266, %v4569_v58  ;;  %v4570_v56 = vsub.s32 32, %v4569_v58  ;;  %v4632_v32 = vshrl.u32 %v12022_v38, %v4617_v24  ;;  %v4716_v62 = vadd.s32 1, %v6407_v51 }
 0x62f   : > { %v4460_v19 = vsub.s32 0, %v10455_v42  ;;  %v4618_v44 = vshrl.u32 %v12026_v28, %v4617_v24  ;;  %v4630_v12 = vor.u32 %v4629_v37, %v4628_v43  ;;  %v4571_v10 = vshll.u32 %v10420_v49, %v4569_v58 }
 0x630   : > { %v4575_v45 = vadd.s32 127, %v4574_v4  ;;  %v4633_v46 = vor.u32 %v4632_v32, %v4631_v7  ;;  %vm4634_vm9 = vcmp.lt.s32.totalorder %v4615_v17, 1  ;;  %vm4637_vm5 = vcmp.lt.s32.totalorder %v4615_v17, 4 }
 0x631   : > { %v6396_v53 = vmin.u32 %v4460_v19, %v10455_v42  ;;  %v4572_v39 = vshrl.u32 %v4554_v9, %v4570_v56  ;;  %v4639_v13 = vsel %vm4637_vm5, %v4627_v0, 2102212464  ;;  %v4642_v34 = vsel %vm4634_vm9, %v4621_v1, %v4624_v40 }
 0x632   : > { %v4576_v15 = vshll.u32 %v4575_v45, 23  ;;  %vm4635_vm10 = vcmp.lt.s32.totalorder %v4615_v17, 2  ;;  %vm4636_vm3 = vcmp.lt.s32.totalorder %v4615_v17, 3  ;;  %v4643_v2 = vsel %vm4637_vm5, %v4630_v12, 920167782 }
 0x633   : > { %v4462_v41 = vclz %v6396_v53  ;;  %v4646_v57 = vsel %vm4634_vm9, %v4624_v40, %v4627_v0  ;;  %v4644_v51 = vsel %vm4636_vm3, %v4627_v0, %v4643_v2  ;;  %v4647_v50 = vsel %vm4637_vm5, %v4633_v46, 1326507024 }
 0x634   : > { %v4577_v4 = vor.u32 4788187, %v4576_v15  ;;  %v4638_v26 = vsel %vm4634_vm9, %v4618_v44, %v4621_v1  ;;  %v4640_v24 = vsel %vm4636_vm3, %v4624_v40, %v4639_v13  ;;  %v4645_v45 = vsel %vm4635_vm10, %v4642_v34, %v4644_v51 }
 0x635   : > { %v6397_v8 = vadd.s32 4294967294, %v4462_v41  ;;  %v4648_v49 = vsel %vm4636_vm3, %v4630_v12, %v4647_v50  ;;  %v10471_v9 = vmul.u32.u64.low %v10453_v33, %v4645_v45  ;;  %v10472_v56 = vmul.u32.u64.high %v10453_v33, %v4645_v45, %v10471_v9 }
 0x636   : > { %v4649_v58 = vsel %vm4635_vm10, %v4646_v57, %v4648_v49  ;;  %v11947_v0 = vand.u32 2147483647, %v10418_v59  ;;  %v4372_v1 = vcvt.s32.f32 %v10444_v27  ;;  %v4573_v40 = vor.u32 %v4572_v39, %v4571_v10  ;;  %v10492_v10 = vpop.f32.mrb[21].mxu1 }
 0x637   : > { %vm6398_vm7 = vcmp.lt.s32.totalorder %v6397_v8, 0  ;;  %v10476_v43 = vmul.u32.u64.low %v10453_v33, %v4649_v58  ;;  %v10477_v19 = vmul.u32.u64.high %v10453_v33, %v4649_v58, %v10476_v43  ;;  %v4641_v37 = vsel %vm4635_vm10, %v4638_v26, %v4640_v24 }
 0x638   : > { %v10482_v7 = vsel %vm6398_vm7, 0, %v6397_v8  ;;  %vm4717_vm13 = vcmp.gt.s32.totalorder %v4716_v62, 0  ;;  %v10484_v32 = vmul.f32 %v4372_v1, %v4370_v21  ;;  %v4578_v15 = vand.u32 2147483647, %v4577_v4 }
 0x639   : > { %v4660_v53 = vadd.s32 1, %v10472_v56  ;;  %v4657_v44 = vmul.u32 %v10453_v33, %v4641_v37  ;;  %vm4659_vm11 = vc.u32 %v10477_v19, %v10471_v9  ;;  %v4713_v12 = vand.u32 8388607, %v11947_v0 }
 0x63a   : > { %v4718_v27 = vsel %vm4717_vm13, %v4716_v62, 0  ;;  %v4580_v17 = vcvt.s32.f32 %v4573_v40  ;;  %v4470_v46 = vsub.s32 4294967266, %v10482_v7  ;;  %v4376_v39 = vsub.s32 4, %v10331_v11 }
 0x63b   : > { %v4661_v21 = vsel %vm4659_vm11, %v4660_v53, %v10472_v56  ;;  %v4450_v41 = vadd.s32 %v10407_v48, %v10414_v22  ;;  %v4720_v13 = vand.u32 31, %v4718_v27  ;;  %v4374_v34 = vxor.u32 2147483648, %v10484_v32 }
 0x63c   : > { %v4662_v33 = vadd.s32 %v4661_v21, %v4657_v44  ;;  %v10500_v2 = vmul.f32 %v4580_v17, %v4578_v15  ;;  %v4466_v62 = vsub.s32 32, %v10482_v7  ;;  %v10505_v57 = vadd.f32 %v10260_v36, %v10402_v61 }
 0x63d   : > { %v4467_v4 = vshll.u32 %v10455_v42, %v10482_v7  ;;  %v4714_v51 = vor.u32 8388608, %v4713_v12  ;;  %v4721_v50 = vsub.s32 32, %v4720_v13  ;;  %v4471_v26 = vadd.s32 127, %v4470_v46 }
 0x63e   : > { %12291 = vst [vmem:[#allocation26_spill] sm:$0xff] %v10505_v57  ;;  %v4663_v8 = vadd.s32 536870912, %v4662_v33  ;;  %v4719_v48 = vshrl.u32 %v4718_v27, 5  ;;  %v4723_v22 = vshll.u32 %v12026_v28, %v4720_v13  ;;  %v4726_v24 = vshll.u32 %v12027_v35, %v4720_v13 }
 0x63f   : > { %v4724_v49 = vshrl.u32 %v12027_v35, %v4721_v50  ;;  %v4727_v58 = vshrl.u32 %v12028_v54, %v4721_v50  ;;  %v4729_v36 = vshll.u32 %v12028_v54, %v4720_v13  ;;  %v4730_v56 = vshrl.u32 %v12029_v14, %v4721_v50 }
 0x640   : > { %v10511_v45 = vshrl.u32 %v4663_v8, 30  ;;  %v4732_v42 = vshll.u32 %v12029_v14, %v4720_v13  ;;  %v4733_v43 = vshrl.u32 %v12030_v20, %v4721_v50  ;;  %v4736_v1 = vshrl.u32 %v12022_v38, %v4721_v50 }
 0x641   : > { %v4725_v37 = vor.u32 %v4724_v49, %v4723_v22  ;;  %v4728_v7 = vor.u32 %v4727_v58, %v4726_v24  ;;  %v4735_v15 = vshll.u32 %v12030_v20, %v4720_v13  ;;  %vm4292_vm12 = vcmp.lt.s32.totalorder %v10238_v30, 0 }
 0x642   : > { %12292 = vst [vmem:[#allocation40_spill] sm:$0xff] %v10511_v45  ;;  %v4665_v40 = vshll.u32 %v10511_v45, 30  ;;  %v4468_v53 = vshrl.u32 %v4450_v41, %v4466_v62  ;;  %v4472_v44 = vshll.u32 %v4471_v26, 23  ;;  %v4731_v12 = vor.u32 %v4730_v56, %v4729_v36 }
 0x643   : > { %v4734_v27 = vor.u32 %v4733_v43, %v4732_v42  ;;  %v4737_v46 = vor.u32 %v4736_v1, %v4735_v15  ;;  %vm4738_vm4 = vcmp.lt.s32.totalorder %v4719_v48, 1  ;;  %v4754_v21 = vshll.u32 %v4714_v51, 8 }
 0x644   : > { %v10523_v17 = vsub.s32 %v4662_v33, %v4665_v40  ;;  %v4722_v8 = vshrl.u32 %v12026_v28, %v4721_v50  ;;  %vm4741_vm15 = vcmp.lt.s32.totalorder %v4719_v48, 4  ;;  %v4746_v0 = vsel %vm4738_vm4, %v4725_v37, %v4728_v7 }
 0x645   : > { %v4917_v22 = vand.u32 2139095040, %v10505_v57  ;;  %vm10530_vm2 = vcmp.le.f32.partialorder %v4290_v3, 0.7853982  ;;  %vm4740_vm0 = vcmp.lt.s32.totalorder %v4719_v48, 3  ;;  %v4743_v33 = vsel %vm4741_vm15, %v4731_v12, 2102212464 }
 0x646   : > { %v4668_v41 = vsub.s32 0, %v10523_v17  ;;  %v4747_v62 = vsel %vm4741_vm15, %v4734_v27, 920167782  ;;  %v4473_v26 = vor.u32 4788187, %v4472_v44  ;;  %vm4739_vm6 = vcmp.lt.s32.totalorder %v4719_v48, 2 }
 0x647   : > { %v4748_v51 = vsel %vm4740_vm0, %v4731_v12, %v4747_v62  ;;  %v4750_v50 = vsel %vm4738_vm4, %v4728_v7, %v4731_v12  ;;  %v4742_v49 = vsel %vm4738_vm4, %v4722_v8, %v4725_v37  ;;  %v4751_v3 = vsel %vm4741_vm15, %v4737_v46, 1326507024  ;;  %v10577_v62 = vpop.f32.mrb[22].mxu0 }
 0x648   : > { %v6404_v24 = vmin.u32 %v4668_v41, %v10523_v17  ;;  %v4749_v58 = vsel %vm4739_vm6, %v4746_v0, %v4748_v51  ;;  %v4744_v36 = vsel %vm4740_vm0, %v4728_v7, %v4743_v33  ;;  %v4752_v56 = vsel %vm4740_vm0, %v4734_v27, %v4751_v3 }
 0x649   : > { %v10539_v42 = vmul.u32.u64.low %v4754_v21, %v4749_v58  ;;  %v10540_v43 = vmul.u32.u64.high %v4754_v21, %v4749_v58, %v10539_v42  ;;  %v4753_v40 = vsel %vm4739_vm6, %v4750_v50, %v4752_v56  ;;  %v4918_v15 = vshrl.u32 %v4917_v22, 23 }
 0x64a   : > { %v4670_v1 = vclz %v6404_v24  ;;  %v10546_v44 = vadd.f32 %v10248_v47, %v10402_v61  ;;  %vm4500_vm8 = vcmp.lt.s32.totalorder %v10253_v6, 0  ;;  %v4469_v37 = vor.u32 %v4468_v53, %v4467_v4 }
 0x64b   : > { %v10549_v12 = vmul.u32.u64.low %v4754_v21, %v4753_v40  ;;  %v10550_v0 = vmul.u32.u64.high %v4754_v21, %v4753_v40, %v10549_v12  ;;  %v4377_v7 = vsel %vm4292_vm12, %v4376_v39, %v10331_v11  ;;  %v4745_v46 = vsel %vm4739_vm6, %v4742_v49, %v4744_v36 }
 0x64c   : > { %v6405_v27 = vadd.s32 4294967294, %v4670_v1  ;;  %v6415_v8 = vadd.s32 4294967169, %v4918_v15  ;;  %v4375_v47 = vsel %vm4292_vm12, %v4374_v34, %v10484_v32  ;;  %v4582_v4 = vxor.u32 2147483648, %v10500_v2 }
 0x64d   : > { %v4474_v53 = vand.u32 2147483647, %v4473_v26  ;;  %v4764_v22 = vadd.s32 1, %v10540_v43  ;;  %vm10567_vm1 = vcmp.le.f32.partialorder %v4498_v63, 0.7853982  ;;  %v4813_v48 = vand.u32 2139095040, %v10546_v44 }
 0x64e   : > { %v11949_v11 = vand.u32 2147483647, %v10505_v57  ;;  %v4924_v39 = vadd.s32 1, %v6415_v8  ;;  %v4379_v33 = vsel %vm10530_vm2, 0, %v4377_v7  ;;  %v4476_v32 = vcvt.s32.f32 %v4469_v37 }
 0x64f   : > { %v4761_v34 = vmul.u32 %v4754_v21, %v4745_v46  ;;  %vm4763_vm14 = vc.u32 %v10550_v0, %v10539_v42  ;;  %v4378_v63 = vsel %vm10530_vm2, %v10238_v30, %v4375_v47  ;;  %v4584_v26 = vsub.s32 4, %v10400_v52 }
 0x650   : > { %vm4396_vm9 = vcmp.lt.s32.totalorder %v10241_v5, 0  ;;  %vm6406_vm5 = vcmp.lt.s32.totalorder %v6405_v27, 0  ;;  %v4765_v51 = vsel %vm4763_vm14, %v4764_v22, %v10540_v43  ;;  %v4583_v21 = vsel %vm4500_vm8, %v4582_v4, %v10500_v2 }
 0x651   : > { %v4477_v50 = vmul.f32 %v4476_v32, %v4474_v53  ;;  %v4766_v24 = vadd.s32 %v4765_v51, %v4761_v34  ;;  %vm4925_vm10 = vcmp.gt.s32.totalorder %v4924_v39, 0  ;;  %v4921_v49 = vand.u32 8388607, %v11949_v11 }
 0x652   : > { %v4926_v58 = vsel %vm4925_vm10, %v4924_v39, 0  ;;  %v11948_v13 = vand.u32 2147483647, %v10546_v44  ;;  %v4814_v3 = vshrl.u32 %v4813_v48, 23  ;;  %6888 = vcosq.f32 %v4378_v63 }
 0x653   : > { %v10591_v36 = vsel %vm6406_vm5, 0, %v6405_v27  ;;  %v4767_v56 = vadd.s32 536870912, %v4766_v24  ;;  %v4928_v1 = vand.u32 31, %v4926_v58  ;;  %6890 = vsinq.f32 %v4378_v63 }
 0x654   : > { %v10593_v43 = vadd.s32 3, %v4379_v33  ;;  %v10598_v2 = vsel %vm4500_vm8, %v4584_v26, %v10400_v52  ;;  %v10603_v40 = vsel %vm10567_vm1, %v10253_v6, %v4583_v21  ;;  %v4478_v15 = vxor.u32 2147483648, %v4477_v50 }
 0x655   : > { %v4658_v37 = vadd.s32 %v10471_v9, %v10477_v19  ;;  %v10607_v12 = vshrl.u32 %v4767_v56, 30  ;;  %v4929_v7 = vsub.s32 32, %v4928_v1  ;;  %v4678_v27 = vsub.s32 4294967266, %v10591_v36 }
 0x656   : > { %12297 = vst [vmem:[#allocation10_spill] sm:$0xff] %v10593_v43  ;;  %v4922_v46 = vor.u32 8388608, %v4921_v49  ;;  %v6411_v8 = vadd.s32 4294967169, %v4814_v3  ;;  %v10612_v52 = vand.u32 8388607, %v11948_v13  ;;  %v4931_v4 = vshll.u32 %v12026_v28, %v4928_v1 }
 0x657   : > { %v4769_v47 = vshll.u32 %v10607_v12, 30  ;;  %v4932_v53 = vshrl.u32 %v12027_v35, %v4929_v7  ;;  %v4934_v22 = vshll.u32 %v12027_v35, %v4928_v1  ;;  %v4935_v9 = vshrl.u32 %v12028_v54, %v4929_v7 }
 0x658   : > { %v4937_v19 = vshll.u32 %v12028_v54, %v4928_v1  ;;  %v4938_v39 = vshrl.u32 %v12029_v14, %v4929_v7  ;;  %v4941_v48 = vshrl.u32 %v12030_v20, %v4929_v7  ;;  %v4479_v33 = vsel %vm4396_vm9, %v4478_v15, %v4477_v50 }
 0x659   : > { %v10624_v32 = vsub.s32 %v4766_v24, %v4769_v47  ;;  %v4927_v34 = vshrl.u32 %v4926_v58, 5  ;;  %v4940_v63 = vshll.u32 %v12029_v14, %v4928_v1  ;;  %v4933_v26 = vor.u32 %v4932_v53, %v4931_v4 }
 0x65a   : > { %v4936_v51 = vor.u32 %v4935_v9, %v4934_v22  ;;  %v4939_v21 = vor.u32 %v4938_v39, %v4937_v19  ;;  %v10627_v49 = vshll.u32 %v4922_v46, 8  ;;  %v4943_v13 = vshll.u32 %v12030_v20, %v4928_v1  ;;  %v10654_v39 = vpop.f32.mrb[22].mxu1 }
 0x65b   : > { %v4772_v3 = vsub.s32 0, %v10624_v32  ;;  %v4942_v56 = vor.u32 %v4941_v48, %v4940_v63  ;;  %v4944_v11 = vshrl.u32 %v12022_v38, %v4929_v7  ;;  %v4674_v55 = vsub.s32 32, %v10591_v36 }
 0x65c   : > { %v4679_v50 = vadd.s32 127, %v4678_v27  ;;  %v4818_v24 = vor.u32 8388608, %v10612_v52  ;;  %v4820_v58 = vadd.s32 1, %v6411_v8  ;;  %v10634_v15 = vpop.eup %6888  ;;  %vm10638_vm3 = vcmp.le.f32.partialorder %v4394_v60, 0.7853982 }
 0x65d   : > { %12298 = vst [vmem:[#allocation17_spill] sm:$0xff] %v10634_v15  ;;  %v12299_v46 = vmov 0  ;;  %v6408_v47 = vmin.u32 %v4772_v3, %v10624_v32  ;;  %v4945_v4 = vor.u32 %v4944_v11, %v4943_v13  ;;  %vm4946_vm7 = vcmp.lt.s32.totalorder %v4927_v34, 1  ;;  %v10643_v1 = vpop.eup %6890 }
 0x65e   : > { %v12300_v46 = vsel %vm10638_vm3, 4294967295, %v12299_v46  ;;  %vm4949_vm13 = vcmp.lt.s32.totalorder %v4927_v34, 4  ;;  %12302 = vst [vmem:[#allocation19_spill] sm:$0xff] %v10643_v1  ;;  %vm4948_vm11 = vcmp.lt.s32.totalorder %v4927_v34, 3  ;;  %v4954_v8 = vsel %vm4946_vm7, %v4933_v26, %v4936_v51 }
 0x65f   : > { %12301 = vst [vmem:[#allocation11_spill] sm:$0xff] %v12300_v46  ;;  %v4951_v27 = vsel %vm4949_vm13, %v4939_v21, 2102212464  ;;  %v4955_v52 = vsel %vm4949_vm13, %v4942_v56, 920167782  ;;  %v4774_v53 = vclz %v6408_v47  ;;  %v4930_v60 = vshrl.u32 %v12026_v28, %v4929_v7 }
 0x660   : > { %vm4947_vm12 = vcmp.lt.s32.totalorder %v4927_v34, 2  ;;  %v4956_v22 = vsel %vm4948_vm11, %v4939_v21, %v4955_v52  ;;  %v4675_v11 = vshll.u32 %v10523_v17, %v10591_v36  ;;  %v4676_v13 = vshrl.u32 %v4658_v37, %v4674_v55 }
 0x661   : > { %v4957_v9 = vsel %vm4947_vm12, %v4954_v8, %v4956_v22  ;;  %v4958_v19 = vsel %vm4946_vm7, %v4936_v51, %v4939_v21  ;;  %v6409_v48 = vadd.s32 4294967294, %v4774_v53  ;;  %v4950_v63 = vsel %vm4946_vm7, %v4930_v60, %v4933_v26 }
 0x662   : > { %v4952_v3 = vsel %vm4948_vm11, %v4936_v51, %v4951_v27  ;;  %v4959_v7 = vsel %vm4949_vm13, %v4945_v4, 1326507024  ;;  %v10661_v52 = vmul.u32.u64.low %v10627_v49, %v4957_v9  ;;  %v10662_v6 = vmul.u32.u64.high %v10627_v49, %v4957_v9, %v10661_v52 }
 0x663   : > { %v4960_v47 = vsel %vm4948_vm11, %v4942_v56, %v4959_v7  ;;  %vm4821_vm4 = vcmp.gt.s32.totalorder %v4820_v58, 0  ;;  %v4680_v55 = vshll.u32 %v4679_v50, 23  ;;  %vm6410_vm15 = vcmp.lt.s32.totalorder %v6409_v48, 0 }
 0x664   : > { %v4961_v17 = vsel %vm4947_vm12, %v4958_v19, %v4960_v47  ;;  %v4822_v36 = vsel %vm4821_vm4, %v4820_v58, 0  ;;  %v4677_v37 = vor.u32 %v4676_v13, %v4675_v11  ;;  %v10666_v21 = vsel %vm6410_vm15, 0, %v6409_v48 }
 0x665   : > { %v10669_v26 = vmul.u32.u64.low %v10627_v49, %v4961_v17  ;;  %v10670_v51 = vmul.u32.u64.high %v10627_v49, %v4961_v17, %v10669_v26  ;;  %6892 = vcosq.f32 %v10603_v40  ;;  %v4782_v56 = vsub.s32 4294967266, %v10666_v21 }
 0x666   : > { %v4953_v4 = vsel %vm4947_vm12, %v4950_v63, %v4952_v3  ;;  %v4824_v27 = vand.u32 31, %v4822_v36  ;;  %v10678_v50 = vsel %vm10638_vm3, %v10241_v5, %v4479_v33  ;;  %v4762_v58 = vadd.s32 %v10539_v42, %v10550_v0 }
 0x667   : > { %v4972_v8 = vadd.s32 1, %v10662_v6  ;;  %v10685_v53 = vadd.f32 %v10264_v25, %v10402_v61  ;;  %v4681_v60 = vor.u32 4788187, %v4680_v55  ;;  %v4783_v22 = vadd.s32 127, %v4782_v56 }
 0x668   : > { %v4825_v11 = vsub.s32 32, %v4824_v27  ;;  %v10687_v34 = vshll.u32 %v4818_v24, 8  ;;  %v4684_v13 = vcvt.s32.f32 %v4677_v37  ;;  %v4969_v9 = vmul.u32 %v10627_v49, %v4953_v4 }
 0x669   : > { %vm4971_vm2 = vc.u32 %v10670_v51, %v10661_v52  ;;  %v10692_v33 = vshrl.u32 %v4822_v36, 5  ;;  %v4827_v0 = vshll.u32 %v12026_v28, %v4824_v27  ;;  %v4830_v25 = vshll.u32 %v12027_v35, %v4824_v27 }
 0x66a   : > { %v4973_v42 = vsel %vm4971_vm2, %v4972_v8, %v10662_v6  ;;  %v4833_v61 = vshll.u32 %v12028_v54, %v4824_v27  ;;  %v4828_v24 = vshrl.u32 %v12027_v35, %v4825_v11  ;;  %v4831_v48 = vshrl.u32 %v12028_v54, %v4825_v11 }
 0x66b   : > { %v4974_v19 = vadd.s32 %v4973_v42, %v4969_v9  ;;  %v4834_v49 = vshrl.u32 %v12029_v14, %v4825_v11  ;;  %v4778_v63 = vsub.s32 32, %v10666_v21  ;;  %v4784_v3 = vshll.u32 %v4783_v22, 23 }
 0x66c   : > { %v4836_v7 = vshll.u32 %v12029_v14, %v4824_v27  ;;  %v4837_v6 = vshrl.u32 %v12030_v20, %v4825_v11  ;;  %v4829_v55 = vor.u32 %v4828_v24, %v4827_v0  ;;  %v4832_v17 = vor.u32 %v4831_v48, %v4830_v25 }
 0x66d   : > { %v4975_v47 = vadd.s32 536870912, %v4974_v19  ;;  %v4835_v36 = vor.u32 %v4834_v49, %v4833_v61  ;;  %v4682_v37 = vand.u32 2147483647, %v4681_v60  ;;  %v4839_v56 = vshll.u32 %v12030_v20, %v4824_v27 }
 0x66e   : > { %v4838_v26 = vor.u32 %v4837_v6, %v4836_v7  ;;  %v4840_v4 = vshrl.u32 %v12022_v38, %v4825_v11  ;;  %vm4842_vm0 = vcmp.lt.s32.totalorder %v10692_v33, 1  ;;  %vm4845_vm6 = vcmp.lt.s32.totalorder %v10692_v33, 4 }
 0x66f   : > { %v10706_v8 = vshrl.u32 %v4975_v47, 30  ;;  %v5021_v22 = vand.u32 2139095040, %v10685_v53  ;;  %v10711_v9 = vpop.eup %6892  ;;  %v4780_v42 = vshrl.u32 %v4762_v58, %v4778_v63  ;;  %vm4844_vm8 = vcmp.lt.s32.totalorder %v10692_v33, 3 }
 0x670   : > { %12303 = vst [vmem:[#allocation15_spill] sm:$0xff] %v10711_v9  ;;  %v4841_v0 = vor.u32 %v4840_v4, %v4839_v56  ;;  %v4851_v60 = vsel %vm4845_vm6, %v4838_v26, 920167782  ;;  %v4785_v27 = vor.u32 4788187, %v4784_v3  ;;  %v4850_v61 = vsel %vm4842_vm0, %v4829_v55, %v4832_v17 }
 0x671   : > { %v4977_v25 = vshll.u32 %v10706_v8, 30  ;;  %v4852_v24 = vsel %vm4844_vm8, %v4835_v36, %v4851_v60  ;;  %v4685_v48 = vmul.f32 %v4684_v13, %v4682_v37  ;;  %v4779_v49 = vshll.u32 %v10624_v32, %v10666_v21 }
 0x672   : > { %vm4843_vm14 = vcmp.lt.s32.totalorder %v10692_v33, 2  ;;  %v4854_v58 = vsel %vm4842_vm0, %v4832_v17, %v4835_v36  ;;  %vm11989_vm5 = vcmp.lt.s32.totalorder %v10304_v29, 0  ;;  %vm4708_vm10 = vcmp.lt.s32.totalorder %v10418_v59, 0 }
 0x673   : > { %v10728_v63 = vsub.s32 %v4974_v19, %v4977_v25  ;;  %v4826_v3 = vshrl.u32 %v12026_v28, %v4825_v11  ;;  %v4847_v7 = vsel %vm4845_vm6, %v4835_v36, 2102212464  ;;  %v4855_v13 = vsel %vm4845_vm6, %v4841_v0, 1326507024 }
 0x674   : > { %v4781_v32 = vor.u32 %v4780_v42, %v4779_v49  ;;  %v4853_v21 = vsel %vm4843_vm14, %v4850_v61, %v4852_v24  ;;  %v4856_v6 = vsel %vm4844_vm8, %v4838_v26, %v4855_v13  ;;  %v5022_v47 = vshrl.u32 %v5021_v22, 23 }
 0x675   : > { %v4786_v37 = vand.u32 2147483647, %v4785_v27  ;;  %v4980_v19 = vsub.s32 0, %v10728_v63  ;;  %v4846_v11 = vsel %vm4842_vm0, %v4826_v3, %v4829_v55  ;;  %v4857_v36 = vsel %vm4843_vm14, %v4854_v58, %v4856_v6 }
 0x676   : > { %v4848_v56 = vsel %vm4844_vm8, %v4832_v17, %v4847_v7  ;;  %v10747_v4 = vmul.u32.u64.low %v10687_v34, %v4857_v36  ;;  %v10748_v42 = vmul.u32.u64.high %v10687_v34, %v4857_v36, %v10747_v4  ;;  %v6419_v0 = vadd.s32 4294967169, %v5022_v47 }
 0x677   : > { %v6416_v26 = vmin.u32 %v4980_v19, %v10728_v63  ;;  %v10752_v22 = vmul.u32.u64.low %v10687_v34, %v4853_v21  ;;  %v10753_v60 = vmul.u32.u64.high %v10687_v34, %v4853_v21, %v10752_v22  ;;  %v11952_v55 = vand.u32 2147483647, %v10685_v53 }
 0x678   : > { %v4686_v27 = vxor.u32 2147483648, %v4685_v48  ;;  %v4788_v25 = vcvt.s32.f32 %v4781_v32  ;;  %v4792_v61 = vsub.s32 4, %v10607_v12  ;;  %v5028_v24 = vadd.s32 1, %v6419_v0 }
 0x679   : > { %6894 = vsinq.f32 %v10603_v40  ;;  %v4982_v49 = vclz %v6416_v26  ;;  %v4849_v58 = vsel %vm4843_vm14, %v4846_v11, %v4848_v56  ;;  %vm4867_vm7 = vc.u32 %v10748_v42, %v10752_v22  ;;  %v10772_v40 = vpop.f32.mrb[23].mxu0  ;;  %v10788_v56 = vpop.permute.xlu1 %4093 }
 0x67a   : > { %6896 = vcosq.f32 %v10678_v50  ;;  %v10765_v3 = vmul.f32 %v4788_v25, %v4786_v37  ;;  %vm5029_vm13 = vcmp.gt.s32.totalorder %v5028_v24, 0  ;;  %v4868_v13 = vadd.s32 1, %v10753_v60 }
 0x67b   : > { %v6417_v7 = vadd.s32 4294967294, %v4982_v49  ;;  %v5025_v32 = vand.u32 8388607, %v11952_v55  ;;  %v5030_v21 = vsel %vm5029_vm13, %v5028_v24, 0  ;;  %v10776_v33 = vsel %vm11989_vm5, %v4686_v27, %v4685_v48 }
 0x67c   : > { %v10781_v6 = vsel %vm4708_vm10, %v4792_v61, %v10607_v12  ;;  %v4865_v47 = vmul.u32 %v10687_v34, %v4849_v58  ;;  %v5032_v37 = vand.u32 31, %v5030_v21  ;;  %v4970_v19 = vadd.s32 %v10661_v52, %v10670_v51 }
 0x67d   : > { %vm6418_vm11 = vcmp.lt.s32.totalorder %v6417_v7, 0  ;;  %v4869_v36 = vsel %vm4867_vm7, %v4868_v13, %v10753_v60  ;;  %v5026_v27 = vor.u32 8388608, %v5025_v32  ;;  %v10794_v25 = vadd.f32 %v10280_v16, %v10788_v56 }
 0x67e   : > { %v4985_v4 = vsel %vm6418_vm11, 0, %v6417_v7  ;;  %v4870_v0 = vadd.s32 %v4869_v36, %v4865_v47  ;;  %v5033_v26 = vsub.s32 32, %v5032_v37  ;;  %v5035_v34 = vshll.u32 %v12026_v28, %v5032_v37 }
 0x67f   : > { %v4990_v12 = vsub.s32 4294967266, %v4985_v4  ;;  %12304 = vst [vmem:[#allocation32_spill] sm:$0xff] %v10794_v25  ;;  %v5038_v60 = vshll.u32 %v12027_v35, %v5032_v37  ;;  %v5031_v49 = vshrl.u32 %v5030_v21, 5  ;;  %v5041_v58 = vshll.u32 %v12028_v54, %v5032_v37 }
 0x680   : > { %v4871_v52 = vadd.s32 536870912, %v4870_v0  ;;  %v5036_v51 = vshrl.u32 %v12027_v35, %v5033_v26  ;;  %v5039_v61 = vshrl.u32 %v12028_v54, %v5033_v26  ;;  %v5042_v7 = vshrl.u32 %v12029_v14, %v5033_v26 }
 0x681   : > { %v4991_v24 = vadd.s32 127, %v4990_v12  ;;  %v4986_v13 = vsub.s32 32, %v4985_v4  ;;  %v5044_v48 = vshll.u32 %v12029_v14, %v5032_v37  ;;  %v5045_v11 = vshrl.u32 %v12030_v20, %v5033_v26 }
 0x682   : > { %v10801_v32 = vshrl.u32 %v4871_v52, 30  ;;  %v5037_v47 = vor.u32 %v5036_v51, %v5035_v34  ;;  %v5040_v36 = vor.u32 %v5039_v61, %v5038_v60  ;;  %v5043_v17 = vor.u32 %v5042_v7, %v5041_v58 }
 0x683   : > { %v10803_v16 = vpop.eup %6894  ;;  %v4992_v55 = vshll.u32 %v4991_v24, 23  ;;  %v12308_v21 = vand.u32 2147483647, %v10304_v29  ;;  %v12311_v52 = vand.u32 2147483647, %v10418_v59  ;;  %v5047_v60 = vshll.u32 %v12030_v20, %v5032_v37 }
 0x684   : > { %12305 = vst [vmem:[#allocation31_spill] sm:$0xff] %v10801_v32  ;;  %12306 = vst [vmem:[#allocation7_spill] sm:$0xff] %v10803_v16  ;;  %v10807_v9 = vpop.eup %6896  ;;  %v4873_v51 = vshll.u32 %v10801_v32, 30  ;;  %v5048_v61 = vshrl.u32 %v12022_v38, %v5033_v26  ;;  %v5066_v24 = vshll.u32 %v5026_v27, 8  ;;  %vm4916_vm15 = vcmp.lt.s32.totalorder %v10505_v57, 0 }
 0x685   : > { %12307 = vst [vmem:[#allocation12_spill] sm:$0xff] %v10807_v9  ;;  %vm10811_vm12 = vcmp.le.f32.partialorder %v12308_v21, 0.7853982  ;;  %vm10817_vm4 = vcmp.le.f32.partialorder %v12311_v52, 0.7853982  ;;  %v4987_v58 = vshll.u32 %v10728_v63, %v4985_v4  ;;  %v5034_v7 = vshrl.u32 %v12026_v28, %v5033_v26 }
 0x686   : > { %v5046_v21 = vor.u32 %v5045_v11, %v5044_v48  ;;  %v5125_v16 = vand.u32 2139095040, %v10794_v25  ;;  %v10828_v52 = vsub.s32 %v4870_v0, %v4873_v51  ;;  %v5049_v30 = vor.u32 %v5048_v61, %v5047_v60 }
 0x687   : > { %vm5050_vm2 = vcmp.lt.s32.totalorder %v5031_v49, 1  ;;  %vm5053_vm0 = vcmp.lt.s32.totalorder %v5031_v49, 4  ;;  %v4988_v15 = vshrl.u32 %v4970_v19, %v4986_v13  ;;  %v4993_v1 = vor.u32 4788187, %v4992_v55 }
 0x688   : > { %v5055_v37 = vsel %vm5053_vm0, %v5043_v17, 2102212464  ;;  %v5058_v43 = vsel %vm5050_vm2, %v5037_v47, %v5040_v36  ;;  %v4876_v27 = vsub.s32 0, %v10828_v52  ;;  %vm5052_vm6 = vcmp.lt.s32.totalorder %v5031_v49, 3 }
 0x689   : > { %v5059_v45 = vsel %vm5053_vm0, %v5046_v21, 920167782  ;;  %v5062_v32 = vsel %vm5050_vm2, %v5040_v36, %v5043_v17  ;;  %v12314_v63 = vand.u32 2147483647, %v10505_v57  ;;  %vm5051_vm14 = vcmp.lt.s32.totalorder %v5031_v49, 2 }
 0x68a   : > { %v5054_v48 = vsel %vm5050_vm2, %v5034_v7, %v5037_v47  ;;  %v5060_v4 = vsel %vm5052_vm6, %v5043_v17, %v5059_v45  ;;  %v5063_v0 = vsel %vm5053_vm0, %v5049_v30, 1326507024  ;;  %v6412_v19 = vmin.u32 %v4876_v27, %v10828_v52  ;;  %v10847_v45 = vpop.f32.mrb[23].mxu1 }
 0x68b   : > { %vm10833_vm8 = vcmp.le.f32.partialorder %v12314_v63, 0.7853982  ;;  %v5056_v55 = vsel %vm5052_vm6, %v5040_v36, %v5055_v37  ;;  %v5061_v26 = vsel %vm5051_vm14, %v5058_v43, %v5060_v4  ;;  %v5064_v13 = vsel %vm5052_vm6, %v5046_v21, %v5063_v0 }
 0x68c   : > { %v4989_v51 = vor.u32 %v4988_v15, %v4987_v58  ;;  %v5065_v60 = vsel %vm5051_vm14, %v5062_v32, %v5064_v13  ;;  %v10840_v61 = vmul.u32.u64.low %v5066_v24, %v5061_v26  ;;  %v10841_v9 = vmul.u32.u64.high %v5066_v24, %v5061_v26, %v10840_v61 }
 0x68d   : > { %v4878_v63 = vclz %v6412_v19  ;;  %v10844_v46 = vmul.u32.u64.low %v5066_v24, %v5065_v60  ;;  %v10845_v5 = vmul.u32.u64.high %v5066_v24, %v5065_v60, %v10844_v46  ;;  %v5126_v47 = vshrl.u32 %v5125_v16, 23 }
 0x68e   : > { %6898 = vsinq.f32 %v10678_v50  ;;  %v4690_v30 = vsel %vm10811_vm12, %v10304_v29, %v10776_v33  ;;  %v4795_v43 = vsel %vm10817_vm4, 0, %v10781_v6  ;;  %v5057_v15 = vsel %vm5051_vm14, %v5054_v48, %v5056_v55 }
 0x68f   : > { %v4994_v17 = vand.u32 2147483647, %v4993_v1  ;;  %v12317_v46 = vsub.s32 4, %v10706_v8  ;;  %v6413_v36 = vadd.s32 4294967294, %v4878_v63  ;;  %v6423_v50 = vadd.s32 4294967169, %v5126_v47 }
 0x690   : > { %v12318_v16 = vxor.u32 2147483648, %v10765_v3  ;;  %v5076_v58 = vadd.s32 1, %v10841_v9  ;;  %v11967_v6 = vand.u32 2147483647, %v10794_v25  ;;  %v10872_v1 = vadd.f32 %v10346_v31, %v10788_v56 }
 0x691   : > { %v5001_v32 = vsel %vm4916_vm15, %v12317_v46, %v10706_v8  ;;  %v4996_v49 = vcvt.s32.f32 %v4989_v51  ;;  %vm6414_vm7 = vcmp.lt.s32.totalorder %v6413_v36, 0  ;;  %v5073_v7 = vmul.u32 %v5066_v24, %v5057_v15 }
 0x692   : > { %v4791_v33 = vsel %vm4708_vm10, %v12318_v16, %v10765_v3  ;;  %12319 = vst [vmem:[#allocation23_spill] sm:$0xff] %v10872_v1  ;;  %vm5075_vm13 = vc.u32 %v10845_v5, %v10840_v61  ;;  %6900 = vcosq.f32 %v4690_v30  ;;  %v10876_v8 = vsel %vm6414_vm7, 0, %v6413_v36 }
 0x693   : > { %v5077_v21 = vsel %vm5075_vm13, %v5076_v58, %v10841_v9  ;;  %v5132_v3 = vadd.s32 1, %v6423_v50  ;;  %v10882_v37 = vsel %vm10817_vm4, %v10418_v59, %v4791_v33  ;;  %v10884_v27 = vmul.f32 %v4996_v49, %v4994_v17 }
 0x694   : > { %v5003_v31 = vsel %vm10833_vm8, 0, %v5001_v32  ;;  %v5078_v24 = vadd.s32 %v5077_v21, %v5073_v7  ;;  %v4886_v48 = vsub.s32 4294967266, %v10876_v8  ;;  %v5129_v4 = vand.u32 8388607, %v11967_v6 }
 0x695   : > { %vm5133_vm10 = vcmp.gt.s32.totalorder %v5132_v3, 0  ;;  %v5333_v9 = vand.u32 2139095040, %v10872_v1  ;;  %v12320_v34 = vsel %vm10567_vm1, 0, %v10598_v2  ;;  %6902 = vsinq.f32 %v4690_v30 }
 0x696   : > { %v10896_v0 = vadd.s32 3, %v12320_v34  ;;  %v5079_v19 = vadd.s32 536870912, %v5078_v24  ;;  %v5134_v55 = vsel %vm5133_vm10, %v5132_v3, 0  ;;  %6904 = vcosq.f32 %v10882_v37 }
 0x697   : > { %v10899_v26 = vadd.s32 3, %v4795_v43  ;;  %v10901_v13 = vadd.s32 3, %v5003_v31  ;;  %v5136_v51 = vand.u32 31, %v5134_v55  ;;  %v4866_v63 = vadd.s32 %v10752_v22, %v10748_v42 }
 0x698   : > { %12321 = vst [vmem:[#allocation6_spill] sm:$0xff] %v10896_v0  ;;  %v10906_v41 = vshrl.u32 %v5079_v19, 30  ;;  %v10909_v47 = vpop.eup %6898  ;;  %v4887_v30 = vadd.s32 127, %v4886_v48  ;;  %v5130_v15 = vor.u32 8388608, %v5129_v4  ;;  %v5334_v46 = vshrl.u32 %v5333_v9, 23 }
 0x699   : > { %12322 = vst [vmem:[#allocation29_spill] sm:$0xff] %v10899_v26  ;;  %12323 = vst [vmem:[#allocation37_spill] sm:$0xff] %v10901_v13  ;;  %v5137_v17 = vsub.s32 32, %v5136_v51  ;;  %v5135_v32 = vshrl.u32 %v5134_v55, 5  ;;  %v5139_v36 = vshll.u32 %v12026_v28, %v5136_v51  ;;  %v5142_v50 = vshll.u32 %v12027_v35, %v5136_v51 }
 0x69a   : > { %12324 = vst [vmem:[#allocation9_spill] sm:$0xff] %v10906_v41  ;;  %v5081_v43 = vshll.u32 %v10906_v41, 30  ;;  %v5145_v22 = vshll.u32 %v12028_v54, %v5136_v51  ;;  %v5148_v49 = vshll.u32 %v12029_v14, %v5136_v51  ;;  %v5151_v21 = vshll.u32 %v12030_v20, %v5136_v51 }
 0x69b   : > { %v5140_v16 = vshrl.u32 %v12027_v35, %v5137_v17  ;;  %v5143_v42 = vshrl.u32 %v12028_v54, %v5137_v17  ;;  %v5146_v33 = vshrl.u32 %v12029_v14, %v5137_v17  ;;  %v5149_v7 = vshrl.u32 %v12030_v20, %v5137_v17 }
 0x69c   : > { %v10918_v58 = vsub.s32 %v5078_v24, %v5081_v43  ;;  %v10923_v3 = vpop.eup %6900  ;;  %v5152_v9 = vshrl.u32 %v12022_v38, %v5137_v17  ;;  %v4882_v34 = vsub.s32 32, %v10876_v8  ;;  %v5170_v24 = vshll.u32 %v5130_v15, 8 }
 0x69d   : > { %v5141_v31 = vor.u32 %v5140_v16, %v5139_v36  ;;  %v5144_v48 = vor.u32 %v5143_v42, %v5142_v50  ;;  %v5147_v4 = vor.u32 %v5146_v33, %v5145_v22  ;;  %v5150_v55 = vor.u32 %v5149_v7, %v5148_v49 }
 0x69e   : > { %v5084_v19 = vsub.s32 0, %v10918_v58  ;;  %v4883_v43 = vshll.u32 %v10828_v52, %v10876_v8  ;;  %v4888_v6 = vshll.u32 %v4887_v30, 23  ;;  %v5153_v2 = vor.u32 %v5152_v9, %v5151_v21 }
 0x69f   : > { %v6431_v60 = vadd.s32 4294967169, %v5334_v46  ;;  %v10930_v51 = vpop.eup %6902  ;;  %v5138_v50 = vshrl.u32 %v12026_v28, %v5137_v17  ;;  %vm5154_vm1 = vcmp.lt.s32.totalorder %v5135_v32, 1  ;;  %vm5157_vm11 = vcmp.lt.s32.totalorder %v5135_v32, 4 }
 0x6a0   : > { %v6420_v36 = vmin.u32 %v5084_v19, %v10918_v58  ;;  %v10934_v16 = vpop.eup %6904  ;;  %vm5156_vm4 = vcmp.lt.s32.totalorder %v5135_v32, 3  ;;  %v5159_v42 = vsel %vm5157_vm11, %v5147_v4, 2102212464  ;;  %v5162_v22 = vsel %vm5154_vm1, %v5141_v31, %v5144_v48 }
 0x6a1   : > { %12325 = vst [vmem:[#allocation42_spill] sm:$0xff] %v10934_v16  ;;  %v5163_v15 = vsel %vm5157_vm11, %v5150_v55, 920167782  ;;  %vm5155_vm2 = vcmp.lt.s32.totalorder %v5135_v32, 2  ;;  %v5166_v8 = vsel %vm5154_vm1, %v5144_v48, %v5147_v4  ;;  %v4884_v30 = vshrl.u32 %v4866_v63, %v4882_v34 }
 0x6a2   : > { %v5086_v33 = vclz %v6420_v36  ;;  %v5164_v52 = vsel %vm5156_vm4, %v5147_v4, %v5163_v15  ;;  %v5158_v46 = vsel %vm5154_vm1, %v5138_v50, %v5141_v31  ;;  %v5167_v7 = vsel %vm5157_vm11, %v5153_v2, 1326507024 }
 0x6a3   : > { %v5165_v49 = vsel %vm5155_vm2, %v5162_v22, %v5164_v52  ;;  %v5160_v9 = vsel %vm5156_vm4, %v5144_v48, %v5159_v42  ;;  %v5168_v17 = vsel %vm5156_vm4, %v5150_v55, %v5167_v7  ;;  %v5340_v19 = vadd.s32 1, %v6431_v60  ;;  %v10960_v55 = vpop.permute.xlu1 %4097 }
 0x6a4   : > { %v6421_v21 = vadd.s32 4294967294, %v5086_v33  ;;  %v4889_v13 = vor.u32 4788187, %v4888_v6  ;;  %v5169_v0 = vsel %vm5155_vm2, %v5166_v8, %v5168_v17  ;;  %v4885_v63 = vor.u32 %v4884_v30, %v4883_v43 }
 0x6a5   : > { %v10938_v16 = vmul.u32.u64.low %v5170_v24, %v5165_v49  ;;  %v10939_v59 = vmul.u32.u64.high %v5170_v24, %v5165_v49, %v10938_v16  ;;  %v10942_v36 = vmul.u32.u64.low %v5170_v24, %v5169_v0  ;;  %v10943_v15 = vmul.u32.u64.high %v5170_v24, %v5169_v0, %v10942_v36 }
 0x6a6   : > { %vm6422_vm0 = vcmp.lt.s32.totalorder %v6421_v21, 0  ;;  %vm5341_vm6 = vcmp.gt.s32.totalorder %v5340_v19, 0  ;;  %v5161_v2 = vsel %vm5155_vm2, %v5158_v46, %v5160_v9  ;;  %6906 = vsinq.f32 %v10882_v37 }
 0x6a7   : > { %v10945_v31 = vsel %vm6422_vm0, 0, %v6421_v21  ;;  %v5342_v48 = vsel %vm5341_vm6, %v5340_v19, 0  ;;  %v12326_v6 = vxor.u32 2147483648, %v10884_v27  ;;  %v12327_v4 = vand.u32 2147483647, %v10872_v1 }
 0x6a8   : > { %v10958_v0 = vadd.f32 %v10437_v23, %v10788_v56  ;;  %v4890_v32 = vand.u32 2147483647, %v4889_v13  ;;  %v5180_v43 = vadd.s32 1, %v10939_v59  ;;  %v5344_v50 = vand.u32 31, %v5342_v48 }
 0x6a9   : > { %v4999_v60 = vsel %vm4916_vm15, %v12326_v6, %v10884_v27  ;;  %v5337_v34 = vand.u32 8388607, %v12327_v4  ;;  %v10965_v37 = vadd.f32 %v10492_v10, %v10788_v56  ;;  %v5094_v42 = vsub.s32 4294967266, %v10945_v31 }
 0x6aa   : > { %v5177_v27 = vmul.u32 %v5170_v24, %v5161_v2  ;;  %vm5179_vm15 = vc.u32 %v10943_v15, %v10938_v16  ;;  %v10972_v23 = vadd.f32 %v10577_v62, %v10960_v55  ;;  %v10977_v13 = vsel %vm10833_vm8, %v10505_v57, %v4999_v60 }
 0x6ab   : > { %v4892_v22 = vcvt.s32.f32 %v4885_v63  ;;  %v5181_v33 = vsel %vm5179_vm15, %v5180_v43, %v10939_v59  ;;  %v5345_v10 = vsub.s32 32, %v5344_v50  ;;  %v5074_v56 = vadd.s32 %v10840_v61, %v10845_v5 }
 0x6ac   : > { %12328 = vst [vmem:[#allocation22_spill] sm:$0xff] %v10972_v23  ;;  %v5182_v24 = vadd.s32 %v5181_v33, %v5177_v27  ;;  %v5338_v52 = vor.u32 8388608, %v5337_v34  ;;  %v5090_v49 = vsub.s32 32, %v10945_v31  ;;  %v5095_v7 = vadd.s32 127, %v5094_v42 }
 0x6ad   : > { %v4893_v30 = vmul.f32 %v4892_v22, %v4890_v32  ;;  %v5348_v62 = vshrl.u32 %v12027_v35, %v5345_v10  ;;  %v5351_v46 = vshrl.u32 %v12028_v54, %v5345_v10  ;;  %v5354_v11 = vshrl.u32 %v12029_v14, %v5345_v10 }
 0x6ae   : > { %v5183_v21 = vadd.s32 536870912, %v5182_v24  ;;  %v5347_v59 = vshll.u32 %v12026_v28, %v5344_v50  ;;  %v5350_v9 = vshll.u32 %v12027_v35, %v5344_v50  ;;  %v5353_v5 = vshll.u32 %v12028_v54, %v5344_v50 }
 0x6af   : > { %v5356_v61 = vshll.u32 %v12029_v14, %v5344_v50  ;;  %v5357_v17 = vshrl.u32 %v12030_v20, %v5345_v10  ;;  %v5343_v36 = vshrl.u32 %v5342_v48, 5  ;;  %v5359_v63 = vshll.u32 %v12030_v20, %v5344_v50 }
 0x6b0   : > { %v10992_v19 = vshrl.u32 %v5183_v21, 30  ;;  %v5360_v2 = vshrl.u32 %v12022_v38, %v5345_v10  ;;  %v5349_v6 = vor.u32 %v5348_v62, %v5347_v59  ;;  %v5352_v60 = vor.u32 %v5351_v46, %v5350_v9  ;;  %v10996_v32 = vpop.eup %6906 }
 0x6b1   : > { %v5355_v4 = vor.u32 %v5354_v11, %v5353_v5  ;;  %v5358_v34 = vor.u32 %v5357_v17, %v5356_v61  ;;  %12329 = vst [vmem:[#allocation30_spill] sm:$0xff] %v10996_v32  ;;  %vm4812_vm8 = vcmp.lt.s32.totalorder %v10546_v44, 0  ;;  %v4894_v43 = vxor.u32 2147483648, %v4893_v30 }
 0x6b2   : > { %v5096_v42 = vshll.u32 %v5095_v7, 23  ;;  %v5185_v27 = vshll.u32 %v10992_v19, 30  ;;  %v5361_v22 = vor.u32 %v5360_v2, %v5359_v63  ;;  %v5091_v48 = vshll.u32 %v10918_v58, %v10945_v31 }
 0x6b3   : > { %v5092_v33 = vshrl.u32 %v5074_v56, %v5090_v49  ;;  %v5378_v50 = vshll.u32 %v5338_v52, 8  ;;  %v5229_v21 = vand.u32 2139095040, %v10958_v0  ;;  %v5346_v46 = vshrl.u32 %v12026_v28, %v5345_v10 }
 0x6b4   : > { %v11003_v62 = vsub.s32 %v5182_v24, %v5185_v27  ;;  %vm5362_vm14 = vcmp.lt.s32.totalorder %v5343_v36, 1  ;;  %vm5365_vm7 = vcmp.lt.s32.totalorder %v5343_v36, 4  ;;  %v12330_v11 = vand.u32 2147483647, %v10546_v44 }
 0x6b5   : > { %v5370_v59 = vsel %vm5362_vm14, %v5349_v6, %v5352_v60  ;;  %v5371_v9 = vsel %vm5365_vm7, %v5358_v34, 920167782  ;;  %v5374_v58 = vsel %vm5362_vm14, %v5352_v60, %v5355_v4  ;;  %v5375_v31 = vsel %vm5365_vm7, %v5361_v22, 1326507024 }
 0x6b6   : > { %vm11008_vm13 = vcmp.le.f32.partialorder %v12330_v11, 0.7853982  ;;  %v5097_v56 = vor.u32 4788187, %v5096_v42  ;;  %vm5124_vm10 = vcmp.lt.s32.totalorder %v10794_v25, 0  ;;  %v5188_v24 = vsub.s32 0, %v11003_v62 }
 0x6b7   : > { %vm5364_vm1 = vcmp.lt.s32.totalorder %v5343_v36, 3  ;;  %v5367_v10 = vsel %vm5365_vm7, %v5355_v4, 2102212464  ;;  %v5093_v52 = vor.u32 %v5092_v33, %v5091_v48  ;;  %vm5363_vm11 = vcmp.lt.s32.totalorder %v5343_v36, 2 }
 0x6b8   : > { %v5372_v49 = vsel %vm5364_vm1, %v5355_v4, %v5371_v9  ;;  %v5376_v5 = vsel %vm5364_vm1, %v5358_v34, %v5375_v31  ;;  %v6424_v61 = vmin.u32 %v5188_v24, %v11003_v62  ;;  %v5366_v17 = vsel %vm5362_vm14, %v5346_v46, %v5349_v6 }
 0x6b9   : > { %v5373_v63 = vsel %vm5363_vm11, %v5370_v59, %v5372_v49  ;;  %v5377_v2 = vsel %vm5363_vm11, %v5374_v58, %v5376_v5  ;;  %v5368_v27 = vsel %vm5364_vm1, %v5352_v60, %v5367_v10  ;;  %v5230_v11 = vshrl.u32 %v5229_v21, 23 }
 0x6ba   : > { %v11020_v42 = vmul.u32.u64.low %v5378_v50, %v5377_v2  ;;  %v11021_v22 = vmul.u32.u64.high %v5378_v50, %v5377_v2, %v11020_v42  ;;  %v5098_v8 = vand.u32 2147483647, %v5097_v56  ;;  %v12333_v57 = vand.u32 2147483647, %v10794_v25 }
 0x6bb   : > { %v5190_v4 = vclz %v6424_v61  ;;  %v11029_v34 = vmul.u32.u64.low %v5378_v50, %v5373_v63  ;;  %v11030_v33 = vmul.u32.u64.high %v5378_v50, %v5373_v63, %v11029_v34  ;;  %6908 = vcosq.f32 %v10977_v13 }
 0x6bc   : > { %vm11025_vm4 = vcmp.le.f32.partialorder %v12333_v57, 0.7853982  ;;  %v4895_v6 = vsel %vm4812_vm8, %v4894_v43, %v4893_v30  ;;  %v5208_v60 = vsub.s32 4, %v10992_v19  ;;  %v6427_v21 = vadd.s32 4294967169, %v5230_v11 }
 0x6bd   : > { %v5100_v46 = vcvt.s32.f32 %v5093_v52  ;;  %v6425_v59 = vadd.s32 4294967294, %v5190_v4  ;;  %v5369_v57 = vsel %vm5363_vm11, %v5366_v17, %v5368_v27  ;;  %v12336_v9 = vand.u32 2147483647, %v10958_v0 }
 0x6be   : > { %6910 = vsinq.f32 %v10977_v13  ;;  %vm5387_vm2 = vc.u32 %v11021_v22, %v11029_v34  ;;  %v5236_v31 = vadd.s32 1, %v6427_v21  ;;  %v5437_v56 = vand.u32 2139095040, %v10965_v37 }
 0x6bf   : > { %v5233_v58 = vand.u32 8388607, %v12336_v9  ;;  %v4898_v30 = vsel %vm11008_vm13, %v10546_v44, %v4895_v6  ;;  %v11047_v43 = vmul.f32 %v5100_v46, %v5098_v8  ;;  %vm6426_vm0 = vcmp.lt.s32.totalorder %v6425_v59, 0 }
 0x6c0   : > { %v5388_v36 = vadd.s32 1, %v11030_v33  ;;  %v5193_v24 = vsel %vm6426_vm0, 0, %v6425_v59  ;;  %v11053_v13 = vsel %vm5124_vm10, %v5208_v60, %v10992_v19  ;;  %v5385_v10 = vmul.u32 %v5378_v50, %v5369_v57 }
 0x6c1   : > { %vm5237_vm6 = vcmp.gt.s32.totalorder %v5236_v31, 0  ;;  %v5198_v52 = vsub.s32 4294967266, %v5193_v24  ;;  %v5234_v5 = vor.u32 8388608, %v5233_v58  ;;  %v11972_v61 = vand.u32 2147483647, %v10965_v37 }
 0x6c2   : > { %v5389_v49 = vsel %vm5387_vm2, %v5388_v36, %v11030_v33  ;;  %6912 = vcosq.f32 %v4898_v30  ;;  %v5238_v17 = vsel %vm5237_vm6, %v5236_v31, 0  ;;  %v5438_v63 = vshrl.u32 %v5437_v56, 23 }
 0x6c3   : > { %v5390_v8 = vadd.s32 %v5389_v49, %v5385_v10  ;;  %6914 = vsinq.f32 %v4898_v30  ;;  %v5194_v2 = vsub.s32 32, %v5193_v24  ;;  %v5199_v27 = vadd.s32 127, %v5198_v52 }
 0x6c4   : > { %v5240_v42 = vand.u32 31, %v5238_v17  ;;  %v5178_v19 = vadd.s32 %v10938_v16, %v10943_v15  ;;  %v11063_v60 = vshll.u32 %v5234_v5, 8  ;;  %v11067_v21 = vand.u32 8388607, %v11972_v61 }
 0x6c5   : > { %v5391_v4 = vadd.s32 536870912, %v5390_v8  ;;  %v5200_v33 = vshll.u32 %v5199_v27, 23  ;;  %v11069_v46 = vpop.eup %6908  ;;  %v5195_v59 = vshll.u32 %v11003_v62, %v5193_v24  ;;  %v6435_v16 = vadd.s32 4294967169, %v5438_v63 }
 0x6c6   : > { %v5241_v6 = vsub.s32 32, %v5240_v42  ;;  %12337 = vst [vmem:[#allocation21_spill] sm:$0xff] %v11069_v46  ;;  %v5541_v15 = vand.u32 2139095040, %v10972_v23  ;;  %v5196_v9 = vshrl.u32 %v5178_v19, %v5194_v2  ;;  %v5243_v58 = vshll.u32 %v12026_v28, %v5240_v42 }
 0x6c7   : > { %v11072_v57 = vshrl.u32 %v5391_v4, 30  ;;  %v5246_v56 = vshll.u32 %v12027_v35, %v5240_v42  ;;  %v5249_v62 = vshll.u32 %v12028_v54, %v5240_v42  ;;  %v5201_v52 = vor.u32 4788187, %v5200_v33 }
 0x6c8   : > { %v5244_v31 = vshrl.u32 %v12027_v35, %v5241_v6  ;;  %v11078_v30 = vpop.eup %6910  ;;  %v5247_v10 = vshrl.u32 %v12028_v54, %v5241_v6  ;;  %v5250_v24 = vshrl.u32 %v12029_v14, %v5241_v6  ;;  %v5239_v49 = vshrl.u32 %v5238_v17, 5 }
 0x6c9   : > { %12338 = vst [vmem:[#allocation20_spill] sm:$0xff] %v11078_v30  ;;  %v5393_v36 = vshll.u32 %v11072_v57, 30  ;;  %v5252_v5 = vshll.u32 %v12029_v14, %v5240_v42  ;;  %v5253_v63 = vshrl.u32 %v12030_v20, %v5241_v6  ;;  %v5197_v61 = vor.u32 %v5196_v9, %v5195_v59 }
 0x6ca   : > { %v5245_v27 = vor.u32 %v5244_v31, %v5243_v58  ;;  %v5248_v19 = vor.u32 %v5247_v10, %v5246_v56  ;;  %v5251_v4 = vor.u32 %v5250_v24, %v5249_v62  ;;  %v5255_v11 = vshll.u32 %v12030_v20, %v5240_v42 }
 0x6cb   : > { %v11086_v2 = vsub.s32 %v5390_v8, %v5393_v36  ;;  %v5254_v50 = vor.u32 %v5253_v63, %v5252_v5  ;;  %v5256_v46 = vshrl.u32 %v12022_v38, %v5241_v6  ;;  %v5242_v17 = vshrl.u32 %v12026_v28, %v5241_v6 }
 0x6cc   : > { %v11090_v30 = vpop.eup %6912  ;;  %v5442_v32 = vor.u32 8388608, %v11067_v21  ;;  %v5444_v26 = vadd.s32 1, %v6435_v16  ;;  %v5202_v58 = vand.u32 2147483647, %v5201_v52  ;;  %vm5258_vm15 = vcmp.lt.s32.totalorder %v5239_v49, 1 }
 0x6cd   : > { %v5396_v33 = vsub.s32 0, %v11086_v2  ;;  %v11095_v8 = vpop.eup %6914  ;;  %v5257_v31 = vor.u32 %v5256_v46, %v5255_v11  ;;  %vm5261_vm14 = vcmp.lt.s32.totalorder %v5239_v49, 4  ;;  %vm5260_vm7 = vcmp.lt.s32.totalorder %v5239_v49, 3 }
 0x6ce   : > { %v5263_v42 = vsel %vm5261_vm14, %v5251_v4, 2102212464  ;;  %v5266_v9 = vsel %vm5258_vm15, %v5245_v27, %v5248_v19  ;;  %v5204_v56 = vcvt.s32.f32 %v5197_v61  ;;  %v5262_v36 = vsel %vm5258_vm15, %v5242_v17, %v5245_v27 }
 0x6cf   : > { %v6432_v59 = vmin.u32 %v5396_v33, %v11086_v2  ;;  %v5264_v10 = vsel %vm5260_vm7, %v5248_v19, %v5263_v42  ;;  %v5267_v62 = vsel %vm5261_vm14, %v5254_v50, 920167782  ;;  %vm5259_vm1 = vcmp.lt.s32.totalorder %v5239_v49, 2 }
 0x6d0   : > { %v5268_v21 = vsel %vm5260_vm7, %v5251_v4, %v5267_v62  ;;  %v5270_v16 = vsel %vm5258_vm15, %v5248_v19, %v5251_v4  ;;  %v11100_v24 = vmul.f32 %v5204_v56, %v5202_v58  ;;  %v5271_v46 = vsel %vm5261_vm14, %v5257_v31, 1326507024 }
 0x6d1   : > { %v5398_v6 = vclz %v6432_v59  ;;  %v5269_v11 = vsel %vm5259_vm1, %v5266_v9, %v5268_v21  ;;  %v5542_v52 = vshrl.u32 %v5541_v15, 23  ;;  %v5265_v63 = vsel %vm5259_vm1, %v5262_v36, %v5264_v10 }
 0x6d2   : > { %v5272_v33 = vsel %vm5260_vm7, %v5254_v50, %v5271_v46  ;;  %vm5445_vm11 = vcmp.gt.s32.totalorder %v5444_v26, 0  ;;  %v11104_v27 = vmul.u32.u64.low %v11063_v60, %v5269_v11  ;;  %v11105_v17 = vmul.u32.u64.high %v11063_v60, %v5269_v11, %v11104_v27 }
 0x6d3   : > { %v6433_v5 = vadd.s32 4294967294, %v5398_v6  ;;  %v5273_v61 = vsel %vm5259_vm1, %v5270_v16, %v5272_v33  ;;  %v5446_v59 = vsel %vm5445_vm11, %v5444_v26, 0  ;;  %v11976_v58 = vand.u32 2147483647, %v10972_v23 }
 0x6d4   : > { %v11109_v19 = vmul.u32.u64.low %v11063_v60, %v5273_v61  ;;  %v11110_v4 = vmul.u32.u64.high %v11063_v60, %v5273_v61, %v11109_v19  ;;  %v5386_v15 = vadd.s32 %v11029_v34, %v11021_v22  ;;  %v5448_v50 = vand.u32 31, %v5446_v59 }
 0x6d5   : > { %vm6434_vm2 = vcmp.lt.s32.totalorder %v6433_v5, 0  ;;  %v11115_v31 = vshll.u32 %v5442_v32, 8  ;;  %v5206_v42 = vxor.u32 2147483648, %v11100_v24  ;;  %v5281_v26 = vmul.u32 %v11063_v60, %v5265_v63 }
 0x6d6   : > { %v5401_v49 = vsel %vm6434_vm2, 0, %v6433_v5  ;;  %v5284_v36 = vadd.s32 1, %v11105_v17  ;;  %v11120_v10 = vshrl.u32 %v5446_v59, 5  ;;  %v5449_v62 = vsub.s32 32, %v5448_v50 }
 0x6d7   : > { %v5402_v9 = vsub.s32 32, %v5401_v49  ;;  %v5406_v56 = vsub.s32 4294967266, %v5401_v49  ;;  %v6439_v6 = vadd.s32 4294967169, %v5542_v52  ;;  %vm5283_vm0 = vc.u32 %v11110_v4, %v11104_v27 }
 0x6d8   : > { %v5451_v22 = vshll.u32 %v12026_v28, %v5448_v50  ;;  %v11127_v32 = vand.u32 8388607, %v11976_v58  ;;  %v5285_v34 = vsel %vm5283_vm0, %v5284_v36, %v11105_v17  ;;  %v5452_v60 = vshrl.u32 %v12027_v35, %v5449_v62 }
 0x6d9   : > { %v5407_v21 = vadd.s32 127, %v5406_v56  ;;  %v5454_v16 = vshll.u32 %v12027_v35, %v5448_v50  ;;  %v5455_v11 = vshrl.u32 %v12028_v54, %v5449_v62  ;;  %v5403_v46 = vshll.u32 %v11086_v2, %v5401_v49 }
 0x6da   : > { %v5404_v52 = vshrl.u32 %v5386_v15, %v5402_v9  ;;  %v5286_v63 = vadd.s32 %v5285_v34, %v5281_v26  ;;  %vm11987_vm6 = vcmp.lt.s32.totalorder %v10685_v53, 0  ;;  %v5453_v33 = vor.u32 %v5452_v60, %v5451_v22 }
 0x6db   : > { %v5408_v5 = vshll.u32 %v5407_v21, 23  ;;  %v5456_v61 = vor.u32 %v5455_v11, %v5454_v16  ;;  %v5457_v59 = vshll.u32 %v12028_v54, %v5448_v50  ;;  %v5458_v19 = vshrl.u32 %v12029_v14, %v5449_v62 }
 0x6dc   : > { %v5287_v17 = vadd.s32 536870912, %v5286_v63  ;;  %v5460_v56 = vshll.u32 %v12029_v14, %v5448_v50  ;;  %v5461_v36 = vshrl.u32 %v12030_v20, %v5449_v62  ;;  %vm5466_vm15 = vcmp.lt.s32.totalorder %v11120_v10, 1 }
 0x6dd   : > { %v5409_v58 = vor.u32 4788187, %v5408_v5  ;;  %v5459_v2 = vor.u32 %v5458_v19, %v5457_v59  ;;  %v5463_v15 = vshll.u32 %v12030_v20, %v5448_v50  ;;  %v5464_v49 = vshrl.u32 %v12022_v38, %v5449_v62 }
 0x6de   : > { %v12339_v9 = vand.u32 2147483647, %v10685_v53  ;;  %v5405_v21 = vor.u32 %v5404_v52, %v5403_v46  ;;  %v11148_v22 = vshrl.u32 %v5287_v17, 30  ;;  %v5450_v34 = vshrl.u32 %v12026_v28, %v5449_v62 }
 0x6df   : > { %v5462_v60 = vor.u32 %v5461_v36, %v5460_v56  ;;  %v5465_v16 = vor.u32 %v5464_v49, %v5463_v15  ;;  %vm5467_vm7 = vcmp.lt.s32.totalorder %v11120_v10, 2  ;;  %vm5469_vm1 = vcmp.lt.s32.totalorder %v11120_v10, 4 }
 0x6e0   : > { %vm11144_vm14 = vcmp.le.f32.partialorder %v12339_v9, 0.7853982  ;;  %12342 = vst [vmem:[#allocation35_spill] sm:$0xff] %v11148_v22  ;;  %v5474_v50 = vsel %vm5466_vm15, %v5453_v33, %v5456_v61  ;;  %v5289_v11 = vshll.u32 %v11148_v22, 30  ;;  %vm5468_vm11 = vcmp.lt.s32.totalorder %v11120_v10, 3 }
 0x6e1   : > { %v5471_v5 = vsel %vm5469_vm1, %v5459_v2, 2102212464  ;;  %v5475_v59 = vsel %vm5469_vm1, %v5462_v60, 920167782  ;;  %v5410_v46 = vand.u32 2147483647, %v5409_v58  ;;  %v5478_v62 = vsel %vm5466_vm15, %v5456_v61, %v5459_v2 }
 0x6e2   : > { %v5476_v52 = vsel %vm5468_vm11, %v5459_v2, %v5475_v59  ;;  %v5479_v19 = vsel %vm5469_vm1, %v5465_v16, 1326507024  ;;  %v5412_v17 = vcvt.s32.f32 %v5405_v21  ;;  %v11159_v56 = vsub.s32 %v5286_v63, %v5289_v11 }
 0x6e3   : > { %v5470_v36 = vsel %vm5466_vm15, %v5450_v34, %v5453_v33  ;;  %v5477_v15 = vsel %vm5467_vm7, %v5474_v50, %v5476_v52  ;;  %v5472_v49 = vsel %vm5468_vm11, %v5456_v61, %v5471_v5  ;;  %v5480_v9 = vsel %vm5468_vm11, %v5462_v60, %v5479_v19 }
 0x6e4   : > { %v11166_v22 = vmul.u32.u64.low %v11115_v31, %v5477_v15  ;;  %v11167_v41 = vmul.u32.u64.high %v11115_v31, %v5477_v15, %v11166_v22  ;;  %v12343_v58 = vxor.u32 2147483648, %v11047_v43  ;;  %v5207_v33 = vsel %vm5124_vm10, %v5206_v42, %v11100_v24 }
 0x6e5   : > { %v5292_v2 = vsub.s32 0, %v11159_v56  ;;  %v5481_v61 = vsel %vm5467_vm7, %v5478_v62, %v5480_v9  ;;  %v11181_v21 = vmul.f32 %v5412_v17, %v5410_v46  ;;  %v5548_v16 = vadd.s32 1, %v6439_v6 }
 0x6e6   : > { %v5103_v63 = vsel %vm11987_vm6, %v12343_v58, %v11047_v43  ;;  %v11184_v34 = vmul.u32.u64.low %v11115_v31, %v5481_v61  ;;  %v11185_v60 = vmul.u32.u64.high %v11115_v31, %v5481_v61, %v11184_v34  ;;  %v12344_v43 = vsel %vm11025_vm4, 0, %v11053_v13 }
 0x6e7   : > { %v11191_v50 = vadd.s32 3, %v12344_v43  ;;  %v6428_v24 = vmin.u32 %v5292_v2, %v11159_v56  ;;  %v5473_v42 = vsel %vm5467_vm7, %v5470_v36, %v5472_v49  ;;  %v5546_v11 = vor.u32 8388608, %v11127_v32 }
 0x6e8   : > { %v11200_v5 = vsel %vm11144_vm14, %v10685_v53, %v5103_v63  ;;  %v5492_v59 = vadd.s32 1, %v11167_v41  ;;  %vm5549_vm10 = vcmp.gt.s32.totalorder %v5548_v16, 0  ;;  %v11207_v13 = vsel %vm11025_vm4, %v10794_v25, %v5207_v33 }
 0x6e9   : > { %12345 = vst [vmem:[#allocation38_spill] sm:$0xff] %v11191_v50  ;;  %v5282_v10 = vadd.s32 %v11104_v27, %v11110_v4  ;;  %v5294_v46 = vclz %v6428_v24  ;;  %v5550_v32 = vsel %vm5549_vm10, %v5548_v16, 0  ;;  %v5489_v62 = vmul.u32 %v11115_v31, %v5473_v42 }
 0x6ea   : > { %vm5491_vm2 = vc.u32 %v11185_v60, %v11166_v22  ;;  %v5552_v19 = vand.u32 31, %v5550_v32  ;;  %v11216_v15 = vshll.u32 %v5546_v11, 8  ;;  %v11220_v48 = vadd.f32 %v10654_v39, %v10960_v55 }
 0x6eb   : > { %v6429_v17 = vadd.s32 4294967294, %v5294_v46  ;;  %v5493_v36 = vsel %vm5491_vm2, %v5492_v59, %v11167_v41  ;;  %v11222_v4 = vshrl.u32 %v5550_v32, 5  ;;  %vm5332_vm0 = vcmp.lt.s32.totalorder %v10872_v1, 0 }
 0x6ec   : > { %v5494_v27 = vadd.s32 %v5493_v36, %v5489_v62  ;;  %v5553_v49 = vsub.s32 32, %v5552_v19  ;;  %v5555_v9 = vshll.u32 %v12026_v28, %v5552_v19  ;;  %v5558_v31 = vshll.u32 %v12027_v35, %v5552_v19 }
 0x6ed   : > { %vm6430_vm4 = vcmp.lt.s32.totalorder %v6429_v17, 0  ;;  %v5561_v58 = vshll.u32 %v12028_v54, %v5552_v19  ;;  %v5564_v63 = vshll.u32 %v12029_v14, %v5552_v19  ;;  %v5567_v39 = vshll.u32 %v12030_v20, %v5552_v19 }
 0x6ee   : > { %v5297_v41 = vsel %vm6430_vm4, 0, %v6429_v17  ;;  %v5495_v33 = vadd.s32 536870912, %v5494_v27  ;;  %v5556_v2 = vshrl.u32 %v12027_v35, %v5553_v49  ;;  %v5559_v43 = vshrl.u32 %v12028_v54, %v5553_v49 }
 0x6ef   : > { %v5298_v61 = vsub.s32 32, %v5297_v41  ;;  %v5299_v34 = vshll.u32 %v11159_v56, %v5297_v41  ;;  %v5302_v16 = vsub.s32 4294967266, %v5297_v41  ;;  %v5562_v11 = vshrl.u32 %v12029_v14, %v5553_v49 }
 0x6f0   : > { %v11232_v24 = vshrl.u32 %v5495_v33, 30  ;;  %v5557_v42 = vor.u32 %v5556_v2, %v5555_v9  ;;  %v5565_v59 = vshrl.u32 %v12030_v20, %v5553_v49  ;;  %v5560_v62 = vor.u32 %v5559_v43, %v5558_v31 }
 0x6f1   : > { %v5300_v46 = vshrl.u32 %v5282_v10, %v5298_v61  ;;  %v5303_v32 = vadd.s32 127, %v5302_v16  ;;  %v5568_v17 = vshrl.u32 %v12022_v38, %v5553_v49  ;;  %v5563_v56 = vor.u32 %v5562_v11, %v5561_v58 }
 0x6f2   : > { %v5497_v19 = vshll.u32 %v11232_v24, 30  ;;  %v5566_v36 = vor.u32 %v5565_v59, %v5564_v63  ;;  %v5749_v41 = vand.u32 2139095040, %v11220_v48  ;;  %v5554_v9 = vshrl.u32 %v12026_v28, %v5553_v49 }
 0x6f3   : > { %v5301_v33 = vor.u32 %v5300_v46, %v5299_v34  ;;  %v5304_v6 = vshll.u32 %v5303_v32, 23  ;;  %v5569_v2 = vor.u32 %v5568_v17, %v5567_v39  ;;  %vm5570_vm15 = vcmp.lt.s32.totalorder %v11222_v4, 1 }
 0x6f4   : > { %v11241_v52 = vsub.s32 %v5494_v27, %v5497_v19  ;;  %vm5571_vm7 = vcmp.lt.s32.totalorder %v11222_v4, 2  ;;  %vm5573_vm1 = vcmp.lt.s32.totalorder %v11222_v4, 4  ;;  %v12346_v10 = vand.u32 2147483647, %v10872_v1 }
 0x6f5   : > { %v5305_v58 = vor.u32 4788187, %v5304_v6  ;;  %vm5572_vm10 = vcmp.lt.s32.totalorder %v11222_v4, 3  ;;  %v5575_v63 = vsel %vm5573_vm1, %v5563_v56, 2102212464  ;;  %v5578_v49 = vsel %vm5570_vm15, %v5557_v42, %v5560_v62 }
 0x6f6   : > { %vm11248_vm11 = vcmp.le.f32.partialorder %v12346_v10, 0.7853982  ;;  %vm11986_vm2 = vcmp.lt.s32.totalorder %v10958_v0, 0  ;;  %v5500_v27 = vsub.s32 0, %v11241_v52  ;;  %v5574_v39 = vsel %vm5570_vm15, %v5554_v9, %v5557_v42 }
 0x6f7   : > { %v5579_v61 = vsel %vm5573_vm1, %v5566_v36, 920167782  ;;  %v5582_v34 = vsel %vm5570_vm15, %v5560_v62, %v5563_v56  ;;  %v5306_v16 = vand.u32 2147483647, %v5305_v58  ;;  %v5308_v43 = vcvt.s32.f32 %v5301_v33 }
 0x6f8   : > { %v5580_v11 = vsel %vm5572_vm10, %v5563_v56, %v5579_v61  ;;  %v5583_v59 = vsel %vm5573_vm1, %v5569_v2, 1326507024  ;;  %v6436_v46 = vmin.u32 %v5500_v27, %v11241_v52  ;;  %v5576_v32 = vsel %vm5572_vm10, %v5560_v62, %v5575_v63 }
 0x6f9   : > { %v5581_v6 = vsel %vm5571_vm7, %v5578_v49, %v5580_v11  ;;  %v5584_v17 = vsel %vm5572_vm10, %v5566_v36, %v5583_v59  ;;  %v12349_v19 = vand.u32 2147483647, %v10958_v0  ;;  %v5309_v42 = vmul.f32 %v5308_v43, %v5306_v16 }
 0x6fa   : > { %v5585_v9 = vsel %vm5571_vm7, %v5582_v34, %v5584_v17  ;;  %v11267_v56 = vmul.u32.u64.low %v11216_v15, %v5581_v6  ;;  %v11268_v33 = vmul.u32.u64.high %v11216_v15, %v5581_v6, %v11267_v56  ;;  %v5502_v2 = vclz %v6436_v46 }
 0x6fb   : > { %vm11260_vm4 = vcmp.le.f32.partialorder %v12349_v19, 0.7853982  ;;  %v11271_v62 = vmul.u32.u64.low %v11216_v15, %v5585_v9  ;;  %v11272_v58 = vmul.u32.u64.high %v11216_v15, %v5585_v9, %v11271_v62  ;;  %v5750_v36 = vshrl.u32 %v5749_v41, 23 }
 0x6fc   : > { %6916 = vcosq.f32 %v11200_v5  ;;  %v12352_v63 = vxor.u32 2147483648, %v11181_v21  ;;  %v5310_v27 = vxor.u32 2147483648, %v5309_v42  ;;  %v5577_v61 = vsel %vm5571_vm7, %v5574_v39, %v5576_v32 }
 0x6fd   : > { %6918 = vsinq.f32 %v11200_v5  ;;  %v6437_v34 = vadd.s32 4294967294, %v5502_v2  ;;  %v11981_v16 = vand.u32 2147483647, %v11220_v48  ;;  %v6447_v43 = vadd.s32 4294967169, %v5750_v36 }
 0x6fe   : > { %v5415_v49 = vsel %vm5332_vm0, %v12352_v63, %v11181_v21  ;;  %6920 = vcosq.f32 %v11207_v13  ;;  %v12353_v41 = vsub.s32 4, %v11072_v57  ;;  %v5596_v21 = vadd.s32 1, %v11268_v33 }
 0x6ff   : > { %v11293_v4 = vadd.f32 %v10772_v40, %v10960_v55  ;;  %v5418_v5 = vsel %vm11248_vm11, %v10872_v1, %v5415_v49  ;;  %vm6438_vm15 = vcmp.lt.s32.totalorder %v6437_v34, 0  ;;  %v5593_v39 = vmul.u32 %v11216_v15, %v5577_v61 }
 0x700   : > { %v5417_v11 = vsel %vm5332_vm0, %v12353_v41, %v11072_v57  ;;  %vm5595_vm7 = vc.u32 %v11272_v58, %v11267_v56  ;;  %v5311_v59 = vsel %vm11986_vm2, %v5310_v27, %v5309_v42  ;;  %v5505_v46 = vsel %vm6438_vm15, 0, %v6437_v34 }
 0x701   : > { %v5597_v57 = vsel %vm5595_vm7, %v5596_v21, %v11268_v33  ;;  %v5756_v32 = vadd.s32 1, %v6447_v43  ;;  %6922 = vsinq.f32 %v11207_v13  ;;  %v5419_v40 = vsel %vm11248_vm11, 0, %v5417_v11  ;;  %v5955_v11 = vld [vmem:[#allocation2] sm:$0x1] }
 0x702   : > { %v5510_v6 = vsub.s32 4294967266, %v5505_v46  ;;  %v5753_v17 = vand.u32 8388607, %v11981_v16  ;;  %6924 = vcosq.f32 %v5418_v5  ;;  %v5598_v15 = vadd.s32 %v5597_v57, %v5593_v39  ;;  %5958 = vperm.xlu0 %6759, %v5955_v11  }
 0x703   : > { %vm5757_vm0 = vcmp.gt.s32.totalorder %v5756_v32, 0  ;;  %v5645_v19 = vand.u32 2139095040, %v11293_v4  ;;  %v11312_v42 = vsel %vm11260_vm4, %v10958_v0, %v5311_v59  ;;  %v5506_v9 = vsub.s32 32, %v5505_v46 }
 0x704   : > { %v5511_v33 = vadd.s32 127, %v5510_v6  ;;  %v5758_v13 = vsel %vm5757_vm0, %v5756_v32, 0  ;;  %6926 = vsinq.f32 %v5418_v5  ;;  %v11314_v31 = vadd.s32 3, %v5419_v40 }
 0x705   : > { %v5599_v2 = vadd.s32 536870912, %v5598_v15  ;;  %v5760_v62 = vand.u32 31, %v5758_v13  ;;  %v5490_v36 = vadd.s32 %v11166_v22, %v11185_v60  ;;  %v5754_v63 = vor.u32 8388608, %v5753_v17 }
 0x706   : > { %12354 = vst [vmem:[#allocation41_spill] sm:$0xff] %v11314_v31  ;;  %v11321_v27 = vadd.f32 %v10847_v45, %v10960_v55  ;;  %v11323_v61 = vpop.eup %6916  ;;  %6928 = vcosq.f32 %v11312_v42  ;;  %v11327_v34 = vadd.s32 %v11267_v56, %v11272_v58  ;;  %v5507_v22 = vshll.u32 %v11241_v52, %v5505_v46 }
 0x707   : > { %v11329_v43 = vshrl.u32 %v5599_v2, 30  ;;  %v5761_v41 = vsub.s32 32, %v5760_v62  ;;  %v11331_v21 = vpop.eup %6918  ;;  %v5508_v60 = vshrl.u32 %v5490_v36, %v5506_v9  ;;  %v5512_v5 = vshll.u32 %v5511_v33, 23 }
 0x708   : > { %v5646_v39 = vshrl.u32 %v5645_v19, 23  ;;  %v11334_v45 = vpop.eup %6920  ;;  %v5763_v59 = vshll.u32 %v12026_v28, %v5760_v62  ;;  %v5766_v58 = vshll.u32 %v12027_v35, %v5760_v62  ;;  %v5769_v32 = vshll.u32 %v12028_v54, %v5760_v62 }
 0x709   : > { %12355 = vst [vmem:[#allocation25_spill] sm:$0xff] %v11334_v45  ;;  %v5601_v55 = vshll.u32 %v11329_v43, 30  ;;  %v5764_v56 = vshrl.u32 %v12027_v35, %v5761_v41  ;;  %v5767_v57 = vshrl.u32 %v12028_v54, %v5761_v41  ;;  %v5770_v52 = vshrl.u32 %v12029_v14, %v5761_v41 }
 0x70a   : > { %v5773_v46 = vshrl.u32 %v12030_v20, %v5761_v41  ;;  %v5759_v6 = vshrl.u32 %v5758_v13, 5  ;;  %v5772_v17 = vshll.u32 %v12029_v14, %v5760_v62  ;;  %v11347_v19 = vshll.u32 %v5754_v63, 8 }
 0x70b   : > { %v11344_v40 = vsub.s32 %v5598_v15, %v5601_v55  ;;  %v11349_v9 = vpop.eup %6922  ;;  %v5513_v33 = vor.u32 4788187, %v5512_v5  ;;  %vm5540_vm1 = vcmp.lt.s32.totalorder %v10972_v23, 0  ;;  %v5765_v2 = vor.u32 %v5764_v56, %v5763_v59 }
 0x70c   : > { %12356 = vst [vmem:[#allocation39_spill] sm:$0xff] %v11349_v9  ;;  %v5768_v36 = vor.u32 %v5767_v57, %v5766_v58  ;;  %v5771_v11 = vor.u32 %v5770_v52, %v5769_v32  ;;  %v11352_v16 = vpop.eup %6924  ;;  %v5774_v1 = vor.u32 %v5773_v46, %v5772_v17  ;;  %v5775_v15 = vshll.u32 %v12030_v20, %v5760_v62 }
 0x70d   : > { %12357 = vst [vmem:[#allocation34_spill] sm:$0xff] %v11352_v16  ;;  %v5604_v49 = vsub.s32 0, %v11344_v40  ;;  %v5776_v13 = vshrl.u32 %v12022_v38, %v5761_v41  ;;  %v5509_v55 = vor.u32 %v5508_v60, %v5507_v22  ;;  %v5624_v63 = vsub.s32 4, %v11329_v43 }
 0x70e   : > { %v5762_v31 = vshrl.u32 %v12026_v28, %v5761_v41  ;;  %v6443_v5 = vadd.s32 4294967169, %v5646_v39  ;;  %v11359_v45 = vpop.eup %6926  ;;  %vm5778_vm11 = vcmp.lt.s32.totalorder %v5759_v6, 1  ;;  %vm5781_vm10 = vcmp.lt.s32.totalorder %v5759_v6, 4 }
 0x70f   : > { %12358 = vst [vmem:[#allocation36_spill] sm:$0xff] %v11359_v45  ;;  %v6440_v59 = vmin.u32 %v5604_v49, %v11344_v40  ;;  %v5777_v56 = vor.u32 %v5776_v13, %v5775_v15  ;;  %vm5780_vm15 = vcmp.lt.s32.totalorder %v5759_v6, 3  ;;  %v5783_v58 = vsel %vm5781_vm10, %v5771_v11, 2102212464 }
 0x710   : > { %v5786_v62 = vsel %vm5778_vm11, %v5765_v2, %v5768_v36  ;;  %v5787_v57 = vsel %vm5781_vm10, %v5774_v1, 920167782  ;;  %v11365_v22 = vpop.eup %6928  ;;  %v5514_v60 = vand.u32 2147483647, %v5513_v33  ;;  %v12359_v41 = vand.u32 2147483647, %v10972_v23 }
 0x711   : > { %v12360_v39 = vmov 0  ;;  %v5606_v49 = vclz %v6440_v59  ;;  %vm5779_vm0 = vcmp.lt.s32.totalorder %v5759_v6, 2  ;;  %v5788_v32 = vsel %vm5780_vm15, %v5771_v11, %v5787_v57 }
 0x712   : > { %vm11369_vm7 = vcmp.le.f32.partialorder %v12359_v41, 0.7853982  ;;  %v5516_v52 = vcvt.s32.f32 %v5509_v55  ;;  %v5789_v46 = vsel %vm5779_vm0, %v5786_v62, %v5788_v32  ;;  %v5790_v17 = vsel %vm5778_vm11, %v5768_v36, %v5771_v11 }
 0x713   : > { %v12361_v39 = vsel %vm11369_vm7, 4294967295, %v12360_v39  ;;  %v12363_v15 = vand.u32 2147483647, %v11293_v4  ;;  %v6441_v33 = vadd.s32 4294967294, %v5606_v49  ;;  %v5782_v16 = vsel %vm5778_vm11, %v5762_v31, %v5765_v2 }
 0x714   : > { %12362 = vst [vmem:[#allocation27_spill] sm:$0xff] %v12361_v39  ;;  %v5784_v41 = vsel %vm5780_vm15, %v5768_v36, %v5783_v58  ;;  %v5791_v45 = vsel %vm5781_vm10, %v5777_v56, 1326507024  ;;  %v11385_v57 = vmul.u32.u64.low %v11347_v19, %v5789_v46  ;;  %v11386_v55 = vmul.u32.u64.high %v11347_v19, %v5789_v46, %v11385_v57 }
 0x715   : > { %v11378_v13 = vand.u32 8388607, %v12363_v15  ;;  %v5792_v59 = vsel %vm5780_vm15, %v5774_v1, %v5791_v45  ;;  %v5652_v62 = vadd.s32 1, %v6443_v5  ;;  %v5517_v11 = vmul.f32 %v5516_v52, %v5514_v60 }
 0x716   : > { %vm6442_vm2 = vcmp.lt.s32.totalorder %v6441_v33, 0  ;;  %v11392_v49 = vsel %vm5540_vm1, %v5624_v63, %v11329_v43  ;;  %v5793_v31 = vsel %vm5779_vm0, %v5790_v17, %v5792_v59  ;;  %vm11988_vm10 = vcmp.lt.s32.totalorder %v10965_v37, 0 }
 0x717   : > { %12364 = vst [vmem:[#allocation24_spill] sm:$0xff] %v11392_v49  ;;  %v5609_v2 = vsel %vm6442_vm2, 0, %v6441_v33  ;;  %v11396_v36 = vmul.u32.u64.low %v11347_v19, %v5793_v31  ;;  %v11397_v56 = vmul.u32.u64.high %v11347_v19, %v5793_v31, %v11396_v36  ;;  %vm5653_vm11 = vcmp.gt.s32.totalorder %v5652_v62, 0 }
 0x718   : > { %v5610_v1 = vsub.s32 32, %v5609_v2  ;;  %v5614_v45 = vsub.s32 4294967266, %v5609_v2  ;;  %v5785_v5 = vsel %vm5779_vm0, %v5782_v16, %v5784_v41  ;;  %v5654_v58 = vsel %vm5653_vm11, %v5652_v62, 0 }
 0x719   : > { %6930 = vsinq.f32 %v11312_v42  ;;  %v5804_v43 = vadd.s32 1, %v11386_v55  ;;  %v5650_v63 = vor.u32 8388608, %v11378_v13  ;;  %v5656_v60 = vand.u32 31, %v5654_v58 }
 0x71a   : > { %v5611_v32 = vshll.u32 %v11344_v40, %v5609_v2  ;;  %v5612_v52 = vshrl.u32 %v11327_v34, %v5610_v1  ;;  %v5615_v46 = vadd.s32 127, %v5614_v45  ;;  %v5801_v16 = vmul.u32 %v11347_v19, %v5785_v5 }
 0x71b   : > { %vm5803_vm2 = vc.u32 %v11397_v56, %v11385_v57  ;;  %v5657_v42 = vsub.s32 32, %v5656_v60  ;;  %v5518_v15 = vxor.u32 2147483648, %v5517_v11  ;;  %v5659_v34 = vshll.u32 %v12026_v28, %v5656_v60 }
 0x71c   : > { %v5613_v13 = vor.u32 %v5612_v52, %v5611_v32  ;;  %v5616_v33 = vshll.u32 %v5615_v46, 23  ;;  %v5805_v40 = vsel %vm5803_vm2, %v5804_v43, %v11386_v55  ;;  %v12365_v31 = vand.u32 2147483647, %v10965_v37 }
 0x71d   : > { %v5806_v41 = vadd.s32 %v5805_v40, %v5801_v16  ;;  %v5660_v59 = vshrl.u32 %v12027_v35, %v5657_v42  ;;  %v5663_v62 = vshrl.u32 %v12028_v54, %v5657_v42  ;;  %v5655_v36 = vshrl.u32 %v5654_v58, 5 }
 0x71e   : > { %vm11419_vm15 = vcmp.le.f32.partialorder %v12365_v31, 0.7853982  ;;  %v5617_v2 = vor.u32 4788187, %v5616_v33  ;;  %v5662_v1 = vshll.u32 %v12027_v35, %v5656_v60  ;;  %v5666_v45 = vshrl.u32 %v12029_v14, %v5657_v42 }
 0x71f   : > { %v5620_v55 = vcvt.s32.f32 %v5613_v13  ;;  %v5807_v5 = vadd.s32 536870912, %v5806_v41  ;;  %v5661_v43 = vor.u32 %v5660_v59, %v5659_v34  ;;  %v5665_v32 = vshll.u32 %v12028_v54, %v5656_v60 }
 0x720   : > { %v5618_v52 = vand.u32 2147483647, %v5617_v2  ;;  %v5664_v46 = vor.u32 %v5663_v62, %v5662_v1  ;;  %v5668_v16 = vshll.u32 %v12029_v14, %v5656_v60  ;;  %v5669_v40 = vshrl.u32 %v12030_v20, %v5657_v42 }
 0x721   : > { %v5519_v31 = vsel %vm11988_vm10, %v5518_v15, %v5517_v11  ;;  %vm5748_vm0 = vcmp.lt.s32.totalorder %v11220_v48, 0  ;;  %v5808_v58 = vshrl.u32 %v5807_v5, 30  ;;  %v5667_v33 = vor.u32 %v5666_v45, %v5665_v32 }
 0x722   : > { %v5672_v6 = vshrl.u32 %v12022_v38, %v5657_v42  ;;  %v5621_v13 = vmul.f32 %v5620_v55, %v5618_v52  ;;  %v5658_v34 = vshrl.u32 %v12026_v28, %v5657_v42  ;;  %v5670_v59 = vor.u32 %v5669_v40, %v5668_v16 }
 0x723   : > { %v5671_v2 = vshll.u32 %v12030_v20, %v5656_v60  ;;  %v11434_v62 = vpop.eup %6930  ;;  %v5809_v1 = vshll.u32 %v5808_v58, 30  ;;  %vm5674_vm11 = vcmp.lt.s32.totalorder %v5655_v36, 1  ;;  %vm5675_vm2 = vcmp.lt.s32.totalorder %v5655_v36, 2 }
 0x724   : > { %vm5677_vm6 = vcmp.lt.s32.totalorder %v5655_v36, 4  ;;  %vm5676_vm10 = vcmp.lt.s32.totalorder %v5655_v36, 3  ;;  %v5682_v11 = vsel %vm5674_vm11, %v5661_v43, %v5664_v46  ;;  %v5622_v45 = vxor.u32 2147483648, %v5621_v13 }
 0x725   : > { %v5673_v17 = vor.u32 %v5672_v6, %v5671_v2  ;;  %v5683_v15 = vsel %vm5677_vm6, %v5670_v59, 920167782  ;;  %v12368_v55 = vand.u32 2147483647, %v11220_v48  ;;  %v11444_v60 = vsub.s32 %v5806_v41, %v5809_v1 }
 0x726   : > { %v5679_v5 = vsel %vm5677_vm6, %v5667_v33, 2102212464  ;;  %v5684_v32 = vsel %vm5676_vm10, %v5667_v33, %v5683_v15  ;;  %v5832_v52 = vsub.s32 4, %v5808_v58  ;;  %v5690_v16 = vshll.u32 %v5650_v63, 8 }
 0x727   : > { %vm11440_vm5 = vcmp.le.f32.partialorder %v12368_v55, 0.7853982  ;;  %v5685_v6 = vsel %vm5675_vm2, %v5682_v11, %v5684_v32  ;;  %v5853_v40 = vand.u32 2139095040, %v11321_v27  ;;  %v5522_v2 = vsel %vm11419_vm15, %v10965_v37, %v5519_v31 }
 0x728   : > { %v5812_v55 = vsub.s32 0, %v11444_v60  ;;  %v5678_v25 = vsel %vm5674_vm11, %v5658_v34, %v5661_v43  ;;  %v5686_v41 = vsel %vm5674_vm11, %v5664_v46, %v5667_v33  ;;  %v5680_v1 = vsel %vm5676_vm10, %v5664_v46, %v5679_v5 }
 0x729   : > { %v5687_v15 = vsel %vm5677_vm6, %v5673_v17, 1326507024  ;;  %v11458_v49 = vmul.u32.u64.low %v5690_v16, %v5685_v6  ;;  %v11459_v9 = vmul.u32.u64.high %v5690_v16, %v5685_v6, %v11458_v49  ;;  %v5623_v63 = vsel %vm5540_vm1, %v5622_v45, %v5621_v13 }
 0x72a   : > { %v6448_v11 = vmin.u32 %v5812_v55, %v11444_v60  ;;  %v5688_v31 = vsel %vm5676_vm10, %v5670_v59, %v5687_v15  ;;  %v12371_v32 = vand.u32 2147483647, %v11321_v27  ;;  %v11469_v43 = vsel %vm5748_vm0, %v5832_v52, %v5808_v58  ;;  %v12373_v52 = vld [vmem:[#allocation13_spill] sm:$0xff] }
 0x72b   : > { %12372 = vst [vmem:[#allocation33_spill] sm:$0xff] %v11469_v43  ;;  %v5689_v46 = vsel %vm5675_vm2, %v5686_v41, %v5688_v31  ;;  %v5854_v17 = vshrl.u32 %v5853_v40, 23  ;;  %v4480_v33 = vsub.s32 4, %v10442_v18  ;;  %v5681_v5 = vsel %vm5675_vm2, %v5678_v25, %v5680_v1 }
 0x72c   : > { %v5857_v50 = vand.u32 8388607, %v12371_v32  ;;  %v5814_v34 = vclz %v6448_v11  ;;  %v11474_v13 = vmul.u32.u64.low %v5690_v16, %v5689_v46  ;;  %v11475_v45 = vmul.u32.u64.high %v5690_v16, %v5689_v46, %v11474_v13 }
 0x72d   : > { %v11480_v59 = vsel %vm11369_vm7, %v10972_v23, %v5623_v63  ;;  %v5700_v6 = vadd.s32 1, %v11459_v9  ;;  %v6451_v58 = vadd.s32 4294967169, %v5854_v17  ;;  %v4481_v40 = vsel %vm4396_vm9, %v4480_v33, %v10442_v18  ;;  %v12375_v33 = vld [vmem:[#allocation12_spill] sm:$0xff]  ;;  %v12376_v13 = vld [vmem:[#allocation31_spill] sm:$0xff] }
 0x72e   : > { %6932 = vcosq.f32 %v5522_v2  ;;  %v6449_v55 = vadd.s32 4294967294, %v5814_v34  ;;  %v5858_v41 = vor.u32 8388608, %v5857_v50  ;;  %v4483_v25 = vsel %vm10638_vm3, 0, %v4481_v40 }
 0x72f   : > { %6934 = vsinq.f32 %v5522_v2  ;;  %v5802_v1 = vadd.s32 %v11385_v57, %v11397_v56  ;;  %v5860_v63 = vadd.s32 1, %v6451_v58  ;;  %v5697_v11 = vmul.u32 %v5690_v16, %v5681_v5 }
 0x730   : > { %6936 = vcosq.f32 %v11480_v59  ;;  %vm6450_vm6 = vcmp.lt.s32.totalorder %v6449_v55, 0  ;;  %vm5699_vm9 = vc.u32 %v11475_v45, %v11458_v49  ;;  %v4487_v31 = vadd.s32 3, %v4483_v25 }
 0x731   : > { %v5817_v18 = vsel %vm6450_vm6, 0, %v6449_v55  ;;  %v5701_v50 = vsel %vm5699_vm9, %v5700_v6, %v11459_v9  ;;  %vm5861_vm1 = vcmp.gt.s32.totalorder %v5860_v63, 0  ;;  %v11496_v57 = vshll.u32 %v5858_v41, 8 }
 0x732   : > { %v5818_v2 = vsub.s32 32, %v5817_v18  ;;  %v5822_v32 = vsub.s32 4294967266, %v5817_v18  ;;  %v5702_v46 = vadd.s32 %v5701_v50, %v5697_v11  ;;  %v5862_v56 = vsel %vm5861_vm1, %v5860_v63, 0 }
 0x733   : > { %v4896_v58 = vsub.s32 4, %v12376_v13  ;;  %v5819_v16 = vshll.u32 %v11444_v60, %v5817_v18  ;;  %v11503_v9 = vadd.s32 %v11458_v49, %v11475_v45  ;;  %v5864_v6 = vand.u32 31, %v5862_v56 }
 0x734   : > { %v5820_v5 = vshrl.u32 %v5802_v1, %v5818_v2  ;;  %v5823_v40 = vadd.s32 127, %v5822_v32  ;;  %v5703_v55 = vadd.s32 536870912, %v5702_v46  ;;  %v11505_v36 = vand.u32 3, %v4487_v31 }
 0x735   : > { %v5863_v50 = vshrl.u32 %v5862_v56, 5  ;;  %v5865_v15 = vsub.s32 32, %v5864_v6  ;;  %v5867_v34 = vshll.u32 %v12026_v28, %v5864_v6  ;;  %v5870_v60 = vshll.u32 %v12027_v35, %v5864_v6 }
 0x736   : > { %v5821_v25 = vor.u32 %v5820_v5, %v5819_v16  ;;  %v5824_v63 = vshll.u32 %v5823_v40, 23  ;;  %v11508_v11 = vshrl.u32 %v5703_v55, 30  ;;  %v5873_v1 = vshll.u32 %v12028_v54, %v5864_v6 }
 0x737   : > { %v5876_v2 = vshll.u32 %v12029_v14, %v5864_v6  ;;  %v5866_v16 = vshrl.u32 %v12026_v28, %v5865_v15  ;;  %v5868_v56 = vshrl.u32 %v12027_v35, %v5865_v15  ;;  %v5871_v5 = vshrl.u32 %v12028_v54, %v5865_v15 }
 0x738   : > { %v11513_v18 = vpop.eup %6932  ;;  %v5825_v49 = vor.u32 4788187, %v5824_v63  ;;  %v5828_v45 = vcvt.s32.f32 %v5821_v25  ;;  %v5705_v31 = vshll.u32 %v11508_v11, 30  ;;  %v5874_v40 = vshrl.u32 %v12029_v14, %v5865_v15 }
 0x739   : > { %12377 = vst [vmem:[#allocation16_spill] sm:$0xff] %v11513_v18  ;;  %v11517_v32 = vpop.eup %6934  ;;  %v5877_v25 = vshrl.u32 %v12030_v20, %v5865_v15  ;;  %v5879_v63 = vshll.u32 %v12030_v20, %v5864_v6  ;;  %v5869_v23 = vor.u32 %v5868_v56, %v5867_v34  ;;  %v5872_v43 = vor.u32 %v5871_v5, %v5870_v60 }
 0x73a   : > { %v11523_v55 = vpop.eup %6936  ;;  %v5826_v41 = vand.u32 2147483647, %v5825_v49  ;;  %v11525_v17 = vsub.s32 %v5702_v46, %v5705_v31  ;;  %v5875_v39 = vor.u32 %v5874_v40, %v5873_v1  ;;  %v5880_v28 = vshrl.u32 %v12022_v38, %v5865_v15 }
 0x73b   : > { %v5878_v54 = vor.u32 %v5877_v25, %v5876_v2  ;;  %vm5882_vm3 = vcmp.lt.s32.totalorder %v5863_v50, 1  ;;  %vm5884_vm10 = vcmp.lt.s32.totalorder %v5863_v50, 3  ;;  %vm5885_vm11 = vcmp.lt.s32.totalorder %v5863_v50, 4 }
 0x73c   : > { %v5829_v18 = vmul.f32 %v5828_v45, %v5826_v41  ;;  %v5708_v35 = vsub.s32 0, %v11525_v17  ;;  %v5881_v14 = vor.u32 %v5880_v28, %v5879_v63  ;;  %v5886_v49 = vsel %vm5882_vm3, %v5866_v16, %v5869_v23 }
 0x73d   : > { %vm4489_vm2 = vcmp.lt.s32.totalorder %v11505_v36, 2  ;;  %v5887_v20 = vsel %vm5885_vm11, %v5875_v39, 2102212464  ;;  %v5890_v34 = vsel %vm5882_vm3, %v5869_v23, %v5872_v43  ;;  %v5891_v60 = vsel %vm5885_vm11, %v5878_v54, 920167782 }
 0x73e   : > { %v5830_v46 = vxor.u32 2147483648, %v5829_v18  ;;  %v6444_v31 = vmin.u32 %v5708_v35, %v11525_v17  ;;  %v5888_v6 = vsel %vm5884_vm10, %v5872_v43, %v5887_v20  ;;  %v5894_v38 = vsel %vm5882_vm3, %v5872_v43, %v5875_v39 }
 0x73f   : > { %v5895_v15 = vsel %vm5885_vm11, %v5881_v14, 1326507024  ;;  %vm5883_vm6 = vcmp.lt.s32.totalorder %v5863_v50, 2  ;;  %v5892_v1 = vsel %vm5884_vm10, %v5875_v39, %v5891_v60  ;;  %vm4490_vm9 = vcmp.eq.s32.totalorder %v11505_v36, 0 }
 0x740   : > { %v5710_v41 = vclz %v6444_v31  ;;  %v5893_v45 = vsel %vm5883_vm6, %v5890_v34, %v5892_v1  ;;  %v5896_v2 = vsel %vm5884_vm10, %v5878_v54, %v5895_v15  ;;  %vm4493_vm1 = vcmp.eq.s32.totalorder %v11505_v36, 2 }
 0x741   : > { %v4897_v23 = vsel %vm4812_vm8, %v4896_v58, %v12376_v13  ;;  %v5889_v56 = vsel %vm5883_vm6, %v5886_v49, %v5888_v6  ;;  %v5897_v5 = vsel %vm5883_vm6, %v5894_v38, %v5896_v2  ;;  %v12378_v43 = vxor.u32 2147483648, %v10909_v47  ;;  %v12380_v49 = vld [vmem:[#allocation40_spill] sm:$0xff] }
 0x742   : > { %v6445_v16 = vadd.s32 4294967294, %v5710_v41  ;;  %v5831_v39 = vsel %vm5748_vm0, %v5830_v46, %v5829_v18  ;;  %v11547_v25 = vmul.u32.u64.low %v11496_v57, %v5897_v5  ;;  %v11548_v50 = vmul.u32.u64.high %v11496_v57, %v5897_v5, %v11547_v25 }
 0x743   : > { %v4492_v40 = vsel %vm4490_vm9, %v12375_v33, %v12378_v43  ;;  %vm4486_vm3 = vweird.f32 %v12373_v52  ;;  %v12379_v63 = vxor.u32 2147483648, %v12375_v33  ;;  %v4899_v35 = vsel %vm11008_vm13, 0, %v4897_v23 }
 0x744   : > { %vm6446_vm8 = vcmp.lt.s32.totalorder %v6445_v16, 0  ;;  %v11555_v58 = vmul.u32.u64.low %v11496_v57, %v5893_v45  ;;  %v11556_v28 = vmul.u32.u64.high %v11496_v57, %v5893_v45, %v11555_v58  ;;  %vm4902_vm0 = vweird.f32 %v10546_v44 }
 0x745   : > { %v4495_v13 = vsel %vm4493_vm1, %v12379_v63, %v10909_v47  ;;  %v5713_v18 = vsel %vm6446_vm8, 0, %v6445_v16  ;;  %v5905_v54 = vmul.u32 %v11496_v57, %v5889_v56  ;;  %v4903_v14 = vadd.s32 3, %v4899_v35 }
 0x746   : > { %v4688_v46 = vsub.s32 4, %v12380_v49  ;;  %v5714_v31 = vsub.s32 32, %v5713_v18  ;;  %v5718_v20 = vsub.s32 4294967266, %v5713_v18  ;;  %v4496_v47 = vsel %vm4489_vm2, %v4492_v40, %v4495_v13 }
 0x747   : > { %v4910_v33 = vxor.u32 2147483648, %v11090_v30  ;;  %v5715_v34 = vshll.u32 %v11525_v17, %v5713_v18  ;;  %vm5907_vm10 = vc.u32 %v11548_v50, %v11555_v58  ;;  %v4904_v7 = vand.u32 3, %v4903_v14  ;;  %v12386_v14 = vld [vmem:[#allocation9_spill] sm:$0xff] }
 0x748   : > { %vm12381_vm13 = vcmp.lt.s32.totalorder %v10304_v29, 0  ;;  %v5716_v57 = vshrl.u32 %v11503_v9, %v5714_v31  ;;  %v5719_v60 = vadd.s32 127, %v5718_v20  ;;  %v5908_v38 = vadd.s32 1, %v11556_v28 }
 0x749   : > { %v4689_v6 = vsel %vm12381_vm13, %v4688_v46, %v12380_v49  ;;  %vm4905_vm11 = vcmp.lt.s32.totalorder %v4904_v7, 2  ;;  %vm4906_vm2 = vcmp.eq.s32.totalorder %v4904_v7, 0  ;;  %vm4909_vm6 = vcmp.eq.s32.totalorder %v4904_v7, 2 }
 0x74a   : > { %v4691_v36 = vsel %vm10811_vm12, 0, %v4689_v6  ;;  %v5717_v17 = vor.u32 %v5716_v57, %v5715_v34  ;;  %v5720_v41 = vshll.u32 %v5719_v60, 23  ;;  %v5909_v1 = vsel %vm5907_vm10, %v5908_v38, %v11556_v28  ;;  %v12389_v34 = vld [vmem:[#allocation19_spill] sm:$0xff]  ;;  %v12390_v57 = vld [vmem:[#allocation17_spill] sm:$0xff] }
 0x74b   : > { %v4695_v15 = vadd.s32 3, %v4691_v36  ;;  %v12382_v45 = vxor.u32 2147483648, %v11095_v8  ;;  %vm5644_vm9 = vcmp.lt.s32.totalorder %v11293_v4, 0  ;;  %v5910_v9 = vadd.s32 %v5909_v1, %v5905_v54  ;;  %v12391_v1 = vld [vmem:[#allocation18_spill] sm:$0xff] }
 0x74c   : > { %v4911_v23 = vsel %vm4909_vm6, %v4910_v33, %v11095_v8  ;;  %v4699_v12 = vxor.u32 2147483648, %v10930_v51  ;;  %v12383_v56 = vand.u32 2147483647, %v11293_v4  ;;  %v5721_v43 = vor.u32 4788187, %v5720_v41 }
 0x74d   : > { %v4908_v2 = vsel %vm4906_vm2, %v11090_v30, %v12382_v45  ;;  %v4696_v16 = vand.u32 3, %v4695_v15  ;;  %v4497_v40 = vsel %vm4486_vm3, nan, %v4496_v47  ;;  %v4702_v25 = vxor.u32 2147483648, %v10923_v3  ;;  %v12388_v47 = vld [vmem:[#allocation10_spill] sm:$0xff] }
 0x74e   : > { %vm11584_vm12 = vcmp.le.f32.partialorder %v12383_v56, 0.7853982  ;;  %v4912_v30 = vsel %vm4905_vm11, %v4908_v2, %v4911_v23  ;;  %v5724_v63 = vcvt.s32.f32 %v5717_v17  ;;  %v5911_v13 = vadd.s32 536870912, %v5910_v9  ;;  %v12393_v23 = vld [vmem:[#allocation30_spill] sm:$0xff]  ;;  %v12394_v56 = vld [vmem:[#allocation8_spill] sm:$0xff] }
 0x74f   : > { %v4913_v8 = vsel %vm4902_vm0, nan, %v4912_v30  ;;  %vm4698_vm1 = vcmp.eq.s32.totalorder %v4696_v16, 0  ;;  %v5722_v28 = vand.u32 2147483647, %v5721_v43  ;;  %vm4701_vm8 = vcmp.eq.s32.totalorder %v4696_v16, 2 }
 0x750   : > { %v6495_v35 = vpack.c.bf16 %v4913_v8, %v4497_v40  ;;  %v4700_v18 = vsel %vm4698_vm1, %v10923_v3, %v4699_v12  ;;  %6938 = vsinq.f32 %v11480_v59  ;;  %v11596_v54 = vshrl.u32 %v5911_v13, 30  ;;  %v12395_v8 = vld [vmem:[#allocation42_spill] sm:$0xff] }
 0x751   : > { %v4703_v52 = vsel %vm4701_vm8, %v4702_v25, %v10930_v51  ;;  %v5104_v49 = vsub.s32 4, %v12386_v14  ;;  %v11603_v46 = vsel %vm11440_vm5, %v11220_v48, %v5831_v39  ;;  %v5725_v44 = vmul.f32 %v5724_v63, %v5722_v28 }
 0x752   : > { %6496 = vmatprep.subr.bf16.mxu0 %v6495_v35  ;;  %vm4694_vm3 = vweird.f32 %v10304_v29  ;;  %vm4697_vm0 = vcmp.lt.s32.totalorder %v4696_v16, 2  ;;  %v11607_v3 = vadd.s32 %v11555_v58, %v11548_v50  ;;  %v5913_v59 = vshll.u32 %v11596_v54, 30 }
 0x753   : > { %v4704_v31 = vsel %vm4697_vm0, %v4700_v18, %v4703_v52  ;;  %vm12387_vm10 = vcmp.lt.s32.totalorder %v10685_v53, 0  ;;  %v5726_v20 = vxor.u32 2147483648, %v5725_v44  ;;  %vm5110_vm13 = vweird.f32 %v10685_v53 }
 0x754   : > { %v5105_v51 = vsel %vm12387_vm10, %v5104_v49, %v12386_v14  ;;  %v4384_v33 = vand.u32 3, %v12388_v47  ;;  %v4387_v7 = vxor.u32 2147483648, %v12389_v34  ;;  %v11618_v6 = vsub.s32 %v5910_v9, %v5913_v59  ;;  %v12392_v9 = vld [vmem:[#allocation29_spill] sm:$0xff]  ;;  %v12397_v59 = vld [vmem:[#allocation7_spill] sm:$0xff] }
 0x755   : > { %v5107_v39 = vsel %vm11144_vm14, 0, %v5105_v51  ;;  %v5115_v58 = vxor.u32 2147483648, %v11331_v21  ;;  %v4390_v60 = vxor.u32 2147483648, %v12390_v57  ;;  %v5727_v38 = vsel %vm5644_vm9, %v5726_v20, %v5725_v44 }
 0x756   : > { %v5111_v50 = vadd.s32 3, %v5107_v39  ;;  %v4705_v26 = vsel %vm4694_vm3, nan, %v4704_v31  ;;  %v5118_v36 = vxor.u32 2147483648, %v11323_v61  ;;  %vm4386_vm14 = vcmp.eq.s32.totalorder %v4384_v33, 0  ;;  %v12398_v31 = vld [vmem:[#allocation15_spill] sm:$0xff] }
 0x757   : > { %v5730_v15 = vsel %vm11584_vm12, %v11293_v4, %v5727_v38  ;;  %v5916_v17 = vsub.s32 0, %v11618_v6  ;;  %vm4382_vm11 = vweird.f32 %v12391_v1  ;;  %vm4389_vm2 = vcmp.eq.s32.totalorder %v4384_v33, 2  ;;  %v12400_v38 = vld [vmem:[#allocation20_spill] sm:$0xff] }
 0x758   : > { %v5112_v41 = vand.u32 3, %v5111_v50  ;;  %v4388_v45 = vsel %vm4386_vm14, %v12390_v57, %v4387_v7  ;;  %v4391_v2 = vsel %vm4389_vm2, %v4390_v60, %v12389_v34  ;;  %v4800_v29 = vand.u32 3, %v12392_v9  ;;  %v12399_v57 = vld [vmem:[#allocation37_spill] sm:$0xff] }
 0x759   : > { %v4803_v16 = vxor.u32 2147483648, %v12393_v23  ;;  %v6452_v12 = vmin.u32 %v5916_v17, %v11618_v6  ;;  %vm4385_vm1 = vcmp.lt.s32.totalorder %v4384_v33, 2  ;;  %vm4798_vm8 = vweird.f32 %v12394_v56  ;;  %v12404_v56 = vld [vmem:[#allocation35_spill] sm:$0xff] }
 0x75a   : > { %vm5114_vm6 = vcmp.eq.s32.totalorder %v5112_v41, 0  ;;  %6940 = vsinq.f32 %v5730_v15  ;;  %vm5113_vm3 = vcmp.lt.s32.totalorder %v5112_v41, 2  ;;  %vm5117_vm0 = vcmp.eq.s32.totalorder %v5112_v41, 2  ;;  %v11639_v40 = vpop.eup %6938  ;;  %v12401_v41 = vld [vmem:[#allocation21_spill] sm:$0xff] }
 0x75b   : > { %v5116_v43 = vsel %vm5114_vm6, %v11323_v61, %v5115_v58  ;;  %v5918_v30 = vclz %v6452_v12  ;;  %v5119_v25 = vsel %vm5117_vm0, %v5118_v36, %v11331_v21  ;;  %v4392_v63 = vsel %vm4385_vm1, %v4388_v45, %v4391_v2  ;;  %v12396_v61 = vld [vmem:[#allocation6_spill] sm:$0xff] }
 0x75c   : > { %vm4802_vm10 = vcmp.eq.s32.totalorder %v4800_v29, 0  ;;  %v5120_v13 = vsel %vm5113_vm3, %v5116_v43, %v5119_v25  ;;  %vm4801_vm14 = vcmp.lt.s32.totalorder %v4800_v29, 2  ;;  %v4806_v35 = vxor.u32 2147483648, %v12395_v8 }
 0x75d   : > { %v4804_v28 = vsel %vm4802_vm10, %v12395_v8, %v4803_v16  ;;  %v6453_v18 = vadd.s32 4294967294, %v5918_v30  ;;  %v5121_v52 = vsel %vm5110_vm13, nan, %v5120_v13  ;;  %vm4805_vm2 = vcmp.eq.s32.totalorder %v4800_v29, 2 }
 0x75e   : > { %v4592_v14 = vand.u32 3, %v12396_v61  ;;  %v6503_v49 = vpack.c.bf16 %v5121_v52, %v4705_v26  ;;  %v4807_v44 = vsel %vm4805_vm2, %v4806_v35, %v12393_v23  ;;  %v4595_v21 = vxor.u32 2147483648, %v12397_v59 }
 0x75f   : > { %v4598_v51 = vxor.u32 2147483648, %v12398_v31  ;;  %6942 = vcosq.f32 %v5730_v15  ;;  %vm6454_vm6 = vcmp.lt.s32.totalorder %v6453_v18, 0  ;;  %v4808_v20 = vsel %vm4801_vm14, %v4804_v28, %v4807_v44 }
 0x760   : > { %vm4594_vm1 = vcmp.eq.s32.totalorder %v4592_v14, 0  ;;  %v5921_v39 = vsel %vm6454_vm6, 0, %v6453_v18  ;;  %6504 = vmatprep.subr.bf16.mxu1 %v6503_v49  ;;  %v4393_v53 = vsel %vm4382_vm11, nan, %v4392_v63  ;;  %v4809_v47 = vsel %vm4798_vm8, nan, %v4808_v20 }
 0x761   : > { %v4596_v33 = vsel %vm4594_vm1, %v12398_v31, %v4595_v21  ;;  %v5922_v34 = vsub.s32 32, %v5921_v39  ;;  %v5926_v7 = vsub.s32 4294967266, %v5921_v39  ;;  %v6497_v50 = vpack.c.bf16 %v4809_v47, %v4393_v53 }
 0x762   : > { %vm4597_vm13 = vcmp.eq.s32.totalorder %v4592_v14, 2  ;;  %vm4593_vm3 = vcmp.lt.s32.totalorder %v4592_v14, 2  ;;  %v5008_v60 = vand.u32 3, %v12399_v57  ;;  %v5011_v26 = vxor.u32 2147483648, %v12400_v38 }
 0x763   : > { %v4599_v58 = vsel %vm4597_vm13, %v4598_v51, %v12397_v59  ;;  %v5923_v36 = vshll.u32 %v11618_v6, %v5921_v39  ;;  %v5924_v15 = vshrl.u32 %v11607_v3, %v5922_v34  ;;  %v5927_v17 = vadd.s32 127, %v5926_v7  ;;  %6498 = vmatpush1.bf16.msra.mxu0 %v6497_v50  ;;  %v12402_v6 = vld [vmem:[#allocation28_spill] sm:$0xff]  ;;  %v12403_v3 = vld [vmem:[#allocation26_spill] sm:$0xff] }
 0x764   : > { %v5014_v1 = vxor.u32 2147483648, %v12401_v41  ;;  %v11661_v45 = vpop.eup %6940  ;;  %v4600_v2 = vsel %vm4593_vm3, %v4596_v33, %v4599_v58  ;;  %vm5009_vm11 = vcmp.lt.s32.totalorder %v5008_v60, 2  ;;  %vm5010_vm8 = vcmp.eq.s32.totalorder %v5008_v60, 0 }
 0x765   : > { %vm5013_vm0 = vcmp.eq.s32.totalorder %v5008_v60, 2  ;;  %v5925_v9 = vor.u32 %v5924_v15, %v5923_v36  ;;  %v5928_v29 = vshll.u32 %v5927_v17, 23  ;;  %v5012_v23 = vsel %vm5010_vm8, %v12401_v41, %v5011_v26  ;;  %v12410_v26 = vld [vmem:[#allocation16_spill] sm:$0xff] }
 0x766   : > { %v5015_v16 = vsel %vm5013_vm0, %v5014_v1, %v12400_v38  ;;  %vm5852_vm10 = vcmp.lt.s32.totalorder %v11321_v27, 0  ;;  %vm4590_vm14 = vweird.f32 %v12402_v6  ;;  %vm5006_vm2 = vweird.f32 %v12403_v3 }
 0x767   : > { %v5016_v12 = vsel %vm5009_vm11, %v5012_v23, %v5015_v16  ;;  %v5312_v43 = vsub.s32 4, %v12404_v56  ;;  %6944 = vcosq.f32 %v11603_v46  ;;  %v12405_v30 = vand.u32 2147483647, %v11321_v27  ;;  %v12412_v16 = vld [vmem:[#allocation39_spill] sm:$0xff] }
 0x768   : > { %v5929_v63 = vor.u32 4788187, %v5928_v29  ;;  %v4601_v13 = vsel %vm4590_vm14, nan, %v4600_v2  ;;  %v5017_v8 = vsel %vm5006_vm2, nan, %v5016_v12  ;;  %6946 = vsinq.f32 %v11603_v46  ;;  %v12411_v29 = vld [vmem:[#allocation38_spill] sm:$0xff]  ;;  %v12414_v12 = vld [vmem:[#allocation24_spill] sm:$0xff] }
 0x769   : > { %vm11672_vm6 = vcmp.le.f32.partialorder %v12405_v30, 0.7853982  ;;  %v6505_v28 = vpack.c.bf16 %v5017_v8, %v4601_v13  ;;  %vm12408_vm1 = vcmp.lt.s32.totalorder %v10958_v0, 0  ;;  %v5728_v18 = vsub.s32 4, %v11508_v11  ;;  %v6943_v52 = vpop.eup %6942 }
 0x76a   : > { %v5313_v35 = vsel %vm12408_vm1, %v5312_v43, %v12404_v56  ;;  %v5930_v61 = vand.u32 2147483647, %v5929_v63  ;;  %v5932_v14 = vcvt.s32.f32 %v5925_v9  ;;  %v5323_v44 = vxor.u32 2147483648, %v11434_v62 }
 0x76b   : > { %v5315_v49 = vsel %vm11260_vm4, 0, %v5313_v35  ;;  %6506 = vmatpush1.bf16.msra.mxu1 %v6505_v28  ;;  %v5326_v21 = vxor.u32 2147483648, %v11365_v22  ;;  %v5729_v46 = vsel %vm5644_vm9, %v5728_v18, %v11508_v11  ;;  %v5520_v31 = vsub.s32 4, %v11232_v24  ;;  %v12418_v18 = vld [vmem:[#allocation32_spill] sm:$0xff] }
 0x76c   : > { %v5319_v59 = vadd.s32 3, %v5315_v49  ;;  %v5933_v51 = vmul.f32 %v5932_v14, %v5930_v61  ;;  %vm5318_vm13 = vweird.f32 %v10958_v0  ;;  %v5731_v20 = vsel %vm11584_vm12, 0, %v5729_v46 }
 0x76d   : > { %vm5734_vm4 = vweird.f32 %v11293_v4  ;;  %v5739_v10 = vxor.u32 2147483648, %v11661_v45  ;;  %v5735_v53 = vadd.s32 3, %v5731_v20  ;;  %v5742_v47 = vxor.u32 2147483648, %v6943_v52 }
 0x76e   : > { %v5320_v39 = vand.u32 3, %v5319_v59  ;;  %vm12409_vm3 = vcmp.lt.s32.totalorder %v10965_v37, 0  ;;  %v5934_v11 = vxor.u32 2147483648, %v5933_v51  ;;  %v5531_v7 = vxor.u32 2147483648, %v11517_v32  ;;  %v12420_v59 = vld [vmem:[#allocation22_spill] sm:$0xff] }
 0x76f   : > { %v5521_v33 = vsel %vm12409_vm3, %v5520_v31, %v11232_v24  ;;  %v5936_v5 = vsub.s32 4, %v11596_v54  ;;  %v5736_v50 = vand.u32 3, %v5735_v53  ;;  %v5534_v36 = vxor.u32 2147483648, %v12410_v26  ;;  %v12421_v53 = vld [vmem:[#allocation41_spill] sm:$0xff] }
 0x770   : > { %v5523_v34 = vsel %vm11419_vm15, 0, %v5521_v33  ;;  %vm5321_vm9 = vcmp.lt.s32.totalorder %v5320_v39, 2  ;;  %vm5322_vm12 = vcmp.eq.s32.totalorder %v5320_v39, 0  ;;  %vm5325_vm11 = vcmp.eq.s32.totalorder %v5320_v39, 2  ;;  %v12422_v33 = vld [vmem:[#allocation36_spill] sm:$0xff] }
 0x771   : > { %v5935_v58 = vsel %vm5852_vm10, %v5934_v11, %v5933_v51  ;;  %v5324_v57 = vsel %vm5322_vm12, %v11365_v22, %v5323_v44  ;;  %v5327_v60 = vsel %vm5325_vm11, %v5326_v21, %v11434_v62  ;;  %v5527_v24 = vadd.s32 3, %v5523_v34  ;;  %v11709_v15 = vpop.eup %6944 }
 0x772   : > { %v5938_v19 = vsel %vm11672_vm6, %v11321_v27, %v5935_v58  ;;  %v5328_v38 = vsel %vm5321_vm9, %v5324_v57, %v5327_v60  ;;  %vm5738_vm15 = vcmp.eq.s32.totalorder %v5736_v50, 0  ;;  %vm5737_vm8 = vcmp.lt.s32.totalorder %v5736_v50, 2  ;;  %v11711_v41 = vpop.eup %6946 }
 0x773   : > { %6948 = vcosq.f32 %v5938_v19  ;;  %v5740_v17 = vsel %vm5738_vm15, %v6943_v52, %v5739_v10  ;;  %vm5741_vm0 = vcmp.eq.s32.totalorder %v5736_v50, 2  ;;  %v5528_v62 = vand.u32 3, %v5527_v24  ;;  %v12419_v52 = vld [vmem:[#allocation25_spill] sm:$0xff]  ;;  %v12423_v50 = vld [vmem:[#allocation34_spill] sm:$0xff] }
 0x774   : > { %6950 = vsinq.f32 %v5938_v19  ;;  %v5743_v22 = vsel %vm5741_vm0, %v5742_v47, %v11661_v45  ;;  %v5937_v1 = vsel %vm5852_vm10, %v5936_v5, %v11596_v54  ;;  %v5216_v23 = vand.u32 3, %v12411_v29  ;;  %v12416_v45 = vld [vmem:[#allocation33_spill] sm:$0xff] }
 0x775   : > { %v5744_v2 = vsel %vm5737_vm8, %v5740_v17, %v5743_v22  ;;  %v5939_v9 = vsel %vm11672_vm6, 0, %v5937_v1  ;;  %v5219_v6 = vxor.u32 2147483648, %v12412_v16  ;;  %v12415_v56 = vsel %vm11369_vm7, 0, %v12414_v12  ;;  %v5954_v17 = vld [vmem:[%s11823_s3] sm:$0x1] }
 0x776   : > { %v5631_v43 = vadd.s32 3, %v12415_v56  ;;  %v12417_v30 = vsel %vm11440_vm5, 0, %v12416_v45  ;;  %v5329_v54 = vsel %vm5318_vm13, nan, %v5328_v38  ;;  %v5745_v25 = vsel %vm5734_vm4, nan, %v5744_v2 }
 0x777   : > { %v5839_v63 = vadd.s32 3, %v12417_v30  ;;  %v6499_v13 = vpack.c.bf16 %v5745_v25, %v5329_v54  ;;  %vm5530_vm10 = vcmp.eq.s32.totalorder %v5528_v62, 0  ;;  %vm5533_vm14 = vcmp.eq.s32.totalorder %v5528_v62, 2 }
 0x778   : > { %v5943_v8 = vadd.s32 3, %v5939_v9  ;;  %v5532_v28 = vsel %vm5530_vm10, %v12410_v26, %v5531_v7  ;;  %v5535_v35 = vsel %vm5533_vm14, %v5534_v36, %v11517_v32  ;;  %vm5214_vm7 = vweird.f32 %v12418_v18 }
 0x779   : > { %vm5218_vm2 = vcmp.eq.s32.totalorder %v5216_v23, 0  ;;  %6500 = vmatprep.subr.bf16.mxu0 %v6499_v13  ;;  %vm5529_vm5 = vcmp.lt.s32.totalorder %v5528_v62, 2  ;;  %v5222_v61 = vxor.u32 2147483648, %v12419_v52  ;;  %vm5526_vm6 = vweird.f32 %v10965_v37 }
 0x77a   : > { %v5944_v42 = vand.u32 3, %v5943_v8  ;;  %v5220_v0 = vsel %vm5218_vm2, %v12419_v52, %v5219_v6  ;;  %vm5942_vm1 = vweird.f32 %v11321_v27  ;;  %vm5221_vm13 = vcmp.eq.s32.totalorder %v5216_v23, 2 }
 0x77b   : > { %v5632_v4 = vand.u32 3, %v5631_v43  ;;  %v5635_v14 = vxor.u32 2147483648, %v11639_v40  ;;  %v5638_v32 = vxor.u32 2147483648, %v11523_v55  ;;  %v5536_v49 = vsel %vm5529_vm5, %v5532_v28, %v5535_v35 }
 0x77c   : > { %vm5217_vm4 = vcmp.lt.s32.totalorder %v5216_v23, 2  ;;  %v5223_v44 = vsel %vm5221_vm13, %v5222_v61, %v12412_v16  ;;  %vm5630_vm3 = vweird.f32 %v12420_v59  ;;  %vm5945_vm9 = vcmp.lt.s32.totalorder %v5944_v42, 2  ;;  %v12425_v23 = vld [vmem:[#allocation23_spill] sm:$0xff] }
 0x77d   : > { %v5224_v21 = vsel %vm5217_vm4, %v5220_v0, %v5223_v44  ;;  %vm5634_vm12 = vcmp.eq.s32.totalorder %v5632_v4, 0  ;;  %vm5637_vm11 = vcmp.eq.s32.totalorder %v5632_v4, 2  ;;  %v6949_v46 = vpop.eup %6948  ;;  %vm5949_vm15 = vcmp.eq.s32.totalorder %v5944_v42, 2 }
 0x77e   : > { %vm5633_vm8 = vcmp.lt.s32.totalorder %v5632_v4, 2  ;;  %v5636_v31 = vsel %vm5634_vm12, %v11523_v55, %v5635_v14  ;;  %v5639_v51 = vsel %vm5637_vm11, %v5638_v32, %v11639_v40  ;;  %v6951_v20 = vpop.eup %6950  ;;  %v5950_v10 = vxor.u32 2147483648, %v6949_v46 }
 0x77f   : > { %v5640_v39 = vsel %vm5633_vm8, %v5636_v31, %v5639_v51  ;;  %v5424_v47 = vand.u32 3, %v12421_v53  ;;  %v5427_v11 = vxor.u32 2147483648, %v12422_v33  ;;  %v5947_v34 = vxor.u32 2147483648, %v6951_v20 }
 0x780   : > { %v5225_v7 = vsel %vm5214_vm7, nan, %v5224_v21  ;;  %v5641_v5 = vsel %vm5630_vm3, nan, %v5640_v39  ;;  %v5430_v58 = vxor.u32 2147483648, %v12423_v50  ;;  %vm5946_vm0 = vcmp.eq.s32.totalorder %v5944_v42, 0 }
 0x781   : > { %v5951_v55 = vsel %vm5949_vm15, %v5950_v10, %v6951_v20  ;;  %v6501_v57 = vpack.c.bf16 %v5641_v5, %v5225_v7  ;;  %vm5426_vm10 = vcmp.eq.s32.totalorder %v5424_v47, 0  ;;  %v5948_v40 = vsel %vm5946_vm0, %v6949_v46, %v5947_v34  ;;  %v5959_v56 = vpop.permute.xlu0 %5958 }
 0x782   : > { %v5428_v60 = vsel %vm5426_vm10, %v12423_v50, %v5427_v11  ;;  %vm5429_vm14 = vcmp.eq.s32.totalorder %v5424_v47, 2  ;;  %v5840_v24 = vand.u32 3, %v5839_v63  ;;  %v5952_v19 = vsel %vm5945_vm9, %v5948_v40, %v5951_v55 }
 0x783   : > { %6502 = vmatpush1.bf16.msra.mxu0 %v6501_v57  ;;  %v5431_v38 = vsel %vm5429_vm14, %v5430_v58, %v12422_v33  ;;  %v5843_v26 = vxor.u32 2147483648, %v11711_v41  ;;  %v5846_v36 = vxor.u32 2147483648, %v11709_v15  ;;  %v5537_v22 = vsel %vm5526_vm6, nan, %v5536_v49 }
 0x784   : > { %v5953_v62 = vsel %vm5942_vm1, nan, %v5952_v19  ;;  %vm5425_vm7 = vcmp.lt.s32.totalorder %v5424_v47, 2  ;;  %vm5842_vm2 = vcmp.eq.s32.totalorder %v5840_v24, 0  ;;  %vm5845_vm5 = vcmp.eq.s32.totalorder %v5840_v24, 2 }
 0x785   : > { %v6507_v1 = vpack.c.bf16 %v5953_v62, %v5537_v22  ;;  %v5432_v2 = vsel %vm5425_vm7, %v5428_v60, %v5431_v38  ;;  %v5844_v9 = vsel %vm5842_vm2, %v11709_v15, %v5843_v26  ;;  %vm5841_vm13 = vcmp.lt.s32.totalorder %v5840_v24, 2 }
 0x786   : > { %v5847_v29 = vsel %vm5845_vm5, %v5846_v36, %v11711_v41  ;;  %vm12424_vm4 = vcmask 261120   ;;  %vm5422_vm3 = vweird.f32 %v12425_v23  ;;  %vm5838_vm6 = vweird.f32 %v11220_v48 }
 0x787   : > { %6455 = vmatmul.mubr.msk.f32.vlgmr.msra.gmra.mrb[24].mxu0 %vm12424_vm4, %v5954_v17  ;;  %6508 = vmatprep.subr.bf16.mxu1 %v6507_v1  ;;  %v5848_v37 = vsel %vm5841_vm13, %v5844_v9, %v5847_v29  ;;  %v5433_v27 = vsel %vm5422_vm3, nan, %v5432_v2  ;;  %vm12426_vm1 = vmmov %vm12424_vm4  ;;  %v12427_v3 = vlaneseq  ;;  %v7042_v8 = vmov 1966171168  }
 0x788   : > { %v5849_v16 = vsel %vm5838_vm6, nan, %v5848_v37  ;;  %v6121_v28 = vunpack.c.l.s4 %v7042_v8 }
 0x789   : > { %v6509_v6 = vpack.c.bf16 %v5849_v16, %v5433_v27  ;;  %v5962_v15 = vshrl.u32 %v12427_v3, 7  ;;  %vm6145_vm9 = vcmp.lt.s32.totalorder %v12427_v3, 512 }
 0x78a   : > { %v6122_v42 = vunpack.c.0.s8 %v6121_v28 }
 0x78b   : > { %6510 = vmatpush1.bf16.msra.mxu1 %v6509_v6  ;;  %v5963_v12 = vsub.s32 0, %v5962_v15 }
 0x78c   : > { %v6125_v0 = vsub.s32 %v6122_v42, %v5962_v15 }
 0x78d   : > { %v5964_v43 = vrot.slane %v5959_v56, %v5963_v12 }
 0x78e   : > { %6456 = vmatmul.mubr.msk.f32.vlgmr.msra.gmra.mrb[24].mxu1 %vm12426_vm1, %v5954_v17 }
 0x85a   : > { %v6034_v41 = vpop.f32.mrb[24].mxu0 }
 0x85b   : > { %v6035_v45 = vadd.f32 %v6034_v41, %v5964_v43  ;;  %v6036_v30 = vpop.f32.mrb[25].mxu0 }
 0x85c   : > { %v6037_v63 = vadd.f32 %v6036_v30, %v5964_v43 }
 0x85d   : > { %6952 = vtanh.f32 %v6035_v45 }
 0x85e   : > { %6954 = vtanh.f32 %v6037_v63 }
 0x861   : > { %v6105_v48 = vpop.f32.mrb[24].mxu1 }
 0x862   : > { %v6106_v54 = vadd.f32 %v6105_v48, %v5964_v43  ;;  %v6107_v25 = vpop.f32.mrb[25].mxu1 }
 0x863   : > { %v6108_v13 = vadd.f32 %v6107_v25, %v5964_v43 }
 0x864   : > { %6956 = vtanh.f32 %v6106_v54 }
 0x865   : > { %6958 = vtanh.f32 %v6108_v13 }
 0x867   : > { %v6953_v35 = vpop.eup %6952 }
 0x868   : > { %v6955_v18 = vpop.eup %6954 }
 0x869   : > { %v6118_v52 = vcombine.low %v6953_v35, %v6955_v18 }
 0x86b   : > { %v6126_v32 = vrot.slane %v6118_v52, %v6125_v0 }
 0x86e   : > { %v6957_v61 = vpop.eup %6956 }
 0x86f   : > { %v6959_v4 = vpop.eup %6958 }
 0x870   : > { %v6119_v14 = vcombine.low %v6957_v61, %v6959_v4 }
 0x872   : > { %v6133_v49 = vrot.slane %v6119_v14, %v6125_v0 }
 0x874   : > { %v6134_v44 = vcombine.low %v6126_v32, %v6133_v49 }
 0x876   : > { %v6141_v59 = vrot.slane %v6134_v44, %v6125_v0 }
 0x878   : > { %6147 = vst.msk [vmem:[%s204_s10] sm:$0xf] %vm6145_vm9, %v6141_v59 }
 0x879   : > { %6981 = shalt.err (!%p6978_p2)
}
 0x87a   : > { %s6982_s19 = scalar_lea.hbm %s11778_s14, 64  ;;  %s6986_s27 = scalar_lea.hbm %s11825_s5, 128 }
 0x87b   : > { %p6983_p3 = scmp.ne.s32.totalorder %s11778_s14, %s6982_s19  ;;  %p6987_p8 = scmp.lt.u32.totalorder %s11778_s14, %s11825_s5 }
 0x87c   : > { %p6988_p9 = scmp.lt.u32.totalorder %s6986_s27, %s6982_s19  ;;  %p6990_p11 = scmp.lt.u32.totalorder %s6982_s19, %s11778_s14 }
 0x87d   : > { %p6984_p4 = pnand %p6983_p3, %p7115_p5 }
 0x87e   : > { %p6989_p10 = por %p6988_p9, %p6987_p8 }
 0x87f   : > { %p6985_p7 = pneg %p6984_p4 }
 0x880   : > { %p6991_p12 = por %p6990_p11, %p6989_p10 }
 0x882   : > { %p6992_p13 = pnand %p6991_p12, %p6985_p7 }
 0x884   : > { %6995 = shalt.err (!%p6992_p13)
}
 0x885   : > { %6703 = dma.vmem_to_hbm [thread:$0]  (%p7115_p5), %s11780_s11, 64, %s11778_s14, %s6149_s15  }
 0x886 PF: > { %p6709_p0 = scmp.ge.s32.totalorder %s7030_s23, 2  ;;  %s6175_s8 = sand.u32 1, %s7018_s20  }
 0x887   : > { %s6176_s9 = scalar_lea.sflag [#allocation4], %s6175_s8 }
 0x888   : > { %p6706_p1 = pnand %p6709_p0, %p7119_p6 }
 0x88a   : > { %7013 = dma.done.wait (!%p6706_p1), %s6176_s9, 64  }
 0x88b   : > { %7015 = vsyncadd (!%p6706_p1), %s6176_s9, 4294967232  ;;  %p17_p2 = scmp.ge.s32.totalorder %s7102_s25, 4   ;;  %s12428_s20 = smov %s7022_s21 }
 0x88c   : > { %s12429_s21 = smov %s7026_s22  ;;  %s12430_s22 = smov %s7113_s28 }
 0x88d   : > { %s12431_s23 = smov %s7102_s25  ;;  %19 = sbr.rel (!%p17_p2) target bundleno = 6 (0x6), region = 73 }
 0x894   :  { %6181 = vsyncpa [#allocation4], 1 }
 0x895   :  { %6183 = vsyncpa [#allocation4 + $0x1], 1 }

</bundles_post_ra>
